<compile_context>
chip_gen: v7x
topology: tpu7x:2x2x1
jax: 0.10.0
libtpu: 0.0.40
codegen_flags: <defaults>
</compile_context>

<pallas_src>
import functools
import math

import jax
import jax.numpy as jnp
import numpy as np
from jax.experimental import pallas as pl
from jax.experimental.pallas import tpu as pltpu


# ----------------------------------------------------------------------------
# Config
# ----------------------------------------------------------------------------
CFG = dict(
    input_size=32,
    channels=[64, 64, 64, 64, 256],          # channels[-1] = 64*3 + d_model
    kernel_sizes=[5, 3, 3, 3, 1],
    dilations=[1, 2, 3, 4, 1],
    attention_channels=32,
    res2net_scale=4,
    se_channels=32,
    lin_neurons=48,
    enc=dict(d_input=64, n_layers=2, n_head=4, d_k=16, d_v=16,
             d_model=64, d_inner=48),
)
BN_EPS = 1e-5
LN_EPS = 1e-5
ASP_EPS = 1e-12

# Matmul operand dtype: set to jnp.bfloat16 on v6e/v7x to halve HBM traffic
# and feed the 256x256 bf16 MXU; float32 keeps parity with the PyTorch ref.
MXU_DTYPE = jnp.float32

ROW_TILE = 256   # row tile for the grid-over-M kernels (only used for big M)


def _row_tiles(M, tm=ROW_TILE):
    if M <= tm:
        return M, 1
    return tm, pl.cdiv(M, tm)


def _apply_act(y, act):
    if act == "relu":
        return jnp.maximum(y, 0.0)
    if act == "tanh":
        return jnp.tanh(y)
    if act == "sigmoid":
        return jax.nn.sigmoid(y)
    return y


def _bn_fold(bn):
    sc = bn["gamma"] / jnp.sqrt(bn["var"] + BN_EPS)
    sh = bn["beta"] - bn["mean"] * sc
    return sc, sh


# ----------------------------------------------------------------------------
# Kernel 1: fused matmul + bias + activation + per-channel affine
#   out = act(A @ W + b) * scale + shift        (every k=1 conv / linear)
# ----------------------------------------------------------------------------
def _mm_kernel(a_ref, w_ref, b_ref, s_ref, t_ref, o_ref, *, act):
    y = jnp.dot(a_ref[...], w_ref[...],
                preferred_element_type=jnp.float32) + b_ref[...]
    y = _apply_act(y, act)
    o_ref[...] = y * s_ref[...] + t_ref[...]


def matmul_act(A, W, b=None, scale=None, shift=None, act="none"):
    """A: (M, K), W: (K, N) -> (M, N) float32."""
    M, K = A.shape
    K2, N = W.shape
    assert K == K2
    if b is None:
        b = jnp.zeros((N,), jnp.float32)
    if scale is None:
        scale = jnp.ones((N,), jnp.float32)
    if shift is None:
        shift = jnp.zeros((N,), jnp.float32)
    b2 = b.reshape(1, N).astype(jnp.float32)
    s2 = scale.reshape(1, N).astype(jnp.float32)
    t2 = shift.reshape(1, N).astype(jnp.float32)
    TM, gm = _row_tiles(M)
    return pl.pallas_call(
        functools.partial(_mm_kernel, act=act),
        out_shape=jax.ShapeDtypeStruct((M, N), jnp.float32),
        grid=(gm,),
        in_specs=[
            pl.BlockSpec((TM, K), lambda i: (i, 0)),
            pl.BlockSpec((K, N), lambda i: (0, 0)),
            pl.BlockSpec((1, N), lambda i: (0, 0)),
            pl.BlockSpec((1, N), lambda i: (0, 0)),
            pl.BlockSpec((1, N), lambda i: (0, 0)),
        ],
        out_specs=pl.BlockSpec((TM, N), lambda i: (i, 0)),
        compiler_params=pltpu.CompilerParams(
            dimension_semantics=("parallel",)),
    )(A.astype(MXU_DTYPE), W.astype(MXU_DTYPE), b2, s2, t2)


# ----------------------------------------------------------------------------
# Kernel 2: fused dilated conv (k taps accumulated in VMEM, no im2col)
#   per-batch program:  y = act(sum_j x[t+j*d] @ W_j + b) * scale + shift
# ----------------------------------------------------------------------------
def _conv_tap_kernel(xp_ref, w_ref, b_ref, s_ref, t_ref, o_ref,
                     *, k, dilation, L, Cin, act):
    x = xp_ref[0]                                     # (Lp, Cin)
    w = w_ref[...]                                    # (k*Cin, Cout)
    acc = jnp.dot(x[0:L, :], w[0:Cin, :], preferred_element_type=jnp.float32)
    for j in range(1, k):
        off = j * dilation
        acc = acc + jnp.dot(x[off:off + L, :], w[j * Cin:(j + 1) * Cin, :],
                            preferred_element_type=jnp.float32)
    y = _apply_act(acc + b_ref[...], act)
    o_ref[0] = y * s_ref[...] + t_ref[...]


def conv1d_cl(x, w, b, dilation=1, scale=None, shift=None, act="none"):
    """Channels-last 'same' conv. x: (B, L, Cin); w: (Cout, Cin, k)."""
    B, L, Cin = x.shape
    Cout, _, k = w.shape
    if scale is None:
        scale = jnp.ones((Cout,), jnp.float32)
    if shift is None:
        shift = jnp.zeros((Cout,), jnp.float32)
    if k == 1:                                        # pointwise -> matmul
        y = matmul_act(x.reshape(B * L, Cin), w[:, :, 0].T, b,
                       scale=scale, shift=shift, act=act)
        return y.reshape(B, L, Cout)

    pad = dilation * (k - 1) // 2
    xp = jnp.pad(x, ((0, 0), (pad, pad), (0, 0)), mode="reflect")
    Lp = L + 2 * pad
    Wt = jnp.transpose(w, (2, 1, 0)).reshape(k * Cin, Cout)   # taps stacked
    b2 = b.reshape(1, Cout).astype(jnp.float32)
    s2 = scale.reshape(1, Cout).astype(jnp.float32)
    t2 = shift.reshape(1, Cout).astype(jnp.float32)
    # TODO(synk): for the 7000-frame path this per-batch full-sequence tile
    # should be split into time tiles with halos; fine at test shapes.
    return pl.pallas_call(
        functools.partial(_conv_tap_kernel, k=k, dilation=dilation,
                          L=L, Cin=Cin, act=act),
        out_shape=jax.ShapeDtypeStruct((B, L, Cout), jnp.float32),
        grid=(B,),
        in_specs=[
            pl.BlockSpec((1, Lp, Cin), lambda i: (i, 0, 0)),
            pl.BlockSpec((k * Cin, Cout), lambda i: (0, 0)),
            pl.BlockSpec((1, Cout), lambda i: (0, 0)),
            pl.BlockSpec((1, Cout), lambda i: (0, 0)),
            pl.BlockSpec((1, Cout), lambda i: (0, 0)),
        ],
        out_specs=pl.BlockSpec((1, L, Cout), lambda i: (i, 0, 0)),
        compiler_params=pltpu.CompilerParams(
            dimension_semantics=("parallel",)),
    )(xp.astype(MXU_DTYPE), Wt.astype(MXU_DTYPE), b2, s2, t2)


def tdnn_block(p, x, dilation):
    """TDNNBlock: BN(ReLU(conv(x))) with BN folded into the conv epilogue."""
    sc, sh = _bn_fold(p["bn"])
    return conv1d_cl(x, p["conv"]["w"], p["conv"]["b"], dilation,
                     scale=sc, shift=sh, act="relu")


# ----------------------------------------------------------------------------
# Kernel 3: fused SERes2Net tail:
#   tdnn2 (k=1 conv + ReLU + BN)  ->  SE (squeeze mean, 2 matmuls, sigmoid,
#   excite mul)  ->  + residual,  all in one per-batch program.
# ----------------------------------------------------------------------------
def _tdnn2_se_res_kernel(x_ref, w_ref, b_ref, s_ref, t_ref,
                         w1_ref, b1_ref, w2_ref, b2_ref, r_ref, o_ref):
    x = x_ref[0]                                      # (L, C) res2net output
    h = jnp.dot(x, w_ref[...], preferred_element_type=jnp.float32) + b_ref[...]
    h = jnp.maximum(h, 0.0) * s_ref[...] + t_ref[...]  # tdnn2: ReLU then BN
    sq = jnp.mean(h, axis=0, keepdims=True)            # squeeze (lengths=None)
    a = jnp.maximum(jnp.dot(sq, w1_ref[...],
                            preferred_element_type=jnp.float32) + b1_ref[...],
                    0.0)
    g = jax.nn.sigmoid(jnp.dot(a, w2_ref[...],
                               preferred_element_type=jnp.float32) + b2_ref[...])
    o_ref[0] = h * g + r_ref[0]                        # excite + residual


def tdnn2_se_residual(tdnn2, se, x, residual):
    B, L, C = x.shape
    se_ch = se["conv1"]["w"].shape[0]
    w = tdnn2["conv"]["w"][:, :, 0].T.astype(jnp.float32)       # (C, C)
    b = tdnn2["conv"]["b"].reshape(1, C).astype(jnp.float32)
    s, t = _bn_fold(tdnn2["bn"])
    s = s.reshape(1, C).astype(jnp.float32)
    t = t.reshape(1, C).astype(jnp.float32)
    w1 = se["conv1"]["w"][:, :, 0].T.astype(jnp.float32)        # (C, se)
    b1 = se["conv1"]["b"].reshape(1, se_ch).astype(jnp.float32)
    w2 = se["conv2"]["w"][:, :, 0].T.astype(jnp.float32)        # (se, C)
    b2 = se["conv2"]["b"].reshape(1, C).astype(jnp.float32)
    return pl.pallas_call(
        _tdnn2_se_res_kernel,
        out_shape=jax.ShapeDtypeStruct((B, L, C), jnp.float32),
        grid=(B,),
        in_specs=[
            pl.BlockSpec((1, L, C), lambda i: (i, 0, 0)),
            pl.BlockSpec((C, C), lambda i: (0, 0)),
            pl.BlockSpec((1, C), lambda i: (0, 0)),
            pl.BlockSpec((1, C), lambda i: (0, 0)),
            pl.BlockSpec((1, C), lambda i: (0, 0)),
            pl.BlockSpec((C, se_ch), lambda i: (0, 0)),
            pl.BlockSpec((1, se_ch), lambda i: (0, 0)),
            pl.BlockSpec((se_ch, C), lambda i: (0, 0)),
            pl.BlockSpec((1, C), lambda i: (0, 0)),
            pl.BlockSpec((1, L, C), lambda i: (i, 0, 0)),
        ],
        out_specs=pl.BlockSpec((1, L, C), lambda i: (i, 0, 0)),
        compiler_params=pltpu.CompilerParams(
            dimension_semantics=("parallel",)),
    )(x.astype(MXU_DTYPE), w.astype(MXU_DTYPE), b, s, t,
      w1, b1, w2, b2, residual.astype(jnp.float32))


def res2net_block(p, x, scale, dilation):
    B, L, C = x.shape
    chunk = C // scale
    y = [x[..., :chunk]]
    y_i = None
    for i in range(1, scale):
        x_i = x[..., i * chunk:(i + 1) * chunk]
        inp = x_i if i == 1 else x_i + y_i
        y_i = tdnn_block(p["blocks"][i - 1], inp, dilation)
        y.append(y_i)
    return jnp.concatenate(y, axis=-1)


def se_res2net_block(p, x, dilation, scale):
    residual = x                               # in_channels == out_channels
    h = tdnn_block(p["tdnn1"], x, 1)
    h = res2net_block(p["res2net"], h, scale, dilation)
    return tdnn2_se_residual(p["tdnn2"], p["se"], h, residual)


# ----------------------------------------------------------------------------
# Kernel 4: scaled-dot-product attention, all (batch*heads) in one program
# (lengths are full -> no mask).
# ----------------------------------------------------------------------------
def _attn_kernel(q_ref, k_ref, v_ref, o_ref, *, scale):
    q = q_ref[...]
    k = k_ref[...]
    v = v_ref[...]
    s = jnp.einsum("bqd,bkd->bqk", q, k,
                   preferred_element_type=jnp.float32) * scale
    s = s - jnp.max(s, axis=-1, keepdims=True)
    p = jnp.exp(s)
    p = p / jnp.sum(p, axis=-1, keepdims=True)
    o_ref[...] = jnp.einsum("bqk,bkd->bqd", p, v,
                            preferred_element_type=jnp.float32)


def attention_pallas(q, k, v, scale):
    # TODO(synk): tile flash-style over (BH, q) for the 7000-frame path; a
    # single whole-batch program is fastest at these sizes (tens of KB).
    BH, T, dk = q.shape
    dv = v.shape[-1]
    return pl.pallas_call(
        functools.partial(_attn_kernel, scale=scale),
        out_shape=jax.ShapeDtypeStruct((BH, T, dv), jnp.float32),
    )(q.astype(jnp.float32), k.astype(jnp.float32), v.astype(jnp.float32))


# ----------------------------------------------------------------------------
# Kernel 5: fused projection + residual + LayerNorm (attention output path)
# Kernel 6: fused FFN (2 matmuls + ReLU) + residual + LayerNorm
# Kernel 7: fused linear_in + LayerNorm + positional-encoding add
# ----------------------------------------------------------------------------
def _proj_res_ln_kernel(h_ref, w_ref, b_ref, r_ref, g_ref, be_ref, o_ref, *, eps):
    y = (jnp.dot(h_ref[...], w_ref[...], preferred_element_type=jnp.float32)
         + b_ref[...] + r_ref[...])
    mu = jnp.mean(y, axis=-1, keepdims=True)
    var = jnp.mean((y - mu) ** 2, axis=-1, keepdims=True)
    o_ref[...] = (y - mu) * jax.lax.rsqrt(var + eps) * g_ref[...] + be_ref[...]


def proj_residual_ln(h, w, b, res, gamma, beta, eps=LN_EPS):
    M, K = h.shape
    D = w.shape[1]
    TM, gm = _row_tiles(M)
    return pl.pallas_call(
        functools.partial(_proj_res_ln_kernel, eps=eps),
        out_shape=jax.ShapeDtypeStruct((M, D), jnp.float32),
        grid=(gm,),
        in_specs=[
            pl.BlockSpec((TM, K), lambda i: (i, 0)),
            pl.BlockSpec((K, D), lambda i: (0, 0)),
            pl.BlockSpec((1, D), lambda i: (0, 0)),
            pl.BlockSpec((TM, D), lambda i: (i, 0)),
            pl.BlockSpec((1, D), lambda i: (0, 0)),
            pl.BlockSpec((1, D), lambda i: (0, 0)),
        ],
        out_specs=pl.BlockSpec((TM, D), lambda i: (i, 0)),
        compiler_params=pltpu.CompilerParams(
            dimension_semantics=("parallel",)),
    )(h.astype(jnp.float32), w.astype(jnp.float32),
      b.reshape(1, D).astype(jnp.float32), res.astype(jnp.float32),
      gamma.reshape(1, D).astype(jnp.float32),
      beta.reshape(1, D).astype(jnp.float32))


def _ffn_kernel(x_ref, w1_ref, b1_ref, w2_ref, b2_ref, g_ref, be_ref, o_ref, *, eps):
    x = x_ref[...]
    h = jnp.maximum(jnp.dot(x, w1_ref[...],
                            preferred_element_type=jnp.float32) + b1_ref[...],
                    0.0)
    y = (jnp.dot(h, w2_ref[...], preferred_element_type=jnp.float32)
         + b2_ref[...] + x)
    mu = jnp.mean(y, axis=-1, keepdims=True)
    var = jnp.mean((y - mu) ** 2, axis=-1, keepdims=True)
    o_ref[...] = (y - mu) * jax.lax.rsqrt(var + eps) * g_ref[...] + be_ref[...]


def ffn_residual_ln(x2, w1, b1, w2, b2, gamma, beta, eps=LN_EPS):
    M, D = x2.shape
    dI = w1.shape[1]
    TM, gm = _row_tiles(M)
    return pl.pallas_call(
        functools.partial(_ffn_kernel, eps=eps),
        out_shape=jax.ShapeDtypeStruct((M, D), jnp.float32),
        grid=(gm,),
        in_specs=[
            pl.BlockSpec((TM, D), lambda i: (i, 0)),
            pl.BlockSpec((D, dI), lambda i: (0, 0)),
            pl.BlockSpec((1, dI), lambda i: (0, 0)),
            pl.BlockSpec((dI, D), lambda i: (0, 0)),
            pl.BlockSpec((1, D), lambda i: (0, 0)),
            pl.BlockSpec((1, D), lambda i: (0, 0)),
            pl.BlockSpec((1, D), lambda i: (0, 0)),
        ],
        out_specs=pl.BlockSpec((TM, D), lambda i: (i, 0)),
        compiler_params=pltpu.CompilerParams(
            dimension_semantics=("parallel",)),
    )(x2.astype(jnp.float32), w1.astype(jnp.float32),
      b1.reshape(1, dI).astype(jnp.float32), w2.astype(jnp.float32),
      b2.reshape(1, D).astype(jnp.float32),
      gamma.reshape(1, D).astype(jnp.float32),
      beta.reshape(1, D).astype(jnp.float32))


def _linear_ln_pe_kernel(x_ref, w_ref, b_ref, g_ref, be_ref, pe_ref, o_ref, *, eps):
    y = (jnp.dot(x_ref[...], w_ref[...], preferred_element_type=jnp.float32)
         + b_ref[...])
    mu = jnp.mean(y, axis=-1, keepdims=True)
    var = jnp.mean((y - mu) ** 2, axis=-1, keepdims=True)
    o_ref[...] = ((y - mu) * jax.lax.rsqrt(var + eps) * g_ref[...]
                  + be_ref[...] + pe_ref[...])


def linear_ln_pe(x2, w, b, gamma, beta, pe, eps=LN_EPS):
    M, K = x2.shape
    D = w.shape[1]
    TM, gm = _row_tiles(M)
    return pl.pallas_call(
        functools.partial(_linear_ln_pe_kernel, eps=eps),
        out_shape=jax.ShapeDtypeStruct((M, D), jnp.float32),
        grid=(gm,),
        in_specs=[
            pl.BlockSpec((TM, K), lambda i: (i, 0)),
            pl.BlockSpec((K, D), lambda i: (0, 0)),
            pl.BlockSpec((1, D), lambda i: (0, 0)),
            pl.BlockSpec((1, D), lambda i: (0, 0)),
            pl.BlockSpec((1, D), lambda i: (0, 0)),
            pl.BlockSpec((TM, D), lambda i: (i, 0)),
        ],
        out_specs=pl.BlockSpec((TM, D), lambda i: (i, 0)),
        compiler_params=pltpu.CompilerParams(
            dimension_semantics=("parallel",)),
    )(x2.astype(MXU_DTYPE), w.astype(MXU_DTYPE),
      b.reshape(1, D).astype(jnp.float32),
      gamma.reshape(1, D).astype(jnp.float32),
      beta.reshape(1, D).astype(jnp.float32), pe.astype(jnp.float32))


# ----------------------------------------------------------------------------
# Transformer encoder (lengths are full -> pad masks are identity)
# ----------------------------------------------------------------------------
def sinusoid_pe(T, d_model):
    pos = np.arange(T, dtype=np.float32)[:, None]
    div = np.exp(np.arange(0, d_model, 2, dtype=np.float32)
                 * -(math.log(10000.0) / d_model))
    pe = np.zeros((T, d_model), np.float32)
    pe[:, 0::2] = np.sin(pos * div)
    pe[:, 1::2] = np.cos(pos * div)
    return jnp.asarray(pe)


def mha_forward(lp, x, e):
    B, T, D = x.shape
    H, dk, dv = e["n_head"], e["d_k"], e["d_v"]
    x2 = x.reshape(B * T, D)
    # fused Q/K/V projection: one lane-dense matmul (D -> 2*H*dk + H*dv)
    wqkv = jnp.concatenate([lp["wq"]["w"].T, lp["wk"]["w"].T, lp["wv"]["w"].T],
                           axis=1)
    bqkv = jnp.concatenate([lp["wq"]["b"], lp["wk"]["b"], lp["wv"]["b"]], axis=0)
    qkv = matmul_act(x2, wqkv, bqkv)
    nq = H * dk
    q = qkv[:, :nq].reshape(B, T, H, dk)
    k = qkv[:, nq:2 * nq].reshape(B, T, H, dk)
    v = qkv[:, 2 * nq:].reshape(B, T, H, dv)
    q = q.transpose(2, 0, 1, 3).reshape(H * B, T, dk)
    k = k.transpose(2, 0, 1, 3).reshape(H * B, T, dk)
    v = v.transpose(2, 0, 1, 3).reshape(H * B, T, dv)
    o = attention_pallas(q, k, v, 1.0 / math.sqrt(dk))
    o = o.reshape(H, B, T, dv).transpose(1, 2, 0, 3).reshape(B * T, H * dv)
    y = proj_residual_ln(o, lp["fc"]["w"].T, lp["fc"]["b"], x2,
                         lp["ln_attn"]["gamma"], lp["ln_attn"]["beta"])
    return y.reshape(B, T, D)


def ffn_forward(lp, x):
    B, T, D = x.shape
    y = ffn_residual_ln(x.reshape(B * T, D),
                        lp["w1"]["w"].T, lp["w1"]["b"],
                        lp["w2"]["w"].T, lp["w2"]["b"],
                        lp["ln_ffn"]["gamma"], lp["ln_ffn"]["beta"])
    return y.reshape(B, T, D)


def encoder_forward(p, x, e):
    B, T, Din = x.shape
    D = e["d_model"]
    pe = jnp.broadcast_to(sinusoid_pe(T, D)[None], (B, T, D)).reshape(B * T, D)
    h = linear_ln_pe(x.reshape(B * T, Din), p["linear_in"]["w"].T,
                     p["linear_in"]["b"], p["ln_in"]["gamma"],
                     p["ln_in"]["beta"], pe).reshape(B, T, D)
    for lp in p["layers"]:                       # dropout = identity (eval)
        h = mha_forward(lp, h, e)
        h = ffn_forward(lp, h)
    return h


# ----------------------------------------------------------------------------
# Kernel 8: fully fused MFA + AttentiveStatisticsPooling + asp_bn.
# One program per batch element.  The concat of the 4 backbone branches is
# never materialized (the MFA weight is split per-branch and accumulated in
# VMEM), the (B,T,256) mfa intermediate never touches HBM, and the
# concat(x, mean, std) input of the TDNN heads is also virtual (the TDNN
# weight is split into [Wx; Wm; Ws] so mean/std become a per-batch bias).
# ----------------------------------------------------------------------------
def _mfa_asp_kernel(x1_ref, x2_ref, x3_ref, x4_ref,
                    wm_ref, bm_ref, sm_ref, tm_ref,
                    w3a_ref, ba_ref, sa_ref, ta_ref, wca_ref, bca_ref,
                    w3b_ref, bb_ref, sb_ref, tb_ref, wcb_ref, bcb_ref,
                    bn_s_ref, bn_t_ref, o_ref, *, C, splits, eps):
    # ---- mfa: pointwise conv over the virtual concat of the 4 branches ----
    wm = wm_ref[...]                                       # (sum(splits), C)
    acc = None
    off = 0
    for xr, kk in zip((x1_ref, x2_ref, x3_ref, x4_ref), splits):
        part = jnp.dot(xr[0], wm[off:off + kk, :],
                       preferred_element_type=jnp.float32)
        acc = part if acc is None else acc + part
        off += kk
    x = jnp.maximum(acc + bm_ref[...], 0.0) * sm_ref[...] + tm_ref[...]  # (L,C)

    # ---- attentive statistics pooling (global_context, lengths=None) ----
    mean_g = jnp.mean(x, axis=0, keepdims=True)            # uniform 1/L weights
    var_g = jnp.mean((x - mean_g) ** 2, axis=0, keepdims=True)
    std_g = jnp.sqrt(jnp.maximum(var_g, eps))

    def head(w3, b, s, t, wc, bc):
        h = (jnp.dot(x, w3[0:C, :], preferred_element_type=jnp.float32)
             + jnp.dot(mean_g, w3[C:2 * C, :], preferred_element_type=jnp.float32)
             + jnp.dot(std_g, w3[2 * C:3 * C, :], preferred_element_type=jnp.float32)
             + b)
        h = jnp.maximum(h, 0.0) * s + t                    # ReLU then folded BN
        h = jnp.tanh(h)
        logits = jnp.dot(h, wc, preferred_element_type=jnp.float32) + bc  # (L, C)
        logits = logits - jnp.max(logits, axis=0, keepdims=True)
        e = jnp.exp(logits)
        w = e / jnp.sum(e, axis=0, keepdims=True)          # softmax over time
        m = jnp.sum(w * x, axis=0, keepdims=True)
        v = jnp.sum(w * (x - m) ** 2, axis=0, keepdims=True)
        return m, jnp.sqrt(jnp.maximum(v, eps))

    m1, s1 = head(w3a_ref[...], ba_ref[...], sa_ref[...], ta_ref[...],
                  wca_ref[...], bca_ref[...])
    m2, s2 = head(w3b_ref[...], bb_ref[...], sb_ref[...], tb_ref[...],
                  wcb_ref[...], bcb_ref[...])
    g = bn_s_ref[...]
    h_ = bn_t_ref[...]
    # pooled = [mean1, mean2, std1, std2] with asp_bn affine folded in
    o_ref[0, :, 0:C] = m1 * g[:, 0:C] + h_[:, 0:C]
    o_ref[0, :, C:2 * C] = m2 * g[:, C:2 * C] + h_[:, C:2 * C]
    o_ref[0, :, 2 * C:3 * C] = s1 * g[:, 2 * C:3 * C] + h_[:, 2 * C:3 * C]
    o_ref[0, :, 3 * C:4 * C] = s2 * g[:, 3 * C:4 * C] + h_[:, 3 * C:4 * C]


def mfa_asp_forward(mfa_p, asp_p, bn4, branches):
    """branches: list of 4 (B, L, Ci) arrays -> pooled (B, 4C), asp_bn folded."""
    B, L, _ = branches[0].shape
    splits = tuple(b.shape[-1] for b in branches)
    Ktot = sum(splits)
    C = mfa_p["conv"]["w"].shape[0]
    att = asp_p["conv1"]["w"].shape[1]

    wm = mfa_p["conv"]["w"][:, :, 0].T.astype(jnp.float32)        # (Ktot, C)
    bm = mfa_p["conv"]["b"].reshape(1, C).astype(jnp.float32)
    sm, tm_ = _bn_fold(mfa_p["bn"])
    sm = sm.reshape(1, C).astype(jnp.float32)
    tm_ = tm_.reshape(1, C).astype(jnp.float32)

    def head_params(tdnn, conv):
        w3 = tdnn["conv"]["w"][:, :, 0].T.astype(jnp.float32)     # (3C, att)
        b = tdnn["conv"]["b"].reshape(1, att).astype(jnp.float32)
        s, t = _bn_fold(tdnn["bn"])
        wc = conv["w"][:, :, 0].T.astype(jnp.float32)             # (att, C)
        bc = conv["b"].reshape(1, C).astype(jnp.float32)
        return (w3, b, s.reshape(1, att).astype(jnp.float32),
                t.reshape(1, att).astype(jnp.float32), wc, bc)

    h1 = head_params(asp_p["tdnn1"], asp_p["conv1"])
    h2 = head_params(asp_p["tdnn2"], asp_p["conv2"])
    bn_s, bn_t = _bn_fold(bn4)
    bn_s = bn_s.reshape(1, 4 * C).astype(jnp.float32)
    bn_t = bn_t.reshape(1, 4 * C).astype(jnp.float32)

    x_specs = [pl.BlockSpec((1, L, k), lambda i: (i, 0, 0)) for k in splits]
    wspec = pl.BlockSpec((3 * C, att), lambda i: (0, 0))
    aspec = pl.BlockSpec((1, att), lambda i: (0, 0))
    cspec = pl.BlockSpec((att, C), lambda i: (0, 0))
    bspec = pl.BlockSpec((1, C), lambda i: (0, 0))
    head_specs = [wspec, aspec, aspec, aspec, cspec, bspec]

    # TODO(synk): for the 7000-frame path split the time axis into tiles with
    # a two-pass (stats then weighted-sum) schedule; single tile is fine here.
    pooled = pl.pallas_call(
        functools.partial(_mfa_asp_kernel, C=C, splits=splits, eps=ASP_EPS),
        out_shape=jax.ShapeDtypeStruct((B, 1, 4 * C), jnp.float32),
        grid=(B,),
        in_specs=(x_specs
                  + [pl.BlockSpec((Ktot, C), lambda i: (0, 0)),
                     bspec, bspec, bspec]
                  + head_specs + head_specs
                  + [pl.BlockSpec((1, 4 * C), lambda i: (0, 0)),
                     pl.BlockSpec((1, 4 * C), lambda i: (0, 0))]),
        out_specs=pl.BlockSpec((1, 1, 4 * C), lambda i: (i, 0, 0)),
        compiler_params=pltpu.CompilerParams(
            dimension_semantics=("parallel",)),
    )(*[b.astype(MXU_DTYPE) for b in branches], wm.astype(MXU_DTYPE),
      bm, sm, tm_, *h1, *h2, bn_s, bn_t)
    return pooled.reshape(B, 4 * C)


# ----------------------------------------------------------------------------
# Full MACCIF forward (channels-last layout end-to-end)
# ----------------------------------------------------------------------------
def maccif_forward(params, x, cfg):
    """x: (batch, time, input_size) -> (batch, 1, lin_neurons)."""
    dil = cfg["dilations"]
    if x.shape[1] >= 7000:
        x = x[:, :7000, :]

    xl = []
    h = tdnn_block(params["block0"], x, dil[0])
    xl.append(h)
    for i in range(1, 4):
        h = se_res2net_block(params[f"block{i}"], h, dil[i],
                             cfg["res2net_scale"])
        xl.append(h)

    xe = encoder_forward(params["tencoder"], xl[-1], cfg["enc"])
    xl.append(xe)

    # MFA (k=1 conv over the virtual concat of xl[1:]) + ASP + asp_bn, fused.
    pooled = mfa_asp_forward(params["mfa"], params["asp"], params["asp_bn"],
                             xl[1:])
    # final fc (k=1 conv == linear) on M=batch rows: plain JAX (launch
    # overhead would exceed the compute).
    emb = pooled @ params["fc"]["w"][:, :, 0].T + params["fc"]["b"]
    return emb[:, None, :]                             # (B, 1, lin_neurons)


# ----------------------------------------------------------------------------
# Deterministic parameter init
# ----------------------------------------------------------------------------
def init_conv(key, cout, cin, k):
    k1, k2 = jax.random.split(key)
    w = jax.random.normal(k1, (cout, cin, k), jnp.float32) / jnp.sqrt(cin * k)
    b = 0.01 * jax.random.normal(k2, (cout,), jnp.float32)
    return dict(w=w, b=b)


def init_bn(key, c):
    k1, k2, k3, k4 = jax.random.split(key, 4)
    return dict(gamma=1.0 + 0.1 * jax.random.normal(k1, (c,), jnp.float32),
                beta=0.1 * jax.random.normal(k2, (c,), jnp.float32),
                mean=0.1 * jax.random.normal(k3, (c,), jnp.float32),
                var=jax.random.uniform(k4, (c,), jnp.float32, 0.5, 1.5))


def init_linear(key, din, dout):
    k1, k2 = jax.random.split(key)
    w = jax.random.normal(k1, (dout, din), jnp.float32) / jnp.sqrt(din)
    b = 0.01 * jax.random.normal(k2, (dout,), jnp.float32)
    return dict(w=w, b=b)


def init_ln(key, d):
    del key
    return dict(gamma=jnp.ones((d,), jnp.float32),
                beta=jnp.zeros((d,), jnp.float32))


def init_tdnn(key, cin, cout, k):
    k1, k2 = jax.random.split(key)
    return dict(conv=init_conv(k1, cout, cin, k), bn=init_bn(k2, cout))


def init_se_res2net(key, cin, cout, scale, se_ch, ksize):
    ks = jax.random.split(key, 4 + (scale - 1))
    return dict(
        tdnn1=init_tdnn(ks[0], cin, cout, 1),
        tdnn2=init_tdnn(ks[1], cout, cout, 1),
        res2net=dict(blocks=[init_tdnn(ks[4 + i], cout // scale,
                                       cout // scale, ksize)
                             for i in range(scale - 1)]),
        se=dict(conv1=init_conv(ks[2], se_ch, cout, 1),
                conv2=init_conv(ks[3], cout, se_ch, 1)),
    )


def init_encoder(key, e):
    ks = jax.random.split(key, 2 + e["n_layers"])
    layers = []
    for i in range(e["n_layers"]):
        lk = jax.random.split(ks[2 + i], 8)
        layers.append(dict(
            wq=init_linear(lk[0], e["d_model"], e["n_head"] * e["d_k"]),
            wk=init_linear(lk[1], e["d_model"], e["n_head"] * e["d_k"]),
            wv=init_linear(lk[2], e["d_model"], e["n_head"] * e["d_v"]),
            fc=init_linear(lk[3], e["n_head"] * e["d_v"], e["d_model"]),
            ln_attn=init_ln(lk[4], e["d_model"]),
            w1=init_linear(lk[5], e["d_model"], e["d_inner"]),
            w2=init_linear(lk[6], e["d_inner"], e["d_model"]),
            ln_ffn=init_ln(lk[7], e["d_model"]),
        ))
    return dict(linear_in=init_linear(ks[0], e["d_input"], e["d_model"]),
                ln_in=init_ln(ks[1], e["d_model"]),
                layers=layers)


def init_asp(key, C, att_ch):
    ks = jax.random.split(key, 4)
    return dict(tdnn1=init_tdnn(ks[0], 3 * C, att_ch, 1),
                tdnn2=init_tdnn(ks[1], 3 * C, att_ch, 1),
                conv1=init_conv(ks[2], C, att_ch, 1),
                conv2=init_conv(ks[3], C, att_ch, 1))


def init_params(key, cfg):
    C, ks_ = cfg["channels"], cfg["kernel_sizes"]
    keys = jax.random.split(key, 10)
    p = dict()
    p["block0"] = init_tdnn(keys[0], cfg["input_size"], C[0], ks_[0])
    for i in range(1, 4):
        p[f"block{i}"] = init_se_res2net(keys[i], C[i - 1], C[i],
                                         cfg["res2net_scale"],
                                         cfg["se_channels"], ks_[i])
    p["tencoder"] = init_encoder(keys[4], cfg["enc"])
    cat_ch = C[1] + C[2] + C[3] + cfg["enc"]["d_model"]
    p["mfa"] = init_tdnn(keys[5], cat_ch, C[-1], ks_[-1])
    p["asp"] = init_asp(keys[6], C[-1], cfg["attention_channels"])
    p["asp_bn"] = init_bn(keys[7], C[-1] * 4)
    p["fc"] = init_conv(keys[8], cfg["lin_neurons"], C[-1] * 4, 1)
    return p


# ----------------------------------------------------------------------------
if __name__ == "__main__":
    key = jax.random.PRNGKey(0)
    pkey, xkey = jax.random.split(key)
    params = init_params(pkey, CFG)

    B, T = 2, 16
    x = jax.random.normal(xkey, (B, T, CFG["input_size"]), jnp.float32)

    fwd = jax.jit(lambda p, inp: maccif_forward(p, inp, CFG))
    out = jax.block_until_ready(fwd(params, x))

    assert out.shape == (B, 1, CFG["lin_neurons"]), out.shape
    assert bool(jnp.all(jnp.isfinite(out)))
    print("KERNEL_OK")
</pallas_src>

<mosaic_0001>
module attributes {stable_mosaic.version = 11 : i64} {
  func.func @_conv_tap_kernel(%arg0: i32, %arg1: memref<1x20x32xf32, #tpu.memory_space<vmem>>, %arg2: memref<160x64xf32, #tpu.memory_space<vmem>>, %arg3: memref<1x64xf32, #tpu.memory_space<vmem>>, %arg4: memref<1x64xf32, #tpu.memory_space<vmem>>, %arg5: memref<1x64xf32, #tpu.memory_space<vmem>>, %arg6: memref<1x16x64xf32, #tpu.memory_space<vmem>>) attributes {dimension_semantics = [#tpu.dimension_semantics<parallel>], iteration_bounds = array<i64: 2>, scalar_prefetch = 0 : i64, scratch_operands = 0 : i64, tpu.core_type = #tpu.core_type<tc>, window_params = [{transform_indices = @transform_0, window_bounds = array<i64: 1, 20, 32>}, {pipeline_mode = #tpu.pipeline_mode<synchronous>, transform_indices = @transform_1, window_bounds = array<i64: 160, 64>}, {pipeline_mode = #tpu.pipeline_mode<synchronous>, transform_indices = @transform_2, window_bounds = array<i64: 1, 64>}, {pipeline_mode = #tpu.pipeline_mode<synchronous>, transform_indices = @transform_3, window_bounds = array<i64: 1, 64>}, {pipeline_mode = #tpu.pipeline_mode<synchronous>, transform_indices = @transform_4, window_bounds = array<i64: 1, 64>}, {transform_indices = @transform_5, window_bounds = array<i64: 1, 16, 64>}]} {
    %c0 = arith.constant 0 : index
    %c0_0 = arith.constant 0 : index
    %c0_1 = arith.constant 0 : index
    %0 = vector.load %arg1[%c0, %c0_0, %c0_1] : memref<1x20x32xf32, #tpu.memory_space<vmem>>, vector<1x20x32xf32>
    %1 = vector.shape_cast %0 : vector<1x20x32xf32> to vector<20x32xf32>
    %c0_2 = arith.constant 0 : index
    %c0_3 = arith.constant 0 : index
    %2 = vector.load %arg2[%c0_2, %c0_3] : memref<160x64xf32, #tpu.memory_space<vmem>>, vector<160x64xf32>
    %3 = vector.extract_strided_slice %1 {offsets = [0, 0], sizes = [16, 32], strides = [1, 1]} : vector<20x32xf32> to vector<16x32xf32>
    %4 = vector.extract_strided_slice %2 {offsets = [0, 0], sizes = [32, 64], strides = [1, 1]} : vector<160x64xf32> to vector<32x64xf32>
    %cst = arith.constant dense<0.000000e+00> : vector<16x64xf32>
    %5 = tpu.matmul %3, %4, %cst {dimension_numbers = #tpu.dot_dimension_numbers<[1], [0], [0], [1], [0, 0, 1, 1], [], []>} : vector<16x32xf32>, vector<32x64xf32>, vector<16x64xf32> -> vector<16x64xf32>
    %6 = vector.extract_strided_slice %1 {offsets = [1, 0], sizes = [16, 32], strides = [1, 1]} : vector<20x32xf32> to vector<16x32xf32>
    %7 = vector.extract_strided_slice %2 {offsets = [32, 0], sizes = [32, 64], strides = [1, 1]} : vector<160x64xf32> to vector<32x64xf32>
    %cst_4 = arith.constant dense<0.000000e+00> : vector<16x64xf32>
    %8 = tpu.matmul %6, %7, %cst_4 {dimension_numbers = #tpu.dot_dimension_numbers<[1], [0], [0], [1], [0, 0, 1, 1], [], []>} : vector<16x32xf32>, vector<32x64xf32>, vector<16x64xf32> -> vector<16x64xf32>
    %9 = arith.addf %5, %8 : vector<16x64xf32>
    %10 = vector.extract_strided_slice %1 {offsets = [2, 0], sizes = [16, 32], strides = [1, 1]} : vector<20x32xf32> to vector<16x32xf32>
    %11 = vector.extract_strided_slice %2 {offsets = [64, 0], sizes = [32, 64], strides = [1, 1]} : vector<160x64xf32> to vector<32x64xf32>
    %cst_5 = arith.constant dense<0.000000e+00> : vector<16x64xf32>
    %12 = tpu.matmul %10, %11, %cst_5 {dimension_numbers = #tpu.dot_dimension_numbers<[1], [0], [0], [1], [0, 0, 1, 1], [], []>} : vector<16x32xf32>, vector<32x64xf32>, vector<16x64xf32> -> vector<16x64xf32>
    %13 = arith.addf %9, %12 : vector<16x64xf32>
    %14 = vector.extract_strided_slice %1 {offsets = [3, 0], sizes = [16, 32], strides = [1, 1]} : vector<20x32xf32> to vector<16x32xf32>
    %15 = vector.extract_strided_slice %2 {offsets = [96, 0], sizes = [32, 64], strides = [1, 1]} : vector<160x64xf32> to vector<32x64xf32>
    %cst_6 = arith.constant dense<0.000000e+00> : vector<16x64xf32>
    %16 = tpu.matmul %14, %15, %cst_6 {dimension_numbers = #tpu.dot_dimension_numbers<[1], [0], [0], [1], [0, 0, 1, 1], [], []>} : vector<16x32xf32>, vector<32x64xf32>, vector<16x64xf32> -> vector<16x64xf32>
    %17 = arith.addf %13, %16 : vector<16x64xf32>
    %18 = vector.extract_strided_slice %1 {offsets = [4, 0], sizes = [16, 32], strides = [1, 1]} : vector<20x32xf32> to vector<16x32xf32>
    %19 = vector.extract_strided_slice %2 {offsets = [128, 0], sizes = [32, 64], strides = [1, 1]} : vector<160x64xf32> to vector<32x64xf32>
    %cst_7 = arith.constant dense<0.000000e+00> : vector<16x64xf32>
    %20 = tpu.matmul %18, %19, %cst_7 {dimension_numbers = #tpu.dot_dimension_numbers<[1], [0], [0], [1], [0, 0, 1, 1], [], []>} : vector<16x32xf32>, vector<32x64xf32>, vector<16x64xf32> -> vector<16x64xf32>
    %21 = arith.addf %17, %20 : vector<16x64xf32>
    %c0_8 = arith.constant 0 : index
    %c0_9 = arith.constant 0 : index
    %22 = vector.load %arg3[%c0_8, %c0_9] : memref<1x64xf32, #tpu.memory_space<vmem>>, vector<1x64xf32>
    %23 = vector.broadcast %22 : vector<1x64xf32> to vector<16x64xf32>
    %24 = arith.addf %21, %23 : vector<16x64xf32>
    %cst_10 = arith.constant 0.000000e+00 : f32
    %25 = vector.broadcast %cst_10 : f32 to vector<16x64xf32>
    %26 = arith.maximumf %24, %25 : vector<16x64xf32>
    %c0_11 = arith.constant 0 : index
    %c0_12 = arith.constant 0 : index
    %27 = vector.load %arg4[%c0_11, %c0_12] : memref<1x64xf32, #tpu.memory_space<vmem>>, vector<1x64xf32>
    %28 = vector.broadcast %27 : vector<1x64xf32> to vector<16x64xf32>
    %29 = arith.mulf %26, %28 : vector<16x64xf32>
    %c0_13 = arith.constant 0 : index
    %c0_14 = arith.constant 0 : index
    %30 = vector.load %arg5[%c0_13, %c0_14] : memref<1x64xf32, #tpu.memory_space<vmem>>, vector<1x64xf32>
    %31 = vector.broadcast %30 : vector<1x64xf32> to vector<16x64xf32>
    %32 = arith.addf %29, %31 : vector<16x64xf32>
    %c0_15 = arith.constant 0 : index
    %c0_16 = arith.constant 0 : index
    %c0_17 = arith.constant 0 : index
    %33 = vector.load %arg6[%c0_15, %c0_16, %c0_17] : memref<1x16x64xf32, #tpu.memory_space<vmem>>, vector<1x16x64xf32>
    %34 = vector.shape_cast %33 : vector<1x16x64xf32> to vector<16x64xf32>
    %35 = vector.shape_cast %32 : vector<16x64xf32> to vector<1x16x64xf32>
    tpu.vector_store %arg6[%c0_15, %c0_16, %c0_17], %35 {strides = array<i32>} : memref<1x16x64xf32, #tpu.memory_space<vmem>>, vector<1x16x64xf32>,
    return
  }
  func.func @transform_0(%arg0: i32) -> (i32, i32, i32) {
    %c0_i32 = arith.constant 0 : i32
    %c0_i32_0 = arith.constant 0 : i32
    %c0_i32_1 = arith.constant 0 : i32
    return %arg0, %c0_i32, %c0_i32_0 : i32, i32, i32
  }
  func.func @transform_1(%arg0: i32) -> (i32, i32) {
    %c0_i32 = arith.constant 0 : i32
    %c0_i32_0 = arith.constant 0 : i32
    %c0_i32_1 = arith.constant 0 : i32
    return %c0_i32, %c0_i32_0 : i32, i32
  }
  func.func @transform_2(%arg0: i32) -> (i32, i32) {
    %c0_i32 = arith.constant 0 : i32
    %c0_i32_0 = arith.constant 0 : i32
    %c0_i32_1 = arith.constant 0 : i32
    return %c0_i32, %c0_i32_0 : i32, i32
  }
  func.func @transform_3(%arg0: i32) -> (i32, i32) {
    %c0_i32 = arith.constant 0 : i32
    %c0_i32_0 = arith.constant 0 : i32
    %c0_i32_1 = arith.constant 0 : i32
    return %c0_i32, %c0_i32_0 : i32, i32
  }
  func.func @transform_4(%arg0: i32) -> (i32, i32) {
    %c0_i32 = arith.constant 0 : i32
    %c0_i32_0 = arith.constant 0 : i32
    %c0_i32_1 = arith.constant 0 : i32
    return %c0_i32, %c0_i32_0 : i32, i32
  }
  func.func @transform_5(%arg0: i32) -> (i32, i32, i32) {
    %c0_i32 = arith.constant 0 : i32
    %c0_i32_0 = arith.constant 0 : i32
    %c0_i32_1 = arith.constant 0 : i32
    return %arg0, %c0_i32, %c0_i32_0 : i32, i32, i32
  }
}

module attributes {stable_mosaic.version = 11 : i64} {
  func.func @_mm_kernel(%arg0: i32, %arg1: memref<32x64xf32, #tpu.memory_space<vmem>>, %arg2: memref<64x64xf32, #tpu.memory_space<vmem>>, %arg3: memref<1x64xf32, #tpu.memory_space<vmem>>, %arg4: memref<1x64xf32, #tpu.memory_space<vmem>>, %arg5: memref<1x64xf32, #tpu.memory_space<vmem>>, %arg6: memref<32x64xf32, #tpu.memory_space<vmem>>) attributes {dimension_semantics = [#tpu.dimension_semantics<parallel>], iteration_bounds = array<i64: 1>, scalar_prefetch = 0 : i64, scratch_operands = 0 : i64, tpu.core_type = #tpu.core_type<tc>, window_params = [{transform_indices = @transform_0, window_bounds = array<i64: 32, 64>}, {pipeline_mode = #tpu.pipeline_mode<synchronous>, transform_indices = @transform_1, window_bounds = array<i64: 64, 64>}, {pipeline_mode = #tpu.pipeline_mode<synchronous>, transform_indices = @transform_2, window_bounds = array<i64: 1, 64>}, {pipeline_mode = #tpu.pipeline_mode<synchronous>, transform_indices = @transform_3, window_bounds = array<i64: 1, 64>}, {pipeline_mode = #tpu.pipeline_mode<synchronous>, transform_indices = @transform_4, window_bounds = array<i64: 1, 64>}, {transform_indices = @transform_5, window_bounds = array<i64: 32, 64>}]} {
    %c0 = arith.constant 0 : index
    %c0_0 = arith.constant 0 : index
    %0 = vector.load %arg1[%c0, %c0_0] : memref<32x64xf32, #tpu.memory_space<vmem>>, vector<32x64xf32>
    %c0_1 = arith.constant 0 : index
    %c0_2 = arith.constant 0 : index
    %1 = vector.load %arg2[%c0_1, %c0_2] : memref<64x64xf32, #tpu.memory_space<vmem>>, vector<64x64xf32>
    %cst = arith.constant dense<0.000000e+00> : vector<32x64xf32>
    %2 = tpu.matmul %0, %1, %cst {dimension_numbers = #tpu.dot_dimension_numbers<[1], [0], [0], [1], [0, 0, 1, 1], [], []>} : vector<32x64xf32>, vector<64x64xf32>, vector<32x64xf32> -> vector<32x64xf32>
    %c0_3 = arith.constant 0 : index
    %c0_4 = arith.constant 0 : index
    %3 = vector.load %arg3[%c0_3, %c0_4] : memref<1x64xf32, #tpu.memory_space<vmem>>, vector<1x64xf32>
    %4 = vector.broadcast %3 : vector<1x64xf32> to vector<32x64xf32>
    %5 = arith.addf %2, %4 : vector<32x64xf32>
    %cst_5 = arith.constant 0.000000e+00 : f32
    %6 = vector.broadcast %cst_5 : f32 to vector<32x64xf32>
    %7 = arith.maximumf %5, %6 : vector<32x64xf32>
    %c0_6 = arith.constant 0 : index
    %c0_7 = arith.constant 0 : index
    %8 = vector.load %arg4[%c0_6, %c0_7] : memref<1x64xf32, #tpu.memory_space<vmem>>, vector<1x64xf32>
    %9 = vector.broadcast %8 : vector<1x64xf32> to vector<32x64xf32>
    %10 = arith.mulf %7, %9 : vector<32x64xf32>
    %c0_8 = arith.constant 0 : index
    %c0_9 = arith.constant 0 : index
    %11 = vector.load %arg5[%c0_8, %c0_9] : memref<1x64xf32, #tpu.memory_space<vmem>>, vector<1x64xf32>
    %12 = vector.broadcast %11 : vector<1x64xf32> to vector<32x64xf32>
    %13 = arith.addf %10, %12 : vector<32x64xf32>
    %c0_10 = arith.constant 0 : index
    %c0_11 = arith.constant 0 : index
    %14 = vector.load %arg6[%c0_10, %c0_11] : memref<32x64xf32, #tpu.memory_space<vmem>>, vector<32x64xf32>
    tpu.vector_store %arg6[%c0_10, %c0_11], %13 {strides = array<i32>} : memref<32x64xf32, #tpu.memory_space<vmem>>, vector<32x64xf32>,
    return
  }
  func.func @transform_0(%arg0: i32) -> (i32, i32) {
    %c0_i32 = arith.constant 0 : i32
    %c0_i32_0 = arith.constant 0 : i32
    return %arg0, %c0_i32 : i32, i32
  }
  func.func @transform_1(%arg0: i32) -> (i32, i32) {
    %c0_i32 = arith.constant 0 : i32
    %c0_i32_0 = arith.constant 0 : i32
    %c0_i32_1 = arith.constant 0 : i32
    return %c0_i32, %c0_i32_0 : i32, i32
  }
  func.func @transform_2(%arg0: i32) -> (i32, i32) {
    %c0_i32 = arith.constant 0 : i32
    %c0_i32_0 = arith.constant 0 : i32
    %c0_i32_1 = arith.constant 0 : i32
    return %c0_i32, %c0_i32_0 : i32, i32
  }
  func.func @transform_3(%arg0: i32) -> (i32, i32) {
    %c0_i32 = arith.constant 0 : i32
    %c0_i32_0 = arith.constant 0 : i32
    %c0_i32_1 = arith.constant 0 : i32
    return %c0_i32, %c0_i32_0 : i32, i32
  }
  func.func @transform_4(%arg0: i32) -> (i32, i32) {
    %c0_i32 = arith.constant 0 : i32
    %c0_i32_0 = arith.constant 0 : i32
    %c0_i32_1 = arith.constant 0 : i32
    return %c0_i32, %c0_i32_0 : i32, i32
  }
  func.func @transform_5(%arg0: i32) -> (i32, i32) {
    %c0_i32 = arith.constant 0 : i32
    %c0_i32_0 = arith.constant 0 : i32
    return %arg0, %c0_i32 : i32, i32
  }
}

module attributes {stable_mosaic.version = 11 : i64} {
  func.func @_conv_tap_kernel(%arg0: i32, %arg1: memref<1x20x16xf32, #tpu.memory_space<vmem>>, %arg2: memref<48x16xf32, #tpu.memory_space<vmem>>, %arg3: memref<1x16xf32, #tpu.memory_space<vmem>>, %arg4: memref<1x16xf32, #tpu.memory_space<vmem>>, %arg5: memref<1x16xf32, #tpu.memory_space<vmem>>, %arg6: memref<1x16x16xf32, #tpu.memory_space<vmem>>) attributes {dimension_semantics = [#tpu.dimension_semantics<parallel>], iteration_bounds = array<i64: 2>, scalar_prefetch = 0 : i64, scratch_operands = 0 : i64, tpu.core_type = #tpu.core_type<tc>, window_params = [{transform_indices = @transform_0, window_bounds = array<i64: 1, 20, 16>}, {pipeline_mode = #tpu.pipeline_mode<synchronous>, transform_indices = @transform_1, window_bounds = array<i64: 48, 16>}, {pipeline_mode = #tpu.pipeline_mode<synchronous>, transform_indices = @transform_2, window_bounds = array<i64: 1, 16>}, {pipeline_mode = #tpu.pipeline_mode<synchronous>, transform_indices = @transform_3, window_bounds = array<i64: 1, 16>}, {pipeline_mode = #tpu.pipeline_mode<synchronous>, transform_indices = @transform_4, window_bounds = array<i64: 1, 16>}, {transform_indices = @transform_5, window_bounds = array<i64: 1, 16, 16>}]} {
    %c0 = arith.constant 0 : index
    %c0_0 = arith.constant 0 : index
    %c0_1 = arith.constant 0 : index
    %0 = vector.load %arg1[%c0, %c0_0, %c0_1] : memref<1x20x16xf32, #tpu.memory_space<vmem>>, vector<1x20x16xf32>
    %1 = vector.shape_cast %0 : vector<1x20x16xf32> to vector<20x16xf32>
    %c0_2 = arith.constant 0 : index
    %c0_3 = arith.constant 0 : index
    %2 = vector.load %arg2[%c0_2, %c0_3] : memref<48x16xf32, #tpu.memory_space<vmem>>, vector<48x16xf32>
    %3 = vector.extract_strided_slice %1 {offsets = [0, 0], sizes = [16, 16], strides = [1, 1]} : vector<20x16xf32> to vector<16x16xf32>
    %4 = vector.extract_strided_slice %2 {offsets = [0, 0], sizes = [16, 16], strides = [1, 1]} : vector<48x16xf32> to vector<16x16xf32>
    %cst = arith.constant dense<0.000000e+00> : vector<16x16xf32>
    %5 = tpu.matmul %3, %4, %cst {dimension_numbers = #tpu.dot_dimension_numbers<[1], [0], [0], [1], [0, 0, 1, 1], [], []>} : vector<16x16xf32>, vector<16x16xf32>, vector<16x16xf32> -> vector<16x16xf32>
    %6 = vector.extract_strided_slice %1 {offsets = [2, 0], sizes = [16, 16], strides = [1, 1]} : vector<20x16xf32> to vector<16x16xf32>
    %7 = vector.extract_strided_slice %2 {offsets = [16, 0], sizes = [16, 16], strides = [1, 1]} : vector<48x16xf32> to vector<16x16xf32>
    %cst_4 = arith.constant dense<0.000000e+00> : vector<16x16xf32>
    %8 = tpu.matmul %6, %7, %cst_4 {dimension_numbers = #tpu.dot_dimension_numbers<[1], [0], [0], [1], [0, 0, 1, 1], [], []>} : vector<16x16xf32>, vector<16x16xf32>, vector<16x16xf32> -> vector<16x16xf32>
    %9 = arith.addf %5, %8 : vector<16x16xf32>
    %10 = vector.extract_strided_slice %1 {offsets = [4, 0], sizes = [16, 16], strides = [1, 1]} : vector<20x16xf32> to vector<16x16xf32>
    %11 = vector.extract_strided_slice %2 {offsets = [32, 0], sizes = [16, 16], strides = [1, 1]} : vector<48x16xf32> to vector<16x16xf32>
    %cst_5 = arith.constant dense<0.000000e+00> : vector<16x16xf32>
    %12 = tpu.matmul %10, %11, %cst_5 {dimension_numbers = #tpu.dot_dimension_numbers<[1], [0], [0], [1], [0, 0, 1, 1], [], []>} : vector<16x16xf32>, vector<16x16xf32>, vector<16x16xf32> -> vector<16x16xf32>
    %13 = arith.addf %9, %12 : vector<16x16xf32>
    %c0_6 = arith.constant 0 : index
    %c0_7 = arith.constant 0 : index
    %14 = vector.load %arg3[%c0_6, %c0_7] : memref<1x16xf32, #tpu.memory_space<vmem>>, vector<1x16xf32>
    %15 = vector.broadcast %14 : vector<1x16xf32> to vector<16x16xf32>
    %16 = arith.addf %13, %15 : vector<16x16xf32>
    %cst_8 = arith.constant 0.000000e+00 : f32
    %17 = vector.broadcast %cst_8 : f32 to vector<16x16xf32>
    %18 = arith.maximumf %16, %17 : vector<16x16xf32>
    %c0_9 = arith.constant 0 : index
    %c0_10 = arith.constant 0 : index
    %19 = vector.load %arg4[%c0_9, %c0_10] : memref<1x16xf32, #tpu.memory_space<vmem>>, vector<1x16xf32>
    %20 = vector.broadcast %19 : vector<1x16xf32> to vector<16x16xf32>
    %21 = arith.mulf %18, %20 : vector<16x16xf32>
    %c0_11 = arith.constant 0 : index
    %c0_12 = arith.constant 0 : index
    %22 = vector.load %arg5[%c0_11, %c0_12] : memref<1x16xf32, #tpu.memory_space<vmem>>, vector<1x16xf32>
    %23 = vector.broadcast %22 : vector<1x16xf32> to vector<16x16xf32>
    %24 = arith.addf %21, %23 : vector<16x16xf32>
    %c0_13 = arith.constant 0 : index
    %c0_14 = arith.constant 0 : index
    %c0_15 = arith.constant 0 : index
    %25 = vector.load %arg6[%c0_13, %c0_14, %c0_15] : memref<1x16x16xf32, #tpu.memory_space<vmem>>, vector<1x16x16xf32>
    %26 = vector.shape_cast %25 : vector<1x16x16xf32> to vector<16x16xf32>
    %27 = vector.shape_cast %24 : vector<16x16xf32> to vector<1x16x16xf32>
    tpu.vector_store %arg6[%c0_13, %c0_14, %c0_15], %27 {strides = array<i32>} : memref<1x16x16xf32, #tpu.memory_space<vmem>>, vector<1x16x16xf32>,
    return
  }
  func.func @transform_0(%arg0: i32) -> (i32, i32, i32) {
    %c0_i32 = arith.constant 0 : i32
    %c0_i32_0 = arith.constant 0 : i32
    %c0_i32_1 = arith.constant 0 : i32
    return %arg0, %c0_i32, %c0_i32_0 : i32, i32, i32
  }
  func.func @transform_1(%arg0: i32) -> (i32, i32) {
    %c0_i32 = arith.constant 0 : i32
    %c0_i32_0 = arith.constant 0 : i32
    %c0_i32_1 = arith.constant 0 : i32
    return %c0_i32, %c0_i32_0 : i32, i32
  }
  func.func @transform_2(%arg0: i32) -> (i32, i32) {
    %c0_i32 = arith.constant 0 : i32
    %c0_i32_0 = arith.constant 0 : i32
    %c0_i32_1 = arith.constant 0 : i32
    return %c0_i32, %c0_i32_0 : i32, i32
  }
  func.func @transform_3(%arg0: i32) -> (i32, i32) {
    %c0_i32 = arith.constant 0 : i32
    %c0_i32_0 = arith.constant 0 : i32
    %c0_i32_1 = arith.constant 0 : i32
    return %c0_i32, %c0_i32_0 : i32, i32
  }
  func.func @transform_4(%arg0: i32) -> (i32, i32) {
    %c0_i32 = arith.constant 0 : i32
    %c0_i32_0 = arith.constant 0 : i32
    %c0_i32_1 = arith.constant 0 : i32
    return %c0_i32, %c0_i32_0 : i32, i32
  }
  func.func @transform_5(%arg0: i32) -> (i32, i32, i32) {
    %c0_i32 = arith.constant 0 : i32
    %c0_i32_0 = arith.constant 0 : i32
    %c0_i32_1 = arith.constant 0 : i32
    return %arg0, %c0_i32, %c0_i32_0 : i32, i32, i32
  }
}

module attributes {stable_mosaic.version = 11 : i64} {
  func.func @_tdnn2_se_res_kernel(%arg0: i32, %arg1: memref<1x16x64xf32, #tpu.memory_space<vmem>>, %arg2: memref<64x64xf32, #tpu.memory_space<vmem>>, %arg3: memref<1x64xf32, #tpu.memory_space<vmem>>, %arg4: memref<1x64xf32, #tpu.memory_space<vmem>>, %arg5: memref<1x64xf32, #tpu.memory_space<vmem>>, %arg6: memref<64x32xf32, #tpu.memory_space<vmem>>, %arg7: memref<1x32xf32, #tpu.memory_space<vmem>>, %arg8: memref<32x64xf32, #tpu.memory_space<vmem>>, %arg9: memref<1x64xf32, #tpu.memory_space<vmem>>, %arg10: memref<1x16x64xf32, #tpu.memory_space<vmem>>, %arg11: memref<1x16x64xf32, #tpu.memory_space<vmem>>) attributes {dimension_semantics = [#tpu.dimension_semantics<parallel>], iteration_bounds = array<i64: 2>, scalar_prefetch = 0 : i64, scratch_operands = 0 : i64, tpu.core_type = #tpu.core_type<tc>, window_params = [{transform_indices = @transform_0, window_bounds = array<i64: 1, 16, 64>}, {pipeline_mode = #tpu.pipeline_mode<synchronous>, transform_indices = @transform_1, window_bounds = array<i64: 64, 64>}, {pipeline_mode = #tpu.pipeline_mode<synchronous>, transform_indices = @transform_2, window_bounds = array<i64: 1, 64>}, {pipeline_mode = #tpu.pipeline_mode<synchronous>, transform_indices = @transform_3, window_bounds = array<i64: 1, 64>}, {pipeline_mode = #tpu.pipeline_mode<synchronous>, transform_indices = @transform_4, window_bounds = array<i64: 1, 64>}, {pipeline_mode = #tpu.pipeline_mode<synchronous>, transform_indices = @transform_5, window_bounds = array<i64: 64, 32>}, {pipeline_mode = #tpu.pipeline_mode<synchronous>, transform_indices = @transform_6, window_bounds = array<i64: 1, 32>}, {pipeline_mode = #tpu.pipeline_mode<synchronous>, transform_indices = @transform_7, window_bounds = array<i64: 32, 64>}, {pipeline_mode = #tpu.pipeline_mode<synchronous>, transform_indices = @transform_8, window_bounds = array<i64: 1, 64>}, {transform_indices = @transform_9, window_bounds = array<i64: 1, 16, 64>}, {transform_indices = @transform_10, window_bounds = array<i64: 1, 16, 64>}]} {
    %c0 = arith.constant 0 : index
    %c0_0 = arith.constant 0 : index
    %c0_1 = arith.constant 0 : index
    %0 = vector.load %arg1[%c0, %c0_0, %c0_1] : memref<1x16x64xf32, #tpu.memory_space<vmem>>, vector<1x16x64xf32>
    %1 = vector.shape_cast %0 : vector<1x16x64xf32> to vector<16x64xf32>
    %c0_2 = arith.constant 0 : index
    %c0_3 = arith.constant 0 : index
    %2 = vector.load %arg2[%c0_2, %c0_3] : memref<64x64xf32, #tpu.memory_space<vmem>>, vector<64x64xf32>
    %cst = arith.constant dense<0.000000e+00> : vector<16x64xf32>
    %3 = tpu.matmul %1, %2, %cst {dimension_numbers = #tpu.dot_dimension_numbers<[1], [0], [0], [1], [0, 0, 1, 1], [], []>} : vector<16x64xf32>, vector<64x64xf32>, vector<16x64xf32> -> vector<16x64xf32>
    %c0_4 = arith.constant 0 : index
    %c0_5 = arith.constant 0 : index
    %4 = vector.load %arg3[%c0_4, %c0_5] : memref<1x64xf32, #tpu.memory_space<vmem>>, vector<1x64xf32>
    %5 = vector.broadcast %4 : vector<1x64xf32> to vector<16x64xf32>
    %6 = arith.addf %3, %5 : vector<16x64xf32>
    %cst_6 = arith.constant 0.000000e+00 : f32
    %7 = vector.broadcast %cst_6 : f32 to vector<16x64xf32>
    %8 = arith.maximumf %6, %7 : vector<16x64xf32>
    %c0_7 = arith.constant 0 : index
    %c0_8 = arith.constant 0 : index
    %9 = vector.load %arg4[%c0_7, %c0_8] : memref<1x64xf32, #tpu.memory_space<vmem>>, vector<1x64xf32>
    %10 = vector.broadcast %9 : vector<1x64xf32> to vector<16x64xf32>
    %11 = arith.mulf %8, %10 : vector<16x64xf32>
    %c0_9 = arith.constant 0 : index
    %c0_10 = arith.constant 0 : index
    %12 = vector.load %arg5[%c0_9, %c0_10] : memref<1x64xf32, #tpu.memory_space<vmem>>, vector<1x64xf32>
    %13 = vector.broadcast %12 : vector<1x64xf32> to vector<16x64xf32>
    %14 = arith.addf %11, %13 : vector<16x64xf32>
    %cst_11 = arith.constant dense<0.000000e+00> : vector<64xf32>
    %15 = vector.multi_reduction <add>, %14, %cst_11 [0] : vector<16x64xf32> to vector<64xf32>
    %16 = vector.shape_cast %15 : vector<64xf32> to vector<1x64xf32>
    %cst_12 = arith.constant 1.600000e+01 : f32
    %17 = vector.broadcast %cst_12 : f32 to vector<1x64xf32>
    %18 = arith.divf %16, %17 : vector<1x64xf32>
    %c0_13 = arith.constant 0 : index
    %c0_14 = arith.constant 0 : index
    %19 = vector.load %arg6[%c0_13, %c0_14] : memref<64x32xf32, #tpu.memory_space<vmem>>, vector<64x32xf32>
    %cst_15 = arith.constant dense<0.000000e+00> : vector<1x32xf32>
    %20 = tpu.matmul %18, %19, %cst_15 {dimension_numbers = #tpu.dot_dimension_numbers<[1], [0], [0], [1], [0, 0, 1, 1], [], []>} : vector<1x64xf32>, vector<64x32xf32>, vector<1x32xf32> -> vector<1x32xf32>
    %c0_16 = arith.constant 0 : index
    %c0_17 = arith.constant 0 : index
    %21 = vector.load %arg7[%c0_16, %c0_17] : memref<1x32xf32, #tpu.memory_space<vmem>>, vector<1x32xf32>
    %22 = arith.addf %20, %21 : vector<1x32xf32>
    %cst_18 = arith.constant 0.000000e+00 : f32
    %23 = vector.broadcast %cst_18 : f32 to vector<1x32xf32>
    %24 = arith.maximumf %22, %23 : vector<1x32xf32>
    %c0_19 = arith.constant 0 : index
    %c0_20 = arith.constant 0 : index
    %25 = vector.load %arg8[%c0_19, %c0_20] : memref<32x64xf32, #tpu.memory_space<vmem>>, vector<32x64xf32>
    %cst_21 = arith.constant dense<0.000000e+00> : vector<1x64xf32>
    %26 = tpu.matmul %24, %25, %cst_21 {dimension_numbers = #tpu.dot_dimension_numbers<[1], [0], [0], [1], [0, 0, 1, 1], [], []>} : vector<1x32xf32>, vector<32x64xf32>, vector<1x64xf32> -> vector<1x64xf32>
    %c0_22 = arith.constant 0 : index
    %c0_23 = arith.constant 0 : index
    %27 = vector.load %arg9[%c0_22, %c0_23] : memref<1x64xf32, #tpu.memory_space<vmem>>, vector<1x64xf32>
    %28 = arith.addf %26, %27 : vector<1x64xf32>
    %29 = arith.negf %28 : vector<1x64xf32>
    %30 = math.exp %29 : vector<1x64xf32>
    %cst_24 = arith.constant 1.000000e+00 : f32
    %31 = vector.broadcast %cst_24 : f32 to vector<1x64xf32>
    %32 = arith.addf %31, %30 : vector<1x64xf32>
    %33 = arith.divf %31, %32 : vector<1x64xf32>
    %34 = vector.broadcast %33 : vector<1x64xf32> to vector<16x64xf32>
    %35 = arith.mulf %14, %34 : vector<16x64xf32>
    %c0_25 = arith.constant 0 : index
    %c0_26 = arith.constant 0 : index
    %c0_27 = arith.constant 0 : index
    %36 = vector.load %arg10[%c0_25, %c0_26, %c0_27] : memref<1x16x64xf32, #tpu.memory_space<vmem>>, vector<1x16x64xf32>
    %37 = vector.shape_cast %36 : vector<1x16x64xf32> to vector<16x64xf32>
    %38 = arith.addf %35, %37 : vector<16x64xf32>
    %c0_28 = arith.constant 0 : index
    %c0_29 = arith.constant 0 : index
    %c0_30 = arith.constant 0 : index
    %39 = vector.load %arg11[%c0_28, %c0_29, %c0_30] : memref<1x16x64xf32, #tpu.memory_space<vmem>>, vector<1x16x64xf32>
    %40 = vector.shape_cast %39 : vector<1x16x64xf32> to vector<16x64xf32>
    %41 = vector.shape_cast %38 : vector<16x64xf32> to vector<1x16x64xf32>
    tpu.vector_store %arg11[%c0_28, %c0_29, %c0_30], %41 {strides = array<i32>} : memref<1x16x64xf32, #tpu.memory_space<vmem>>, vector<1x16x64xf32>,
    return
  }
  func.func @transform_0(%arg0: i32) -> (i32, i32, i32) {
    %c0_i32 = arith.constant 0 : i32
    %c0_i32_0 = arith.constant 0 : i32
    %c0_i32_1 = arith.constant 0 : i32
    return %arg0, %c0_i32, %c0_i32_0 : i32, i32, i32
  }
  func.func @transform_1(%arg0: i32) -> (i32, i32) {
    %c0_i32 = arith.constant 0 : i32
    %c0_i32_0 = arith.constant 0 : i32
    %c0_i32_1 = arith.constant 0 : i32
    return %c0_i32, %c0_i32_0 : i32, i32
  }
  func.func @transform_2(%arg0: i32) -> (i32, i32) {
    %c0_i32 = arith.constant 0 : i32
    %c0_i32_0 = arith.constant 0 : i32
    %c0_i32_1 = arith.constant 0 : i32
    return %c0_i32, %c0_i32_0 : i32, i32
  }
  func.func @transform_3(%arg0: i32) -> (i32, i32) {
    %c0_i32 = arith.constant 0 : i32
    %c0_i32_0 = arith.constant 0 : i32
    %c0_i32_1 = arith.constant 0 : i32
    return %c0_i32, %c0_i32_0 : i32, i32
  }
  func.func @transform_4(%arg0: i32) -> (i32, i32) {
    %c0_i32 = arith.constant 0 : i32
    %c0_i32_0 = arith.constant 0 : i32
    %c0_i32_1 = arith.constant 0 : i32
    return %c0_i32, %c0_i32_0 : i32, i32
  }
  func.func @transform_5(%arg0: i32) -> (i32, i32) {
    %c0_i32 = arith.constant 0 : i32
    %c0_i32_0 = arith.constant 0 : i32
    %c0_i32_1 = arith.constant 0 : i32
    return %c0_i32, %c0_i32_0 : i32, i32
  }
  func.func @transform_6(%arg0: i32) -> (i32, i32) {
    %c0_i32 = arith.constant 0 : i32
    %c0_i32_0 = arith.constant 0 : i32
    %c0_i32_1 = arith.constant 0 : i32
    return %c0_i32, %c0_i32_0 : i32, i32
  }
  func.func @transform_7(%arg0: i32) -> (i32, i32) {
    %c0_i32 = arith.constant 0 : i32
    %c0_i32_0 = arith.constant 0 : i32
    %c0_i32_1 = arith.constant 0 : i32
    return %c0_i32, %c0_i32_0 : i32, i32
  }
  func.func @transform_8(%arg0: i32) -> (i32, i32) {
    %c0_i32 = arith.constant 0 : i32
    %c0_i32_0 = arith.constant 0 : i32
    %c0_i32_1 = arith.constant 0 : i32
    return %c0_i32, %c0_i32_0 : i32, i32
  }
  func.func @transform_9(%arg0: i32) -> (i32, i32, i32) {
    %c0_i32 = arith.constant 0 : i32
    %c0_i32_0 = arith.constant 0 : i32
    %c0_i32_1 = arith.constant 0 : i32
    return %arg0, %c0_i32, %c0_i32_0 : i32, i32, i32
  }
  func.func @transform_10(%arg0: i32) -> (i32, i32, i32) {
    %c0_i32 = arith.constant 0 : i32
    %c0_i32_0 = arith.constant 0 : i32
    %c0_i32_1 = arith.constant 0 : i32
    return %arg0, %c0_i32, %c0_i32_0 : i32, i32, i32
  }
}

module attributes {stable_mosaic.version = 11 : i64} {
  func.func @_conv_tap_kernel(%arg0: i32, %arg1: memref<1x22x16xf32, #tpu.memory_space<vmem>>, %arg2: memref<48x16xf32, #tpu.memory_space<vmem>>, %arg3: memref<1x16xf32, #tpu.memory_space<vmem>>, %arg4: memref<1x16xf32, #tpu.memory_space<vmem>>, %arg5: memref<1x16xf32, #tpu.memory_space<vmem>>, %arg6: memref<1x16x16xf32, #tpu.memory_space<vmem>>) attributes {dimension_semantics = [#tpu.dimension_semantics<parallel>], iteration_bounds = array<i64: 2>, scalar_prefetch = 0 : i64, scratch_operands = 0 : i64, tpu.core_type = #tpu.core_type<tc>, window_params = [{transform_indices = @transform_0, window_bounds = array<i64: 1, 22, 16>}, {pipeline_mode = #tpu.pipeline_mode<synchronous>, transform_indices = @transform_1, window_bounds = array<i64: 48, 16>}, {pipeline_mode = #tpu.pipeline_mode<synchronous>, transform_indices = @transform_2, window_bounds = array<i64: 1, 16>}, {pipeline_mode = #tpu.pipeline_mode<synchronous>, transform_indices = @transform_3, window_bounds = array<i64: 1, 16>}, {pipeline_mode = #tpu.pipeline_mode<synchronous>, transform_indices = @transform_4, window_bounds = array<i64: 1, 16>}, {transform_indices = @transform_5, window_bounds = array<i64: 1, 16, 16>}]} {
    %c0 = arith.constant 0 : index
    %c0_0 = arith.constant 0 : index
    %c0_1 = arith.constant 0 : index
    %0 = vector.load %arg1[%c0, %c0_0, %c0_1] : memref<1x22x16xf32, #tpu.memory_space<vmem>>, vector<1x22x16xf32>
    %1 = vector.shape_cast %0 : vector<1x22x16xf32> to vector<22x16xf32>
    %c0_2 = arith.constant 0 : index
    %c0_3 = arith.constant 0 : index
    %2 = vector.load %arg2[%c0_2, %c0_3] : memref<48x16xf32, #tpu.memory_space<vmem>>, vector<48x16xf32>
    %3 = vector.extract_strided_slice %1 {offsets = [0, 0], sizes = [16, 16], strides = [1, 1]} : vector<22x16xf32> to vector<16x16xf32>
    %4 = vector.extract_strided_slice %2 {offsets = [0, 0], sizes = [16, 16], strides = [1, 1]} : vector<48x16xf32> to vector<16x16xf32>
    %cst = arith.constant dense<0.000000e+00> : vector<16x16xf32>
    %5 = tpu.matmul %3, %4, %cst {dimension_numbers = #tpu.dot_dimension_numbers<[1], [0], [0], [1], [0, 0, 1, 1], [], []>} : vector<16x16xf32>, vector<16x16xf32>, vector<16x16xf32> -> vector<16x16xf32>
    %6 = vector.extract_strided_slice %1 {offsets = [3, 0], sizes = [16, 16], strides = [1, 1]} : vector<22x16xf32> to vector<16x16xf32>
    %7 = vector.extract_strided_slice %2 {offsets = [16, 0], sizes = [16, 16], strides = [1, 1]} : vector<48x16xf32> to vector<16x16xf32>
    %cst_4 = arith.constant dense<0.000000e+00> : vector<16x16xf32>
    %8 = tpu.matmul %6, %7, %cst_4 {dimension_numbers = #tpu.dot_dimension_numbers<[1], [0], [0], [1], [0, 0, 1, 1], [], []>} : vector<16x16xf32>, vector<16x16xf32>, vector<16x16xf32> -> vector<16x16xf32>
    %9 = arith.addf %5, %8 : vector<16x16xf32>
    %10 = vector.extract_strided_slice %1 {offsets = [6, 0], sizes = [16, 16], strides = [1, 1]} : vector<22x16xf32> to vector<16x16xf32>
    %11 = vector.extract_strided_slice %2 {offsets = [32, 0], sizes = [16, 16], strides = [1, 1]} : vector<48x16xf32> to vector<16x16xf32>
    %cst_5 = arith.constant dense<0.000000e+00> : vector<16x16xf32>
    %12 = tpu.matmul %10, %11, %cst_5 {dimension_numbers = #tpu.dot_dimension_numbers<[1], [0], [0], [1], [0, 0, 1, 1], [], []>} : vector<16x16xf32>, vector<16x16xf32>, vector<16x16xf32> -> vector<16x16xf32>
    %13 = arith.addf %9, %12 : vector<16x16xf32>
    %c0_6 = arith.constant 0 : index
    %c0_7 = arith.constant 0 : index
    %14 = vector.load %arg3[%c0_6, %c0_7] : memref<1x16xf32, #tpu.memory_space<vmem>>, vector<1x16xf32>
    %15 = vector.broadcast %14 : vector<1x16xf32> to vector<16x16xf32>
    %16 = arith.addf %13, %15 : vector<16x16xf32>
    %cst_8 = arith.constant 0.000000e+00 : f32
    %17 = vector.broadcast %cst_8 : f32 to vector<16x16xf32>
    %18 = arith.maximumf %16, %17 : vector<16x16xf32>
    %c0_9 = arith.constant 0 : index
    %c0_10 = arith.constant 0 : index
    %19 = vector.load %arg4[%c0_9, %c0_10] : memref<1x16xf32, #tpu.memory_space<vmem>>, vector<1x16xf32>
    %20 = vector.broadcast %19 : vector<1x16xf32> to vector<16x16xf32>
    %21 = arith.mulf %18, %20 : vector<16x16xf32>
    %c0_11 = arith.constant 0 : index
    %c0_12 = arith.constant 0 : index
    %22 = vector.load %arg5[%c0_11, %c0_12] : memref<1x16xf32, #tpu.memory_space<vmem>>, vector<1x16xf32>
    %23 = vector.broadcast %22 : vector<1x16xf32> to vector<16x16xf32>
    %24 = arith.addf %21, %23 : vector<16x16xf32>
    %c0_13 = arith.constant 0 : index
    %c0_14 = arith.constant 0 : index
    %c0_15 = arith.constant 0 : index
    %25 = vector.load %arg6[%c0_13, %c0_14, %c0_15] : memref<1x16x16xf32, #tpu.memory_space<vmem>>, vector<1x16x16xf32>
    %26 = vector.shape_cast %25 : vector<1x16x16xf32> to vector<16x16xf32>
    %27 = vector.shape_cast %24 : vector<16x16xf32> to vector<1x16x16xf32>
    tpu.vector_store %arg6[%c0_13, %c0_14, %c0_15], %27 {strides = array<i32>} : memref<1x16x16xf32, #tpu.memory_space<vmem>>, vector<1x16x16xf32>,
    return
  }
  func.func @transform_0(%arg0: i32) -> (i32, i32, i32) {
    %c0_i32 = arith.constant 0 : i32
    %c0_i32_0 = arith.constant 0 : i32
    %c0_i32_1 = arith.constant 0 : i32
    return %arg0, %c0_i32, %c0_i32_0 : i32, i32, i32
  }
  func.func @transform_1(%arg0: i32) -> (i32, i32) {
    %c0_i32 = arith.constant 0 : i32
    %c0_i32_0 = arith.constant 0 : i32
    %c0_i32_1 = arith.constant 0 : i32
    return %c0_i32, %c0_i32_0 : i32, i32
  }
  func.func @transform_2(%arg0: i32) -> (i32, i32) {
    %c0_i32 = arith.constant 0 : i32
    %c0_i32_0 = arith.constant 0 : i32
    %c0_i32_1 = arith.constant 0 : i32
    return %c0_i32, %c0_i32_0 : i32, i32
  }
  func.func @transform_3(%arg0: i32) -> (i32, i32) {
    %c0_i32 = arith.constant 0 : i32
    %c0_i32_0 = arith.constant 0 : i32
    %c0_i32_1 = arith.constant 0 : i32
    return %c0_i32, %c0_i32_0 : i32, i32
  }
  func.func @transform_4(%arg0: i32) -> (i32, i32) {
    %c0_i32 = arith.constant 0 : i32
    %c0_i32_0 = arith.constant 0 : i32
    %c0_i32_1 = arith.constant 0 : i32
    return %c0_i32, %c0_i32_0 : i32, i32
  }
  func.func @transform_5(%arg0: i32) -> (i32, i32, i32) {
    %c0_i32 = arith.constant 0 : i32
    %c0_i32_0 = arith.constant 0 : i32
    %c0_i32_1 = arith.constant 0 : i32
    return %arg0, %c0_i32, %c0_i32_0 : i32, i32, i32
  }
}

module attributes {stable_mosaic.version = 11 : i64} {
  func.func @_conv_tap_kernel(%arg0: i32, %arg1: memref<1x24x16xf32, #tpu.memory_space<vmem>>, %arg2: memref<48x16xf32, #tpu.memory_space<vmem>>, %arg3: memref<1x16xf32, #tpu.memory_space<vmem>>, %arg4: memref<1x16xf32, #tpu.memory_space<vmem>>, %arg5: memref<1x16xf32, #tpu.memory_space<vmem>>, %arg6: memref<1x16x16xf32, #tpu.memory_space<vmem>>) attributes {dimension_semantics = [#tpu.dimension_semantics<parallel>], iteration_bounds = array<i64: 2>, scalar_prefetch = 0 : i64, scratch_operands = 0 : i64, tpu.core_type = #tpu.core_type<tc>, window_params = [{transform_indices = @transform_0, window_bounds = array<i64: 1, 24, 16>}, {pipeline_mode = #tpu.pipeline_mode<synchronous>, transform_indices = @transform_1, window_bounds = array<i64: 48, 16>}, {pipeline_mode = #tpu.pipeline_mode<synchronous>, transform_indices = @transform_2, window_bounds = array<i64: 1, 16>}, {pipeline_mode = #tpu.pipeline_mode<synchronous>, transform_indices = @transform_3, window_bounds = array<i64: 1, 16>}, {pipeline_mode = #tpu.pipeline_mode<synchronous>, transform_indices = @transform_4, window_bounds = array<i64: 1, 16>}, {transform_indices = @transform_5, window_bounds = array<i64: 1, 16, 16>}]} {
    %c0 = arith.constant 0 : index
    %c0_0 = arith.constant 0 : index
    %c0_1 = arith.constant 0 : index
    %0 = vector.load %arg1[%c0, %c0_0, %c0_1] : memref<1x24x16xf32, #tpu.memory_space<vmem>>, vector<1x24x16xf32>
    %1 = vector.shape_cast %0 : vector<1x24x16xf32> to vector<24x16xf32>
    %c0_2 = arith.constant 0 : index
    %c0_3 = arith.constant 0 : index
    %2 = vector.load %arg2[%c0_2, %c0_3] : memref<48x16xf32, #tpu.memory_space<vmem>>, vector<48x16xf32>
    %3 = vector.extract_strided_slice %1 {offsets = [0, 0], sizes = [16, 16], strides = [1, 1]} : vector<24x16xf32> to vector<16x16xf32>
    %4 = vector.extract_strided_slice %2 {offsets = [0, 0], sizes = [16, 16], strides = [1, 1]} : vector<48x16xf32> to vector<16x16xf32>
    %cst = arith.constant dense<0.000000e+00> : vector<16x16xf32>
    %5 = tpu.matmul %3, %4, %cst {dimension_numbers = #tpu.dot_dimension_numbers<[1], [0], [0], [1], [0, 0, 1, 1], [], []>} : vector<16x16xf32>, vector<16x16xf32>, vector<16x16xf32> -> vector<16x16xf32>
    %6 = vector.extract_strided_slice %1 {offsets = [4, 0], sizes = [16, 16], strides = [1, 1]} : vector<24x16xf32> to vector<16x16xf32>
    %7 = vector.extract_strided_slice %2 {offsets = [16, 0], sizes = [16, 16], strides = [1, 1]} : vector<48x16xf32> to vector<16x16xf32>
    %cst_4 = arith.constant dense<0.000000e+00> : vector<16x16xf32>
    %8 = tpu.matmul %6, %7, %cst_4 {dimension_numbers = #tpu.dot_dimension_numbers<[1], [0], [0], [1], [0, 0, 1, 1], [], []>} : vector<16x16xf32>, vector<16x16xf32>, vector<16x16xf32> -> vector<16x16xf32>
    %9 = arith.addf %5, %8 : vector<16x16xf32>
    %10 = vector.extract_strided_slice %1 {offsets = [8, 0], sizes = [16, 16], strides = [1, 1]} : vector<24x16xf32> to vector<16x16xf32>
    %11 = vector.extract_strided_slice %2 {offsets = [32, 0], sizes = [16, 16], strides = [1, 1]} : vector<48x16xf32> to vector<16x16xf32>
    %cst_5 = arith.constant dense<0.000000e+00> : vector<16x16xf32>
    %12 = tpu.matmul %10, %11, %cst_5 {dimension_numbers = #tpu.dot_dimension_numbers<[1], [0], [0], [1], [0, 0, 1, 1], [], []>} : vector<16x16xf32>, vector<16x16xf32>, vector<16x16xf32> -> vector<16x16xf32>
    %13 = arith.addf %9, %12 : vector<16x16xf32>
    %c0_6 = arith.constant 0 : index
    %c0_7 = arith.constant 0 : index
    %14 = vector.load %arg3[%c0_6, %c0_7] : memref<1x16xf32, #tpu.memory_space<vmem>>, vector<1x16xf32>
    %15 = vector.broadcast %14 : vector<1x16xf32> to vector<16x16xf32>
    %16 = arith.addf %13, %15 : vector<16x16xf32>
    %cst_8 = arith.constant 0.000000e+00 : f32
    %17 = vector.broadcast %cst_8 : f32 to vector<16x16xf32>
    %18 = arith.maximumf %16, %17 : vector<16x16xf32>
    %c0_9 = arith.constant 0 : index
    %c0_10 = arith.constant 0 : index
    %19 = vector.load %arg4[%c0_9, %c0_10] : memref<1x16xf32, #tpu.memory_space<vmem>>, vector<1x16xf32>
    %20 = vector.broadcast %19 : vector<1x16xf32> to vector<16x16xf32>
    %21 = arith.mulf %18, %20 : vector<16x16xf32>
    %c0_11 = arith.constant 0 : index
    %c0_12 = arith.constant 0 : index
    %22 = vector.load %arg5[%c0_11, %c0_12] : memref<1x16xf32, #tpu.memory_space<vmem>>, vector<1x16xf32>
    %23 = vector.broadcast %22 : vector<1x16xf32> to vector<16x16xf32>
    %24 = arith.addf %21, %23 : vector<16x16xf32>
    %c0_13 = arith.constant 0 : index
    %c0_14 = arith.constant 0 : index
    %c0_15 = arith.constant 0 : index
    %25 = vector.load %arg6[%c0_13, %c0_14, %c0_15] : memref<1x16x16xf32, #tpu.memory_space<vmem>>, vector<1x16x16xf32>
    %26 = vector.shape_cast %25 : vector<1x16x16xf32> to vector<16x16xf32>
    %27 = vector.shape_cast %24 : vector<16x16xf32> to vector<1x16x16xf32>
    tpu.vector_store %arg6[%c0_13, %c0_14, %c0_15], %27 {strides = array<i32>} : memref<1x16x16xf32, #tpu.memory_space<vmem>>, vector<1x16x16xf32>,
    return
  }
  func.func @transform_0(%arg0: i32) -> (i32, i32, i32) {
    %c0_i32 = arith.constant 0 : i32
    %c0_i32_0 = arith.constant 0 : i32
    %c0_i32_1 = arith.constant 0 : i32
    return %arg0, %c0_i32, %c0_i32_0 : i32, i32, i32
  }
  func.func @transform_1(%arg0: i32) -> (i32, i32) {
    %c0_i32 = arith.constant 0 : i32
    %c0_i32_0 = arith.constant 0 : i32
    %c0_i32_1 = arith.constant 0 : i32
    return %c0_i32, %c0_i32_0 : i32, i32
  }
  func.func @transform_2(%arg0: i32) -> (i32, i32) {
    %c0_i32 = arith.constant 0 : i32
    %c0_i32_0 = arith.constant 0 : i32
    %c0_i32_1 = arith.constant 0 : i32
    return %c0_i32, %c0_i32_0 : i32, i32
  }
  func.func @transform_3(%arg0: i32) -> (i32, i32) {
    %c0_i32 = arith.constant 0 : i32
    %c0_i32_0 = arith.constant 0 : i32
    %c0_i32_1 = arith.constant 0 : i32
    return %c0_i32, %c0_i32_0 : i32, i32
  }
  func.func @transform_4(%arg0: i32) -> (i32, i32) {
    %c0_i32 = arith.constant 0 : i32
    %c0_i32_0 = arith.constant 0 : i32
    %c0_i32_1 = arith.constant 0 : i32
    return %c0_i32, %c0_i32_0 : i32, i32
  }
  func.func @transform_5(%arg0: i32) -> (i32, i32, i32) {
    %c0_i32 = arith.constant 0 : i32
    %c0_i32_0 = arith.constant 0 : i32
    %c0_i32_1 = arith.constant 0 : i32
    return %arg0, %c0_i32, %c0_i32_0 : i32, i32, i32
  }
}

module attributes {stable_mosaic.version = 11 : i64} {
  func.func @_linear_ln_pe_kernel(%arg0: i32, %arg1: memref<32x64xf32, #tpu.memory_space<vmem>>, %arg2: memref<64x64xf32, #tpu.memory_space<vmem>>, %arg3: memref<1x64xf32, #tpu.memory_space<vmem>>, %arg4: memref<1x64xf32, #tpu.memory_space<vmem>>, %arg5: memref<1x64xf32, #tpu.memory_space<vmem>>, %arg6: memref<32x64xf32, #tpu.memory_space<vmem>>, %arg7: memref<32x64xf32, #tpu.memory_space<vmem>>) attributes {dimension_semantics = [#tpu.dimension_semantics<parallel>], iteration_bounds = array<i64: 1>, scalar_prefetch = 0 : i64, scratch_operands = 0 : i64, tpu.core_type = #tpu.core_type<tc>, window_params = [{transform_indices = @transform_0, window_bounds = array<i64: 32, 64>}, {pipeline_mode = #tpu.pipeline_mode<synchronous>, transform_indices = @transform_1, window_bounds = array<i64: 64, 64>}, {pipeline_mode = #tpu.pipeline_mode<synchronous>, transform_indices = @transform_2, window_bounds = array<i64: 1, 64>}, {pipeline_mode = #tpu.pipeline_mode<synchronous>, transform_indices = @transform_3, window_bounds = array<i64: 1, 64>}, {pipeline_mode = #tpu.pipeline_mode<synchronous>, transform_indices = @transform_4, window_bounds = array<i64: 1, 64>}, {transform_indices = @transform_5, window_bounds = array<i64: 32, 64>}, {transform_indices = @transform_6, window_bounds = array<i64: 32, 64>}]} {
    %c0 = arith.constant 0 : index
    %c0_0 = arith.constant 0 : index
    %0 = vector.load %arg1[%c0, %c0_0] : memref<32x64xf32, #tpu.memory_space<vmem>>, vector<32x64xf32>
    %c0_1 = arith.constant 0 : index
    %c0_2 = arith.constant 0 : index
    %1 = vector.load %arg2[%c0_1, %c0_2] : memref<64x64xf32, #tpu.memory_space<vmem>>, vector<64x64xf32>
    %cst = arith.constant dense<0.000000e+00> : vector<32x64xf32>
    %2 = tpu.matmul %0, %1, %cst {dimension_numbers = #tpu.dot_dimension_numbers<[1], [0], [0], [1], [0, 0, 1, 1], [], []>} : vector<32x64xf32>, vector<64x64xf32>, vector<32x64xf32> -> vector<32x64xf32>
    %c0_3 = arith.constant 0 : index
    %c0_4 = arith.constant 0 : index
    %3 = vector.load %arg3[%c0_3, %c0_4] : memref<1x64xf32, #tpu.memory_space<vmem>>, vector<1x64xf32>
    %4 = vector.broadcast %3 : vector<1x64xf32> to vector<32x64xf32>
    %5 = arith.addf %2, %4 : vector<32x64xf32>
    %cst_5 = arith.constant dense<0.000000e+00> : vector<32xf32>
    %6 = vector.multi_reduction <add>, %5, %cst_5 [1] : vector<32x64xf32> to vector<32xf32>
    %7 = vector.shape_cast %6 : vector<32xf32> to vector<32x1xf32>
    %cst_6 = arith.constant 6.400000e+01 : f32
    %8 = vector.broadcast %cst_6 : f32 to vector<32x1xf32>
    %9 = arith.divf %7, %8 : vector<32x1xf32>
    %10 = vector.broadcast %9 : vector<32x1xf32> to vector<32x64xf32>
    %11 = arith.subf %5, %10 : vector<32x64xf32>
    %12 = arith.mulf %11, %11 : vector<32x64xf32>
    %cst_7 = arith.constant dense<0.000000e+00> : vector<32xf32>
    %13 = vector.multi_reduction <add>, %12, %cst_7 [1] : vector<32x64xf32> to vector<32xf32>
    %14 = vector.shape_cast %13 : vector<32xf32> to vector<32x1xf32>
    %cst_8 = arith.constant 6.400000e+01 : f32
    %15 = vector.broadcast %cst_8 : f32 to vector<32x1xf32>
    %16 = arith.divf %14, %15 : vector<32x1xf32>
    %17 = vector.broadcast %9 : vector<32x1xf32> to vector<32x64xf32>
    %18 = arith.subf %5, %17 : vector<32x64xf32>
    %cst_9 = arith.constant 9.99999974E-6 : f32
    %19 = vector.broadcast %cst_9 : f32 to vector<32x1xf32>
    %20 = arith.addf %16, %19 : vector<32x1xf32>
    %21 = math.rsqrt %20 : vector<32x1xf32>
    %22 = vector.broadcast %21 : vector<32x1xf32> to vector<32x64xf32>
    %23 = arith.mulf %18, %22 : vector<32x64xf32>
    %c0_10 = arith.constant 0 : index
    %c0_11 = arith.constant 0 : index
    %24 = vector.load %arg4[%c0_10, %c0_11] : memref<1x64xf32, #tpu.memory_space<vmem>>, vector<1x64xf32>
    %25 = vector.broadcast %24 : vector<1x64xf32> to vector<32x64xf32>
    %26 = arith.mulf %23, %25 : vector<32x64xf32>
    %c0_12 = arith.constant 0 : index
    %c0_13 = arith.constant 0 : index
    %27 = vector.load %arg5[%c0_12, %c0_13] : memref<1x64xf32, #tpu.memory_space<vmem>>, vector<1x64xf32>
    %28 = vector.broadcast %27 : vector<1x64xf32> to vector<32x64xf32>
    %29 = arith.addf %26, %28 : vector<32x64xf32>
    %c0_14 = arith.constant 0 : index
    %c0_15 = arith.constant 0 : index
    %30 = vector.load %arg6[%c0_14, %c0_15] : memref<32x64xf32, #tpu.memory_space<vmem>>, vector<32x64xf32>
    %31 = arith.addf %29, %30 : vector<32x64xf32>
    %c0_16 = arith.constant 0 : index
    %c0_17 = arith.constant 0 : index
    %32 = vector.load %arg7[%c0_16, %c0_17] : memref<32x64xf32, #tpu.memory_space<vmem>>, vector<32x64xf32>
    tpu.vector_store %arg7[%c0_16, %c0_17], %31 {strides = array<i32>} : memref<32x64xf32, #tpu.memory_space<vmem>>, vector<32x64xf32>,
    return
  }
  func.func @transform_0(%arg0: i32) -> (i32, i32) {
    %c0_i32 = arith.constant 0 : i32
    %c0_i32_0 = arith.constant 0 : i32
    return %arg0, %c0_i32 : i32, i32
  }
  func.func @transform_1(%arg0: i32) -> (i32, i32) {
    %c0_i32 = arith.constant 0 : i32
    %c0_i32_0 = arith.constant 0 : i32
    %c0_i32_1 = arith.constant 0 : i32
    return %c0_i32, %c0_i32_0 : i32, i32
  }
  func.func @transform_2(%arg0: i32) -> (i32, i32) {
    %c0_i32 = arith.constant 0 : i32
    %c0_i32_0 = arith.constant 0 : i32
    %c0_i32_1 = arith.constant 0 : i32
    return %c0_i32, %c0_i32_0 : i32, i32
  }
  func.func @transform_3(%arg0: i32) -> (i32, i32) {
    %c0_i32 = arith.constant 0 : i32
    %c0_i32_0 = arith.constant 0 : i32
    %c0_i32_1 = arith.constant 0 : i32
    return %c0_i32, %c0_i32_0 : i32, i32
  }
  func.func @transform_4(%arg0: i32) -> (i32, i32) {
    %c0_i32 = arith.constant 0 : i32
    %c0_i32_0 = arith.constant 0 : i32
    %c0_i32_1 = arith.constant 0 : i32
    return %c0_i32, %c0_i32_0 : i32, i32
  }
  func.func @transform_5(%arg0: i32) -> (i32, i32) {
    %c0_i32 = arith.constant 0 : i32
    %c0_i32_0 = arith.constant 0 : i32
    return %arg0, %c0_i32 : i32, i32
  }
  func.func @transform_6(%arg0: i32) -> (i32, i32) {
    %c0_i32 = arith.constant 0 : i32
    %c0_i32_0 = arith.constant 0 : i32
    return %arg0, %c0_i32 : i32, i32
  }
}

module attributes {stable_mosaic.version = 11 : i64} {
  func.func @_mm_kernel(%arg0: i32, %arg1: memref<32x64xf32, #tpu.memory_space<vmem>>, %arg2: memref<64x192xf32, #tpu.memory_space<vmem>>, %arg3: memref<1x192xf32, #tpu.memory_space<vmem>>, %arg4: memref<1x192xf32, #tpu.memory_space<vmem>>, %arg5: memref<1x192xf32, #tpu.memory_space<vmem>>, %arg6: memref<32x192xf32, #tpu.memory_space<vmem>>) attributes {dimension_semantics = [#tpu.dimension_semantics<parallel>], iteration_bounds = array<i64: 1>, scalar_prefetch = 0 : i64, scratch_operands = 0 : i64, tpu.core_type = #tpu.core_type<tc>, window_params = [{transform_indices = @transform_0, window_bounds = array<i64: 32, 64>}, {pipeline_mode = #tpu.pipeline_mode<synchronous>, transform_indices = @transform_1, window_bounds = array<i64: 64, 192>}, {pipeline_mode = #tpu.pipeline_mode<synchronous>, transform_indices = @transform_2, window_bounds = array<i64: 1, 192>}, {pipeline_mode = #tpu.pipeline_mode<synchronous>, transform_indices = @transform_3, window_bounds = array<i64: 1, 192>}, {pipeline_mode = #tpu.pipeline_mode<synchronous>, transform_indices = @transform_4, window_bounds = array<i64: 1, 192>}, {transform_indices = @transform_5, window_bounds = array<i64: 32, 192>}]} {
    %c0 = arith.constant 0 : index
    %c0_0 = arith.constant 0 : index
    %0 = vector.load %arg1[%c0, %c0_0] : memref<32x64xf32, #tpu.memory_space<vmem>>, vector<32x64xf32>
    %c0_1 = arith.constant 0 : index
    %c0_2 = arith.constant 0 : index
    %1 = vector.load %arg2[%c0_1, %c0_2] : memref<64x192xf32, #tpu.memory_space<vmem>>, vector<64x192xf32>
    %cst = arith.constant dense<0.000000e+00> : vector<32x192xf32>
    %2 = tpu.matmul %0, %1, %cst {dimension_numbers = #tpu.dot_dimension_numbers<[1], [0], [0], [1], [0, 0, 1, 1], [], []>} : vector<32x64xf32>, vector<64x192xf32>, vector<32x192xf32> -> vector<32x192xf32>
    %c0_3 = arith.constant 0 : index
    %c0_4 = arith.constant 0 : index
    %3 = vector.load %arg3[%c0_3, %c0_4] : memref<1x192xf32, #tpu.memory_space<vmem>>, vector<1x192xf32>
    %4 = vector.broadcast %3 : vector<1x192xf32> to vector<32x192xf32>
    %5 = arith.addf %2, %4 : vector<32x192xf32>
    %c0_5 = arith.constant 0 : index
    %c0_6 = arith.constant 0 : index
    %6 = vector.load %arg4[%c0_5, %c0_6] : memref<1x192xf32, #tpu.memory_space<vmem>>, vector<1x192xf32>
    %7 = vector.broadcast %6 : vector<1x192xf32> to vector<32x192xf32>
    %8 = arith.mulf %5, %7 : vector<32x192xf32>
    %c0_7 = arith.constant 0 : index
    %c0_8 = arith.constant 0 : index
    %9 = vector.load %arg5[%c0_7, %c0_8] : memref<1x192xf32, #tpu.memory_space<vmem>>, vector<1x192xf32>
    %10 = vector.broadcast %9 : vector<1x192xf32> to vector<32x192xf32>
    %11 = arith.addf %8, %10 : vector<32x192xf32>
    %c0_9 = arith.constant 0 : index
    %c0_10 = arith.constant 0 : index
    %12 = vector.load %arg6[%c0_9, %c0_10] : memref<32x192xf32, #tpu.memory_space<vmem>>, vector<32x192xf32>
    tpu.vector_store %arg6[%c0_9, %c0_10], %11 {strides = array<i32>} : memref<32x192xf32, #tpu.memory_space<vmem>>, vector<32x192xf32>,
    return
  }
  func.func @transform_0(%arg0: i32) -> (i32, i32) {
    %c0_i32 = arith.constant 0 : i32
    %c0_i32_0 = arith.constant 0 : i32
    return %arg0, %c0_i32 : i32, i32
  }
  func.func @transform_1(%arg0: i32) -> (i32, i32) {
    %c0_i32 = arith.constant 0 : i32
    %c0_i32_0 = arith.constant 0 : i32
    %c0_i32_1 = arith.constant 0 : i32
    return %c0_i32, %c0_i32_0 : i32, i32
  }
  func.func @transform_2(%arg0: i32) -> (i32, i32) {
    %c0_i32 = arith.constant 0 : i32
    %c0_i32_0 = arith.constant 0 : i32
    %c0_i32_1 = arith.constant 0 : i32
    return %c0_i32, %c0_i32_0 : i32, i32
  }
  func.func @transform_3(%arg0: i32) -> (i32, i32) {
    %c0_i32 = arith.constant 0 : i32
    %c0_i32_0 = arith.constant 0 : i32
    %c0_i32_1 = arith.constant 0 : i32
    return %c0_i32, %c0_i32_0 : i32, i32
  }
  func.func @transform_4(%arg0: i32) -> (i32, i32) {
    %c0_i32 = arith.constant 0 : i32
    %c0_i32_0 = arith.constant 0 : i32
    %c0_i32_1 = arith.constant 0 : i32
    return %c0_i32, %c0_i32_0 : i32, i32
  }
  func.func @transform_5(%arg0: i32) -> (i32, i32) {
    %c0_i32 = arith.constant 0 : i32
    %c0_i32_0 = arith.constant 0 : i32
    return %arg0, %c0_i32 : i32, i32
  }
}

module attributes {stable_mosaic.version = 11 : i64} {
  func.func @_attn_kernel(%arg0: memref<8x16x16xf32, #tpu.memory_space<vmem>>, %arg1: memref<8x16x16xf32, #tpu.memory_space<vmem>>, %arg2: memref<8x16x16xf32, #tpu.memory_space<vmem>>, %arg3: memref<8x16x16xf32, #tpu.memory_space<vmem>>) attributes {dimension_semantics = [], scalar_prefetch = 0 : i64, scratch_operands = 0 : i64, tpu.core_type = #tpu.core_type<tc>} {
    %c0 = arith.constant 0 : index
    %c0_0 = arith.constant 0 : index
    %c0_1 = arith.constant 0 : index
    %0 = vector.load %arg0[%c0, %c0_0, %c0_1] : memref<8x16x16xf32, #tpu.memory_space<vmem>>, vector<8x16x16xf32>
    %c0_2 = arith.constant 0 : index
    %c0_3 = arith.constant 0 : index
    %c0_4 = arith.constant 0 : index
    %1 = vector.load %arg1[%c0_2, %c0_3, %c0_4] : memref<8x16x16xf32, #tpu.memory_space<vmem>>, vector<8x16x16xf32>
    %c0_5 = arith.constant 0 : index
    %c0_6 = arith.constant 0 : index
    %c0_7 = arith.constant 0 : index
    %2 = vector.load %arg2[%c0_5, %c0_6, %c0_7] : memref<8x16x16xf32, #tpu.memory_space<vmem>>, vector<8x16x16xf32>
    "tpu.trace_start"() <{level = 10 : i32, message = "bqd,bkd->bqk"}> : () -> ()
    %cst = arith.constant dense<0.000000e+00> : vector<8x16x16xf32>
    %3 = tpu.matmul %0, %1, %cst {dimension_numbers = #tpu.dot_dimension_numbers<[2], [2], [1], [1], [0, 0, 0, 1, 1, 1], [0], [0]>} : vector<8x16x16xf32>, vector<8x16x16xf32>, vector<8x16x16xf32> -> vector<8x16x16xf32>
    "tpu.trace_stop"() : () -> ()
    %cst_8 = arith.constant 2.500000e-01 : f32
    %4 = vector.broadcast %cst_8 : f32 to vector<8x16x16xf32>
    %5 = arith.mulf %3, %4 : vector<8x16x16xf32>
    %cst_9 = arith.constant dense<0xFF800000> : vector<8x16xf32>
    %6 = vector.multi_reduction <maximumf>, %5, %cst_9 [2] : vector<8x16x16xf32> to vector<8x16xf32>
    %7 = vector.shape_cast %6 : vector<8x16xf32> to vector<8x16x1xf32>
    %8 = vector.broadcast %7 : vector<8x16x1xf32> to vector<8x16x16xf32>
    %9 = arith.subf %5, %8 : vector<8x16x16xf32>
    %10 = math.exp %9 : vector<8x16x16xf32>
    %cst_10 = arith.constant dense<0.000000e+00> : vector<8x16xf32>
    %11 = vector.multi_reduction <add>, %10, %cst_10 [2] : vector<8x16x16xf32> to vector<8x16xf32>
    %12 = vector.shape_cast %11 : vector<8x16xf32> to vector<8x16x1xf32>
    %13 = vector.broadcast %12 : vector<8x16x1xf32> to vector<8x16x16xf32>
    %14 = arith.divf %10, %13 : vector<8x16x16xf32>
    "tpu.trace_start"() <{level = 10 : i32, message = "bqk,bkd->bqd"}> : () -> ()
    %cst_11 = arith.constant dense<0.000000e+00> : vector<8x16x16xf32>
    %15 = tpu.matmul %14, %2, %cst_11 {dimension_numbers = #tpu.dot_dimension_numbers<[2], [1], [1], [2], [0, 0, 0, 1, 1, 2], [0], [0]>} : vector<8x16x16xf32>, vector<8x16x16xf32>, vector<8x16x16xf32> -> vector<8x16x16xf32>
    "tpu.trace_stop"() : () -> ()
    %c0_12 = arith.constant 0 : index
    %c0_13 = arith.constant 0 : index
    %c0_14 = arith.constant 0 : index
    %16 = vector.load %arg3[%c0_12, %c0_13, %c0_14] : memref<8x16x16xf32, #tpu.memory_space<vmem>>, vector<8x16x16xf32>
    tpu.vector_store %arg3[%c0_12, %c0_13, %c0_14], %15 {strides = array<i32>} : memref<8x16x16xf32, #tpu.memory_space<vmem>>, vector<8x16x16xf32>,
    return
  }
}

module attributes {stable_mosaic.version = 11 : i64} {
  func.func @_proj_res_ln_kernel(%arg0: i32, %arg1: memref<32x64xf32, #tpu.memory_space<vmem>>, %arg2: memref<64x64xf32, #tpu.memory_space<vmem>>, %arg3: memref<1x64xf32, #tpu.memory_space<vmem>>, %arg4: memref<32x64xf32, #tpu.memory_space<vmem>>, %arg5: memref<1x64xf32, #tpu.memory_space<vmem>>, %arg6: memref<1x64xf32, #tpu.memory_space<vmem>>, %arg7: memref<32x64xf32, #tpu.memory_space<vmem>>) attributes {dimension_semantics = [#tpu.dimension_semantics<parallel>], iteration_bounds = array<i64: 1>, scalar_prefetch = 0 : i64, scratch_operands = 0 : i64, tpu.core_type = #tpu.core_type<tc>, window_params = [{transform_indices = @transform_0, window_bounds = array<i64: 32, 64>}, {pipeline_mode = #tpu.pipeline_mode<synchronous>, transform_indices = @transform_1, window_bounds = array<i64: 64, 64>}, {pipeline_mode = #tpu.pipeline_mode<synchronous>, transform_indices = @transform_2, window_bounds = array<i64: 1, 64>}, {transform_indices = @transform_3, window_bounds = array<i64: 32, 64>}, {pipeline_mode = #tpu.pipeline_mode<synchronous>, transform_indices = @transform_4, window_bounds = array<i64: 1, 64>}, {pipeline_mode = #tpu.pipeline_mode<synchronous>, transform_indices = @transform_5, window_bounds = array<i64: 1, 64>}, {transform_indices = @transform_6, window_bounds = array<i64: 32, 64>}]} {
    %c0 = arith.constant 0 : index
    %c0_0 = arith.constant 0 : index
    %0 = vector.load %arg1[%c0, %c0_0] : memref<32x64xf32, #tpu.memory_space<vmem>>, vector<32x64xf32>
    %c0_1 = arith.constant 0 : index
    %c0_2 = arith.constant 0 : index
    %1 = vector.load %arg2[%c0_1, %c0_2] : memref<64x64xf32, #tpu.memory_space<vmem>>, vector<64x64xf32>
    %cst = arith.constant dense<0.000000e+00> : vector<32x64xf32>
    %2 = tpu.matmul %0, %1, %cst {dimension_numbers = #tpu.dot_dimension_numbers<[1], [0], [0], [1], [0, 0, 1, 1], [], []>} : vector<32x64xf32>, vector<64x64xf32>, vector<32x64xf32> -> vector<32x64xf32>
    %c0_3 = arith.constant 0 : index
    %c0_4 = arith.constant 0 : index
    %3 = vector.load %arg3[%c0_3, %c0_4] : memref<1x64xf32, #tpu.memory_space<vmem>>, vector<1x64xf32>
    %4 = vector.broadcast %3 : vector<1x64xf32> to vector<32x64xf32>
    %5 = arith.addf %2, %4 : vector<32x64xf32>
    %c0_5 = arith.constant 0 : index
    %c0_6 = arith.constant 0 : index
    %6 = vector.load %arg4[%c0_5, %c0_6] : memref<32x64xf32, #tpu.memory_space<vmem>>, vector<32x64xf32>
    %7 = arith.addf %5, %6 : vector<32x64xf32>
    %cst_7 = arith.constant dense<0.000000e+00> : vector<32xf32>
    %8 = vector.multi_reduction <add>, %7, %cst_7 [1] : vector<32x64xf32> to vector<32xf32>
    %9 = vector.shape_cast %8 : vector<32xf32> to vector<32x1xf32>
    %cst_8 = arith.constant 6.400000e+01 : f32
    %10 = vector.broadcast %cst_8 : f32 to vector<32x1xf32>
    %11 = arith.divf %9, %10 : vector<32x1xf32>
    %12 = vector.broadcast %11 : vector<32x1xf32> to vector<32x64xf32>
    %13 = arith.subf %7, %12 : vector<32x64xf32>
    %14 = arith.mulf %13, %13 : vector<32x64xf32>
    %cst_9 = arith.constant dense<0.000000e+00> : vector<32xf32>
    %15 = vector.multi_reduction <add>, %14, %cst_9 [1] : vector<32x64xf32> to vector<32xf32>
    %16 = vector.shape_cast %15 : vector<32xf32> to vector<32x1xf32>
    %cst_10 = arith.constant 6.400000e+01 : f32
    %17 = vector.broadcast %cst_10 : f32 to vector<32x1xf32>
    %18 = arith.divf %16, %17 : vector<32x1xf32>
    %19 = vector.broadcast %11 : vector<32x1xf32> to vector<32x64xf32>
    %20 = arith.subf %7, %19 : vector<32x64xf32>
    %cst_11 = arith.constant 9.99999974E-6 : f32
    %21 = vector.broadcast %cst_11 : f32 to vector<32x1xf32>
    %22 = arith.addf %18, %21 : vector<32x1xf32>
    %23 = math.rsqrt %22 : vector<32x1xf32>
    %24 = vector.broadcast %23 : vector<32x1xf32> to vector<32x64xf32>
    %25 = arith.mulf %20, %24 : vector<32x64xf32>
    %c0_12 = arith.constant 0 : index
    %c0_13 = arith.constant 0 : index
    %26 = vector.load %arg5[%c0_12, %c0_13] : memref<1x64xf32, #tpu.memory_space<vmem>>, vector<1x64xf32>
    %27 = vector.broadcast %26 : vector<1x64xf32> to vector<32x64xf32>
    %28 = arith.mulf %25, %27 : vector<32x64xf32>
    %c0_14 = arith.constant 0 : index
    %c0_15 = arith.constant 0 : index
    %29 = vector.load %arg6[%c0_14, %c0_15] : memref<1x64xf32, #tpu.memory_space<vmem>>, vector<1x64xf32>
    %30 = vector.broadcast %29 : vector<1x64xf32> to vector<32x64xf32>
    %31 = arith.addf %28, %30 : vector<32x64xf32>
    %c0_16 = arith.constant 0 : index
    %c0_17 = arith.constant 0 : index
    %32 = vector.load %arg7[%c0_16, %c0_17] : memref<32x64xf32, #tpu.memory_space<vmem>>, vector<32x64xf32>
    tpu.vector_store %arg7[%c0_16, %c0_17], %31 {strides = array<i32>} : memref<32x64xf32, #tpu.memory_space<vmem>>, vector<32x64xf32>,
    return
  }
  func.func @transform_0(%arg0: i32) -> (i32, i32) {
    %c0_i32 = arith.constant 0 : i32
    %c0_i32_0 = arith.constant 0 : i32
    return %arg0, %c0_i32 : i32, i32
  }
  func.func @transform_1(%arg0: i32) -> (i32, i32) {
    %c0_i32 = arith.constant 0 : i32
    %c0_i32_0 = arith.constant 0 : i32
    %c0_i32_1 = arith.constant 0 : i32
    return %c0_i32, %c0_i32_0 : i32, i32
  }
  func.func @transform_2(%arg0: i32) -> (i32, i32) {
    %c0_i32 = arith.constant 0 : i32
    %c0_i32_0 = arith.constant 0 : i32
    %c0_i32_1 = arith.constant 0 : i32
    return %c0_i32, %c0_i32_0 : i32, i32
  }
  func.func @transform_3(%arg0: i32) -> (i32, i32) {
    %c0_i32 = arith.constant 0 : i32
    %c0_i32_0 = arith.constant 0 : i32
    return %arg0, %c0_i32 : i32, i32
  }
  func.func @transform_4(%arg0: i32) -> (i32, i32) {
    %c0_i32 = arith.constant 0 : i32
    %c0_i32_0 = arith.constant 0 : i32
    %c0_i32_1 = arith.constant 0 : i32
    return %c0_i32, %c0_i32_0 : i32, i32
  }
  func.func @transform_5(%arg0: i32) -> (i32, i32) {
    %c0_i32 = arith.constant 0 : i32
    %c0_i32_0 = arith.constant 0 : i32
    %c0_i32_1 = arith.constant 0 : i32
    return %c0_i32, %c0_i32_0 : i32, i32
  }
  func.func @transform_6(%arg0: i32) -> (i32, i32) {
    %c0_i32 = arith.constant 0 : i32
    %c0_i32_0 = arith.constant 0 : i32
    return %arg0, %c0_i32 : i32, i32
  }
}

module attributes {stable_mosaic.version = 11 : i64} {
  func.func @_ffn_kernel(%arg0: i32, %arg1: memref<32x64xf32, #tpu.memory_space<vmem>>, %arg2: memref<64x48xf32, #tpu.memory_space<vmem>>, %arg3: memref<1x48xf32, #tpu.memory_space<vmem>>, %arg4: memref<48x64xf32, #tpu.memory_space<vmem>>, %arg5: memref<1x64xf32, #tpu.memory_space<vmem>>, %arg6: memref<1x64xf32, #tpu.memory_space<vmem>>, %arg7: memref<1x64xf32, #tpu.memory_space<vmem>>, %arg8: memref<32x64xf32, #tpu.memory_space<vmem>>) attributes {dimension_semantics = [#tpu.dimension_semantics<parallel>], iteration_bounds = array<i64: 1>, scalar_prefetch = 0 : i64, scratch_operands = 0 : i64, tpu.core_type = #tpu.core_type<tc>, window_params = [{transform_indices = @transform_0, window_bounds = array<i64: 32, 64>}, {pipeline_mode = #tpu.pipeline_mode<synchronous>, transform_indices = @transform_1, window_bounds = array<i64: 64, 48>}, {pipeline_mode = #tpu.pipeline_mode<synchronous>, transform_indices = @transform_2, window_bounds = array<i64: 1, 48>}, {pipeline_mode = #tpu.pipeline_mode<synchronous>, transform_indices = @transform_3, window_bounds = array<i64: 48, 64>}, {pipeline_mode = #tpu.pipeline_mode<synchronous>, transform_indices = @transform_4, window_bounds = array<i64: 1, 64>}, {pipeline_mode = #tpu.pipeline_mode<synchronous>, transform_indices = @transform_5, window_bounds = array<i64: 1, 64>}, {pipeline_mode = #tpu.pipeline_mode<synchronous>, transform_indices = @transform_6, window_bounds = array<i64: 1, 64>}, {transform_indices = @transform_7, window_bounds = array<i64: 32, 64>}]} {
    %c0 = arith.constant 0 : index
    %c0_0 = arith.constant 0 : index
    %0 = vector.load %arg1[%c0, %c0_0] : memref<32x64xf32, #tpu.memory_space<vmem>>, vector<32x64xf32>
    %c0_1 = arith.constant 0 : index
    %c0_2 = arith.constant 0 : index
    %1 = vector.load %arg2[%c0_1, %c0_2] : memref<64x48xf32, #tpu.memory_space<vmem>>, vector<64x48xf32>
    %cst = arith.constant dense<0.000000e+00> : vector<32x48xf32>
    %2 = tpu.matmul %0, %1, %cst {dimension_numbers = #tpu.dot_dimension_numbers<[1], [0], [0], [1], [0, 0, 1, 1], [], []>} : vector<32x64xf32>, vector<64x48xf32>, vector<32x48xf32> -> vector<32x48xf32>
    %c0_3 = arith.constant 0 : index
    %c0_4 = arith.constant 0 : index
    %3 = vector.load %arg3[%c0_3, %c0_4] : memref<1x48xf32, #tpu.memory_space<vmem>>, vector<1x48xf32>
    %4 = vector.broadcast %3 : vector<1x48xf32> to vector<32x48xf32>
    %5 = arith.addf %2, %4 : vector<32x48xf32>
    %cst_5 = arith.constant 0.000000e+00 : f32
    %6 = vector.broadcast %cst_5 : f32 to vector<32x48xf32>
    %7 = arith.maximumf %5, %6 : vector<32x48xf32>
    %c0_6 = arith.constant 0 : index
    %c0_7 = arith.constant 0 : index
    %8 = vector.load %arg4[%c0_6, %c0_7] : memref<48x64xf32, #tpu.memory_space<vmem>>, vector<48x64xf32>
    %cst_8 = arith.constant dense<0.000000e+00> : vector<32x64xf32>
    %9 = tpu.matmul %7, %8, %cst_8 {dimension_numbers = #tpu.dot_dimension_numbers<[1], [0], [0], [1], [0, 0, 1, 1], [], []>} : vector<32x48xf32>, vector<48x64xf32>, vector<32x64xf32> -> vector<32x64xf32>
    %c0_9 = arith.constant 0 : index
    %c0_10 = arith.constant 0 : index
    %10 = vector.load %arg5[%c0_9, %c0_10] : memref<1x64xf32, #tpu.memory_space<vmem>>, vector<1x64xf32>
    %11 = vector.broadcast %10 : vector<1x64xf32> to vector<32x64xf32>
    %12 = arith.addf %9, %11 : vector<32x64xf32>
    %13 = arith.addf %12, %0 : vector<32x64xf32>
    %cst_11 = arith.constant dense<0.000000e+00> : vector<32xf32>
    %14 = vector.multi_reduction <add>, %13, %cst_11 [1] : vector<32x64xf32> to vector<32xf32>
    %15 = vector.shape_cast %14 : vector<32xf32> to vector<32x1xf32>
    %cst_12 = arith.constant 6.400000e+01 : f32
    %16 = vector.broadcast %cst_12 : f32 to vector<32x1xf32>
    %17 = arith.divf %15, %16 : vector<32x1xf32>
    %18 = vector.broadcast %17 : vector<32x1xf32> to vector<32x64xf32>
    %19 = arith.subf %13, %18 : vector<32x64xf32>
    %20 = arith.mulf %19, %19 : vector<32x64xf32>
    %cst_13 = arith.constant dense<0.000000e+00> : vector<32xf32>
    %21 = vector.multi_reduction <add>, %20, %cst_13 [1] : vector<32x64xf32> to vector<32xf32>
    %22 = vector.shape_cast %21 : vector<32xf32> to vector<32x1xf32>
    %cst_14 = arith.constant 6.400000e+01 : f32
    %23 = vector.broadcast %cst_14 : f32 to vector<32x1xf32>
    %24 = arith.divf %22, %23 : vector<32x1xf32>
    %25 = vector.broadcast %17 : vector<32x1xf32> to vector<32x64xf32>
    %26 = arith.subf %13, %25 : vector<32x64xf32>
    %cst_15 = arith.constant 9.99999974E-6 : f32
    %27 = vector.broadcast %cst_15 : f32 to vector<32x1xf32>
    %28 = arith.addf %24, %27 : vector<32x1xf32>
    %29 = math.rsqrt %28 : vector<32x1xf32>
    %30 = vector.broadcast %29 : vector<32x1xf32> to vector<32x64xf32>
    %31 = arith.mulf %26, %30 : vector<32x64xf32>
    %c0_16 = arith.constant 0 : index
    %c0_17 = arith.constant 0 : index
    %32 = vector.load %arg6[%c0_16, %c0_17] : memref<1x64xf32, #tpu.memory_space<vmem>>, vector<1x64xf32>
    %33 = vector.broadcast %32 : vector<1x64xf32> to vector<32x64xf32>
    %34 = arith.mulf %31, %33 : vector<32x64xf32>
    %c0_18 = arith.constant 0 : index
    %c0_19 = arith.constant 0 : index
    %35 = vector.load %arg7[%c0_18, %c0_19] : memref<1x64xf32, #tpu.memory_space<vmem>>, vector<1x64xf32>
    %36 = vector.broadcast %35 : vector<1x64xf32> to vector<32x64xf32>
    %37 = arith.addf %34, %36 : vector<32x64xf32>
    %c0_20 = arith.constant 0 : index
    %c0_21 = arith.constant 0 : index
    %38 = vector.load %arg8[%c0_20, %c0_21] : memref<32x64xf32, #tpu.memory_space<vmem>>, vector<32x64xf32>
    tpu.vector_store %arg8[%c0_20, %c0_21], %37 {strides = array<i32>} : memref<32x64xf32, #tpu.memory_space<vmem>>, vector<32x64xf32>,
    return
  }
  func.func @transform_0(%arg0: i32) -> (i32, i32) {
    %c0_i32 = arith.constant 0 : i32
    %c0_i32_0 = arith.constant 0 : i32
    return %arg0, %c0_i32 : i32, i32
  }
  func.func @transform_1(%arg0: i32) -> (i32, i32) {
    %c0_i32 = arith.constant 0 : i32
    %c0_i32_0 = arith.constant 0 : i32
    %c0_i32_1 = arith.constant 0 : i32
    return %c0_i32, %c0_i32_0 : i32, i32
  }
  func.func @transform_2(%arg0: i32) -> (i32, i32) {
    %c0_i32 = arith.constant 0 : i32
    %c0_i32_0 = arith.constant 0 : i32
    %c0_i32_1 = arith.constant 0 : i32
    return %c0_i32, %c0_i32_0 : i32, i32
  }
  func.func @transform_3(%arg0: i32) -> (i32, i32) {
    %c0_i32 = arith.constant 0 : i32
    %c0_i32_0 = arith.constant 0 : i32
    %c0_i32_1 = arith.constant 0 : i32
    return %c0_i32, %c0_i32_0 : i32, i32
  }
  func.func @transform_4(%arg0: i32) -> (i32, i32) {
    %c0_i32 = arith.constant 0 : i32
    %c0_i32_0 = arith.constant 0 : i32
    %c0_i32_1 = arith.constant 0 : i32
    return %c0_i32, %c0_i32_0 : i32, i32
  }
  func.func @transform_5(%arg0: i32) -> (i32, i32) {
    %c0_i32 = arith.constant 0 : i32
    %c0_i32_0 = arith.constant 0 : i32
    %c0_i32_1 = arith.constant 0 : i32
    return %c0_i32, %c0_i32_0 : i32, i32
  }
  func.func @transform_6(%arg0: i32) -> (i32, i32) {
    %c0_i32 = arith.constant 0 : i32
    %c0_i32_0 = arith.constant 0 : i32
    %c0_i32_1 = arith.constant 0 : i32
    return %c0_i32, %c0_i32_0 : i32, i32
  }
  func.func @transform_7(%arg0: i32) -> (i32, i32) {
    %c0_i32 = arith.constant 0 : i32
    %c0_i32_0 = arith.constant 0 : i32
    return %arg0, %c0_i32 : i32, i32
  }
}

module attributes {stable_mosaic.version = 11 : i64} {
  func.func @_mfa_asp_kernel(%arg0: i32, %arg1: memref<1x16x64xf32, #tpu.memory_space<vmem>>, %arg2: memref<1x16x64xf32, #tpu.memory_space<vmem>>, %arg3: memref<1x16x64xf32, #tpu.memory_space<vmem>>, %arg4: memref<1x16x64xf32, #tpu.memory_space<vmem>>, %arg5: memref<256x256xf32, #tpu.memory_space<vmem>>, %arg6: memref<1x256xf32, #tpu.memory_space<vmem>>, %arg7: memref<1x256xf32, #tpu.memory_space<vmem>>, %arg8: memref<1x256xf32, #tpu.memory_space<vmem>>, %arg9: memref<768x32xf32, #tpu.memory_space<vmem>>, %arg10: memref<1x32xf32, #tpu.memory_space<vmem>>, %arg11: memref<1x32xf32, #tpu.memory_space<vmem>>, %arg12: memref<1x32xf32, #tpu.memory_space<vmem>>, %arg13: memref<32x256xf32, #tpu.memory_space<vmem>>, %arg14: memref<1x256xf32, #tpu.memory_space<vmem>>, %arg15: memref<768x32xf32, #tpu.memory_space<vmem>>, %arg16: memref<1x32xf32, #tpu.memory_space<vmem>>, %arg17: memref<1x32xf32, #tpu.memory_space<vmem>>, %arg18: memref<1x32xf32, #tpu.memory_space<vmem>>, %arg19: memref<32x256xf32, #tpu.memory_space<vmem>>, %arg20: memref<1x256xf32, #tpu.memory_space<vmem>>, %arg21: memref<1x1024xf32, #tpu.memory_space<vmem>>, %arg22: memref<1x1024xf32, #tpu.memory_space<vmem>>, %arg23: memref<1x1x1024xf32, #tpu.memory_space<vmem>>) attributes {dimension_semantics = [#tpu.dimension_semantics<parallel>], iteration_bounds = array<i64: 2>, scalar_prefetch = 0 : i64, scratch_operands = 0 : i64, tpu.core_type = #tpu.core_type<tc>, window_params = [{transform_indices = @transform_0, window_bounds = array<i64: 1, 16, 64>}, {transform_indices = @transform_1, window_bounds = array<i64: 1, 16, 64>}, {transform_indices = @transform_2, window_bounds = array<i64: 1, 16, 64>}, {transform_indices = @transform_3, window_bounds = array<i64: 1, 16, 64>}, {pipeline_mode = #tpu.pipeline_mode<synchronous>, transform_indices = @transform_4, window_bounds = array<i64: 256, 256>}, {pipeline_mode = #tpu.pipeline_mode<synchronous>, transform_indices = @transform_5, window_bounds = array<i64: 1, 256>}, {pipeline_mode = #tpu.pipeline_mode<synchronous>, transform_indices = @transform_6, window_bounds = array<i64: 1, 256>}, {pipeline_mode = #tpu.pipeline_mode<synchronous>, transform_indices = @transform_7, window_bounds = array<i64: 1, 256>}, {pipeline_mode = #tpu.pipeline_mode<synchronous>, transform_indices = @transform_8, window_bounds = array<i64: 768, 32>}, {pipeline_mode = #tpu.pipeline_mode<synchronous>, transform_indices = @transform_9, window_bounds = array<i64: 1, 32>}, {pipeline_mode = #tpu.pipeline_mode<synchronous>, transform_indices = @transform_10, window_bounds = array<i64: 1, 32>}, {pipeline_mode = #tpu.pipeline_mode<synchronous>, transform_indices = @transform_11, window_bounds = array<i64: 1, 32>}, {pipeline_mode = #tpu.pipeline_mode<synchronous>, transform_indices = @transform_12, window_bounds = array<i64: 32, 256>}, {pipeline_mode = #tpu.pipeline_mode<synchronous>, transform_indices = @transform_13, window_bounds = array<i64: 1, 256>}, {pipeline_mode = #tpu.pipeline_mode<synchronous>, transform_indices = @transform_14, window_bounds = array<i64: 768, 32>}, {pipeline_mode = #tpu.pipeline_mode<synchronous>, transform_indices = @transform_15, window_bounds = array<i64: 1, 32>}, {pipeline_mode = #tpu.pipeline_mode<synchronous>, transform_indices = @transform_16, window_bounds = array<i64: 1, 32>}, {pipeline_mode = #tpu.pipeline_mode<synchronous>, transform_indices = @transform_17, window_bounds = array<i64: 1, 32>}, {pipeline_mode = #tpu.pipeline_mode<synchronous>, transform_indices = @transform_18, window_bounds = array<i64: 32, 256>}, {pipeline_mode = #tpu.pipeline_mode<synchronous>, transform_indices = @transform_19, window_bounds = array<i64: 1, 256>}, {pipeline_mode = #tpu.pipeline_mode<synchronous>, transform_indices = @transform_20, window_bounds = array<i64: 1, 1024>}, {pipeline_mode = #tpu.pipeline_mode<synchronous>, transform_indices = @transform_21, window_bounds = array<i64: 1, 1024>}, {transform_indices = @transform_22, window_bounds = array<i64: 1, 1, 1024>}]} {
    %c0 = arith.constant 0 : index
    %c0_0 = arith.constant 0 : index
    %0 = vector.load %arg5[%c0, %c0_0] : memref<256x256xf32, #tpu.memory_space<vmem>>, vector<256x256xf32>
    %c0_1 = arith.constant 0 : index
    %c0_2 = arith.constant 0 : index
    %c0_3 = arith.constant 0 : index
    %1 = vector.load %arg1[%c0_1, %c0_2, %c0_3] : memref<1x16x64xf32, #tpu.memory_space<vmem>>, vector<1x16x64xf32>
    %2 = vector.shape_cast %1 : vector<1x16x64xf32> to vector<16x64xf32>
    %3 = vector.extract_strided_slice %0 {offsets = [0, 0], sizes = [64, 256], strides = [1, 1]} : vector<256x256xf32> to vector<64x256xf32>
    %cst = arith.constant dense<0.000000e+00> : vector<16x256xf32>
    %4 = tpu.matmul %2, %3, %cst {dimension_numbers = #tpu.dot_dimension_numbers<[1], [0], [0], [1], [0, 0, 1, 1], [], []>} : vector<16x64xf32>, vector<64x256xf32>, vector<16x256xf32> -> vector<16x256xf32>
    %c0_4 = arith.constant 0 : index
    %c0_5 = arith.constant 0 : index
    %c0_6 = arith.constant 0 : index
    %5 = vector.load %arg2[%c0_4, %c0_5, %c0_6] : memref<1x16x64xf32, #tpu.memory_space<vmem>>, vector<1x16x64xf32>
    %6 = vector.shape_cast %5 : vector<1x16x64xf32> to vector<16x64xf32>
    %7 = vector.extract_strided_slice %0 {offsets = [64, 0], sizes = [64, 256], strides = [1, 1]} : vector<256x256xf32> to vector<64x256xf32>
    %cst_7 = arith.constant dense<0.000000e+00> : vector<16x256xf32>
    %8 = tpu.matmul %6, %7, %cst_7 {dimension_numbers = #tpu.dot_dimension_numbers<[1], [0], [0], [1], [0, 0, 1, 1], [], []>} : vector<16x64xf32>, vector<64x256xf32>, vector<16x256xf32> -> vector<16x256xf32>
    %9 = arith.addf %4, %8 : vector<16x256xf32>
    %c0_8 = arith.constant 0 : index
    %c0_9 = arith.constant 0 : index
    %c0_10 = arith.constant 0 : index
    %10 = vector.load %arg3[%c0_8, %c0_9, %c0_10] : memref<1x16x64xf32, #tpu.memory_space<vmem>>, vector<1x16x64xf32>
    %11 = vector.shape_cast %10 : vector<1x16x64xf32> to vector<16x64xf32>
    %12 = vector.extract_strided_slice %0 {offsets = [128, 0], sizes = [64, 256], strides = [1, 1]} : vector<256x256xf32> to vector<64x256xf32>
    %cst_11 = arith.constant dense<0.000000e+00> : vector<16x256xf32>
    %13 = tpu.matmul %11, %12, %cst_11 {dimension_numbers = #tpu.dot_dimension_numbers<[1], [0], [0], [1], [0, 0, 1, 1], [], []>} : vector<16x64xf32>, vector<64x256xf32>, vector<16x256xf32> -> vector<16x256xf32>
    %14 = arith.addf %9, %13 : vector<16x256xf32>
    %c0_12 = arith.constant 0 : index
    %c0_13 = arith.constant 0 : index
    %c0_14 = arith.constant 0 : index
    %15 = vector.load %arg4[%c0_12, %c0_13, %c0_14] : memref<1x16x64xf32, #tpu.memory_space<vmem>>, vector<1x16x64xf32>
    %16 = vector.shape_cast %15 : vector<1x16x64xf32> to vector<16x64xf32>
    %17 = vector.extract_strided_slice %0 {offsets = [192, 0], sizes = [64, 256], strides = [1, 1]} : vector<256x256xf32> to vector<64x256xf32>
    %cst_15 = arith.constant dense<0.000000e+00> : vector<16x256xf32>
    %18 = tpu.matmul %16, %17, %cst_15 {dimension_numbers = #tpu.dot_dimension_numbers<[1], [0], [0], [1], [0, 0, 1, 1], [], []>} : vector<16x64xf32>, vector<64x256xf32>, vector<16x256xf32> -> vector<16x256xf32>
    %19 = arith.addf %14, %18 : vector<16x256xf32>
    %c0_16 = arith.constant 0 : index
    %c0_17 = arith.constant 0 : index
    %20 = vector.load %arg6[%c0_16, %c0_17] : memref<1x256xf32, #tpu.memory_space<vmem>>, vector<1x256xf32>
    %21 = vector.broadcast %20 : vector<1x256xf32> to vector<16x256xf32>
    %22 = arith.addf %19, %21 : vector<16x256xf32>
    %cst_18 = arith.constant 0.000000e+00 : f32
    %23 = vector.broadcast %cst_18 : f32 to vector<16x256xf32>
    %24 = arith.maximumf %22, %23 : vector<16x256xf32>
    %c0_19 = arith.constant 0 : index
    %c0_20 = arith.constant 0 : index
    %25 = vector.load %arg7[%c0_19, %c0_20] : memref<1x256xf32, #tpu.memory_space<vmem>>, vector<1x256xf32>
    %26 = vector.broadcast %25 : vector<1x256xf32> to vector<16x256xf32>
    %27 = arith.mulf %24, %26 : vector<16x256xf32>
    %c0_21 = arith.constant 0 : index
    %c0_22 = arith.constant 0 : index
    %28 = vector.load %arg8[%c0_21, %c0_22] : memref<1x256xf32, #tpu.memory_space<vmem>>, vector<1x256xf32>
    %29 = vector.broadcast %28 : vector<1x256xf32> to vector<16x256xf32>
    %30 = arith.addf %27, %29 : vector<16x256xf32>
    %cst_23 = arith.constant dense<0.000000e+00> : vector<256xf32>
    %31 = vector.multi_reduction <add>, %30, %cst_23 [0] : vector<16x256xf32> to vector<256xf32>
    %32 = vector.shape_cast %31 : vector<256xf32> to vector<1x256xf32>
    %cst_24 = arith.constant 1.600000e+01 : f32
    %33 = vector.broadcast %cst_24 : f32 to vector<1x256xf32>
    %34 = arith.divf %32, %33 : vector<1x256xf32>
    %35 = vector.broadcast %34 : vector<1x256xf32> to vector<16x256xf32>
    %36 = arith.subf %30, %35 : vector<16x256xf32>
    %37 = arith.mulf %36, %36 : vector<16x256xf32>
    %cst_25 = arith.constant dense<0.000000e+00> : vector<256xf32>
    %38 = vector.multi_reduction <add>, %37, %cst_25 [0] : vector<16x256xf32> to vector<256xf32>
    %39 = vector.shape_cast %38 : vector<256xf32> to vector<1x256xf32>
    %cst_26 = arith.constant 1.600000e+01 : f32
    %40 = vector.broadcast %cst_26 : f32 to vector<1x256xf32>
    %41 = arith.divf %39, %40 : vector<1x256xf32>
    %cst_27 = arith.constant 9.99999996E-13 : f32
    %42 = vector.broadcast %cst_27 : f32 to vector<1x256xf32>
    %43 = arith.maximumf %41, %42 : vector<1x256xf32>
    %44 = math.sqrt %43 : vector<1x256xf32>
    %c0_28 = arith.constant 0 : index
    %c0_29 = arith.constant 0 : index
    %45 = vector.load %arg9[%c0_28, %c0_29] : memref<768x32xf32, #tpu.memory_space<vmem>>, vector<768x32xf32>
    %c0_30 = arith.constant 0 : index
    %c0_31 = arith.constant 0 : index
    %46 = vector.load %arg10[%c0_30, %c0_31] : memref<1x32xf32, #tpu.memory_space<vmem>>, vector<1x32xf32>
    %c0_32 = arith.constant 0 : index
    %c0_33 = arith.constant 0 : index
    %47 = vector.load %arg11[%c0_32, %c0_33] : memref<1x32xf32, #tpu.memory_space<vmem>>, vector<1x32xf32>
    %c0_34 = arith.constant 0 : index
    %c0_35 = arith.constant 0 : index
    %48 = vector.load %arg12[%c0_34, %c0_35] : memref<1x32xf32, #tpu.memory_space<vmem>>, vector<1x32xf32>
    %c0_36 = arith.constant 0 : index
    %c0_37 = arith.constant 0 : index
    %49 = vector.load %arg13[%c0_36, %c0_37] : memref<32x256xf32, #tpu.memory_space<vmem>>, vector<32x256xf32>
    %c0_38 = arith.constant 0 : index
    %c0_39 = arith.constant 0 : index
    %50 = vector.load %arg14[%c0_38, %c0_39] : memref<1x256xf32, #tpu.memory_space<vmem>>, vector<1x256xf32>
    %51 = vector.extract_strided_slice %45 {offsets = [0, 0], sizes = [256, 32], strides = [1, 1]} : vector<768x32xf32> to vector<256x32xf32>
    %cst_40 = arith.constant dense<0.000000e+00> : vector<16x32xf32>
    %52 = tpu.matmul %30, %51, %cst_40 {dimension_numbers = #tpu.dot_dimension_numbers<[1], [0], [0], [1], [0, 0, 1, 1], [], []>} : vector<16x256xf32>, vector<256x32xf32>, vector<16x32xf32> -> vector<16x32xf32>
    %53 = vector.extract_strided_slice %45 {offsets = [256, 0], sizes = [256, 32], strides = [1, 1]} : vector<768x32xf32> to vector<256x32xf32>
    %cst_41 = arith.constant dense<0.000000e+00> : vector<1x32xf32>
    %54 = tpu.matmul %34, %53, %cst_41 {dimension_numbers = #tpu.dot_dimension_numbers<[1], [0], [0], [1], [0, 0, 1, 1], [], []>} : vector<1x256xf32>, vector<256x32xf32>, vector<1x32xf32> -> vector<1x32xf32>
    %55 = vector.broadcast %54 : vector<1x32xf32> to vector<16x32xf32>
    %56 = arith.addf %52, %55 : vector<16x32xf32>
    %57 = vector.extract_strided_slice %45 {offsets = [512, 0], sizes = [256, 32], strides = [1, 1]} : vector<768x32xf32> to vector<256x32xf32>
    %cst_42 = arith.constant dense<0.000000e+00> : vector<1x32xf32>
    %58 = tpu.matmul %44, %57, %cst_42 {dimension_numbers = #tpu.dot_dimension_numbers<[1], [0], [0], [1], [0, 0, 1, 1], [], []>} : vector<1x256xf32>, vector<256x32xf32>, vector<1x32xf32> -> vector<1x32xf32>
    %59 = vector.broadcast %58 : vector<1x32xf32> to vector<16x32xf32>
    %60 = arith.addf %56, %59 : vector<16x32xf32>
    %61 = vector.broadcast %46 : vector<1x32xf32> to vector<16x32xf32>
    %62 = arith.addf %60, %61 : vector<16x32xf32>
    %cst_43 = arith.constant 0.000000e+00 : f32
    %63 = vector.broadcast %cst_43 : f32 to vector<16x32xf32>
    %64 = arith.maximumf %62, %63 : vector<16x32xf32>
    %65 = vector.broadcast %47 : vector<1x32xf32> to vector<16x32xf32>
    %66 = arith.mulf %64, %65 : vector<16x32xf32>
    %67 = vector.broadcast %48 : vector<1x32xf32> to vector<16x32xf32>
    %68 = arith.addf %66, %67 : vector<16x32xf32>
    %69 = math.tanh %68 : vector<16x32xf32>
    %cst_44 = arith.constant dense<0.000000e+00> : vector<16x256xf32>
    %70 = tpu.matmul %69, %49, %cst_44 {dimension_numbers = #tpu.dot_dimension_numbers<[1], [0], [0], [1], [0, 0, 1, 1], [], []>} : vector<16x32xf32>, vector<32x256xf32>, vector<16x256xf32> -> vector<16x256xf32>
    %71 = vector.broadcast %50 : vector<1x256xf32> to vector<16x256xf32>
    %72 = arith.addf %70, %71 : vector<16x256xf32>
    %cst_45 = arith.constant dense<0xFF800000> : vector<256xf32>
    %73 = vector.multi_reduction <maximumf>, %72, %cst_45 [0] : vector<16x256xf32> to vector<256xf32>
    %74 = vector.shape_cast %73 : vector<256xf32> to vector<1x256xf32>
    %75 = vector.broadcast %74 : vector<1x256xf32> to vector<16x256xf32>
    %76 = arith.subf %72, %75 : vector<16x256xf32>
    %77 = math.exp %76 : vector<16x256xf32>
    %cst_46 = arith.constant dense<0.000000e+00> : vector<256xf32>
    %78 = vector.multi_reduction <add>, %77, %cst_46 [0] : vector<16x256xf32> to vector<256xf32>
    %79 = vector.shape_cast %78 : vector<256xf32> to vector<1x256xf32>
    %80 = vector.broadcast %79 : vector<1x256xf32> to vector<16x256xf32>
    %81 = arith.divf %77, %80 : vector<16x256xf32>
    %82 = arith.mulf %81, %30 : vector<16x256xf32>
    %cst_47 = arith.constant dense<0.000000e+00> : vector<256xf32>
    %83 = vector.multi_reduction <add>, %82, %cst_47 [0] : vector<16x256xf32> to vector<256xf32>
    %84 = vector.shape_cast %83 : vector<256xf32> to vector<1x256xf32>
    %85 = vector.broadcast %84 : vector<1x256xf32> to vector<16x256xf32>
    %86 = arith.subf %30, %85 : vector<16x256xf32>
    %87 = arith.mulf %86, %86 : vector<16x256xf32>
    %88 = arith.mulf %81, %87 : vector<16x256xf32>
    %cst_48 = arith.constant dense<0.000000e+00> : vector<256xf32>
    %89 = vector.multi_reduction <add>, %88, %cst_48 [0] : vector<16x256xf32> to vector<256xf32>
    %90 = vector.shape_cast %89 : vector<256xf32> to vector<1x256xf32>
    %cst_49 = arith.constant 9.99999996E-13 : f32
    %91 = vector.broadcast %cst_49 : f32 to vector<1x256xf32>
    %92 = arith.maximumf %90, %91 : vector<1x256xf32>
    %93 = math.sqrt %92 : vector<1x256xf32>
    %c0_50 = arith.constant 0 : index
    %c0_51 = arith.constant 0 : index
    %94 = vector.load %arg15[%c0_50, %c0_51] : memref<768x32xf32, #tpu.memory_space<vmem>>, vector<768x32xf32>
    %c0_52 = arith.constant 0 : index
    %c0_53 = arith.constant 0 : index
    %95 = vector.load %arg16[%c0_52, %c0_53] : memref<1x32xf32, #tpu.memory_space<vmem>>, vector<1x32xf32>
    %c0_54 = arith.constant 0 : index
    %c0_55 = arith.constant 0 : index
    %96 = vector.load %arg17[%c0_54, %c0_55] : memref<1x32xf32, #tpu.memory_space<vmem>>, vector<1x32xf32>
    %c0_56 = arith.constant 0 : index
    %c0_57 = arith.constant 0 : index
    %97 = vector.load %arg18[%c0_56, %c0_57] : memref<1x32xf32, #tpu.memory_space<vmem>>, vector<1x32xf32>
    %c0_58 = arith.constant 0 : index
    %c0_59 = arith.constant 0 : index
    %98 = vector.load %arg19[%c0_58, %c0_59] : memref<32x256xf32, #tpu.memory_space<vmem>>, vector<32x256xf32>
    %c0_60 = arith.constant 0 : index
    %c0_61 = arith.constant 0 : index
    %99 = vector.load %arg20[%c0_60, %c0_61] : memref<1x256xf32, #tpu.memory_space<vmem>>, vector<1x256xf32>
    %100 = vector.extract_strided_slice %94 {offsets = [0, 0], sizes = [256, 32], strides = [1, 1]} : vector<768x32xf32> to vector<256x32xf32>
    %cst_62 = arith.constant dense<0.000000e+00> : vector<16x32xf32>
    %101 = tpu.matmul %30, %100, %cst_62 {dimension_numbers = #tpu.dot_dimension_numbers<[1], [0], [0], [1], [0, 0, 1, 1], [], []>} : vector<16x256xf32>, vector<256x32xf32>, vector<16x32xf32> -> vector<16x32xf32>
    %102 = vector.extract_strided_slice %94 {offsets = [256, 0], sizes = [256, 32], strides = [1, 1]} : vector<768x32xf32> to vector<256x32xf32>
    %cst_63 = arith.constant dense<0.000000e+00> : vector<1x32xf32>
    %103 = tpu.matmul %34, %102, %cst_63 {dimension_numbers = #tpu.dot_dimension_numbers<[1], [0], [0], [1], [0, 0, 1, 1], [], []>} : vector<1x256xf32>, vector<256x32xf32>, vector<1x32xf32> -> vector<1x32xf32>
    %104 = vector.broadcast %103 : vector<1x32xf32> to vector<16x32xf32>
    %105 = arith.addf %101, %104 : vector<16x32xf32>
    %106 = vector.extract_strided_slice %94 {offsets = [512, 0], sizes = [256, 32], strides = [1, 1]} : vector<768x32xf32> to vector<256x32xf32>
    %cst_64 = arith.constant dense<0.000000e+00> : vector<1x32xf32>
    %107 = tpu.matmul %44, %106, %cst_64 {dimension_numbers = #tpu.dot_dimension_numbers<[1], [0], [0], [1], [0, 0, 1, 1], [], []>} : vector<1x256xf32>, vector<256x32xf32>, vector<1x32xf32> -> vector<1x32xf32>
    %108 = vector.broadcast %107 : vector<1x32xf32> to vector<16x32xf32>
    %109 = arith.addf %105, %108 : vector<16x32xf32>
    %110 = vector.broadcast %95 : vector<1x32xf32> to vector<16x32xf32>
    %111 = arith.addf %109, %110 : vector<16x32xf32>
    %cst_65 = arith.constant 0.000000e+00 : f32
    %112 = vector.broadcast %cst_65 : f32 to vector<16x32xf32>
    %113 = arith.maximumf %111, %112 : vector<16x32xf32>
    %114 = vector.broadcast %96 : vector<1x32xf32> to vector<16x32xf32>
    %115 = arith.mulf %113, %114 : vector<16x32xf32>
    %116 = vector.broadcast %97 : vector<1x32xf32> to vector<16x32xf32>
    %117 = arith.addf %115, %116 : vector<16x32xf32>
    %118 = math.tanh %117 : vector<16x32xf32>
    %cst_66 = arith.constant dense<0.000000e+00> : vector<16x256xf32>
    %119 = tpu.matmul %118, %98, %cst_66 {dimension_numbers = #tpu.dot_dimension_numbers<[1], [0], [0], [1], [0, 0, 1, 1], [], []>} : vector<16x32xf32>, vector<32x256xf32>, vector<16x256xf32> -> vector<16x256xf32>
    %120 = vector.broadcast %99 : vector<1x256xf32> to vector<16x256xf32>
    %121 = arith.addf %119, %120 : vector<16x256xf32>
    %cst_67 = arith.constant dense<0xFF800000> : vector<256xf32>
    %122 = vector.multi_reduction <maximumf>, %121, %cst_67 [0] : vector<16x256xf32> to vector<256xf32>
    %123 = vector.shape_cast %122 : vector<256xf32> to vector<1x256xf32>
    %124 = vector.broadcast %123 : vector<1x256xf32> to vector<16x256xf32>
    %125 = arith.subf %121, %124 : vector<16x256xf32>
    %126 = math.exp %125 : vector<16x256xf32>
    %cst_68 = arith.constant dense<0.000000e+00> : vector<256xf32>
    %127 = vector.multi_reduction <add>, %126, %cst_68 [0] : vector<16x256xf32> to vector<256xf32>
    %128 = vector.shape_cast %127 : vector<256xf32> to vector<1x256xf32>
    %129 = vector.broadcast %128 : vector<1x256xf32> to vector<16x256xf32>
    %130 = arith.divf %126, %129 : vector<16x256xf32>
    %131 = arith.mulf %130, %30 : vector<16x256xf32>
    %cst_69 = arith.constant dense<0.000000e+00> : vector<256xf32>
    %132 = vector.multi_reduction <add>, %131, %cst_69 [0] : vector<16x256xf32> to vector<256xf32>
    %133 = vector.shape_cast %132 : vector<256xf32> to vector<1x256xf32>
    %134 = vector.broadcast %133 : vector<1x256xf32> to vector<16x256xf32>
    %135 = arith.subf %30, %134 : vector<16x256xf32>
    %136 = arith.mulf %135, %135 : vector<16x256xf32>
    %137 = arith.mulf %130, %136 : vector<16x256xf32>
    %cst_70 = arith.constant dense<0.000000e+00> : vector<256xf32>
    %138 = vector.multi_reduction <add>, %137, %cst_70 [0] : vector<16x256xf32> to vector<256xf32>
    %139 = vector.shape_cast %138 : vector<256xf32> to vector<1x256xf32>
    %cst_71 = arith.constant 9.99999996E-13 : f32
    %140 = vector.broadcast %cst_71 : f32 to vector<1x256xf32>
    %141 = arith.maximumf %139, %140 : vector<1x256xf32>
    %142 = math.sqrt %141 : vector<1x256xf32>
    %c0_72 = arith.constant 0 : index
    %c0_73 = arith.constant 0 : index
    %143 = vector.load %arg21[%c0_72, %c0_73] : memref<1x1024xf32, #tpu.memory_space<vmem>>, vector<1x1024xf32>
    %c0_74 = arith.constant 0 : index
    %c0_75 = arith.constant 0 : index
    %144 = vector.load %arg22[%c0_74, %c0_75] : memref<1x1024xf32, #tpu.memory_space<vmem>>, vector<1x1024xf32>
    %145 = vector.extract_strided_slice %143 {offsets = [0, 0], sizes = [1, 256], strides = [1, 1]} : vector<1x1024xf32> to vector<1x256xf32>
    %146 = arith.mulf %84, %145 : vector<1x256xf32>
    %147 = vector.extract_strided_slice %144 {offsets = [0, 0], sizes = [1, 256], strides = [1, 1]} : vector<1x1024xf32> to vector<1x256xf32>
    %148 = arith.addf %146, %147 : vector<1x256xf32>
    %c0_76 = arith.constant 0 : index
    %c0_77 = arith.constant 0 : index
    %c0_78 = arith.constant 0 : index
    %149 = vector.load %arg23[%c0_76, %c0_77, %c0_78] : memref<1x1x1024xf32, #tpu.memory_space<vmem>>, vector<1x1x256xf32>
    %150 = vector.shape_cast %149 : vector<1x1x256xf32> to vector<1x256xf32>
    %151 = vector.shape_cast %148 : vector<1x256xf32> to vector<1x1x256xf32>
    tpu.vector_store %arg23[%c0_76, %c0_77, %c0_78], %151 {strides = array<i32>} : memref<1x1x1024xf32, #tpu.memory_space<vmem>>, vector<1x1x256xf32>,
    %152 = vector.extract_strided_slice %143 {offsets = [0, 256], sizes = [1, 256], strides = [1, 1]} : vector<1x1024xf32> to vector<1x256xf32>
    %153 = arith.mulf %133, %152 : vector<1x256xf32>
    %154 = vector.extract_strided_slice %144 {offsets = [0, 256], sizes = [1, 256], strides = [1, 1]} : vector<1x1024xf32> to vector<1x256xf32>
    %155 = arith.addf %153, %154 : vector<1x256xf32>
    %c0_79 = arith.constant 0 : index
    %c0_80 = arith.constant 0 : index
    %c256 = arith.constant 256 : index
    %156 = vector.load %arg23[%c0_79, %c0_80, %c256] : memref<1x1x1024xf32, #tpu.memory_space<vmem>>, vector<1x1x256xf32>
    %157 = vector.shape_cast %156 : vector<1x1x256xf32> to vector<1x256xf32>
    %158 = vector.shape_cast %155 : vector<1x256xf32> to vector<1x1x256xf32>
    tpu.vector_store %arg23[%c0_79, %c0_80, %c256], %158 {strides = array<i32>} : memref<1x1x1024xf32, #tpu.memory_space<vmem>>, vector<1x1x256xf32>,
    %159 = vector.extract_strided_slice %143 {offsets = [0, 512], sizes = [1, 256], strides = [1, 1]} : vector<1x1024xf32> to vector<1x256xf32>
    %160 = arith.mulf %93, %159 : vector<1x256xf32>
    %161 = vector.extract_strided_slice %144 {offsets = [0, 512], sizes = [1, 256], strides = [1, 1]} : vector<1x1024xf32> to vector<1x256xf32>
    %162 = arith.addf %160, %161 : vector<1x256xf32>
    %c0_81 = arith.constant 0 : index
    %c0_82 = arith.constant 0 : index
    %c512 = arith.constant 512 : index
    %163 = vector.load %arg23[%c0_81, %c0_82, %c512] : memref<1x1x1024xf32, #tpu.memory_space<vmem>>, vector<1x1x256xf32>
    %164 = vector.shape_cast %163 : vector<1x1x256xf32> to vector<1x256xf32>
    %165 = vector.shape_cast %162 : vector<1x256xf32> to vector<1x1x256xf32>
    tpu.vector_store %arg23[%c0_81, %c0_82, %c512], %165 {strides = array<i32>} : memref<1x1x1024xf32, #tpu.memory_space<vmem>>, vector<1x1x256xf32>,
    %166 = vector.extract_strided_slice %143 {offsets = [0, 768], sizes = [1, 256], strides = [1, 1]} : vector<1x1024xf32> to vector<1x256xf32>
    %167 = arith.mulf %142, %166 : vector<1x256xf32>
    %168 = vector.extract_strided_slice %144 {offsets = [0, 768], sizes = [1, 256], strides = [1, 1]} : vector<1x1024xf32> to vector<1x256xf32>
    %169 = arith.addf %167, %168 : vector<1x256xf32>
    %c0_83 = arith.constant 0 : index
    %c0_84 = arith.constant 0 : index
    %c768 = arith.constant 768 : index
    %170 = vector.load %arg23[%c0_83, %c0_84, %c768] : memref<1x1x1024xf32, #tpu.memory_space<vmem>>, vector<1x1x256xf32>
    %171 = vector.shape_cast %170 : vector<1x1x256xf32> to vector<1x256xf32>
    %172 = vector.shape_cast %169 : vector<1x256xf32> to vector<1x1x256xf32>
    tpu.vector_store %arg23[%c0_83, %c0_84, %c768], %172 {strides = array<i32>} : memref<1x1x1024xf32, #tpu.memory_space<vmem>>, vector<1x1x256xf32>,
    return
  }
  func.func @transform_0(%arg0: i32) -> (i32, i32, i32) {
    %c0_i32 = arith.constant 0 : i32
    %c0_i32_0 = arith.constant 0 : i32
    %c0_i32_1 = arith.constant 0 : i32
    return %arg0, %c0_i32, %c0_i32_0 : i32, i32, i32
  }
  func.func @transform_1(%arg0: i32) -> (i32, i32, i32) {
    %c0_i32 = arith.constant 0 : i32
    %c0_i32_0 = arith.constant 0 : i32
    %c0_i32_1 = arith.constant 0 : i32
    return %arg0, %c0_i32, %c0_i32_0 : i32, i32, i32
  }
  func.func @transform_2(%arg0: i32) -> (i32, i32, i32) {
    %c0_i32 = arith.constant 0 : i32
    %c0_i32_0 = arith.constant 0 : i32
    %c0_i32_1 = arith.constant 0 : i32
    return %arg0, %c0_i32, %c0_i32_0 : i32, i32, i32
  }
  func.func @transform_3(%arg0: i32) -> (i32, i32, i32) {
    %c0_i32 = arith.constant 0 : i32
    %c0_i32_0 = arith.constant 0 : i32
    %c0_i32_1 = arith.constant 0 : i32
    return %arg0, %c0_i32, %c0_i32_0 : i32, i32, i32
  }
  func.func @transform_4(%arg0: i32) -> (i32, i32) {
    %c0_i32 = arith.constant 0 : i32
    %c0_i32_0 = arith.constant 0 : i32
    %c0_i32_1 = arith.constant 0 : i32
    return %c0_i32, %c0_i32_0 : i32, i32
  }
  func.func @transform_5(%arg0: i32) -> (i32, i32) {
    %c0_i32 = arith.constant 0 : i32
    %c0_i32_0 = arith.constant 0 : i32
    %c0_i32_1 = arith.constant 0 : i32
    return %c0_i32, %c0_i32_0 : i32, i32
  }
  func.func @transform_6(%arg0: i32) -> (i32, i32) {
    %c0_i32 = arith.constant 0 : i32
    %c0_i32_0 = arith.constant 0 : i32
    %c0_i32_1 = arith.constant 0 : i32
    return %c0_i32, %c0_i32_0 : i32, i32
  }
  func.func @transform_7(%arg0: i32) -> (i32, i32) {
    %c0_i32 = arith.constant 0 : i32
    %c0_i32_0 = arith.constant 0 : i32
    %c0_i32_1 = arith.constant 0 : i32
    return %c0_i32, %c0_i32_0 : i32, i32
  }
  func.func @transform_8(%arg0: i32) -> (i32, i32) {
    %c0_i32 = arith.constant 0 : i32
    %c0_i32_0 = arith.constant 0 : i32
    %c0_i32_1 = arith.constant 0 : i32
    return %c0_i32, %c0_i32_0 : i32, i32
  }
  func.func @transform_9(%arg0: i32) -> (i32, i32) {
    %c0_i32 = arith.constant 0 : i32
    %c0_i32_0 = arith.constant 0 : i32
    %c0_i32_1 = arith.constant 0 : i32
    return %c0_i32, %c0_i32_0 : i32, i32
  }
  func.func @transform_10(%arg0: i32) -> (i32, i32) {
    %c0_i32 = arith.constant 0 : i32
    %c0_i32_0 = arith.constant 0 : i32
    %c0_i32_1 = arith.constant 0 : i32
    return %c0_i32, %c0_i32_0 : i32, i32
  }
  func.func @transform_11(%arg0: i32) -> (i32, i32) {
    %c0_i32 = arith.constant 0 : i32
    %c0_i32_0 = arith.constant 0 : i32
    %c0_i32_1 = arith.constant 0 : i32
    return %c0_i32, %c0_i32_0 : i32, i32
  }
  func.func @transform_12(%arg0: i32) -> (i32, i32) {
    %c0_i32 = arith.constant 0 : i32
    %c0_i32_0 = arith.constant 0 : i32
    %c0_i32_1 = arith.constant 0 : i32
    return %c0_i32, %c0_i32_0 : i32, i32
  }
  func.func @transform_13(%arg0: i32) -> (i32, i32) {
    %c0_i32 = arith.constant 0 : i32
    %c0_i32_0 = arith.constant 0 : i32
    %c0_i32_1 = arith.constant 0 : i32
    return %c0_i32, %c0_i32_0 : i32, i32
  }
  func.func @transform_14(%arg0: i32) -> (i32, i32) {
    %c0_i32 = arith.constant 0 : i32
    %c0_i32_0 = arith.constant 0 : i32
    %c0_i32_1 = arith.constant 0 : i32
    return %c0_i32, %c0_i32_0 : i32, i32
  }
  func.func @transform_15(%arg0: i32) -> (i32, i32) {
    %c0_i32 = arith.constant 0 : i32
    %c0_i32_0 = arith.constant 0 : i32
    %c0_i32_1 = arith.constant 0 : i32
    return %c0_i32, %c0_i32_0 : i32, i32
  }
  func.func @transform_16(%arg0: i32) -> (i32, i32) {
    %c0_i32 = arith.constant 0 : i32
    %c0_i32_0 = arith.constant 0 : i32
    %c0_i32_1 = arith.constant 0 : i32
    return %c0_i32, %c0_i32_0 : i32, i32
  }
  func.func @transform_17(%arg0: i32) -> (i32, i32) {
    %c0_i32 = arith.constant 0 : i32
    %c0_i32_0 = arith.constant 0 : i32
    %c0_i32_1 = arith.constant 0 : i32
    return %c0_i32, %c0_i32_0 : i32, i32
  }
  func.func @transform_18(%arg0: i32) -> (i32, i32) {
    %c0_i32 = arith.constant 0 : i32
    %c0_i32_0 = arith.constant 0 : i32
    %c0_i32_1 = arith.constant 0 : i32
    return %c0_i32, %c0_i32_0 : i32, i32
  }
  func.func @transform_19(%arg0: i32) -> (i32, i32) {
    %c0_i32 = arith.constant 0 : i32
    %c0_i32_0 = arith.constant 0 : i32
    %c0_i32_1 = arith.constant 0 : i32
    return %c0_i32, %c0_i32_0 : i32, i32
  }
  func.func @transform_20(%arg0: i32) -> (i32, i32) {
    %c0_i32 = arith.constant 0 : i32
    %c0_i32_0 = arith.constant 0 : i32
    %c0_i32_1 = arith.constant 0 : i32
    return %c0_i32, %c0_i32_0 : i32, i32
  }
  func.func @transform_21(%arg0: i32) -> (i32, i32) {
    %c0_i32 = arith.constant 0 : i32
    %c0_i32_0 = arith.constant 0 : i32
    %c0_i32_1 = arith.constant 0 : i32
    return %c0_i32, %c0_i32_0 : i32, i32
  }
  func.func @transform_22(%arg0: i32) -> (i32, i32, i32) {
    %c0_i32 = arith.constant 0 : i32
    %c0_i32_0 = arith.constant 0 : i32
    %c0_i32_1 = arith.constant 0 : i32
    return %arg0, %c0_i32, %c0_i32_0 : i32, i32, i32
  }
}

</mosaic_0001>

<bundles_post_ra>
// kernel: _lambda_.27
= control target key start
LH: loop header
LB: loop body
LE: loop exit
PB: predicated region body
PF: predicated region fallthrough
CT: control target
= control target key end

     0   :  { %vm39_vm0 = vcmask 523264   ;;  %s331_s1 = inlined_call_operand.vmem [shape: f32[64,64], index: 1, kind: input, shape index: {}]   ;;  %s332_s0 = inlined_call_operand.vmem [shape: f32[32,64], index: 0, kind: input, shape index: {}]   ;;  %s333_s2 = inlined_call_operand.vmem [shape: f32[1,64], index: 2, kind: input, shape index: {}]   ;;  %s334_s3 = inlined_call_operand.vmem [shape: f32[1,64], index: 3, kind: input, shape index: {}]   ;;  %s335_s4 = inlined_call_operand.vmem [shape: f32[1,64], index: 4, kind: input, shape index: {}]   ;;  %s336_s5 = inlined_call_operand.vmem [shape: f32[32,64], index: 5, kind: output, shape index: {}]  }
   0x1   :  { %v24_v0 = vld [vmem:[%s331_s1] sm:$0xff]  ;;  %v25_v1 = vld [vmem:[%s331_s1 + $0x8] sm:$0xff]  ;;  %v26_v2 = vld [vmem:[%s331_s1 + $0x10] sm:$0xff] }
   0x2   :  { %v212_v3 = vpack.c.bf16 %v25_v1, %v24_v0  ;;  %v27_v4 = vld [vmem:[%s331_s1 + $0x18] sm:$0xff]  ;;  %v28_v6 = vld [vmem:[%s331_s1 + $0x20] sm:$0xff]  ;;  %v29_v7 = vld [vmem:[%s331_s1 + $0x28] sm:$0xff] }
   0x3   :  { %v216_v5 = vpack.c.bf16 %v27_v4, %v26_v2  ;;  %v20_v8 = vld [vmem:[%s332_s0] sm:$0xff]  ;;  %v22_v9 = vld [vmem:[%s332_s0 + $0x10] sm:$0xff]  ;;  %v220_v10 = vpack.c.bf16 %v29_v7, %v28_v6  ;;  %v31_v12 = vld [vmem:[%s331_s1 + $0x38] sm:$0xff] }
   0x4   :  { %213 = vmatprep.subr.bf16.mxu0 %v212_v3  ;;  %228 = vmatprep.subr.bf16.mxu1 %v212_v3  ;;  %v30_v11 = vld [vmem:[%s331_s1 + $0x30] sm:$0xff]  ;;  %v21_v14 = vld [vmem:[%s332_s0 + $0x8] sm:$0xff]  ;;  %v23_v15 = vld [vmem:[%s332_s0 + $0x18] sm:$0xff] }
   0x5   :  { %215 = vmatpush3.bf16.msra.mxu0 %v212_v3  ;;  %232 = vmatpush3.bf16.msra.mxu1 %v212_v3  ;;  %v224_v13 = vpack.c.bf16 %v31_v12, %v30_v11  ;;  %v171_v16 = vld [vmem:[%s333_s2] ss:$0 sm:$0xff] }
   0x6   :  { %217 = vmatprep.subr.bf16.mxu0 %v216_v5  ;;  %229 = vmatprep.subr.bf16.mxu1 %v216_v5  ;;  %v176_v23 = vld [vmem:[%s334_s3] ss:$0 sm:$0xff] }
   0x7   :  { %206 = vmatprep.mubr.msk.f32.mxu0 %vm39_vm0, %v20_v8  ;;  %209 = vmatprep.mubr.msk.f32.mxu1 %vm39_vm0, %v22_v9  ;;  %v177_v28 = vld [vmem:[%s335_s4] ss:$0 sm:$0xff] }
   0x9   :  { %219 = vmatpush3.bf16.msra.mxu0 %v216_v5  ;;  %233 = vmatpush3.bf16.msra.mxu1 %v216_v5 }
   0xa   :  { %221 = vmatprep.subr.bf16.mxu0 %v220_v10  ;;  %230 = vmatprep.subr.bf16.mxu1 %v220_v10 }
   0xd   :  { %223 = vmatpush3.bf16.msra.mxu0 %v220_v10  ;;  %234 = vmatpush3.bf16.msra.mxu1 %v220_v10 }
   0xe   :  { %225 = vmatprep.subr.bf16.mxu0 %v224_v13  ;;  %231 = vmatprep.subr.bf16.mxu1 %v224_v13 }
  0x11   :  { %227 = vmatpush3.bf16.msra.mxu0 %v224_v13  ;;  %235 = vmatpush3.bf16.msra.mxu1 %v224_v13 }
  0x14   :  { %207 = vmatmul.mubr.msk.f32.vlgmr.msra.gmra.mrb[0].mxu0 %vm39_vm0, %v21_v14  ;;  %210 = vmatmul.mubr.msk.f32.vlgmr.msra.gmra.mrb[0].mxu1 %vm39_vm0, %v23_v15 }
  0xe7   :  { %v208_v17 = vpop.f32.mrb[0].mxu0  ;;  %v211_v18 = vpop.f32.mrb[0].mxu1 }
  0xe8   :  { %v124_v19 = vadd.f32 %v208_v17, %v171_v16  ;;  %v134_v20 = vadd.f32 %v211_v18, %v171_v16  ;;  %v118_v21 = vpop.f32.mrb[1].mxu0  ;;  %v128_v22 = vpop.f32.mrb[1].mxu1 }
  0xe9   :  { %v119_v24 = vadd.f32 %v171_v16, %v118_v21  ;;  %v129_v25 = vadd.f32 %v171_v16, %v128_v22 }
  0xea   :  { %v138_v26 = vmax.f32 %v124_v19, 0.0  ;;  %v140_v27 = vmax.f32 %v134_v20, 0.0 }
  0xeb   :  { %v137_v29 = vmax.f32 %v119_v24, 0.0  ;;  %v139_v30 = vmax.f32 %v129_v25, 0.0 }
  0xec   :  { %v149_v31 = vmul.f32 %v176_v23, %v138_v26  ;;  %v151_v32 = vmul.f32 %v176_v23, %v140_v27 }
  0xed   :  { %v148_v33 = vmul.f32 %v176_v23, %v137_v29  ;;  %v150_v34 = vmul.f32 %v176_v23, %v139_v30 }
  0xee   :  { %v160_v35 = vadd.f32 %v177_v28, %v149_v31  ;;  %v162_v36 = vadd.f32 %v177_v28, %v151_v32 }
  0xef   :  { %v159_v37 = vadd.f32 %v177_v28, %v148_v33  ;;  %v161_v38 = vadd.f32 %v177_v28, %v150_v34 }
  0xf0   :  { %164 = vst.msk [vmem:[%s336_s5 + $0x8] sm:$0xff] %vm39_vm0, %v160_v35  ;;  %166 = vst.msk [vmem:[%s336_s5 + $0x18] sm:$0xff] %vm39_vm0, %v162_v36 }
  0xf1   :  { %163 = vst.msk [vmem:[%s336_s5] sm:$0xff] %vm39_vm0, %v159_v37  ;;  %165 = vst.msk [vmem:[%s336_s5 + $0x10] sm:$0xff] %vm39_vm0, %v161_v38 }

// kernel: _lambda_.26
= control target key start
LH: loop header
LB: loop body
LE: loop exit
PB: predicated region body
PF: predicated region fallthrough
CT: control target
= control target key end

     0   :  { %s968_s18 = smov 0   ;;  %s1074_s0 = inlined_call_operand.vmem [shape: f32[2,20,32], index: 0, kind: input, shape index: {}]   ;;  %s1075_s1 = inlined_call_operand.vmem [shape: f32[160,64], index: 1, kind: input, shape index: {}]   ;;  %s1076_s2 = inlined_call_operand.vmem [shape: f32[1,64], index: 2, kind: input, shape index: {}]   ;;  %s1077_s3 = inlined_call_operand.vmem [shape: f32[1,64], index: 3, kind: input, shape index: {}]   ;;  %s1078_s4 = inlined_call_operand.vmem [shape: f32[1,64], index: 4, kind: input, shape index: {}]   ;;  %s1079_s5 = inlined_call_operand.vmem [shape: f32[2,16,64], index: 5, kind: output, shape index: {}]  }
   0x1 LB: > { %s764_s19 = sadd.s32 4294967295, %s936_s18   ;;  %p768_p0 = scmp.ge.s32.totalorder %s936_s18, 1  ;;  %s936_s18 = sphi %s968_s18, %s15_s18  }
   0x2   : > { %p187_p1 = scmp.lt.s32.totalorder %s936_s18, 3 }
   0x4   : > { %p188_p2 = pnand %p768_p0, %p187_p1 }
   0x5   : > { %v236_v0 = vld [vmem:[%s1075_s1 + $0x40] sm:$0xff] (!%p188_p2)  ;;  %v237_v1 = vld [vmem:[%s1075_s1 + $0x48] sm:$0xff] (!%p188_p2)  ;;  %p215_p3 = scmp.lt.s32.totalorder (!%p188_p2), %s764_s19, 1  ;;  %v238_v5 = vld [vmem:[%s1075_s1 + $0x50] sm:$0xff] (!%p188_p2)  ;;  %vm251_vm0 = vcmask (!%p188_p2), 1046528   ;;  %vm257_vm1 = vcmask (!%p188_p2), 261120  }
   0x6   : > { %191 = sbr.rel (%p188_p2) target bundleno = 262 (0x106), region = 40  ;;  %v232_v2 = vld [vmem:[%s1075_s1 + $0x20] sm:$0xff] (!%p188_p2)  ;;  %v889_v3 = vpack.c.bf16 (!%p188_p2), %v237_v1, %v236_v0  ;;  %v233_v4 = vld [vmem:[%s1075_s1 + $0x28] sm:$0xff] (!%p188_p2)  ;;  %v239_v6 = vld [vmem:[%s1075_s1 + $0x58] sm:$0xff] (!%p188_p2)  ;;  %vm416_vm2 = vcmask (!%p188_p2), 1045504   ;;  %vm503_vm3 = vcmask (!%p188_p2), 1044480  }
   0x7   : > { %v873_v7 = vpack.c.bf16 (!%p188_p2), %v233_v4, %v232_v2  ;;  %v893_v8 = vpack.c.bf16 (!%p188_p2), %v239_v6, %v238_v5  ;;  %v234_v9 = vld [vmem:[%s1075_s1 + $0x30] sm:$0xff] (!%p188_p2)  ;;  %v235_v10 = vld [vmem:[%s1075_s1 + $0x38] sm:$0xff] (!%p188_p2)  ;;  %v240_v11 = vld [vmem:[%s1075_s1 + $0x60] sm:$0xff] (!%p188_p2)  ;;  %vm590_vm4 = vcmask (!%p188_p2), 1043456   ;;  %vm706_vm5 = vcmask (!%p188_p2), 523264  }
   0x8   : > { %890 = vmatprep.subr.bf16.mxu0 (!%p188_p2), %v889_v3  ;;  %v877_v12 = vpack.c.bf16 (!%p188_p2), %v235_v10, %v234_v9  ;;  %v241_v13 = vld [vmem:[%s1075_s1 + $0x68] sm:$0xff] (!%p188_p2)  ;;  %v228_v14 = vld [vmem:[%s1075_s1] sm:$0xff] (!%p188_p2)  ;;  %v242_v17 = vld [vmem:[%s1075_s1 + $0x70] sm:$0xff] (!%p188_p2) }
   0x9   : > { %v229_v15 = vld [vmem:[%s1075_s1 + $0x8] sm:$0xff] (!%p188_p2)  ;;  %874 = vmatprep.subr.bf16.mxu1 (!%p188_p2), %v873_v7  ;;  %892 = vmatpush3.bf16.msra.mxu0 (!%p188_p2), %v889_v3  ;;  %v897_v16 = vpack.c.bf16 (!%p188_p2), %v241_v13, %v240_v11  ;;  %v243_v19 = vld [vmem:[%s1075_s1 + $0x78] sm:$0xff] (!%p188_p2)  ;;  %v230_v20 = vld [vmem:[%s1075_s1 + $0x10] sm:$0xff] (!%p188_p2) }
   0xa   : > { %876 = vmatpush3.bf16.msra.mxu1 (!%p188_p2), %v873_v7  ;;  %894 = vmatprep.subr.bf16.mxu0 (!%p188_p2), %v893_v8  ;;  %v881_v18 = vpack.c.bf16 (!%p188_p2), %v229_v15, %v228_v14  ;;  %v231_v21 = vld [vmem:[%s1075_s1 + $0x18] sm:$0xff] (!%p188_p2)  ;;  %v901_v35 = vpack.c.bf16 (!%p188_p2), %v243_v19, %v242_v17  ;;  %v244_v39 = vld [vmem:[%s1075_s1 + $0x80] sm:$0xff] (!%p188_p2)  ;;  %v245_v40 = vld [vmem:[%s1075_s1 + $0x88] sm:$0xff] (!%p188_p2) }
   0xb   : > { %878 = vmatprep.subr.bf16.mxu1 (!%p188_p2), %v877_v12  ;;  %v885_v36 = vpack.c.bf16 (!%p188_p2), %v231_v21, %v230_v20  ;;  %v905_v43 = vpack.c.bf16 (!%p188_p2), %v245_v40, %v244_v39  ;;  %v246_v46 = vld [vmem:[%s1075_s1 + $0x90] sm:$0xff] (!%p188_p2)  ;;  %v247_v47 = vld [vmem:[%s1075_s1 + $0x98] sm:$0xff] (!%p188_p2)  ;;  %v782_v56 = vld [vmem:[%s1076_s2] ss:$0 sm:$0xff] (!%p188_p2) }
   0xc   : > { %v909_v49 = vpack.c.bf16 (!%p188_p2), %v247_v47, %v246_v46  ;;  %v783_v61 = vld [vmem:[%s1077_s3] ss:$0 sm:$0xff] (!%p188_p2) }
   0xd   : > { %s1081_s19 = smov (!%p215_p3, %s764_s19), 1  ;;  %896 = vmatpush3.bf16.msra.mxu0 %v893_v8  ;;  %v784_v0 = vld [vmem:[%s1078_s4] ss:$0 sm:$0xff] }
   0xe   : > { %s921_s21 = smul.u32 24, %s1081_s19  ;;  %880 = vmatpush3.bf16.msra.mxu1 %v877_v12  ;;  %898 = vmatprep.subr.bf16.mxu0 %v897_v16  ;;  %s787_s22 = sshll.u32 %s1081_s19, 4 }
   0xf   : > { %882 = vmatprep.subr.bf16.mxu1 %v881_v18  ;;  %s224_s27 = scalar_lea.vmem %s1079_s5, %s787_s22 }
  0x10   : > { %s219_s26 = scalar_lea.vmem %s1074_s0, %s921_s21 }
  0x11   : > { %v225_v22 = vld [vmem:[%s219_s26] sm:$0xff]  ;;  %v226_v23 = vld [vmem:[%s219_s26 + $0x8] sm:$0xff]  ;;  %v227_v24 = vld [vmem:[%s219_s26 + $0x10] sm:$0xf] }
  0x12   : > { %v252_v25 = vrot.slane %v225_v22, 1  ;;  %v253_v26 = vrot.slane %v226_v23, 1  ;;  %v417_v27 = vrot.slane %v225_v22, 2  ;;  %v418_v28 = vrot.slane %v226_v23, 2 }
  0x13   : > { %v255_v29 = vrot.slane %v227_v24, 1  ;;  %v420_v30 = vrot.slane %v227_v24, 2  ;;  %v504_v31 = vrot.slane %v225_v22, 3  ;;  %v505_v32 = vrot.slane %v226_v23, 3 }
  0x14   : > { %v254_v33 = vsel %vm251_vm0, %v252_v25, %v253_v26  ;;  %v419_v34 = vsel %vm416_vm2, %v417_v27, %v418_v28  ;;  %v507_v42 = vrot.slane %v227_v24, 3  ;;  %v591_v44 = vrot.slane %v225_v22, 4 }
  0x15   : > { %826 = vmatprep.mubr.msk.f32.mxu1 %vm257_vm1, %v254_v33  ;;  %848 = vmatprep.mubr.msk.f32.mxu0 %vm257_vm1, %v419_v34  ;;  %v256_v37 = vsel %vm251_vm0, %v253_v26, %v255_v29  ;;  %v421_v38 = vsel %vm416_vm2, %v418_v28, %v420_v30  ;;  %v506_v41 = vsel %vm503_vm3, %v504_v31, %v505_v32  ;;  %v592_v45 = vrot.slane %v226_v23, 4 }
  0x16   : > { %827 = vmatmul.mubr.msk.f32.vlgmr.msra.gmra.mrb[0].mxu1 %vm257_vm1, %v256_v37  ;;  %849 = vmatmul.mubr.msk.f32.vlgmr.msra.gmra.mrb[0].mxu0 %vm257_vm1, %v421_v38  ;;  %v508_v48 = vsel %vm503_vm3, %v505_v32, %v507_v42  ;;  %v594_v51 = vrot.slane %v227_v24, 4 }
  0x17   : > { %900 = vmatpush3.bf16.msra.mxu0 %v897_v16  ;;  %884 = vmatpush3.bf16.msra.mxu1 %v881_v18  ;;  %v593_v50 = vsel %vm590_vm4, %v591_v44, %v592_v45 }
  0x18   : > { %902 = vmatprep.subr.bf16.mxu0 %v901_v35  ;;  %886 = vmatprep.subr.bf16.mxu1 %v885_v36  ;;  %v595_v52 = vsel %vm590_vm4, %v592_v45, %v594_v51 }
  0x19   : > { %837 = vmatprep.mubr.msk.f32.mxu1 %vm257_vm1, %v225_v22  ;;  %859 = vmatprep.mubr.msk.f32.mxu0 %vm257_vm1, %v506_v41 }
  0x1b   : > { %904 = vmatpush3.bf16.msra.mxu0 %v901_v35  ;;  %888 = vmatpush3.bf16.msra.mxu1 %v885_v36 }
  0x1c   : > { %906 = vmatprep.subr.bf16.mxu0 %v905_v43 }
  0x1e   : > { %838 = vmatmul.mubr.msk.f32.vlgmr.msra.gmra.mrb[0].mxu1 %vm257_vm1, %v226_v23  ;;  %860 = vmatmul.mubr.msk.f32.vlgmr.msra.gmra.mrb[0].mxu0 %vm257_vm1, %v508_v48 }
  0x1f   : > { %908 = vmatpush3.bf16.msra.mxu0 %v905_v43  ;;  %870 = vmatprep.mubr.msk.f32.mxu0 %vm257_vm1, %v593_v50 }
  0x20   : > { %910 = vmatprep.subr.bf16.mxu0 %v909_v49 }
  0x23   : > { %912 = vmatpush3.bf16.msra.mxu0 %v909_v49 }
  0x26   : > { %871 = vmatmul.mubr.msk.f32.vlgmr.msra.gmra.mrb[0].mxu0 %vm257_vm1, %v595_v52 }
  0xf1   : > { %v839_v53 = vpop.f32.mrb[0].mxu1 }
  0xf2   : > { %v407_v54 = vpop.f32.mrb[1].mxu1 }
  0xf9   : > { %v872_v55 = vpop.f32.mrb[0].mxu0 }
  0xfa   : > { %v913_v57 = vadd.f32 %v872_v55, %v839_v53  ;;  %v666_v58 = vpop.f32.mrb[1].mxu0 }
  0xfb   : > { %v914_v59 = vadd.f32 %v666_v58, %v407_v54 }
  0xfc   : > { %v685_v60 = vadd.f32 %v913_v57, %v782_v56 }
  0xfd   : > { %v684_v62 = vadd.f32 %v914_v59, %v782_v56 }
  0xfe   : > { %v687_v63 = vmax.f32 %v685_v60, 0.0 }
  0xff   : > { %v686_v1 = vmax.f32 %v684_v62, 0.0 }
 0x100   : > { %v696_v2 = vmul.f32 %v783_v61, %v687_v63 }
 0x101   : > { %v695_v3 = vmul.f32 %v783_v61, %v686_v1 }
 0x102   : > { %v705_v4 = vadd.f32 %v784_v0, %v696_v2 }
 0x103   : > { %v704_v5 = vadd.f32 %v784_v0, %v695_v3 }
 0x104   : > { %708 = vst.msk [vmem:[%s224_s27 + $0x8] sm:$0xff] %vm706_vm5, %v705_v4 }
 0x105   : > { %707 = vst.msk [vmem:[%s224_s27] sm:$0xff] %vm706_vm5, %v704_v5 }
 0x106 PF: > { %s15_s18 = sadd.s32 1, %s936_s18  }
 0x107   : > { %p12_p4 = scmp.ge.s32.totalorder %s15_s18, 4  }
 0x109   :  { %14 = sbr.rel (!%p12_p4) target bundleno = 1 (0x1), region = 70 }

// kernel: _lambda_.28
= control target key start
LH: loop header
LB: loop body
LE: loop exit
PB: predicated region body
PF: predicated region fallthrough
CT: control target
= control target key end

     0   :  { %s691_s18 = smov 0   ;;  %s747_s0 = inlined_call_operand.vmem [shape: f32[2,20,16], index: 0, kind: input, shape index: {}]   ;;  %s748_s1 = inlined_call_operand.vmem [shape: f32[48,16], index: 1, kind: input, shape index: {}]   ;;  %s749_s2 = inlined_call_operand.vmem [shape: f32[1,16], index: 2, kind: input, shape index: {}]   ;;  %s750_s3 = inlined_call_operand.vmem [shape: f32[1,16], index: 3, kind: input, shape index: {}]   ;;  %s751_s4 = inlined_call_operand.vmem [shape: f32[1,16], index: 4, kind: input, shape index: {}]   ;;  %s752_s5 = inlined_call_operand.vmem [shape: f32[2,16,16], index: 5, kind: output, shape index: {}]  }
   0x1 LB: > { %s575_s19 = sadd.s32 4294967295, %s659_s18   ;;  %p579_p0 = scmp.ge.s32.totalorder %s659_s18, 1  ;;  %s659_s18 = sphi %s691_s18, %s15_s18  }
   0x2   : > { %p187_p1 = scmp.lt.s32.totalorder %s659_s18, 3 }
   0x4   : > { %p188_p2 = pnand %p579_p0, %p187_p1 }
   0x5   : > { %v228_v0 = vld [vmem:[%s748_s1] sm:$0xff] (!%p188_p2)  ;;  %v229_v1 = vld [vmem:[%s748_s1 + $0x8] sm:$0xff] (!%p188_p2)  ;;  %p215_p3 = scmp.lt.s32.totalorder (!%p188_p2), %s575_s19, 1  ;;  %v230_v5 = vld [vmem:[%s748_s1 + $0x10] sm:$0xff] (!%p188_p2)  ;;  %vm243_vm0 = vcmask (!%p188_p2), 130048   ;;  %vm237_vm1 = vcmask (!%p188_p2), 1045504  }
   0x6   : > { %191 = sbr.rel (%p188_p2) target bundleno = 251 (0xfb), region = 40  ;;  %v232_v2 = vld [vmem:[%s748_s1 + $0x20] sm:$0xff] (!%p188_p2)  ;;  %v632_v3 = vpack.c.bf16 (!%p188_p2), %v229_v1, %v228_v0  ;;  %v233_v4 = vld [vmem:[%s748_s1 + $0x28] sm:$0xff] (!%p188_p2)  ;;  %v231_v6 = vld [vmem:[%s748_s1 + $0x18] sm:$0xff] (!%p188_p2)  ;;  %vm402_vm2 = vcmask (!%p188_p2), 1043456  }
   0x7   : > { %v636_v7 = vpack.c.bf16 (!%p188_p2), %v233_v4, %v232_v2  ;;  %v628_v8 = vpack.c.bf16 (!%p188_p2), %v231_v6, %v230_v5  ;;  %v589_v25 = vld [vmem:[%s749_s2] ss:$0 sm:$0xff] (!%p188_p2) }
   0x8   : > { %633 = vmatprep.subr.bf16.mxu0 (!%p188_p2), %v632_v3  ;;  %v590_v30 = vld [vmem:[%s750_s3] ss:$0 sm:$0xff] (!%p188_p2) }
   0x9   : > { %635 = vmatpush3.bf16.msra.mxu0 (!%p188_p2), %v632_v3  ;;  %629 = vmatprep.subr.bf16.mxu1 (!%p188_p2), %v628_v8  ;;  %v591_v33 = vld [vmem:[%s751_s4] ss:$0 sm:$0xff] (!%p188_p2) }
   0xa   : > { %637 = vmatprep.subr.bf16.mxu0 (!%p188_p2), %v636_v7  ;;  %631 = vmatpush3.bf16.msra.mxu1 (!%p188_p2), %v628_v8 }
   0xd   : > { %s754_s19 = smov (!%p215_p3, %s575_s19), 1 }
   0xe   : > { %s644_s7 = smul.u32 24, %s754_s19  ;;  %s594_s15 = sshll.u32 %s754_s19, 4 }
   0xf   : > { %s224_s22 = scalar_lea.vmem %s752_s5, %s594_s15 }
  0x10   : > { %s219_s10 = scalar_lea.vmem %s747_s0, %s644_s7 }
  0x11   : > { %v225_v9 = vld [vmem:[%s219_s10] sm:$0xff]  ;;  %v227_v10 = vld [vmem:[%s219_s10 + $0x10] sm:$0xf]  ;;  %v226_v11 = vld [vmem:[%s219_s10 + $0x8] sm:$0xff] }
  0x12   : > { %v238_v12 = vrot.slane %v225_v9, 2  ;;  %v241_v13 = vrot.slane %v227_v10, 2  ;;  %618 = vmatprep.mubr.msk.f32.mxu0 %vm243_vm0, %v225_v9  ;;  %v403_v14 = vrot.slane %v225_v9, 4  ;;  %v404_v15 = vrot.slane %v226_v11, 4 }
  0x13   : > { %619 = vmatmul.mubr.msk.f32.vlgmr.msra.gmra.mrb[0].mxu0 %vm243_vm0, %v226_v11  ;;  %v239_v16 = vrot.slane %v226_v11, 2  ;;  %v406_v17 = vrot.slane %v227_v10, 4 }
  0x14   : > { %639 = vmatpush3.bf16.msra.mxu0 %v636_v7  ;;  %v405_v20 = vsel %vm402_vm2, %v403_v14, %v404_v15 }
  0x15   : > { %v240_v18 = vsel %vm237_vm1, %v238_v12, %v239_v16  ;;  %v242_v19 = vsel %vm237_vm1, %v239_v16, %v241_v13  ;;  %625 = vmatprep.mubr.msk.f32.mxu0 %vm243_vm0, %v405_v20  ;;  %v407_v21 = vsel %vm402_vm2, %v404_v15, %v406_v17 }
  0x16   : > { %611 = vmatprep.mubr.msk.f32.mxu1 %vm243_vm0, %v240_v18 }
  0x17   : > { %612 = vmatmul.mubr.msk.f32.vlgmr.msra.gmra.mrb[0].mxu1 %vm243_vm0, %v242_v19 }
  0x1b   : > { %626 = vmatmul.mubr.msk.f32.vlgmr.msra.gmra.mrb[0].mxu0 %vm243_vm0, %v407_v21 }
  0xea   : > { %v613_v22 = vpop.f32.mrb[0].mxu1 }
  0xeb   : > { %v314_v23 = vpop.f32.mrb[1].mxu1 }
  0xee   : > { %v627_v24 = vpop.f32.mrb[0].mxu0 }
  0xef   : > { %v640_v26 = vadd.f32 %v627_v24, %v613_v22  ;;  %v478_v27 = vpop.f32.mrb[1].mxu0 }
  0xf0   : > { %v641_v28 = vadd.f32 %v478_v27, %v314_v23 }
  0xf1   : > { %v497_v29 = vadd.f32 %v640_v26, %v589_v25 }
  0xf2   : > { %v496_v31 = vadd.f32 %v641_v28, %v589_v25 }
  0xf3   : > { %v499_v32 = vmax.f32 %v497_v29, 0.0 }
  0xf4   : > { %v498_v34 = vmax.f32 %v496_v31, 0.0 }
  0xf5   : > { %v508_v35 = vmul.f32 %v590_v30, %v499_v32 }
  0xf6   : > { %v507_v36 = vmul.f32 %v590_v30, %v498_v34 }
  0xf7   : > { %v517_v37 = vadd.f32 %v591_v33, %v508_v35 }
  0xf8   : > { %v516_v38 = vadd.f32 %v591_v33, %v507_v36 }
  0xf9   : > { %519 = vst.msk [vmem:[%s224_s22 + $0x8] sm:$0xff] %vm243_vm0, %v517_v37 }
  0xfa   : > { %518 = vst.msk [vmem:[%s224_s22] sm:$0xff] %vm243_vm0, %v516_v38 }
  0xfb PF: > { %s15_s18 = sadd.s32 1, %s659_s18  }
  0xfc   : > { %p12_p4 = scmp.ge.s32.totalorder %s15_s18, 4  }
  0xfe   :  { %14 = sbr.rel (!%p12_p4) target bundleno = 1 (0x1), region = 70 }

// kernel: _lambda_.31
= control target key start
LH: loop header
LB: loop body
LE: loop exit
PB: predicated region body
PF: predicated region fallthrough
CT: control target
= control target key end

     0   :  { %s969_s13 = smov 0   ;;  %s1076_s0 = inlined_call_operand.vmem [shape: f32[2,16,64], index: 0, kind: input, shape index: {}]   ;;  %s1077_s1 = inlined_call_operand.vmem [shape: f32[64,64], index: 1, kind: input, shape index: {}]   ;;  %s1078_s2 = inlined_call_operand.vmem [shape: f32[1,64], index: 2, kind: input, shape index: {}]   ;;  %s1079_s3 = inlined_call_operand.vmem [shape: f32[1,64], index: 3, kind: input, shape index: {}]   ;;  %s1080_s4 = inlined_call_operand.vmem [shape: f32[1,64], index: 4, kind: input, shape index: {}]   ;;  %s1081_s5 = inlined_call_operand.vmem [shape: f32[64,32], index: 5, kind: input, shape index: {}]   ;;  %s1082_s6 = inlined_call_operand.vmem [shape: f32[1,32], index: 6, kind: input, shape index: {}]   ;;  %s1083_s7 = inlined_call_operand.vmem [shape: f32[32,64], index: 7, kind: input, shape index: {}]   ;;  %s1084_s8 = inlined_call_operand.vmem [shape: f32[1,64], index: 8, kind: input, shape index: {}]   ;;  %s1085_s9 = inlined_call_operand.vmem [shape: f32[2,16,64], index: 9, kind: input, shape index: {}]   ;;  %s1086_s10 = inlined_call_operand.vmem [shape: f32[2,16,64], index: 10, kind: output, shape index: {}]  }
   0x1 LB: > { %s757_s14 = sadd.s32 4294967295, %s909_s13   ;;  %p761_p0 = scmp.ge.s32.totalorder %s909_s13, 1  ;;  %s909_s13 = sphi %s969_s13, %s20_s13  }
   0x2   : > { %p322_p1 = scmp.lt.s32.totalorder %s909_s13, 3 }
   0x4   : > { %p323_p2 = pnand %p761_p0, %p322_p1 }
   0x5   : > { %v382_v0 = vld [vmem:[%s1077_s1] sm:$0xff] (!%p323_p2)  ;;  %v383_v1 = vld [vmem:[%s1077_s1 + $0x8] sm:$0xff] (!%p323_p2)  ;;  %v384_v2 = vld [vmem:[%s1077_s1 + $0x10] sm:$0xff] (!%p323_p2)  ;;  %p365_p3 = scmp.lt.s32.totalorder (!%p323_p2), %s757_s14, 1  ;;  %vm397_vm0 = vcmask (!%p323_p2), 523264   ;;  %v911_v17 = vmov (!%p323_p2), 0.0|0.0  }
   0x6   : > { %326 = sbr.rel (%p323_p2) target bundleno = 725 (0x2d5), region = 60  ;;  %v854_v3 = vpack.c.bf16 (!%p323_p2), %v383_v1, %v382_v0  ;;  %v385_v4 = vld [vmem:[%s1077_s1 + $0x18] sm:$0xff] (!%p323_p2)  ;;  %v386_v6 = vld [vmem:[%s1077_s1 + $0x20] sm:$0xff] (!%p323_p2)  ;;  %v387_v7 = vld [vmem:[%s1077_s1 + $0x28] sm:$0xff] (!%p323_p2)  ;;  %870 = vmatprep.subr.bf16.mxu1 (!%p323_p2), %v911_v17  ;;  %vm912_vm1 = vmmov (!%p323_p2), 0   ;;  %v913_v24 = vmov (!%p323_p2), 0.0  }
   0x7   : > { %v858_v5 = vpack.c.bf16 (!%p323_p2), %v385_v4, %v384_v2  ;;  %v862_v8 = vpack.c.bf16 (!%p323_p2), %v387_v7, %v386_v6  ;;  %v388_v9 = vld [vmem:[%s1077_s1 + $0x30] sm:$0xff] (!%p323_p2)  ;;  %v389_v10 = vld [vmem:[%s1077_s1 + $0x38] sm:$0xff] (!%p323_p2)  ;;  %v510_v14 = vld [vmem:[%s1081_s5] sm:$0xff] (!%p323_p2)  ;;  %840 = vmatprep.mubr.msk.f32.mxu1 (!%p323_p2), %vm912_vm1, %v913_v24  ;;  %vm598_vm2 = vcmask (!%p323_p2), 261120  }
   0x8   : > { %855 = vmatprep.subr.bf16.mxu0 (!%p323_p2), %v854_v3  ;;  %v866_v12 = vpack.c.bf16 (!%p323_p2), %v389_v10, %v388_v9  ;;  %v511_v15 = vld [vmem:[%s1081_s5 + $0x8] sm:$0xff] (!%p323_p2)  ;;  %v512_v18 = vld [vmem:[%s1081_s5 + $0x10] sm:$0xff] (!%p323_p2)  ;;  %v513_v19 = vld [vmem:[%s1081_s5 + $0x18] sm:$0xff] (!%p323_p2) }
   0x9   : > { %857 = vmatpush3.bf16.msra.mxu0 (!%p323_p2), %v854_v3  ;;  %v871_v16 = vpack.c.bf16 (!%p323_p2), %v511_v15, %v510_v14  ;;  %v874_v20 = vpack.c.bf16 (!%p323_p2), %v513_v19, %v512_v18  ;;  %v514_v21 = vld [vmem:[%s1081_s5 + $0x20] sm:$0xff] (!%p323_p2)  ;;  %v515_v22 = vld [vmem:[%s1081_s5 + $0x28] sm:$0xff] (!%p323_p2)  ;;  %v516_v25 = vld [vmem:[%s1081_s5 + $0x30] sm:$0xff] (!%p323_p2) }
   0xa   : > { %859 = vmatprep.subr.bf16.mxu0 (!%p323_p2), %v858_v5  ;;  %v877_v23 = vpack.c.bf16 (!%p323_p2), %v515_v22, %v514_v21  ;;  %v517_v26 = vld [vmem:[%s1081_s5 + $0x38] sm:$0xff] (!%p323_p2)  ;;  %v593_v28 = vld [vmem:[%s1083_s7] sm:$0xff] (!%p323_p2)  ;;  %v594_v29 = vld [vmem:[%s1083_s7 + $0x8] sm:$0xff] (!%p323_p2) }
   0xb   : > { %872 = vmatpush3.bf16.msra.mxu1 (!%p323_p2), %v871_v16  ;;  %v880_v27 = vpack.c.bf16 (!%p323_p2), %v517_v26, %v516_v25  ;;  %v883_v30 = vpack.c.bf16 (!%p323_p2), %v594_v29, %v593_v28  ;;  %v768_v31 = vld [vmem:[%s1078_s2] ss:$0 sm:$0xff] (!%p323_p2)  ;;  %v595_v54 = vld [vmem:[%s1083_s7 + $0x10] sm:$0xff] (!%p323_p2)  ;;  %v596_v55 = vld [vmem:[%s1083_s7 + $0x18] sm:$0xff] (!%p323_p2) }
   0xc   : > { %873 = vmatprep.subr.bf16.mxu1 (!%p323_p2), %v911_v17  ;;  %v771_v35 = vld [vmem:[%s1079_s3] ss:$0 sm:$0xff] (!%p323_p2)  ;;  %v886_v56 = vpack.c.bf16 (!%p323_p2), %v596_v55, %v595_v54 }
   0xd   : > { %s1088_s14 = smov (!%p365_p3, %s757_s14), 1  ;;  %861 = vmatpush3.bf16.msra.mxu0 %v858_v5  ;;  %v772_v38 = vld [vmem:[%s1080_s4] ss:$0 sm:$0xff]  ;;  %v678_v5 = vlaneseq }
   0xe   : > { %s995_s27 = sshll.u32 %s1088_s14, 4  ;;  %863 = vmatprep.subr.bf16.mxu0 %v862_v8  ;;  %v518_v57 = vld [vmem:[%s1082_s6] sm:$0x1] }
   0xf   : > { %s369_s30 = scalar_lea.vmem %s1076_s0, %s995_s27  ;;  %875 = vmatpush3.bf16.msra.mxu1 %v874_v20  ;;  %v597_v62 = vld [vmem:[%s1084_s8] sm:$0x1]  ;;  %v679_v6 = vshrl.u32 %v678_v5, 7  ;;  %s374_s14 = scalar_lea.vmem %s1085_s9, %s995_s27 }
  0x10   : > { %v380_v11 = vld [vmem:[%s369_s30] sm:$0xff]  ;;  %v381_v13 = vld [vmem:[%s369_s30 + $0x8] sm:$0xff]  ;;  %876 = vmatprep.subr.bf16.mxu1 %v911_v17  ;;  %s379_s19 = scalar_lea.vmem %s1086_s10, %s995_s27 }
  0x11   : > { %821 = vmatprep.mubr.msk.f32.mxu0 %vm397_vm0, %v380_v11  ;;  %865 = vmatpush3.bf16.msra.mxu0 %v862_v8  ;;  %v680_v7 = vsub.s32 0, %v679_v6  ;;  %v684_v10 = vld [vmem:[%s374_s14] sm:$0xff]  ;;  %v685_v11 = vld [vmem:[%s374_s14 + $0x8] sm:$0xff] }
  0x12   : > { %867 = vmatprep.subr.bf16.mxu0 %v866_v12 }
  0x13   : > { %878 = vmatpush3.bf16.msra.mxu1 %v877_v23 }
  0x14   : > { %879 = vmatprep.subr.bf16.mxu1 %v911_v17 }
  0x15   : > { %869 = vmatpush3.bf16.msra.mxu0 %v866_v12 }
  0x16   : > { %882 = vmatprep.subr.bf16.mxu0 %v911_v17 }
  0x17   : > { %881 = vmatpush3.bf16.msra.mxu1 %v880_v27 }
  0x18   : > { %822 = vmatmul.mubr.msk.f32.vlgmr.msra.gmra.mrb[0].mxu0 %vm397_vm0, %v381_v13 }
  0x19   : > { %851 = vmatprep.mubr.msk.f32.mxu0 %vm912_vm1, %v913_v24  ;;  %884 = vmatpush3.bf16.msra.mxu0 %v883_v30 }
  0x1a   : > { %885 = vmatprep.subr.bf16.mxu0 %v911_v17 }
  0x1d   : > { %887 = vmatpush3.bf16.msra.mxu0 %v886_v56 }
  0xeb   : > { %v823_v32 = vpop.f32.mrb[0].mxu0 }
  0xec   : > { %v476_v33 = vadd.f32 %v823_v32, %v768_v31  ;;  %v470_v34 = vpop.f32.mrb[1].mxu0 }
  0xed   : > { %v471_v36 = vadd.f32 %v768_v31, %v470_v34 }
  0xee   : > { %v480_v37 = vmax.f32 %v476_v33, 0.0 }
  0xef   : > { %v479_v39 = vmax.f32 %v471_v36, 0.0 }
  0xf0   : > { %v489_v40 = vmul.f32 %v771_v35, %v480_v37 }
  0xf1   : > { %v488_v41 = vmul.f32 %v771_v35, %v479_v39 }
  0xf2   : > { %v498_v42 = vadd.f32 %v772_v38, %v489_v40 }
  0xf3   : > { %v497_v43 = vadd.f32 %v772_v38, %v488_v41 }
  0xf4   : > { %v500_v44 = vsel %vm397_vm0, %v498_v42, 0.0 }
  0xf5   : > { %v499_v45 = vsel %vm397_vm0, %v497_v43, 0.0 }
  0xf6   : > { %v501_v46 = vadd.f32 %v500_v44, %v499_v45 }
  0xf8   : > { %v502_v47 = vrot.slane %v501_v46, 4 }
  0xfa   : > { %v503_v48 = vadd.f32 %v502_v47, %v501_v46 }
  0xfc   : > { %v504_v49 = vrot.slane %v503_v48, 2 }
  0xfe   : > { %v505_v50 = vadd.f32 %v504_v49, %v503_v48 }
 0x100   : > { %v506_v51 = vrot.slane %v505_v50, 1 }
 0x102   : > { %v507_v52 = vadd.f32 %v506_v51, %v505_v50 }
 0x104   : > { %v509_v53 = vmul.f32 0.0625, %v507_v52 }
 0x106   : > { %841 = vmatmul.mubr.msk.f32.vlgmr.msra.gmra.mrb[0].mxu1 %vm397_vm0, %v509_v53 }
 0x1d9   : > { %v588_v58 = vpop.f32.mrb[0].mxu1 }
 0x1da   : > { %v589_v59 = vadd.f32 %v588_v58, %v518_v57  ;;  %v842_v60 = vpop.f32.mrb[1].mxu1 }
 0x1dc   : > { %v592_v61 = vmax.f32 %v589_v59, 0.0 }
 0x1de   : > { %852 = vmatmul.mubr.msk.f32.vlgmr.msra.gmra.mrb[2].mxu0 %vm598_vm2, %v592_v61 }
 0x2b1   : > { %v668_v63 = vpop.f32.mrb[2].mxu0 }
 0x2b2   : > { %v669_v0 = vadd.f32 %v668_v63, %v597_v62  ;;  %v853_v1 = vpop.f32.mrb[3].mxu0 }
 0x2b4   : > { %v775_v2 = vmul.f32 -1.442695, %v669_v0 }
 0x2b6   : > { %899 = vpow2.f32 %v775_v2 }
 0x2c0   : > { %v900_v3 = vpop.eup %899 }
 0x2c1   : > { %v675_v4 = vadd.f32 1.0, %v900_v3 }
 0x2c3   : > { %901 = vrcp.f32 %v675_v4 }
 0x2cd   : > { %v902_v8 = vpop.eup %901 }
 0x2ce   : > { %v681_v9 = vrot.slane %v902_v8, %v680_v7 }
 0x2d0   : > { %v682_v12 = vmul.f32 %v681_v9, %v497_v43  ;;  %v683_v13 = vmul.f32 %v681_v9, %v498_v42 }
 0x2d2   : > { %v686_v14 = vadd.f32 %v684_v10, %v682_v12  ;;  %v687_v15 = vadd.f32 %v685_v11, %v683_v13 }
 0x2d4   : > { %688 = vst.msk [vmem:[%s379_s19] sm:$0xff] %vm397_vm0, %v686_v14  ;;  %689 = vst.msk [vmem:[%s379_s19 + $0x8] sm:$0xff] %vm397_vm0, %v687_v15 }
 0x2d5 PF: > { %s20_s13 = sadd.s32 1, %s909_s13  }
 0x2d6   : > { %p17_p4 = scmp.ge.s32.totalorder %s20_s13, 4  }
 0x2d8   :  { %19 = sbr.rel (!%p17_p4) target bundleno = 1 (0x1), region = 93 }

// kernel: _lambda_.33
= control target key start
LH: loop header
LB: loop body
LE: loop exit
PB: predicated region body
PF: predicated region fallthrough
CT: control target
= control target key end

     0   :  { %s691_s18 = smov 0   ;;  %s747_s0 = inlined_call_operand.vmem [shape: f32[2,22,16], index: 0, kind: input, shape index: {}]   ;;  %s748_s1 = inlined_call_operand.vmem [shape: f32[48,16], index: 1, kind: input, shape index: {}]   ;;  %s749_s2 = inlined_call_operand.vmem [shape: f32[1,16], index: 2, kind: input, shape index: {}]   ;;  %s750_s3 = inlined_call_operand.vmem [shape: f32[1,16], index: 3, kind: input, shape index: {}]   ;;  %s751_s4 = inlined_call_operand.vmem [shape: f32[1,16], index: 4, kind: input, shape index: {}]   ;;  %s752_s5 = inlined_call_operand.vmem [shape: f32[2,16,16], index: 5, kind: output, shape index: {}]  }
   0x1 LB: > { %s575_s19 = sadd.s32 4294967295, %s659_s18   ;;  %p579_p0 = scmp.ge.s32.totalorder %s659_s18, 1  ;;  %s659_s18 = sphi %s691_s18, %s15_s18  }
   0x2   : > { %p187_p1 = scmp.lt.s32.totalorder %s659_s18, 3 }
   0x4   : > { %p188_p2 = pnand %p579_p0, %p187_p1 }
   0x5   : > { %v228_v0 = vld [vmem:[%s748_s1] sm:$0xff] (!%p188_p2)  ;;  %v229_v1 = vld [vmem:[%s748_s1 + $0x8] sm:$0xff] (!%p188_p2)  ;;  %p215_p3 = scmp.lt.s32.totalorder (!%p188_p2), %s575_s19, 1  ;;  %v230_v5 = vld [vmem:[%s748_s1 + $0x10] sm:$0xff] (!%p188_p2)  ;;  %vm243_vm0 = vcmask (!%p188_p2), 130048   ;;  %vm237_vm1 = vcmask (!%p188_p2), 1044480  }
   0x6   : > { %191 = sbr.rel (%p188_p2) target bundleno = 251 (0xfb), region = 40  ;;  %v232_v2 = vld [vmem:[%s748_s1 + $0x20] sm:$0xff] (!%p188_p2)  ;;  %v632_v3 = vpack.c.bf16 (!%p188_p2), %v229_v1, %v228_v0  ;;  %v233_v4 = vld [vmem:[%s748_s1 + $0x28] sm:$0xff] (!%p188_p2)  ;;  %v231_v6 = vld [vmem:[%s748_s1 + $0x18] sm:$0xff] (!%p188_p2)  ;;  %vm402_vm2 = vcmask (!%p188_p2), 1041408  }
   0x7   : > { %v636_v7 = vpack.c.bf16 (!%p188_p2), %v233_v4, %v232_v2  ;;  %v628_v8 = vpack.c.bf16 (!%p188_p2), %v231_v6, %v230_v5  ;;  %v589_v25 = vld [vmem:[%s749_s2] ss:$0 sm:$0xff] (!%p188_p2) }
   0x8   : > { %633 = vmatprep.subr.bf16.mxu0 (!%p188_p2), %v632_v3  ;;  %v590_v30 = vld [vmem:[%s750_s3] ss:$0 sm:$0xff] (!%p188_p2) }
   0x9   : > { %635 = vmatpush3.bf16.msra.mxu0 (!%p188_p2), %v632_v3  ;;  %629 = vmatprep.subr.bf16.mxu1 (!%p188_p2), %v628_v8  ;;  %v591_v33 = vld [vmem:[%s751_s4] ss:$0 sm:$0xff] (!%p188_p2) }
   0xa   : > { %637 = vmatprep.subr.bf16.mxu0 (!%p188_p2), %v636_v7  ;;  %631 = vmatpush3.bf16.msra.mxu1 (!%p188_p2), %v628_v8 }
   0xd   : > { %s754_s19 = smov (!%p215_p3, %s575_s19), 1 }
   0xe   : > { %s644_s7 = smul.u32 24, %s754_s19  ;;  %s594_s15 = sshll.u32 %s754_s19, 4 }
   0xf   : > { %s224_s22 = scalar_lea.vmem %s752_s5, %s594_s15 }
  0x10   : > { %s219_s10 = scalar_lea.vmem %s747_s0, %s644_s7 }
  0x11   : > { %v225_v9 = vld [vmem:[%s219_s10] sm:$0xff]  ;;  %v227_v10 = vld [vmem:[%s219_s10 + $0x10] sm:$0x3f]  ;;  %v226_v11 = vld [vmem:[%s219_s10 + $0x8] sm:$0xff] }
  0x12   : > { %v238_v12 = vrot.slane %v225_v9, 3  ;;  %v241_v13 = vrot.slane %v227_v10, 3  ;;  %618 = vmatprep.mubr.msk.f32.mxu0 %vm243_vm0, %v225_v9  ;;  %v403_v14 = vrot.slane %v225_v9, 6  ;;  %v404_v15 = vrot.slane %v226_v11, 6 }
  0x13   : > { %619 = vmatmul.mubr.msk.f32.vlgmr.msra.gmra.mrb[0].mxu0 %vm243_vm0, %v226_v11  ;;  %v239_v16 = vrot.slane %v226_v11, 3  ;;  %v406_v17 = vrot.slane %v227_v10, 6 }
  0x14   : > { %639 = vmatpush3.bf16.msra.mxu0 %v636_v7  ;;  %v405_v20 = vsel %vm402_vm2, %v403_v14, %v404_v15 }
  0x15   : > { %v240_v18 = vsel %vm237_vm1, %v238_v12, %v239_v16  ;;  %v242_v19 = vsel %vm237_vm1, %v239_v16, %v241_v13  ;;  %625 = vmatprep.mubr.msk.f32.mxu0 %vm243_vm0, %v405_v20  ;;  %v407_v21 = vsel %vm402_vm2, %v404_v15, %v406_v17 }
  0x16   : > { %611 = vmatprep.mubr.msk.f32.mxu1 %vm243_vm0, %v240_v18 }
  0x17   : > { %612 = vmatmul.mubr.msk.f32.vlgmr.msra.gmra.mrb[0].mxu1 %vm243_vm0, %v242_v19 }
  0x1b   : > { %626 = vmatmul.mubr.msk.f32.vlgmr.msra.gmra.mrb[0].mxu0 %vm243_vm0, %v407_v21 }
  0xea   : > { %v613_v22 = vpop.f32.mrb[0].mxu1 }
  0xeb   : > { %v314_v23 = vpop.f32.mrb[1].mxu1 }
  0xee   : > { %v627_v24 = vpop.f32.mrb[0].mxu0 }
  0xef   : > { %v640_v26 = vadd.f32 %v627_v24, %v613_v22  ;;  %v478_v27 = vpop.f32.mrb[1].mxu0 }
  0xf0   : > { %v641_v28 = vadd.f32 %v478_v27, %v314_v23 }
  0xf1   : > { %v497_v29 = vadd.f32 %v640_v26, %v589_v25 }
  0xf2   : > { %v496_v31 = vadd.f32 %v641_v28, %v589_v25 }
  0xf3   : > { %v499_v32 = vmax.f32 %v497_v29, 0.0 }
  0xf4   : > { %v498_v34 = vmax.f32 %v496_v31, 0.0 }
  0xf5   : > { %v508_v35 = vmul.f32 %v590_v30, %v499_v32 }
  0xf6   : > { %v507_v36 = vmul.f32 %v590_v30, %v498_v34 }
  0xf7   : > { %v517_v37 = vadd.f32 %v591_v33, %v508_v35 }
  0xf8   : > { %v516_v38 = vadd.f32 %v591_v33, %v507_v36 }
  0xf9   : > { %519 = vst.msk [vmem:[%s224_s22 + $0x8] sm:$0xff] %vm243_vm0, %v517_v37 }
  0xfa   : > { %518 = vst.msk [vmem:[%s224_s22] sm:$0xff] %vm243_vm0, %v516_v38 }
  0xfb PF: > { %s15_s18 = sadd.s32 1, %s659_s18  }
  0xfc   : > { %p12_p4 = scmp.ge.s32.totalorder %s15_s18, 4  }
  0xfe   :  { %14 = sbr.rel (!%p12_p4) target bundleno = 1 (0x1), region = 70 }

// kernel: _lambda_.38
= control target key start
LH: loop header
LB: loop body
LE: loop exit
PB: predicated region body
PF: predicated region fallthrough
CT: control target
= control target key end

     0   :  { %s683_s18 = smov 0   ;;  %s739_s0 = inlined_call_operand.vmem [shape: f32[2,24,16], index: 0, kind: input, shape index: {}]   ;;  %s740_s1 = inlined_call_operand.vmem [shape: f32[48,16], index: 1, kind: input, shape index: {}]   ;;  %s741_s2 = inlined_call_operand.vmem [shape: f32[1,16], index: 2, kind: input, shape index: {}]   ;;  %s742_s3 = inlined_call_operand.vmem [shape: f32[1,16], index: 3, kind: input, shape index: {}]   ;;  %s743_s4 = inlined_call_operand.vmem [shape: f32[1,16], index: 4, kind: input, shape index: {}]   ;;  %s744_s5 = inlined_call_operand.vmem [shape: f32[2,16,16], index: 5, kind: output, shape index: {}]  }
   0x1 LB: > { %s567_s19 = sadd.s32 4294967295, %s651_s18   ;;  %p571_p0 = scmp.ge.s32.totalorder %s651_s18, 1  ;;  %s651_s18 = sphi %s683_s18, %s15_s18  }
   0x2   : > { %p187_p1 = scmp.lt.s32.totalorder %s651_s18, 3 }
   0x4   : > { %p188_p2 = pnand %p571_p0, %p187_p1 }
   0x5   : > { %v228_v0 = vld [vmem:[%s740_s1] sm:$0xff] (!%p188_p2)  ;;  %v229_v1 = vld [vmem:[%s740_s1 + $0x8] sm:$0xff] (!%p188_p2)  ;;  %p215_p3 = scmp.lt.s32.totalorder (!%p188_p2), %s567_s19, 1  ;;  %v230_v5 = vld [vmem:[%s740_s1 + $0x10] sm:$0xff] (!%p188_p2)  ;;  %vm243_vm0 = vcmask (!%p188_p2), 130048   ;;  %vm237_vm1 = vcmask (!%p188_p2), 1043456  }
   0x6   : > { %191 = sbr.rel (%p188_p2) target bundleno = 251 (0xfb), region = 40  ;;  %v232_v2 = vld [vmem:[%s740_s1 + $0x20] sm:$0xff] (!%p188_p2)  ;;  %v624_v3 = vpack.c.bf16 (!%p188_p2), %v229_v1, %v228_v0  ;;  %v233_v4 = vld [vmem:[%s740_s1 + $0x28] sm:$0xff] (!%p188_p2)  ;;  %v231_v6 = vld [vmem:[%s740_s1 + $0x18] sm:$0xff] (!%p188_p2) }
   0x7   : > { %v628_v7 = vpack.c.bf16 (!%p188_p2), %v233_v4, %v232_v2  ;;  %v620_v8 = vpack.c.bf16 (!%p188_p2), %v231_v6, %v230_v5  ;;  %v581_v20 = vld [vmem:[%s741_s2] ss:$0 sm:$0xff] (!%p188_p2) }
   0x8   : > { %625 = vmatprep.subr.bf16.mxu0 (!%p188_p2), %v624_v3  ;;  %v582_v25 = vld [vmem:[%s742_s3] ss:$0 sm:$0xff] (!%p188_p2) }
   0x9   : > { %627 = vmatpush3.bf16.msra.mxu0 (!%p188_p2), %v624_v3  ;;  %621 = vmatprep.subr.bf16.mxu1 (!%p188_p2), %v620_v8  ;;  %v583_v28 = vld [vmem:[%s743_s4] ss:$0 sm:$0xff] (!%p188_p2) }
   0xa   : > { %629 = vmatprep.subr.bf16.mxu0 (!%p188_p2), %v628_v7  ;;  %623 = vmatpush3.bf16.msra.mxu1 (!%p188_p2), %v620_v8 }
   0xd   : > { %s746_s19 = smov (!%p215_p3, %s567_s19), 1 }
   0xe   : > { %s636_s7 = smul.u32 24, %s746_s19  ;;  %s586_s15 = sshll.u32 %s746_s19, 4 }
   0xf   : > { %s224_s22 = scalar_lea.vmem %s744_s5, %s586_s15 }
  0x10   : > { %s219_s10 = scalar_lea.vmem %s739_s0, %s636_s7 }
  0x11   : > { %v225_v9 = vld [vmem:[%s219_s10] sm:$0xff]  ;;  %v227_v10 = vld [vmem:[%s219_s10 + $0x10] sm:$0xff]  ;;  %v226_v11 = vld [vmem:[%s219_s10 + $0x8] sm:$0xff] }
  0x12   : > { %v238_v12 = vrot.slane %v225_v9, 4  ;;  %v241_v13 = vrot.slane %v227_v10, 4  ;;  %610 = vmatprep.mubr.msk.f32.mxu0 %vm243_vm0, %v225_v9  ;;  %v239_v14 = vrot.slane %v226_v11, 4 }
  0x13   : > { %611 = vmatmul.mubr.msk.f32.vlgmr.msra.gmra.mrb[0].mxu0 %vm243_vm0, %v226_v11 }
  0x14   : > { %631 = vmatpush3.bf16.msra.mxu0 %v628_v7  ;;  %v240_v15 = vsel %vm237_vm1, %v238_v12, %v239_v14  ;;  %v242_v16 = vsel %vm237_vm1, %v239_v14, %v241_v13  ;;  %617 = vmatprep.mubr.msk.f32.mxu0 %vm243_vm0, %v226_v11 }
  0x15   : > { %603 = vmatprep.mubr.msk.f32.mxu1 %vm243_vm0, %v240_v15 }
  0x16   : > { %604 = vmatmul.mubr.msk.f32.vlgmr.msra.gmra.mrb[0].mxu1 %vm243_vm0, %v242_v16 }
  0x1b   : > { %618 = vmatmul.mubr.msk.f32.vlgmr.msra.gmra.mrb[0].mxu0 %vm243_vm0, %v227_v10 }
  0xe9   : > { %v605_v17 = vpop.f32.mrb[0].mxu1 }
  0xea   : > { %v314_v18 = vpop.f32.mrb[1].mxu1 }
  0xee   : > { %v619_v19 = vpop.f32.mrb[0].mxu0 }
  0xef   : > { %v632_v21 = vadd.f32 %v619_v19, %v605_v17  ;;  %v470_v22 = vpop.f32.mrb[1].mxu0 }
  0xf0   : > { %v633_v23 = vadd.f32 %v470_v22, %v314_v18 }
  0xf1   : > { %v489_v24 = vadd.f32 %v632_v21, %v581_v20 }
  0xf2   : > { %v488_v26 = vadd.f32 %v633_v23, %v581_v20 }
  0xf3   : > { %v491_v27 = vmax.f32 %v489_v24, 0.0 }
  0xf4   : > { %v490_v29 = vmax.f32 %v488_v26, 0.0 }
  0xf5   : > { %v500_v30 = vmul.f32 %v582_v25, %v491_v27 }
  0xf6   : > { %v499_v31 = vmul.f32 %v582_v25, %v490_v29 }
  0xf7   : > { %v509_v32 = vadd.f32 %v583_v28, %v500_v30 }
  0xf8   : > { %v508_v33 = vadd.f32 %v583_v28, %v499_v31 }
  0xf9   : > { %511 = vst.msk [vmem:[%s224_s22 + $0x8] sm:$0xff] %vm243_vm0, %v509_v32 }
  0xfa   : > { %510 = vst.msk [vmem:[%s224_s22] sm:$0xff] %vm243_vm0, %v508_v33 }
  0xfb PF: > { %s15_s18 = sadd.s32 1, %s651_s18  }
  0xfc   : > { %p12_p4 = scmp.ge.s32.totalorder %s15_s18, 4  }
  0xfe   :  { %14 = sbr.rel (!%p12_p4) target bundleno = 1 (0x1), region = 70 }

// kernel: _lambda_.42
= control target key start
LH: loop header
LB: loop body
LE: loop exit
PB: predicated region body
PF: predicated region fallthrough
CT: control target
= control target key end

     0   :  { %vm42_vm0 = vcmask 523264   ;;  %s424_s1 = inlined_call_operand.vmem [shape: f32[64,64], index: 1, kind: input, shape index: {}]   ;;  %s425_s0 = inlined_call_operand.vmem [shape: f32[32,64], index: 0, kind: input, shape index: {}]   ;;  %s426_s2 = inlined_call_operand.vmem [shape: f32[1,64], index: 2, kind: input, shape index: {}]   ;;  %s427_s3 = inlined_call_operand.vmem [shape: f32[1,64], index: 3, kind: input, shape index: {}]   ;;  %s428_s4 = inlined_call_operand.vmem [shape: f32[1,64], index: 4, kind: input, shape index: {}]   ;;  %s429_s5 = inlined_call_operand.vmem [shape: f32[32,64], index: 5, kind: input, shape index: {}]   ;;  %s430_s6 = inlined_call_operand.vmem [shape: f32[32,64], index: 6, kind: output, shape index: {}]  }
   0x1   :  { %v27_v0 = vld [vmem:[%s424_s1] sm:$0xff]  ;;  %v28_v1 = vld [vmem:[%s424_s1 + $0x8] sm:$0xff]  ;;  %v29_v2 = vld [vmem:[%s424_s1 + $0x10] sm:$0xff] }
   0x2   :  { %v272_v3 = vpack.c.bf16 %v28_v1, %v27_v0  ;;  %v30_v4 = vld [vmem:[%s424_s1 + $0x18] sm:$0xff]  ;;  %v31_v6 = vld [vmem:[%s424_s1 + $0x20] sm:$0xff]  ;;  %v32_v7 = vld [vmem:[%s424_s1 + $0x28] sm:$0xff] }
   0x3   :  { %v276_v5 = vpack.c.bf16 %v30_v4, %v29_v2  ;;  %v23_v8 = vld [vmem:[%s425_s0] sm:$0xff]  ;;  %v25_v9 = vld [vmem:[%s425_s0 + $0x10] sm:$0xff]  ;;  %v280_v10 = vpack.c.bf16 %v32_v7, %v31_v6  ;;  %v34_v12 = vld [vmem:[%s424_s1 + $0x38] sm:$0xff] }
   0x4   :  { %273 = vmatprep.subr.bf16.mxu0 %v272_v3  ;;  %288 = vmatprep.subr.bf16.mxu1 %v272_v3  ;;  %v33_v11 = vld [vmem:[%s424_s1 + $0x30] sm:$0xff]  ;;  %v24_v14 = vld [vmem:[%s425_s0 + $0x8] sm:$0xff]  ;;  %v26_v15 = vld [vmem:[%s425_s0 + $0x18] sm:$0xff] }
   0x5   :  { %275 = vmatpush3.bf16.msra.mxu0 %v272_v3  ;;  %292 = vmatpush3.bf16.msra.mxu1 %v272_v3  ;;  %v284_v13 = vpack.c.bf16 %v34_v12, %v33_v11  ;;  %v231_v16 = vld [vmem:[%s426_s2] ss:$0 sm:$0xff]  ;;  %v216_v11 = vld [vmem:[%s429_s5 + $0x8] sm:$0xff] }
   0x6   :  { %277 = vmatprep.subr.bf16.mxu0 %v276_v5  ;;  %289 = vmatprep.subr.bf16.mxu1 %v276_v5  ;;  %v236_v62 = vld [vmem:[%s427_s3] ss:$0 sm:$0xff] }
   0x7   :  { %266 = vmatprep.mubr.msk.f32.mxu0 %vm42_vm0, %v23_v8  ;;  %269 = vmatprep.mubr.msk.f32.mxu1 %vm42_vm0, %v25_v9  ;;  %v237_v0 = vld [vmem:[%s428_s4] ss:$0 sm:$0xff] }
   0x8   :  { %v215_v3 = vld [vmem:[%s429_s5] sm:$0xff] }
   0x9   :  { %279 = vmatpush3.bf16.msra.mxu0 %v276_v5  ;;  %293 = vmatpush3.bf16.msra.mxu1 %v276_v5 }
   0xa   :  { %281 = vmatprep.subr.bf16.mxu0 %v280_v10  ;;  %290 = vmatprep.subr.bf16.mxu1 %v280_v10 }
   0xd   :  { %283 = vmatpush3.bf16.msra.mxu0 %v280_v10  ;;  %294 = vmatpush3.bf16.msra.mxu1 %v280_v10 }
   0xe   :  { %285 = vmatprep.subr.bf16.mxu0 %v284_v13  ;;  %291 = vmatprep.subr.bf16.mxu1 %v284_v13 }
  0x11   :  { %287 = vmatpush3.bf16.msra.mxu0 %v284_v13  ;;  %295 = vmatpush3.bf16.msra.mxu1 %v284_v13 }
  0x14   :  { %267 = vmatmul.mubr.msk.f32.vlgmr.msra.gmra.mrb[0].mxu0 %vm42_vm0, %v24_v14  ;;  %270 = vmatmul.mubr.msk.f32.vlgmr.msra.gmra.mrb[0].mxu1 %vm42_vm0, %v26_v15  ;;  %v217_v14 = vld [vmem:[%s429_s5 + $0x10] sm:$0xff] }
  0xe7   :  { %v268_v17 = vpop.f32.mrb[0].mxu0  ;;  %v271_v18 = vpop.f32.mrb[0].mxu1 }
  0xe8   :  { %v121_v19 = vpop.f32.mrb[1].mxu0  ;;  %v131_v20 = vpop.f32.mrb[1].mxu1  ;;  %v137_v21 = vadd.f32 %v271_v18, %v231_v16  ;;  %v127_v24 = vadd.f32 %v268_v17, %v231_v16 }
  0xe9   :  { %v122_v22 = vadd.f32 %v231_v16, %v121_v19  ;;  %v132_v23 = vadd.f32 %v231_v16, %v131_v20  ;;  %v218_v20 = vld [vmem:[%s429_s5 + $0x18] sm:$0xff] }
  0xea   :  { %v149_v27 = vsel %vm42_vm0, %v137_v21, 0.0  ;;  %v143_v28 = vsel %vm42_vm0, %v127_v24, 0.0 }
  0xeb   :  { %v146_v25 = vsel %vm42_vm0, %v132_v23, 0.0  ;;  %v140_v26 = vsel %vm42_vm0, %v122_v22, 0.0 }
  0xec   :  { %147 = vadd.xlane.f32.xlu1 %v146_v25  ;;  %141 = vadd.xlane.f32.xlu0 %v140_v26 }
  0xf0   :  { %150 = vadd.xlane.f32.xlu1 %v149_v27  ;;  %144 = vadd.xlane.f32.xlu0 %v143_v28 }
 0x179   :  { %v148_v29 = vpop.xlane.xlu1 %147  ;;  %v142_v30 = vpop.xlane.xlu0 %141 }
 0x17a   :  { %v155_v31 = vmul.f32 0.015625, %v148_v29  ;;  %v153_v32 = vmul.f32 0.015625, %v142_v30 }
 0x17c   :  { %v159_v33 = vsub.f32 %v132_v23, %v155_v31  ;;  %v157_v34 = vsub.f32 %v122_v22, %v153_v32 }
 0x17d   :  { %v151_v35 = vpop.xlane.xlu1 %150  ;;  %v145_v36 = vpop.xlane.xlu0 %144 }
 0x17e   :  { %v156_v37 = vmul.f32 0.015625, %v151_v35  ;;  %v154_v38 = vmul.f32 0.015625, %v145_v36  ;;  %v161_v39 = vmul.f32 %v157_v34, %v157_v34  ;;  %v163_v43 = vmul.f32 %v159_v33, %v159_v33 }
 0x180   :  { %v160_v40 = vsub.f32 %v137_v21, %v156_v37  ;;  %v158_v41 = vsub.f32 %v127_v24, %v154_v38  ;;  %v165_v42 = vsel %vm42_vm0, %v161_v39, 0.0  ;;  %v171_v45 = vsel %vm42_vm0, %v163_v43, 0.0 }
 0x181   :  { %166 = vadd.xlane.f32.xlu0 %v165_v42 }
 0x182   :  { %v162_v44 = vmul.f32 %v158_v41, %v158_v41  ;;  %v164_v47 = vmul.f32 %v160_v40, %v160_v40 }
 0x184   :  { %v168_v46 = vsel %vm42_vm0, %v162_v44, 0.0  ;;  %v174_v48 = vsel %vm42_vm0, %v164_v47, 0.0 }
 0x185   :  { %172 = vadd.xlane.f32.xlu0 %v171_v45  ;;  %169 = vadd.xlane.f32.xlu1 %v168_v46 }
 0x189   :  { %175 = vadd.xlane.f32.xlu1 %v174_v48 }
 0x20e   :  { %v167_v49 = vpop.xlane.xlu0 %166 }
 0x20f   :  { %v177_v50 = vmul.f32 0.015625, %v167_v49 }
 0x211   :  { %v181_v51 = vadd.f32 1e-05, %v177_v50 }
 0x212   :  { %v170_v52 = vpop.xlane.xlu1 %169  ;;  %v173_v53 = vpop.xlane.xlu0 %172 }
 0x213   :  { %296 = vrsqrt.f32 %v181_v51  ;;  %v178_v54 = vmul.f32 0.015625, %v170_v52  ;;  %v179_v55 = vmul.f32 0.015625, %v173_v53 }
 0x215   :  { %v182_v56 = vadd.f32 1e-05, %v178_v54  ;;  %v183_v57 = vadd.f32 1e-05, %v179_v55 }
 0x216   :  { %v176_v58 = vpop.xlane.xlu1 %175 }
 0x217   :  { %298 = vrsqrt.f32 %v182_v56  ;;  %v180_v59 = vmul.f32 0.015625, %v176_v58 }
 0x218   :  { %300 = vrsqrt.f32 %v183_v57 }
 0x219   :  { %v184_v60 = vadd.f32 1e-05, %v180_v59 }
 0x21b   :  { %302 = vrsqrt.f32 %v184_v60 }
 0x21d   :  { %v297_v61 = vpop.eup %296 }
 0x21e   :  { %v189_v63 = vmul.f32 %v297_v61, %v157_v34 }
 0x220   :  { %v200_v1 = vmul.f32 %v236_v62, %v189_v63 }
 0x221   :  { %v299_v2 = vpop.eup %298 }
 0x222   :  { %v301_v4 = vpop.eup %300  ;;  %v211_v5 = vadd.f32 %v237_v0, %v200_v1  ;;  %v190_v6 = vmul.f32 %v299_v2, %v158_v41 }
 0x223   :  { %v191_v7 = vmul.f32 %v301_v4, %v159_v33 }
 0x224   :  { %v219_v8 = vadd.f32 %v215_v3, %v211_v5  ;;  %v201_v9 = vmul.f32 %v236_v62, %v190_v6 }
 0x225   :  { %v303_v10 = vpop.eup %302  ;;  %v202_v12 = vmul.f32 %v236_v62, %v191_v7 }
 0x226   :  { %223 = vst.msk [vmem:[%s430_s6] sm:$0xff] %vm42_vm0, %v219_v8  ;;  %v212_v13 = vadd.f32 %v237_v0, %v201_v9  ;;  %v192_v15 = vmul.f32 %v303_v10, %v160_v40 }
 0x227   :  { %v213_v16 = vadd.f32 %v237_v0, %v202_v12 }
 0x228   :  { %v220_v17 = vadd.f32 %v216_v11, %v212_v13  ;;  %v203_v18 = vmul.f32 %v236_v62, %v192_v15 }
 0x229   :  { %v221_v19 = vadd.f32 %v217_v14, %v213_v16 }
 0x22a   :  { %224 = vst.msk [vmem:[%s430_s6 + $0x8] sm:$0xff] %vm42_vm0, %v220_v17  ;;  %v214_v21 = vadd.f32 %v237_v0, %v203_v18 }
 0x22b   :  { %225 = vst.msk [vmem:[%s430_s6 + $0x10] sm:$0xff] %vm42_vm0, %v221_v19 }
 0x22c   :  { %v222_v22 = vadd.f32 %v218_v20, %v214_v21 }
 0x22e   :  { %226 = vst.msk [vmem:[%s430_s6 + $0x18] sm:$0xff] %vm42_vm0, %v222_v22 }

// kernel: _lambda_.43
= control target key start
LH: loop header
LB: loop body
LE: loop exit
PB: predicated region body
PF: predicated region fallthrough
CT: control target
= control target key end

     0   :  { %v235_v3 = vmov 0.0   ;;  %vm52_vm0 = vcmask 523264   ;;  %v42_v29 = vlaneseq  ;;  %s367_s1 = inlined_call_operand.vmem [shape: f32[64,192], index: 1, kind: input, shape index: {}]   ;;  %s368_s0 = inlined_call_operand.vmem [shape: f32[32,64], index: 0, kind: input, shape index: {}]   ;;  %s369_s2 = inlined_call_operand.vmem [shape: f32[1,192], index: 2, kind: input, shape index: {}]   ;;  %s370_s3 = inlined_call_operand.vmem [shape: f32[1,192], index: 3, kind: input, shape index: {}]   ;;  %s371_s4 = inlined_call_operand.vmem [shape: f32[1,192], index: 4, kind: input, shape index: {}]   ;;  %s372_s5 = inlined_call_operand.vmem [shape: f32[32,192], index: 5, kind: output, shape index: {}]  }
   0x1   :  { %v25_v0 = vld [vmem:[%s367_s1 + $0x8] sm:$0xff]  ;;  %v27_v1 = vld [vmem:[%s367_s1 + $0x18] sm:$0xff]  ;;  %v24_v2 = vld [vmem:[%s367_s1] sm:$0xff]  ;;  %129 = vmatprep.mubr.f32.mxu0 %v235_v3  ;;  %141 = vmatprep.mubr.f32.mxu1 %v235_v3 }
   0x2   :  { %v210_v4 = vpack.c.bf16 %v27_v1, %v25_v0  ;;  %v26_v5 = vld [vmem:[%s367_s1 + $0x10] sm:$0xff]  ;;  %v29_v6 = vld [vmem:[%s367_s1 + $0x28] sm:$0xff]  ;;  %v31_v7 = vld [vmem:[%s367_s1 + $0x38] sm:$0xff]  ;;  %v43_v30 = vshrl.u32 %v42_v29, 7 }
   0x3   :  { %v212_v8 = vpack.c.bf16 %v26_v5, %v24_v2  ;;  %v214_v9 = vpack.c.bf16 %v31_v7, %v29_v6  ;;  %v28_v10 = vld [vmem:[%s367_s1 + $0x20] sm:$0xff]  ;;  %v30_v11 = vld [vmem:[%s367_s1 + $0x30] sm:$0xff]  ;;  %v33_v12 = vld [vmem:[%s367_s1 + $0x48] sm:$0xff] }
   0x4   :  { %211 = vmatprep.subr.bf16.mxu0 %v210_v4  ;;  %226 = vmatprep.subr.bf16.mxu1 %v210_v4  ;;  %v35_v13 = vld [vmem:[%s367_s1 + $0x58] sm:$0xff]  ;;  %v216_v14 = vpack.c.bf16 %v30_v11, %v28_v10  ;;  %v32_v16 = vld [vmem:[%s367_s1 + $0x40] sm:$0xff]  ;;  %v34_v17 = vld [vmem:[%s367_s1 + $0x50] sm:$0xff]  ;;  %v44_v31 = vsub.s32 0, %v43_v30  ;;  %v48_v33 = vsub.s32 1, %v43_v30 }
   0x5   :  { %213 = vmatpush1.bf16.msra.mxu0 %v212_v8  ;;  %230 = vmatpush1.bf16.msra.mxu1 %v212_v8  ;;  %v218_v15 = vpack.c.bf16 %v35_v13, %v33_v12  ;;  %v37_v18 = vld [vmem:[%s367_s1 + $0x68] sm:$0xff]  ;;  %v39_v19 = vld [vmem:[%s367_s1 + $0x78] sm:$0xff]  ;;  %v220_v20 = vpack.c.bf16 %v34_v17, %v32_v16  ;;  %v36_v22 = vld [vmem:[%s367_s1 + $0x60] sm:$0xff] }
   0x6   :  { %215 = vmatprep.subr.bf16.mxu0 %v214_v9  ;;  %227 = vmatprep.subr.bf16.mxu1 %v214_v9  ;;  %v222_v21 = vpack.c.bf16 %v39_v19, %v37_v18  ;;  %v38_v23 = vld [vmem:[%s367_s1 + $0x70] sm:$0xff]  ;;  %v20_v25 = vld [vmem:[%s368_s0] sm:$0xff]  ;;  %v21_v27 = vld [vmem:[%s368_s0 + $0x8] sm:$0xff] }
   0x7   :  { %v224_v24 = vpack.c.bf16 %v38_v23, %v36_v22  ;;  %v22_v26 = vld [vmem:[%s368_s0 + $0x10] sm:$0xff]  ;;  %v23_v28 = vld [vmem:[%s368_s0 + $0x18] sm:$0xff]  ;;  %v40_v32 = vld [vmem:[%s369_s2] sm:$0x3] }
   0x8   :  { %v154_v34 = vld [vmem:[%s370_s3] sm:$0x3]  ;;  %v45_v35 = vrot.slane %v40_v32, %v44_v31  ;;  %v49_v37 = vrot.slane %v40_v32, %v48_v33 }
   0x9   :  { %217 = vmatpush1.bf16.msra.mxu0 %v216_v14  ;;  %231 = vmatpush1.bf16.msra.mxu1 %v216_v14  ;;  %v174_v36 = vld [vmem:[%s371_s4] sm:$0x3]  ;;  %v159_v38 = vrot.slane %v154_v34, %v44_v31  ;;  %v163_v41 = vrot.slane %v154_v34, %v48_v33 }
   0xa   :  { %219 = vmatprep.subr.bf16.mxu0 %v218_v15  ;;  %228 = vmatprep.subr.bf16.mxu1 %v218_v15  ;;  %v179_v43 = vrot.slane %v174_v36, %v44_v31  ;;  %v183_v48 = vrot.slane %v174_v36, %v48_v33 }
   0xd   :  { %221 = vmatpush1.bf16.msra.mxu0 %v220_v20  ;;  %232 = vmatpush1.bf16.msra.mxu1 %v220_v20 }
   0xe   :  { %223 = vmatprep.subr.bf16.mxu0 %v222_v21  ;;  %229 = vmatprep.subr.bf16.mxu1 %v222_v21 }
  0x11   :  { %225 = vmatpush1.bf16.msra.mxu0 %v224_v24  ;;  %233 = vmatpush1.bf16.msra.mxu1 %v224_v24 }
  0x14   :  { %206 = vmatmul.mubr.msk.f32.vlgmr.msra.gmra.mrb[0].mxu0 %vm52_vm0, %v20_v25  ;;  %208 = vmatmul.mubr.msk.f32.vlgmr.msra.gmra.mrb[0].mxu1 %vm52_vm0, %v22_v26 }
  0x15   :  { %135 = vmatprep.mubr.f32.mxu0 %v235_v3  ;;  %147 = vmatprep.mubr.f32.mxu1 %v235_v3 }
  0x18   :  { %207 = vmatmul.mubr.msk.f32.gmra.mrb[2].mxu0 %vm52_vm0, %v21_v27  ;;  %209 = vmatmul.mubr.msk.f32.gmra.mrb[2].mxu1 %vm52_vm0, %v23_v28 }
  0xe7   :  { %v131_v39 = vpop.f32.mrb[0].mxu0  ;;  %v143_v40 = vpop.f32.mrb[0].mxu1 }
  0xe8   :  { %v132_v42 = vadd.f32 %v131_v39, %v45_v35  ;;  %v144_v44 = vadd.f32 %v143_v40, %v45_v35  ;;  %v133_v45 = vpop.f32.mrb[1].mxu0  ;;  %v145_v46 = vpop.f32.mrb[1].mxu1 }
  0xe9   :  { %v134_v47 = vadd.f32 %v133_v45, %v49_v37  ;;  %v146_v49 = vadd.f32 %v145_v46, %v49_v37 }
  0xea   :  { %v166_v50 = vmul.f32 %v159_v38, %v132_v42  ;;  %v170_v51 = vmul.f32 %v159_v38, %v144_v44 }
  0xeb   :  { %v167_v52 = vmul.f32 %v163_v41, %v134_v47  ;;  %v171_v53 = vmul.f32 %v163_v41, %v146_v49  ;;  %v137_v54 = vpop.f32.mrb[2].mxu0  ;;  %v149_v55 = vpop.f32.mrb[2].mxu1 }
  0xec   :  { %v186_v56 = vadd.f32 %v179_v43, %v166_v50  ;;  %v190_v57 = vadd.f32 %v179_v43, %v170_v51  ;;  %v138_v58 = vadd.f32 %v137_v54, %v45_v35  ;;  %v150_v59 = vadd.f32 %v149_v55, %v45_v35  ;;  %v139_v60 = vpop.f32.mrb[3].mxu0  ;;  %v151_v61 = vpop.f32.mrb[3].mxu1 }
  0xed   :  { %v187_v62 = vadd.f32 %v183_v48, %v167_v52  ;;  %v191_v63 = vadd.f32 %v183_v48, %v171_v53  ;;  %v140_v0 = vadd.f32 %v139_v60, %v49_v37  ;;  %v152_v1 = vadd.f32 %v151_v61, %v49_v37 }
  0xee   :  { %194 = vst [vmem:[%s372_s5] sm:$0xff] %v186_v56  ;;  %198 = vst [vmem:[%s372_s5 + $0x20] sm:$0xff] %v190_v57  ;;  %v168_v2 = vmul.f32 %v159_v38, %v138_v58  ;;  %v172_v3 = vmul.f32 %v159_v38, %v150_v59 }
  0xef   :  { %195 = vst.msk [vmem:[%s372_s5 + $0x8] sm:$0xff] %vm52_vm0, %v187_v62  ;;  %199 = vst.msk [vmem:[%s372_s5 + $0x28] sm:$0xff] %vm52_vm0, %v191_v63  ;;  %v169_v4 = vmul.f32 %v163_v41, %v140_v0  ;;  %v173_v5 = vmul.f32 %v163_v41, %v152_v1 }
  0xf0   :  { %v188_v6 = vadd.f32 %v179_v43, %v168_v2  ;;  %v192_v7 = vadd.f32 %v179_v43, %v172_v3 }
  0xf1   :  { %v189_v8 = vadd.f32 %v183_v48, %v169_v4  ;;  %v193_v9 = vadd.f32 %v183_v48, %v173_v5 }
  0xf2   :  { %196 = vst [vmem:[%s372_s5 + $0x10] sm:$0xff] %v188_v6  ;;  %200 = vst [vmem:[%s372_s5 + $0x30] sm:$0xff] %v192_v7 }
  0xf3   :  { %197 = vst.msk [vmem:[%s372_s5 + $0x18] sm:$0xff] %vm52_vm0, %v189_v8  ;;  %201 = vst.msk [vmem:[%s372_s5 + $0x38] sm:$0xff] %vm52_vm0, %v193_v9 }

// kernel: _lambda_.45
= control target key start
LH: loop header
LB: loop body
LE: loop exit
PB: predicated region body
PF: predicated region fallthrough
CT: control target
= control target key end

     0   :  { %vm42_vm0 = vcmask 523264   ;;  %s424_s1 = inlined_call_operand.vmem [shape: f32[64,64], index: 1, kind: input, shape index: {}]   ;;  %s425_s0 = inlined_call_operand.vmem [shape: f32[32,64], index: 0, kind: input, shape index: {}]   ;;  %s426_s2 = inlined_call_operand.vmem [shape: f32[1,64], index: 2, kind: input, shape index: {}]   ;;  %s427_s3 = inlined_call_operand.vmem [shape: f32[32,64], index: 3, kind: input, shape index: {}]   ;;  %s428_s4 = inlined_call_operand.vmem [shape: f32[1,64], index: 4, kind: input, shape index: {}]   ;;  %s429_s5 = inlined_call_operand.vmem [shape: f32[1,64], index: 5, kind: input, shape index: {}]   ;;  %s430_s6 = inlined_call_operand.vmem [shape: f32[32,64], index: 6, kind: output, shape index: {}]  }
   0x1   :  { %v27_v0 = vld [vmem:[%s424_s1] sm:$0xff]  ;;  %v28_v1 = vld [vmem:[%s424_s1 + $0x8] sm:$0xff]  ;;  %v29_v2 = vld [vmem:[%s424_s1 + $0x10] sm:$0xff] }
   0x2   :  { %v272_v3 = vpack.c.bf16 %v28_v1, %v27_v0  ;;  %v30_v4 = vld [vmem:[%s424_s1 + $0x18] sm:$0xff]  ;;  %v31_v6 = vld [vmem:[%s424_s1 + $0x20] sm:$0xff]  ;;  %v32_v7 = vld [vmem:[%s424_s1 + $0x28] sm:$0xff] }
   0x3   :  { %v276_v5 = vpack.c.bf16 %v30_v4, %v29_v2  ;;  %v23_v8 = vld [vmem:[%s425_s0] sm:$0xff]  ;;  %v25_v9 = vld [vmem:[%s425_s0 + $0x10] sm:$0xff]  ;;  %v280_v10 = vpack.c.bf16 %v32_v7, %v31_v6  ;;  %v34_v12 = vld [vmem:[%s424_s1 + $0x38] sm:$0xff] }
   0x4   :  { %273 = vmatprep.subr.bf16.mxu0 %v272_v3  ;;  %288 = vmatprep.subr.bf16.mxu1 %v272_v3  ;;  %v33_v11 = vld [vmem:[%s424_s1 + $0x30] sm:$0xff]  ;;  %v24_v14 = vld [vmem:[%s425_s0 + $0x8] sm:$0xff]  ;;  %v26_v15 = vld [vmem:[%s425_s0 + $0x18] sm:$0xff] }
   0x5   :  { %275 = vmatpush3.bf16.msra.mxu0 %v272_v3  ;;  %292 = vmatpush3.bf16.msra.mxu1 %v272_v3  ;;  %v284_v13 = vpack.c.bf16 %v34_v12, %v33_v11  ;;  %v231_v16 = vld [vmem:[%s426_s2] ss:$0 sm:$0xff]  ;;  %v142_v22 = vld [vmem:[%s427_s3 + $0x10] sm:$0xff]  ;;  %v143_v24 = vld [vmem:[%s427_s3 + $0x18] sm:$0xff] }
   0x6   :  { %277 = vmatprep.subr.bf16.mxu0 %v276_v5  ;;  %289 = vmatprep.subr.bf16.mxu1 %v276_v5  ;;  %v140_v23 = vld [vmem:[%s427_s3] sm:$0xff]  ;;  %v141_v28 = vld [vmem:[%s427_s3 + $0x8] sm:$0xff] }
   0x7   :  { %266 = vmatprep.mubr.msk.f32.mxu0 %vm42_vm0, %v23_v8  ;;  %269 = vmatprep.mubr.msk.f32.mxu1 %vm42_vm0, %v25_v9  ;;  %v236_v6 = vld [vmem:[%s428_s4] ss:$0 sm:$0xff] }
   0x8   :  { %v237_v8 = vld [vmem:[%s429_s5] ss:$0 sm:$0xff] }
   0x9   :  { %279 = vmatpush3.bf16.msra.mxu0 %v276_v5  ;;  %293 = vmatpush3.bf16.msra.mxu1 %v276_v5 }
   0xa   :  { %281 = vmatprep.subr.bf16.mxu0 %v280_v10  ;;  %290 = vmatprep.subr.bf16.mxu1 %v280_v10 }
   0xd   :  { %283 = vmatpush3.bf16.msra.mxu0 %v280_v10  ;;  %294 = vmatpush3.bf16.msra.mxu1 %v280_v10 }
   0xe   :  { %285 = vmatprep.subr.bf16.mxu0 %v284_v13  ;;  %291 = vmatprep.subr.bf16.mxu1 %v284_v13 }
  0x11   :  { %287 = vmatpush3.bf16.msra.mxu0 %v284_v13  ;;  %295 = vmatpush3.bf16.msra.mxu1 %v284_v13 }
  0x14   :  { %267 = vmatmul.mubr.msk.f32.vlgmr.msra.gmra.mrb[0].mxu0 %vm42_vm0, %v24_v14  ;;  %270 = vmatmul.mubr.msk.f32.vlgmr.msra.gmra.mrb[0].mxu1 %vm42_vm0, %v26_v15 }
  0xe7   :  { %v268_v17 = vpop.f32.mrb[0].mxu0  ;;  %v271_v18 = vpop.f32.mrb[0].mxu1 }
  0xe8   :  { %v137_v19 = vadd.f32 %v271_v18, %v231_v16  ;;  %v121_v20 = vpop.f32.mrb[1].mxu0  ;;  %v131_v21 = vpop.f32.mrb[1].mxu1  ;;  %v127_v25 = vadd.f32 %v268_v17, %v231_v16 }
  0xe9   :  { %v122_v26 = vadd.f32 %v231_v16, %v121_v20  ;;  %v132_v27 = vadd.f32 %v231_v16, %v131_v21 }
  0xea   :  { %v147_v31 = vadd.f32 %v143_v24, %v137_v19  ;;  %v145_v34 = vadd.f32 %v141_v28, %v127_v25 }
  0xeb   :  { %v146_v29 = vadd.f32 %v142_v22, %v132_v27  ;;  %v144_v30 = vadd.f32 %v140_v23, %v122_v26 }
  0xec   :  { %v157_v35 = vsel %vm42_vm0, %v147_v31, 0.0  ;;  %v151_v36 = vsel %vm42_vm0, %v145_v34, 0.0 }
  0xed   :  { %v154_v32 = vsel %vm42_vm0, %v146_v29, 0.0  ;;  %v148_v33 = vsel %vm42_vm0, %v144_v30, 0.0 }
  0xee   :  { %155 = vadd.xlane.f32.xlu1 %v154_v32  ;;  %149 = vadd.xlane.f32.xlu0 %v148_v33 }
  0xf2   :  { %158 = vadd.xlane.f32.xlu1 %v157_v35  ;;  %152 = vadd.xlane.f32.xlu0 %v151_v36 }
 0x17b   :  { %v156_v37 = vpop.xlane.xlu1 %155  ;;  %v150_v38 = vpop.xlane.xlu0 %149 }
 0x17c   :  { %v163_v39 = vmul.f32 0.015625, %v156_v37  ;;  %v161_v40 = vmul.f32 0.015625, %v150_v38 }
 0x17e   :  { %v167_v41 = vsub.f32 %v146_v29, %v163_v39  ;;  %v165_v42 = vsub.f32 %v144_v30, %v161_v40 }
 0x17f   :  { %v159_v43 = vpop.xlane.xlu1 %158  ;;  %v153_v44 = vpop.xlane.xlu0 %152 }
 0x180   :  { %v164_v45 = vmul.f32 0.015625, %v159_v43  ;;  %v162_v46 = vmul.f32 0.015625, %v153_v44  ;;  %v169_v47 = vmul.f32 %v165_v42, %v165_v42  ;;  %v171_v51 = vmul.f32 %v167_v41, %v167_v41 }
 0x182   :  { %v168_v48 = vsub.f32 %v147_v31, %v164_v45  ;;  %v166_v49 = vsub.f32 %v145_v34, %v162_v46  ;;  %v173_v50 = vsel %vm42_vm0, %v169_v47, 0.0  ;;  %v179_v53 = vsel %vm42_vm0, %v171_v51, 0.0 }
 0x183   :  { %174 = vadd.xlane.f32.xlu0 %v173_v50 }
 0x184   :  { %v170_v52 = vmul.f32 %v166_v49, %v166_v49  ;;  %v172_v55 = vmul.f32 %v168_v48, %v168_v48 }
 0x186   :  { %v176_v54 = vsel %vm42_vm0, %v170_v52, 0.0  ;;  %v182_v56 = vsel %vm42_vm0, %v172_v55, 0.0 }
 0x187   :  { %180 = vadd.xlane.f32.xlu0 %v179_v53  ;;  %177 = vadd.xlane.f32.xlu1 %v176_v54 }
 0x18b   :  { %183 = vadd.xlane.f32.xlu1 %v182_v56 }
 0x210   :  { %v175_v57 = vpop.xlane.xlu0 %174 }
 0x211   :  { %v185_v58 = vmul.f32 0.015625, %v175_v57 }
 0x213   :  { %v189_v59 = vadd.f32 1e-05, %v185_v58 }
 0x214   :  { %v178_v60 = vpop.xlane.xlu1 %177  ;;  %v181_v61 = vpop.xlane.xlu0 %180 }
 0x215   :  { %296 = vrsqrt.f32 %v189_v59  ;;  %v186_v62 = vmul.f32 0.015625, %v178_v60  ;;  %v187_v63 = vmul.f32 0.015625, %v181_v61 }
 0x217   :  { %v190_v0 = vadd.f32 1e-05, %v186_v62  ;;  %v191_v1 = vadd.f32 1e-05, %v187_v63 }
 0x218   :  { %v184_v2 = vpop.xlane.xlu1 %183 }
 0x219   :  { %298 = vrsqrt.f32 %v190_v0  ;;  %v188_v3 = vmul.f32 0.015625, %v184_v2 }
 0x21a   :  { %300 = vrsqrt.f32 %v191_v1 }
 0x21b   :  { %v192_v4 = vadd.f32 1e-05, %v188_v3 }
 0x21d   :  { %302 = vrsqrt.f32 %v192_v4 }
 0x21f   :  { %v297_v5 = vpop.eup %296 }
 0x220   :  { %v197_v7 = vmul.f32 %v297_v5, %v165_v42 }
 0x222   :  { %v208_v9 = vmul.f32 %v236_v6, %v197_v7 }
 0x223   :  { %v299_v10 = vpop.eup %298 }
 0x224   :  { %v301_v11 = vpop.eup %300  ;;  %v219_v12 = vadd.f32 %v237_v8, %v208_v9  ;;  %v198_v13 = vmul.f32 %v299_v10, %v166_v49 }
 0x225   :  { %v199_v14 = vmul.f32 %v301_v11, %v167_v41 }
 0x226   :  { %223 = vst.msk [vmem:[%s430_s6] sm:$0xff] %vm42_vm0, %v219_v12  ;;  %v209_v15 = vmul.f32 %v236_v6, %v198_v13 }
 0x227   :  { %v303_v16 = vpop.eup %302  ;;  %v210_v17 = vmul.f32 %v236_v6, %v199_v14 }
 0x228   :  { %v220_v18 = vadd.f32 %v237_v8, %v209_v15  ;;  %v200_v19 = vmul.f32 %v303_v16, %v168_v48 }
 0x229   :  { %v221_v20 = vadd.f32 %v237_v8, %v210_v17 }
 0x22a   :  { %224 = vst.msk [vmem:[%s430_s6 + $0x8] sm:$0xff] %vm42_vm0, %v220_v18  ;;  %v211_v21 = vmul.f32 %v236_v6, %v200_v19 }
 0x22b   :  { %225 = vst.msk [vmem:[%s430_s6 + $0x10] sm:$0xff] %vm42_vm0, %v221_v20 }
 0x22c   :  { %v222_v22 = vadd.f32 %v237_v8, %v211_v21 }
 0x22e   :  { %226 = vst.msk [vmem:[%s430_s6 + $0x18] sm:$0xff] %vm42_vm0, %v222_v22 }

// kernel: _lambda_.44
= control target key start
LH: loop header
LB: loop body
LE: loop exit
PB: predicated region body
PF: predicated region fallthrough
CT: control target
= control target key end

     0   :  { %vm62_vm0 = vcmask 130048   ;;  %s2445_s1 = inlined_call_operand.vmem [shape: f32[8,16,16], index: 1, kind: input, shape index: {}]   ;;  %s2446_s0 = inlined_call_operand.vmem [shape: f32[8,16,16], index: 0, kind: input, shape index: {}]   ;;  %s2447_s2 = inlined_call_operand.vmem [shape: f32[8,16,16], index: 2, kind: input, shape index: {}]   ;;  %s2448_s3 = inlined_call_operand.vmem [shape: f32[8,16,16], index: 3, kind: output, shape index: {}]  }
   0x1   :  { %v30_v0 = vld [vmem:[%s2445_s1] sm:$0xff]  ;;  %v31_v1 = vld [vmem:[%s2445_s1 + $0x8] sm:$0xff]  ;;  %vm2015_vm1 = vmpackc.low %vm62_vm0, %vm62_vm0 }
   0x2   :  { %v1843_v3 = vpack.c.bf16 %v31_v1, %v30_v0  ;;  %v32_v4 = vld [vmem:[%s2445_s1 + $0x10] sm:$0xff]  ;;  %v33_v5 = vld [vmem:[%s2445_s1 + $0x18] sm:$0xff]  ;;  %v14_v6 = vld [vmem:[%s2446_s0] sm:$0xff] }
   0x3   :  { %v1849_v7 = vpack.c.bf16 %v33_v5, %v32_v4  ;;  %1735 = vmatprep.mubr.msk.f32.mxu0 %vm62_vm0, %v14_v6  ;;  %v16_v8 = vld [vmem:[%s2446_s0 + $0x10] sm:$0xff]  ;;  %v34_v9 = vld [vmem:[%s2445_s1 + $0x20] sm:$0xff]  ;;  %v35_v10 = vld [vmem:[%s2445_s1 + $0x28] sm:$0xff] }
   0x4   :  { %1845 = vmatprep.subr.msk.bf16.mxu0 %vm2015_vm1, %v1843_v3  ;;  %1742 = vmatprep.mubr.msk.f32.mxu1 %vm62_vm0, %v16_v8  ;;  %v36_v11 = vld [vmem:[%s2445_s1 + $0x30] sm:$0xff]  ;;  %v37_v12 = vld [vmem:[%s2445_s1 + $0x38] sm:$0xff]  ;;  %v1855_v13 = vpack.c.bf16 %v35_v10, %v34_v9  ;;  %v38_v15 = vld [vmem:[%s2445_s1 + $0x40] sm:$0xff] }
   0x5   :  { %1851 = vmatprep.subr.msk.bf16.mxu1 %vm2015_vm1, %v1849_v7  ;;  %1848 = vmatpush3.bf16.xpose.msk.msra.mxu0 %vm2015_vm1, %v1843_v3  ;;  %v1861_v14 = vpack.c.bf16 %v37_v12, %v36_v11  ;;  %v39_v16 = vld [vmem:[%s2445_s1 + $0x48] sm:$0xff]  ;;  %v40_v18 = vld [vmem:[%s2445_s1 + $0x50] sm:$0xff]  ;;  %v41_v19 = vld [vmem:[%s2445_s1 + $0x58] sm:$0xff] }
   0x6   :  { %1854 = vmatpush3.bf16.xpose.msk.msra.mxu1 %vm2015_vm1, %v1849_v7  ;;  %1857 = vmatprep.subr.msk.bf16.mxu0 %vm2015_vm1, %v1855_v13  ;;  %v15_v17 = vld [vmem:[%s2446_s0 + $0x8] sm:$0xff]  ;;  %v17_v20 = vld [vmem:[%s2446_s0 + $0x18] sm:$0xff]  ;;  %v20_v21 = vld [vmem:[%s2446_s0 + $0x30] sm:$0xff]  ;;  %v1867_v22 = vpack.c.bf16 %v39_v16, %v38_v15  ;;  %v1873_v24 = vpack.c.bf16 %v41_v19, %v40_v18 }
   0x7   :  { %1863 = vmatprep.subr.msk.bf16.mxu1 %vm2015_vm1, %v1861_v14  ;;  %v18_v23 = vld [vmem:[%s2446_s0 + $0x20] sm:$0xff]  ;;  %v43_v26 = vld [vmem:[%s2445_s1 + $0x68] sm:$0xff]  ;;  %v44_v28 = vld [vmem:[%s2445_s1 + $0x70] sm:$0xff] }
   0x8   :  { %v42_v25 = vld [vmem:[%s2445_s1 + $0x60] sm:$0xff]  ;;  %v19_v27 = vld [vmem:[%s2446_s0 + $0x28] sm:$0xff]  ;;  %v45_v29 = vld [vmem:[%s2445_s1 + $0x78] sm:$0xff] }
   0x9   :  { %v21_v30 = vld [vmem:[%s2446_s0 + $0x38] sm:$0xff]  ;;  %v24_v31 = vld [vmem:[%s2446_s0 + $0x50] sm:$0xff]  ;;  %v1879_v32 = vpack.c.bf16 %v43_v26, %v42_v25  ;;  %v22_v33 = vld [vmem:[%s2446_s0 + $0x40] sm:$0xff]  ;;  %v1885_v34 = vpack.c.bf16 %v45_v29, %v44_v28 }
   0xa   :  { %v23_v35 = vld [vmem:[%s2446_s0 + $0x48] sm:$0xff]  ;;  %v25_v36 = vld [vmem:[%s2446_s0 + $0x58] sm:$0xff]  ;;  %v26_v37 = vld [vmem:[%s2446_s0 + $0x60] sm:$0xff] }
   0xb   :  { %v28_v38 = vld [vmem:[%s2446_s0 + $0x70] sm:$0xff]  ;;  %v27_v39 = vld [vmem:[%s2446_s0 + $0x68] sm:$0xff]  ;;  %v29_v40 = vld [vmem:[%s2446_s0 + $0x78] sm:$0xff] }
   0xc   :  { %1736 = vmatmul.mubr.msk.f32.vlgmr.msra.gmra.mrb[0].mxu0 %vm62_vm0, %v15_v17 }
   0xd   :  { %1743 = vmatmul.mubr.msk.f32.vlgmr.msra.gmra.mrb[0].mxu1 %vm62_vm0, %v17_v20  ;;  %1860 = vmatpush3.bf16.xpose.msk.msra.mxu0 %vm2015_vm1, %v1855_v13 }
   0xe   :  { %1866 = vmatpush3.bf16.xpose.msk.msra.mxu1 %vm2015_vm1, %v1861_v14  ;;  %1756 = vmatprep.mubr.msk.f32.mxu1 %vm62_vm0, %v20_v21 }
   0xf   :  { %1749 = vmatprep.mubr.msk.f32.mxu0 %vm62_vm0, %v18_v23  ;;  %1869 = vmatprep.subr.msk.bf16.mxu0 %vm2015_vm1, %v1867_v22 }
  0x10   :  { %1875 = vmatprep.subr.msk.bf16.mxu1 %vm2015_vm1, %v1873_v24 }
  0x14   :  { %1750 = vmatmul.mubr.msk.f32.vlgmr.msra.gmra.mrb[2].mxu0 %vm62_vm0, %v19_v27 }
  0x15   :  { %1757 = vmatmul.mubr.msk.f32.vlgmr.msra.gmra.mrb[2].mxu1 %vm62_vm0, %v21_v30  ;;  %1872 = vmatpush3.bf16.xpose.msk.msra.mxu0 %vm2015_vm1, %v1867_v22 }
  0x16   :  { %1878 = vmatpush3.bf16.xpose.msk.msra.mxu1 %vm2015_vm1, %v1873_v24  ;;  %1770 = vmatprep.mubr.msk.f32.mxu1 %vm62_vm0, %v24_v31 }
  0x17   :  { %1763 = vmatprep.mubr.msk.f32.mxu0 %vm62_vm0, %v22_v33  ;;  %1881 = vmatprep.subr.msk.bf16.mxu0 %vm2015_vm1, %v1879_v32 }
  0x18   :  { %1887 = vmatprep.subr.msk.bf16.mxu1 %vm2015_vm1, %v1885_v34 }
  0x1c   :  { %1764 = vmatmul.mubr.msk.f32.vlgmr.msra.gmra.mrb[4].mxu0 %vm62_vm0, %v23_v35 }
  0x1d   :  { %1771 = vmatmul.mubr.msk.f32.vlgmr.msra.gmra.mrb[4].mxu1 %vm62_vm0, %v25_v36  ;;  %1884 = vmatpush3.bf16.xpose.msk.msra.mxu0 %vm2015_vm1, %v1879_v32 }
  0x1e   :  { %1890 = vmatpush3.bf16.xpose.msk.msra.mxu1 %vm2015_vm1, %v1885_v34  ;;  %1777 = vmatprep.mubr.msk.f32.mxu0 %vm62_vm0, %v26_v37 }
  0x1f   :  { %1784 = vmatprep.mubr.msk.f32.mxu1 %vm62_vm0, %v28_v38 }
  0x24   :  { %1778 = vmatmul.mubr.msk.f32.vlgmr.msra.gmra.mrb[6].mxu0 %vm62_vm0, %v27_v39 }
  0x25   :  { %1785 = vmatmul.mubr.msk.f32.vlgmr.msra.gmra.mrb[6].mxu1 %vm62_vm0, %v29_v40 }
  0xdf   :  { %v1737_v41 = vpop.f32.mrb[0].mxu0 }
  0xe0   :  { %v2157_v42 = vmul.f32 0.25, %v1737_v41  ;;  %v141_v43 = vpop.f32.mrb[1].mxu0  ;;  %v1744_v44 = vpop.f32.mrb[0].mxu1 }
  0xe1   :  { %v2159_v45 = vmul.f32 0.25, %v141_v43  ;;  %v2161_v46 = vmul.f32 0.25, %v1744_v44  ;;  %v228_v47 = vpop.f32.mrb[1].mxu1 }
  0xe2   :  { %v2163_v48 = vmul.f32 0.25, %v228_v47  ;;  %v778_v49 = vsel %vm62_vm0, %v2157_v42, -inf }
  0xe3   :  { %779 = vmax.xlane.f32.xlu1 %v778_v49  ;;  %v775_v50 = vsel %vm62_vm0, %v2159_v45, -inf  ;;  %v784_v51 = vsel %vm62_vm0, %v2161_v46, -inf }
  0xe4   :  { %776 = vmax.xlane.f32.xlu0 %v775_v50  ;;  %v781_v52 = vsel %vm62_vm0, %v2163_v48, -inf }
  0xe7   :  { %785 = vmax.xlane.f32.xlu1 %v784_v51  ;;  %v1751_v53 = vpop.f32.mrb[2].mxu0 }
  0xe8   :  { %v1758_v54 = vpop.f32.mrb[2].mxu1  ;;  %782 = vmax.xlane.f32.xlu0 %v781_v52  ;;  %v2173_v55 = vmul.f32 0.25, %v1751_v53  ;;  %v315_v56 = vpop.f32.mrb[3].mxu0 }
  0xe9   :  { %v2175_v57 = vmul.f32 0.25, %v1758_v54  ;;  %v402_v58 = vpop.f32.mrb[3].mxu1  ;;  %v2177_v59 = vmul.f32 0.25, %v315_v56 }
  0xea   :  { %v2179_v60 = vmul.f32 0.25, %v402_v58  ;;  %v790_v61 = vsel %vm62_vm0, %v2173_v55, -inf }
  0xeb   :  { %v796_v62 = vsel %vm62_vm0, %v2175_v57, -inf  ;;  %v787_v0 = vsel %vm62_vm0, %v2177_v59, -inf }
  0xec   :  { %797 = vmax.xlane.f32.xlu1 %v796_v62  ;;  %791 = vmax.xlane.f32.xlu0 %v790_v61  ;;  %v793_v63 = vsel %vm62_vm0, %v2179_v60, -inf }
  0xef   :  { %v1765_v1 = vpop.f32.mrb[4].mxu0 }
  0xf0   :  { %v1772_v2 = vpop.f32.mrb[4].mxu1  ;;  %794 = vmax.xlane.f32.xlu1 %v793_v63  ;;  %788 = vmax.xlane.f32.xlu0 %v787_v0  ;;  %v2189_v3 = vmul.f32 0.25, %v1765_v1  ;;  %v489_v4 = vpop.f32.mrb[5].mxu0 }
  0xf1   :  { %v2191_v5 = vmul.f32 0.25, %v1772_v2  ;;  %v576_v6 = vpop.f32.mrb[5].mxu1  ;;  %v2193_v7 = vmul.f32 0.25, %v489_v4 }
  0xf2   :  { %v2195_v8 = vmul.f32 0.25, %v576_v6  ;;  %v802_v9 = vsel %vm62_vm0, %v2189_v3, -inf }
  0xf3   :  { %v808_v10 = vsel %vm62_vm0, %v2191_v5, -inf  ;;  %v799_v12 = vsel %vm62_vm0, %v2193_v7, -inf }
  0xf4   :  { %809 = vmax.xlane.f32.xlu1 %v808_v10  ;;  %803 = vmax.xlane.f32.xlu0 %v802_v9  ;;  %v805_v11 = vsel %vm62_vm0, %v2195_v8, -inf }
  0xf7   :  { %v1779_v13 = vpop.f32.mrb[6].mxu0 }
  0xf8   :  { %v1786_v14 = vpop.f32.mrb[6].mxu1  ;;  %806 = vmax.xlane.f32.xlu1 %v805_v11  ;;  %800 = vmax.xlane.f32.xlu0 %v799_v12  ;;  %v663_v15 = vpop.f32.mrb[7].mxu0  ;;  %v2209_v19 = vmul.f32 0.25, %v1779_v13 }
  0xf9   :  { %v750_v16 = vpop.f32.mrb[7].mxu1  ;;  %v2205_v17 = vmul.f32 0.25, %v663_v15  ;;  %v2213_v21 = vmul.f32 0.25, %v1786_v14 }
  0xfa   :  { %v2207_v18 = vmul.f32 0.25, %v750_v16  ;;  %v814_v23 = vsel %vm62_vm0, %v2209_v19, -inf }
  0xfb   :  { %v811_v20 = vsel %vm62_vm0, %v2205_v17, -inf  ;;  %v820_v24 = vsel %vm62_vm0, %v2213_v21, -inf }
  0xfc   :  { %v817_v22 = vsel %vm62_vm0, %v2207_v18, -inf  ;;  %812 = vmax.xlane.f32.xlu0 %v811_v20 }
  0xfd   :  { %818 = vmax.xlane.f32.xlu1 %v817_v22 }
 0x100   :  { %815 = vmax.xlane.f32.xlu0 %v814_v23 }
 0x101   :  { %821 = vmax.xlane.f32.xlu1 %v820_v24 }
 0x170   :  { %v780_v25 = vpop.xlane.xlu1 %779 }
 0x171   :  { %v824_v26 = vsub.f32 %v2157_v42, %v780_v25  ;;  %v777_v27 = vpop.xlane.xlu0 %776 }
 0x172   :  { %v823_v28 = vsub.f32 %v2159_v45, %v777_v27 }
 0x173   :  { %v841_v29 = vmul.f32 1.442695, %v824_v26 }
 0x174   :  { %v839_v30 = vmul.f32 1.442695, %v823_v28  ;;  %v786_v31 = vpop.xlane.xlu1 %785 }
 0x175   :  { %1923 = vpow2.f32 %v841_v29  ;;  %v826_v32 = vsub.f32 %v2161_v46, %v786_v31  ;;  %v783_v33 = vpop.xlane.xlu0 %782 }
 0x176   :  { %v825_v34 = vsub.f32 %v2163_v48, %v783_v33  ;;  %1925 = vpow2.f32 %v839_v30 }
 0x177   :  { %v845_v35 = vmul.f32 1.442695, %v826_v32 }
 0x178   :  { %v843_v36 = vmul.f32 1.442695, %v825_v34 }
 0x179   :  { %1927 = vpow2.f32 %v845_v35  ;;  %v798_v37 = vpop.xlane.xlu1 %797  ;;  %v792_v38 = vpop.xlane.xlu0 %791 }
 0x17a   :  { %v830_v39 = vsub.f32 %v2175_v57, %v798_v37  ;;  %v828_v40 = vsub.f32 %v2173_v55, %v792_v38  ;;  %1929 = vpow2.f32 %v843_v36  ;;  %v46_v36 = vld [vmem:[%s2447_s2] sm:$0xff]  ;;  %v47_v37 = vld [vmem:[%s2447_s2 + $0x8] sm:$0xff] }
 0x17c   :  { %v853_v41 = vmul.f32 1.442695, %v830_v39  ;;  %v849_v42 = vmul.f32 1.442695, %v828_v40  ;;  %v1891_v40 = vpack.c.bf16 %v47_v37, %v46_v36 }
 0x17d   :  { %v795_v43 = vpop.xlane.xlu1 %794  ;;  %v789_v44 = vpop.xlane.xlu0 %788 }
 0x17e   :  { %1931 = vpow2.f32 %v853_v41  ;;  %v829_v45 = vsub.f32 %v2179_v60, %v795_v43  ;;  %v827_v46 = vsub.f32 %v2177_v59, %v789_v44  ;;  %1892 = vmatprep.subr.bf16.mxu0 %v1891_v40  ;;  %v48_v43 = vld [vmem:[%s2447_s2 + $0x10] sm:$0xff]  ;;  %v49_v44 = vld [vmem:[%s2447_s2 + $0x18] sm:$0xff] }
 0x17f   :  { %v2229_v47 = vpop.eup %1923  ;;  %1933 = vpow2.f32 %v849_v42  ;;  %1894 = vmatpush3.bf16.msra.mxu0 %v1891_v40 }
 0x180   :  { %v851_v48 = vmul.f32 1.442695, %v829_v45  ;;  %v847_v49 = vmul.f32 1.442695, %v827_v46  ;;  %v874_v50 = vsel %vm62_vm0, %v2229_v47, 0.0  ;;  %v2233_v51 = vpop.eup %1925  ;;  %v1895_v46 = vpack.c.bf16 %v49_v44, %v48_v43 }
 0x181   :  { %v810_v52 = vpop.xlane.xlu1 %809  ;;  %v804_v53 = vpop.xlane.xlu0 %803  ;;  %875 = vadd.xlane.f32.xlu0 %v874_v50  ;;  %v871_v60 = vsel %vm62_vm0, %v2233_v51, 0.0 }
 0x182   :  { %1935 = vpow2.f32 %v851_v48  ;;  %v834_v54 = vsub.f32 %v2191_v5, %v810_v52  ;;  %v832_v55 = vsub.f32 %v2189_v3, %v804_v53  ;;  %1896 = vmatprep.subr.bf16.mxu1 %v1895_v46  ;;  %v50_v48 = vld [vmem:[%s2447_s2 + $0x20] sm:$0xff]  ;;  %v52_v52 = vld [vmem:[%s2447_s2 + $0x30] sm:$0xff]  ;;  %v53_v53 = vld [vmem:[%s2447_s2 + $0x38] sm:$0xff] }
 0x183   :  { %v2237_v56 = vpop.eup %1927  ;;  %1937 = vpow2.f32 %v847_v49  ;;  %1898 = vmatpush3.bf16.msra.mxu1 %v1895_v46  ;;  %v51_v49 = vld [vmem:[%s2447_s2 + $0x28] sm:$0xff] }
 0x184   :  { %v861_v57 = vmul.f32 1.442695, %v834_v54  ;;  %v857_v58 = vmul.f32 1.442695, %v832_v55  ;;  %v880_v59 = vsel %vm62_vm0, %v2237_v56, 0.0  ;;  %v2243_v61 = vpop.eup %1929  ;;  %v1899_v50 = vpack.c.bf16 %v51_v49, %v50_v48 }
 0x185   :  { %v807_v62 = vpop.xlane.xlu1 %806  ;;  %881 = vadd.xlane.f32.xlu1 %v880_v59  ;;  %v801_v63 = vpop.xlane.xlu0 %800  ;;  %872 = vadd.xlane.f32.xlu0 %v871_v60  ;;  %v877_v5 = vsel %vm62_vm0, %v2243_v61, 0.0  ;;  %v1903_v54 = vpack.c.bf16 %v53_v53, %v52_v52 }
 0x186   :  { %1939 = vpow2.f32 %v861_v57  ;;  %v833_v0 = vsub.f32 %v2195_v8, %v807_v62  ;;  %v831_v1 = vsub.f32 %v2193_v7, %v801_v63  ;;  %1900 = vmatprep.subr.bf16.mxu0 %v1899_v50 }
 0x187   :  { %1941 = vpow2.f32 %v857_v58  ;;  %1904 = vmatprep.subr.bf16.mxu1 %v1903_v54 }
 0x188   :  { %v2247_v2 = vpop.eup %1931  ;;  %v859_v3 = vmul.f32 1.442695, %v833_v0  ;;  %v855_v4 = vmul.f32 1.442695, %v831_v1  ;;  %v54_v1 = vld [vmem:[%s2447_s2 + $0x40] sm:$0xff] }
 0x189   :  { %v2251_v6 = vpop.eup %1933  ;;  %878 = vadd.xlane.f32.xlu1 %v877_v5  ;;  %v813_v9 = vpop.xlane.xlu0 %812  ;;  %v892_v14 = vsel %vm62_vm0, %v2247_v2, 0.0 }
 0x18a   :  { %1943 = vpow2.f32 %v859_v3  ;;  %v819_v10 = vpop.xlane.xlu1 %818  ;;  %v835_v11 = vsub.f32 %v2205_v17, %v813_v9  ;;  %v886_v8 = vsel %vm62_vm0, %v2251_v6, 0.0  ;;  %v55_v3 = vld [vmem:[%s2447_s2 + $0x48] sm:$0xff] }
 0x18b   :  { %1945 = vpow2.f32 %v855_v4  ;;  %v837_v7 = vsub.f32 %v2207_v18, %v819_v10  ;;  %887 = vadd.xlane.f32.xlu0 %v886_v8 }
 0x18c   :  { %v2257_v12 = vpop.eup %1935  ;;  %v863_v13 = vmul.f32 1.442695, %v835_v11 }
 0x18d   :  { %v2261_v15 = vpop.eup %1937  ;;  %v867_v16 = vmul.f32 1.442695, %v837_v7  ;;  %893 = vadd.xlane.f32.xlu1 %v892_v14  ;;  %v816_v20 = vpop.xlane.xlu0 %815  ;;  %v889_v26 = vsel %vm62_vm0, %v2257_v12, 0.0  ;;  %v1907_v7 = vpack.c.bf16 %v55_v3, %v54_v1  ;;  %v57_v14 = vld [vmem:[%s2447_s2 + $0x58] sm:$0xff] }
 0x18e   :  { %1947 = vpow2.f32 %v863_v13  ;;  %v822_v17 = vpop.xlane.xlu1 %821  ;;  %v836_v22 = vsub.f32 %v2209_v19, %v816_v20  ;;  %v883_v23 = vsel %vm62_vm0, %v2261_v15, 0.0  ;;  %v56_v13 = vld [vmem:[%s2447_s2 + $0x50] sm:$0xff] }
 0x18f   :  { %1949 = vpow2.f32 %v867_v16  ;;  %v838_v18 = vsub.f32 %v2213_v21, %v822_v17  ;;  %884 = vadd.xlane.f32.xlu0 %v883_v23  ;;  %v1911_v17 = vpack.c.bf16 %v57_v14, %v56_v13 }
 0x190   :  { %v2267_v24 = vpop.eup %1939  ;;  %v865_v25 = vmul.f32 1.442695, %v836_v22 }
 0x191   :  { %v2271_v27 = vpop.eup %1941  ;;  %v869_v28 = vmul.f32 1.442695, %v838_v18  ;;  %890 = vadd.xlane.f32.xlu1 %v889_v26  ;;  %v904_v21 = vsel %vm62_vm0, %v2267_v24, 0.0 }
 0x192   :  { %1951 = vpow2.f32 %v865_v25  ;;  %v898_v19 = vsel %vm62_vm0, %v2271_v27, 0.0 }
 0x193   :  { %1953 = vpow2.f32 %v869_v28  ;;  %899 = vadd.xlane.f32.xlu0 %v898_v19 }
 0x194   :  { %v2275_v29 = vpop.eup %1943 }
 0x195   :  { %v2279_v30 = vpop.eup %1945  ;;  %905 = vadd.xlane.f32.xlu1 %v904_v21  ;;  %v901_v33 = vsel %vm62_vm0, %v2275_v29, 0.0  ;;  %v60_v21 = vld [vmem:[%s2447_s2 + $0x70] sm:$0xff] }
 0x196   :  { %v895_v31 = vsel %vm62_vm0, %v2279_v30, 0.0 }
 0x197   :  { %896 = vadd.xlane.f32.xlu0 %v895_v31  ;;  %v61_v31 = vld [vmem:[%s2447_s2 + $0x78] sm:$0xff] }
 0x198   :  { %v2283_v32 = vpop.eup %1947  ;;  %v1919_v40 = vpack.c.bf16 %v61_v31, %v60_v21 }
 0x199   :  { %v2287_v34 = vpop.eup %1949  ;;  %902 = vadd.xlane.f32.xlu1 %v901_v33  ;;  %v907_v35 = vsel %vm62_vm0, %v2283_v32, 0.0 }
 0x19a   :  { %v913_v39 = vsel %vm62_vm0, %v2287_v34, 0.0 }
 0x19b   :  { %908 = vadd.xlane.f32.xlu0 %v907_v35 }
 0x19c   :  { %v2297_v38 = vpop.eup %1951 }
 0x19d   :  { %v2301_v41 = vpop.eup %1953  ;;  %914 = vadd.xlane.f32.xlu1 %v913_v39  ;;  %v910_v42 = vsel %vm62_vm0, %v2297_v38, 0.0 }
 0x19e   :  { %v916_v45 = vsel %vm62_vm0, %v2301_v41, 0.0 }
 0x19f   :  { %911 = vadd.xlane.f32.xlu0 %v910_v42 }
 0x1a1   :  { %917 = vadd.xlane.f32.xlu1 %v916_v45 }
 0x20e   :  { %v876_v55 = vpop.xlane.xlu0 %875 }
 0x20f   :  { %1955 = vrcp.f32 %v876_v55 }
 0x212   :  { %v882_v57 = vpop.xlane.xlu1 %881  ;;  %v873_v58 = vpop.xlane.xlu0 %872 }
 0x213   :  { %1957 = vrcp.f32 %v873_v58 }
 0x214   :  { %1959 = vrcp.f32 %v882_v57 }
 0x216   :  { %v879_v59 = vpop.xlane.xlu1 %878 }
 0x217   :  { %1961 = vrcp.f32 %v879_v59 }
 0x218   :  { %v888_v60 = vpop.xlane.xlu0 %887 }
 0x219   :  { %1963 = vrcp.f32 %v888_v60  ;;  %v1956_v0 = vpop.eup %1955 }
 0x21a   :  { %v894_v62 = vpop.xlane.xlu1 %893  ;;  %v922_v11 = vmul.f32 %v1956_v0, %v2229_v47 }
 0x21c   :  { %v885_v63 = vpop.xlane.xlu0 %884 }
 0x21d   :  { %1965 = vrcp.f32 %v885_v63  ;;  %v1958_v4 = vpop.eup %1957 }
 0x21e   :  { %1967 = vrcp.f32 %v894_v62  ;;  %v891_v5 = vpop.xlane.xlu1 %890  ;;  %v920_v9 = vmul.f32 %v1958_v4, %v2233_v51  ;;  %v1960_v10 = vpop.eup %1959 }
 0x21f   :  { %1969 = vrcp.f32 %v891_v5  ;;  %v926_v47 = vmul.f32 %v1960_v10, %v2237_v56  ;;  %v59_v56 = vld [vmem:[%s2447_s2 + $0x68] sm:$0xff] }
 0x220   :  { %v900_v8 = vpop.xlane.xlu0 %899  ;;  %1791 = vmatprep.mubr.msk.f32.mxu0 %vm62_vm0, %v920_v9 }
 0x221   :  { %v1962_v16 = vpop.eup %1961  ;;  %1792 = vmatmul.mubr.msk.f32.vlgmr.msra.gmra.mrb[8].mxu0 %vm62_vm0, %v922_v11  ;;  %1971 = vrcp.f32 %v900_v8 }
 0x222   :  { %v906_v20 = vpop.xlane.xlu1 %905  ;;  %v924_v51 = vmul.f32 %v1962_v16, %v2243_v61  ;;  %1902 = vmatpush3.bf16.msra.mxu0 %v1899_v50  ;;  %v58_v61 = vld [vmem:[%s2447_s2 + $0x60] sm:$0xff] }
 0x223   :  { %1908 = vmatprep.subr.bf16.mxu0 %v1907_v7  ;;  %v1964_v23 = vpop.eup %1963  ;;  %v1915_v36 = vpack.c.bf16 %v59_v56, %v58_v61 }
 0x224   :  { %v897_v22 = vpop.xlane.xlu0 %896  ;;  %1798 = vmatprep.mubr.msk.f32.mxu1 %vm62_vm0, %v924_v51  ;;  %v930_v35 = vmul.f32 %v1964_v23, %v2251_v6 }
 0x225   :  { %1973 = vrcp.f32 %v897_v22  ;;  %1799 = vmatmul.mubr.msk.f32.vlgmr.msra.gmra.mrb[8].mxu1 %vm62_vm0, %v926_v47 }
 0x226   :  { %1975 = vrcp.f32 %v906_v20  ;;  %v903_v18 = vpop.xlane.xlu1 %902  ;;  %1906 = vmatpush3.bf16.msra.mxu1 %v1903_v54 }
 0x227   :  { %v1966_v25 = vpop.eup %1965  ;;  %1977 = vrcp.f32 %v903_v18  ;;  %1912 = vmatprep.subr.bf16.mxu1 %v1911_v17 }
 0x228   :  { %v1968_v26 = vpop.eup %1967  ;;  %v909_v28 = vpop.xlane.xlu0 %908  ;;  %v928_v19 = vmul.f32 %v1966_v25, %v2261_v15 }
 0x229   :  { %v1970_v33 = vpop.eup %1969  ;;  %1979 = vrcp.f32 %v909_v28  ;;  %v934_v15 = vmul.f32 %v1968_v26, %v2247_v2 }
 0x22a   :  { %1805 = vmatprep.mubr.msk.f32.mxu0 %vm62_vm0, %v928_v19  ;;  %v915_v37 = vpop.xlane.xlu1 %914  ;;  %v932_v39 = vmul.f32 %v1970_v33, %v2257_v12 }
 0x22b   :  { %1981 = vrcp.f32 %v915_v37  ;;  %1806 = vmatmul.mubr.msk.f32.vlgmr.msra.gmra.mrb[10].mxu0 %vm62_vm0, %v930_v35  ;;  %v1972_v6 = vpop.eup %1971 }
 0x22c   :  { %v912_v42 = vpop.xlane.xlu0 %911  ;;  %1812 = vmatprep.mubr.msk.f32.mxu1 %vm62_vm0, %v932_v39  ;;  %1910 = vmatpush3.bf16.msra.mxu0 %v1907_v7  ;;  %v938_v46 = vmul.f32 %v1972_v6, %v2271_v27 }
 0x22d   :  { %1983 = vrcp.f32 %v912_v42  ;;  %1813 = vmatmul.mubr.msk.f32.vlgmr.msra.gmra.mrb[10].mxu1 %vm62_vm0, %v934_v15  ;;  %1916 = vmatprep.subr.bf16.mxu0 %v1915_v36 }
 0x22e   :  { %v918_v43 = vpop.xlane.xlu1 %917  ;;  %1914 = vmatpush3.bf16.msra.mxu1 %v1911_v17 }
 0x22f   :  { %v1974_v44 = vpop.eup %1973  ;;  %1985 = vrcp.f32 %v918_v43  ;;  %1920 = vmatprep.subr.bf16.mxu1 %v1919_v40 }
 0x230   :  { %v1976_v12 = vpop.eup %1975  ;;  %v936_v2 = vmul.f32 %v1974_v44, %v2279_v30 }
 0x231   :  { %v1978_v45 = vpop.eup %1977  ;;  %v942_v50 = vmul.f32 %v1976_v12, %v2267_v24 }
 0x232   :  { %1819 = vmatprep.mubr.msk.f32.mxu0 %vm62_vm0, %v936_v2  ;;  %v940_v48 = vmul.f32 %v1978_v45, %v2275_v29 }
 0x233   :  { %v1980_v49 = vpop.eup %1979  ;;  %1820 = vmatmul.mubr.msk.f32.vlgmr.msra.gmra.mrb[12].mxu0 %vm62_vm0, %v938_v46 }
 0x234   :  { %1826 = vmatprep.mubr.msk.f32.mxu1 %vm62_vm0, %v940_v48  ;;  %v944_v52 = vmul.f32 %v1980_v49, %v2283_v32  ;;  %1918 = vmatpush3.bf16.msra.mxu0 %v1915_v36 }
 0x235   :  { %v1982_v53 = vpop.eup %1981  ;;  %1827 = vmatmul.mubr.msk.f32.vlgmr.msra.gmra.mrb[12].mxu1 %vm62_vm0, %v942_v50 }
 0x236   :  { %1833 = vmatprep.mubr.msk.f32.mxu0 %vm62_vm0, %v944_v52  ;;  %1922 = vmatpush3.bf16.msra.mxu1 %v1919_v40  ;;  %v948_v27 = vmul.f32 %v1982_v53, %v2287_v34 }
 0x237   :  { %v1984_v30 = vpop.eup %1983 }
 0x238   :  { %v946_v29 = vmul.f32 %v1984_v30, %v2297_v38  ;;  %1840 = vmatprep.mubr.msk.f32.mxu1 %vm62_vm0, %v948_v27 }
 0x239   :  { %v1986_v24 = vpop.eup %1985 }
 0x23a   :  { %v950_v54 = vmul.f32 %v1986_v24, %v2301_v41  ;;  %1834 = vmatmul.mubr.msk.f32.vlgmr.msra.gmra.mrb[14].mxu0 %vm62_vm0, %v946_v29 }
 0x23c   :  { %1841 = vmatmul.mubr.msk.f32.vlgmr.msra.gmra.mrb[14].mxu1 %vm62_vm0, %v950_v54 }
 0x2f4   :  { %v1793_v32 = vpop.f32.mrb[8].mxu0 }
 0x2f5   :  { %1600 = vst.msk [vmem:[%s2448_s3 + $0x8] sm:$0xff] %vm62_vm0, %v1793_v32  ;;  %v1023_v55 = vpop.f32.mrb[9].mxu0 }
 0x2f6   :  { %1599 = vst.msk [vmem:[%s2448_s3] sm:$0xff] %vm62_vm0, %v1023_v55 }
 0x2f8   :  { %v1800_v34 = vpop.f32.mrb[8].mxu1 }
 0x2f9   :  { %1602 = vst.msk [vmem:[%s2448_s3 + $0x18] sm:$0xff] %vm62_vm0, %v1800_v34  ;;  %v1104_v38 = vpop.f32.mrb[9].mxu1 }
 0x2fa   :  { %1601 = vst.msk [vmem:[%s2448_s3 + $0x10] sm:$0xff] %vm62_vm0, %v1104_v38 }
 0x2fe   :  { %v1807_v41 = vpop.f32.mrb[10].mxu0 }
 0x2ff   :  { %1604 = vst.msk [vmem:[%s2448_s3 + $0x28] sm:$0xff] %vm62_vm0, %v1807_v41  ;;  %v1185_v57 = vpop.f32.mrb[11].mxu0 }
 0x300   :  { %1603 = vst.msk [vmem:[%s2448_s3 + $0x20] sm:$0xff] %vm62_vm0, %v1185_v57  ;;  %v1814_v58 = vpop.f32.mrb[10].mxu1 }
 0x301   :  { %1606 = vst.msk [vmem:[%s2448_s3 + $0x38] sm:$0xff] %vm62_vm0, %v1814_v58  ;;  %v1266_v59 = vpop.f32.mrb[11].mxu1 }
 0x302   :  { %1605 = vst.msk [vmem:[%s2448_s3 + $0x30] sm:$0xff] %vm62_vm0, %v1266_v59 }
 0x306   :  { %v1821_v60 = vpop.f32.mrb[12].mxu0 }
 0x307   :  { %1608 = vst.msk [vmem:[%s2448_s3 + $0x48] sm:$0xff] %vm62_vm0, %v1821_v60  ;;  %v1347_v62 = vpop.f32.mrb[13].mxu0 }
 0x308   :  { %1607 = vst.msk [vmem:[%s2448_s3 + $0x40] sm:$0xff] %vm62_vm0, %v1347_v62  ;;  %v1828_v63 = vpop.f32.mrb[12].mxu1 }
 0x309   :  { %1610 = vst.msk [vmem:[%s2448_s3 + $0x58] sm:$0xff] %vm62_vm0, %v1828_v63  ;;  %v1428_v0 = vpop.f32.mrb[13].mxu1 }
 0x30a   :  { %1609 = vst.msk [vmem:[%s2448_s3 + $0x50] sm:$0xff] %vm62_vm0, %v1428_v0 }
 0x30d   :  { %v1835_v1 = vpop.f32.mrb[14].mxu0 }
 0x30e   :  { %1612 = vst.msk [vmem:[%s2448_s3 + $0x68] sm:$0xff] %vm62_vm0, %v1835_v1  ;;  %v1509_v3 = vpop.f32.mrb[15].mxu0 }
 0x30f   :  { %1611 = vst.msk [vmem:[%s2448_s3 + $0x60] sm:$0xff] %vm62_vm0, %v1509_v3  ;;  %v1842_v4 = vpop.f32.mrb[14].mxu1 }
 0x310   :  { %1614 = vst.msk [vmem:[%s2448_s3 + $0x78] sm:$0xff] %vm62_vm0, %v1842_v4  ;;  %v1590_v5 = vpop.f32.mrb[15].mxu1 }
 0x311   :  { %1613 = vst.msk [vmem:[%s2448_s3 + $0x70] sm:$0xff] %vm62_vm0, %v1590_v5 }

// kernel: _lambda_.46
= control target key start
LH: loop header
LB: loop body
LE: loop exit
PB: predicated region body
PF: predicated region fallthrough
CT: control target
= control target key end

     0   :  { %vm45_vm0 = vcmask 523264   ;;  %vm160_vm1 = vcmask 392192   ;;  %s589_s1 = inlined_call_operand.vmem [shape: f32[64,48], index: 1, kind: input, shape index: {}]   ;;  %s590_s0 = inlined_call_operand.vmem [shape: f32[32,64], index: 0, kind: input, shape index: {}]   ;;  %s591_s3 = inlined_call_operand.vmem [shape: f32[48,64], index: 3, kind: input, shape index: {}]   ;;  %s592_s2 = inlined_call_operand.vmem [shape: f32[1,48], index: 2, kind: input, shape index: {}]   ;;  %s593_s4 = inlined_call_operand.vmem [shape: f32[1,64], index: 4, kind: input, shape index: {}]   ;;  %s594_s5 = inlined_call_operand.vmem [shape: f32[1,64], index: 5, kind: input, shape index: {}]   ;;  %s595_s6 = inlined_call_operand.vmem [shape: f32[1,64], index: 6, kind: input, shape index: {}]   ;;  %s596_s7 = inlined_call_operand.vmem [shape: f32[32,64], index: 7, kind: output, shape index: {}]  }
   0x1   :  { %v30_v0 = vld [vmem:[%s589_s1] sm:$0xff]  ;;  %v31_v1 = vld [vmem:[%s589_s1 + $0x8] sm:$0xff]  ;;  %v32_v2 = vld [vmem:[%s589_s1 + $0x10] sm:$0xff] }
   0x2   :  { %v419_v3 = vpack.c.bf16 %v31_v1, %v30_v0  ;;  %v33_v4 = vld [vmem:[%s589_s1 + $0x18] sm:$0xff]  ;;  %v34_v6 = vld [vmem:[%s589_s1 + $0x20] sm:$0xff]  ;;  %v35_v7 = vld [vmem:[%s589_s1 + $0x28] sm:$0xff] }
   0x3   :  { %v423_v5 = vpack.c.bf16 %v33_v4, %v32_v2  ;;  %v26_v8 = vld [vmem:[%s590_s0] sm:$0xff]  ;;  %v148_v10 = vld [vmem:[%s591_s3 + $0x8] sm:$0xff]  ;;  %v149_v11 = vld [vmem:[%s591_s3 + $0x10] sm:$0xff]  ;;  %v427_v12 = vpack.c.bf16 %v35_v7, %v34_v6 }
   0x4   :  { %420 = vmatprep.subr.bf16.mxu0 %v419_v3  ;;  %395 = vmatprep.mubr.msk.f32.mxu0 %vm45_vm0, %v26_v8  ;;  %v147_v9 = vld [vmem:[%s591_s3] sm:$0xff]  ;;  %v150_v14 = vld [vmem:[%s591_s3 + $0x18] sm:$0xff]  ;;  %v36_v15 = vld [vmem:[%s589_s1 + $0x30] sm:$0xff] }
   0x5   :  { %422 = vmatpush3.bf16.msra.mxu0 %v419_v3  ;;  %v435_v13 = vpack.c.bf16 %v148_v10, %v147_v9  ;;  %v37_v16 = vld [vmem:[%s589_s1 + $0x38] sm:$0xff]  ;;  %v439_v17 = vpack.c.bf16 %v150_v14, %v149_v11  ;;  %v27_v19 = vld [vmem:[%s590_s0 + $0x8] sm:$0xff]  ;;  %v28_v20 = vld [vmem:[%s590_s0 + $0x10] sm:$0xff] }
   0x6   :  { %424 = vmatprep.subr.bf16.mxu0 %v423_v5  ;;  %v431_v18 = vpack.c.bf16 %v37_v16, %v36_v15  ;;  %v29_v21 = vld [vmem:[%s590_s0 + $0x18] sm:$0xff]  ;;  %v151_v22 = vld [vmem:[%s591_s3 + $0x20] sm:$0xff]  ;;  %v152_v23 = vld [vmem:[%s591_s3 + $0x28] sm:$0xff] }
   0x7   :  { %436 = vmatprep.subr.bf16.mxu1 %v435_v13  ;;  %v443_v24 = vpack.c.bf16 %v152_v23, %v151_v22  ;;  %v345_v25 = vld [vmem:[%s592_s2] ss:$0 sm:$0xff] }
   0x8   :  { %438 = vmatpush3.bf16.msra.mxu1 %v435_v13  ;;  %v350_v38 = vld [vmem:[%s593_s4] ss:$0 sm:$0xff] }
   0x9   :  { %426 = vmatpush3.bf16.msra.mxu0 %v423_v5  ;;  %440 = vmatprep.subr.bf16.mxu1 %v439_v17 }
   0xa   :  { %428 = vmatprep.subr.bf16.mxu0 %v427_v12 }
   0xc   :  { %442 = vmatpush3.bf16.msra.mxu1 %v439_v17 }
   0xd   :  { %430 = vmatpush3.bf16.msra.mxu0 %v427_v12  ;;  %444 = vmatprep.subr.bf16.mxu1 %v443_v24 }
   0xe   :  { %432 = vmatprep.subr.bf16.mxu0 %v431_v18 }
  0x10   :  { %446 = vmatpush3.bf16.msra.mxu1 %v443_v24  ;;  %v355_v24 = vld [vmem:[%s594_s5] ss:$0 sm:$0xff] }
  0x11   :  { %434 = vmatpush3.bf16.msra.mxu0 %v431_v18 }
  0x14   :  { %396 = vmatmul.mubr.msk.f32.vlgmr.msra.gmra.mrb[0].mxu0 %vm45_vm0, %v27_v19 }
  0x15   :  { %398 = vmatprep.mubr.msk.f32.mxu0 %vm45_vm0, %v28_v20 }
  0x18   :  { %399 = vmatmul.mubr.msk.f32.gmra.mrb[2].mxu0 %vm45_vm0, %v29_v21 }
  0xe7   :  { %v397_v26 = vpop.f32.mrb[0].mxu0 }
  0xe8   :  { %v130_v27 = vadd.f32 %v397_v26, %v345_v25  ;;  %v124_v28 = vpop.f32.mrb[1].mxu0  ;;  %v356_v26 = vld [vmem:[%s595_s6] ss:$0 sm:$0xff] }
  0xe9   :  { %v125_v29 = vadd.f32 %v345_v25, %v124_v28 }
  0xea   :  { %v144_v32 = vmax.f32 %v130_v27, 0.0 }
  0xeb   :  { %v143_v30 = vmax.f32 %v125_v29, 0.0  ;;  %v400_v31 = vpop.f32.mrb[2].mxu0 }
  0xec   :  { %v140_v33 = vadd.f32 %v400_v31, %v345_v25  ;;  %v134_v34 = vpop.f32.mrb[3].mxu0 }
  0xed   :  { %v135_v35 = vadd.f32 %v345_v25, %v134_v34  ;;  %413 = vmatprep.mubr.msk.f32.mxu1 %vm160_vm1, %v143_v30 }
  0xee   :  { %414 = vmatmul.mubr.msk.f32.vlgmr.msra.gmra.mrb[0].mxu1 %vm160_vm1, %v144_v32  ;;  %v146_v37 = vmax.f32 %v140_v33, 0.0 }
  0xef   :  { %v145_v36 = vmax.f32 %v135_v35, 0.0 }
  0xf1   :  { %416 = vmatprep.mubr.msk.f32.mxu1 %vm160_vm1, %v145_v36 }
  0xf2   :  { %417 = vmatmul.mubr.msk.f32.gmra.mrb[2].mxu1 %vm160_vm1, %v146_v37 }
 0x1c1   :  { %v415_v39 = vpop.f32.mrb[0].mxu1 }
 0x1c2   :  { %v239_v40 = vpop.f32.mrb[1].mxu1  ;;  %v245_v41 = vadd.f32 %v415_v39, %v350_v38 }
 0x1c3   :  { %v240_v42 = vadd.f32 %v350_v38, %v239_v40 }
 0x1c4   :  { %v259_v49 = vadd.f32 %v245_v41, %v27_v19 }
 0x1c5   :  { %v418_v43 = vpop.f32.mrb[2].mxu1  ;;  %v258_v44 = vadd.f32 %v240_v42, %v26_v8 }
 0x1c6   :  { %v249_v45 = vpop.f32.mrb[3].mxu1  ;;  %v255_v46 = vadd.f32 %v418_v43, %v350_v38  ;;  %v265_v52 = vsel %vm45_vm0, %v259_v49, 0.0 }
 0x1c7   :  { %v250_v47 = vadd.f32 %v350_v38, %v249_v45  ;;  %v262_v48 = vsel %vm45_vm0, %v258_v44, 0.0 }
 0x1c8   :  { %263 = vadd.xlane.f32.xlu0 %v262_v48  ;;  %v261_v53 = vadd.f32 %v255_v46, %v29_v21 }
 0x1c9   :  { %v260_v50 = vadd.f32 %v250_v47, %v28_v20 }
 0x1ca   :  { %v271_v54 = vsel %vm45_vm0, %v261_v53, 0.0 }
 0x1cb   :  { %v268_v51 = vsel %vm45_vm0, %v260_v50, 0.0 }
 0x1cc   :  { %269 = vadd.xlane.f32.xlu1 %v268_v51  ;;  %266 = vadd.xlane.f32.xlu0 %v265_v52 }
 0x1d0   :  { %272 = vadd.xlane.f32.xlu1 %v271_v54 }
 0x255   :  { %v264_v55 = vpop.xlane.xlu0 %263 }
 0x256   :  { %v275_v56 = vmul.f32 0.015625, %v264_v55 }
 0x258   :  { %v279_v57 = vsub.f32 %v258_v44, %v275_v56 }
 0x259   :  { %v270_v58 = vpop.xlane.xlu1 %269  ;;  %v267_v59 = vpop.xlane.xlu0 %266 }
 0x25a   :  { %v277_v60 = vmul.f32 0.015625, %v270_v58  ;;  %v276_v61 = vmul.f32 0.015625, %v267_v59  ;;  %v283_v62 = vmul.f32 %v279_v57, %v279_v57 }
 0x25c   :  { %v281_v63 = vsub.f32 %v260_v50, %v277_v60  ;;  %v280_v0 = vsub.f32 %v259_v49, %v276_v61  ;;  %v287_v1 = vsel %vm45_vm0, %v283_v62, 0.0 }
 0x25d   :  { %v273_v2 = vpop.xlane.xlu1 %272  ;;  %288 = vadd.xlane.f32.xlu0 %v287_v1 }
 0x25e   :  { %v278_v3 = vmul.f32 0.015625, %v273_v2  ;;  %v285_v4 = vmul.f32 %v281_v63, %v281_v63  ;;  %v284_v5 = vmul.f32 %v280_v0, %v280_v0 }
 0x260   :  { %v282_v6 = vsub.f32 %v261_v53, %v278_v3  ;;  %v293_v7 = vsel %vm45_vm0, %v285_v4, 0.0  ;;  %v290_v8 = vsel %vm45_vm0, %v284_v5, 0.0 }
 0x261   :  { %294 = vadd.xlane.f32.xlu0 %v293_v7  ;;  %291 = vadd.xlane.f32.xlu1 %v290_v8 }
 0x262   :  { %v286_v9 = vmul.f32 %v282_v6, %v282_v6 }
 0x264   :  { %v296_v10 = vsel %vm45_vm0, %v286_v9, 0.0 }
 0x265   :  { %297 = vadd.xlane.f32.xlu1 %v296_v10 }
 0x2ea   :  { %v289_v11 = vpop.xlane.xlu0 %288 }
 0x2eb   :  { %v299_v12 = vmul.f32 0.015625, %v289_v11 }
 0x2ed   :  { %v303_v13 = vadd.f32 1e-05, %v299_v12 }
 0x2ee   :  { %v292_v14 = vpop.xlane.xlu1 %291  ;;  %v295_v15 = vpop.xlane.xlu0 %294 }
 0x2ef   :  { %447 = vrsqrt.f32 %v303_v13  ;;  %v300_v16 = vmul.f32 0.015625, %v292_v14  ;;  %v301_v17 = vmul.f32 0.015625, %v295_v15 }
 0x2f1   :  { %v304_v18 = vadd.f32 1e-05, %v300_v16  ;;  %v305_v19 = vadd.f32 1e-05, %v301_v17 }
 0x2f2   :  { %v298_v20 = vpop.xlane.xlu1 %297 }
 0x2f3   :  { %449 = vrsqrt.f32 %v304_v18  ;;  %v302_v21 = vmul.f32 0.015625, %v298_v20 }
 0x2f4   :  { %451 = vrsqrt.f32 %v305_v19 }
 0x2f5   :  { %v306_v22 = vadd.f32 1e-05, %v302_v21 }
 0x2f7   :  { %453 = vrsqrt.f32 %v306_v22 }
 0x2f9   :  { %v448_v23 = vpop.eup %447 }
 0x2fa   :  { %v311_v25 = vmul.f32 %v448_v23, %v279_v57 }
 0x2fc   :  { %v322_v27 = vmul.f32 %v355_v24, %v311_v25 }
 0x2fd   :  { %v450_v28 = vpop.eup %449 }
 0x2fe   :  { %v452_v29 = vpop.eup %451  ;;  %v333_v30 = vadd.f32 %v356_v26, %v322_v27  ;;  %v312_v31 = vmul.f32 %v450_v28, %v280_v0 }
 0x2ff   :  { %v313_v32 = vmul.f32 %v452_v29, %v281_v63 }
 0x300   :  { %337 = vst.msk [vmem:[%s596_s7] sm:$0xff] %vm45_vm0, %v333_v30  ;;  %v323_v33 = vmul.f32 %v355_v24, %v312_v31 }
 0x301   :  { %v454_v34 = vpop.eup %453  ;;  %v324_v35 = vmul.f32 %v355_v24, %v313_v32 }
 0x302   :  { %v334_v36 = vadd.f32 %v356_v26, %v323_v33  ;;  %v314_v37 = vmul.f32 %v454_v34, %v282_v6 }
 0x303   :  { %v335_v38 = vadd.f32 %v356_v26, %v324_v35 }
 0x304   :  { %338 = vst.msk [vmem:[%s596_s7 + $0x8] sm:$0xff] %vm45_vm0, %v334_v36  ;;  %v325_v39 = vmul.f32 %v355_v24, %v314_v37 }
 0x305   :  { %339 = vst.msk [vmem:[%s596_s7 + $0x10] sm:$0xff] %vm45_vm0, %v335_v38 }
 0x306   :  { %v336_v40 = vadd.f32 %v356_v26, %v325_v39 }
 0x308   :  { %340 = vst.msk [vmem:[%s596_s7 + $0x18] sm:$0xff] %vm45_vm0, %v336_v40 }

// kernel: _lambda_.51
= control target key start
LH: loop header
LB: loop body
LE: loop exit
PB: predicated region body
PF: predicated region fallthrough
CT: control target
= control target key end

     0   :  { %s4445_s0 = inlined_call_operand.vmem [shape: f32[2,16,64], index: 0, kind: input, shape index: {}]   ;;  %s4446_s1 = inlined_call_operand.vmem [shape: f32[2,16,64], index: 1, kind: input, shape index: {}]   ;;  %s4447_s2 = inlined_call_operand.vmem [shape: f32[2,16,64], index: 2, kind: input, shape index: {}]   ;;  %s4448_s3 = inlined_call_operand.vmem [shape: f32[2,16,64], index: 3, kind: input, shape index: {}]   ;;  %s4449_s4 = inlined_call_operand.vmem [shape: f32[256,256], index: 4, kind: input, shape index: {}]   ;;  %s4450_s5 = inlined_call_operand.vmem [shape: f32[1,256], index: 5, kind: input, shape index: {}]   ;;  %s4451_s6 = inlined_call_operand.vmem [shape: f32[1,256], index: 6, kind: input, shape index: {}]   ;;  %s4452_s7 = inlined_call_operand.vmem [shape: f32[1,256], index: 7, kind: input, shape index: {}]   ;;  %s4453_s8 = inlined_call_operand.vmem [shape: f32[768,32], index: 8, kind: input, shape index: {}]   ;;  %s4454_s9 = inlined_call_operand.vmem [shape: f32[1,32], index: 9, kind: input, shape index: {}]   ;;  %s4455_s10 = inlined_call_operand.vmem [shape: f32[1,32], index: 10, kind: input, shape index: {}]   ;;  %s4456_s11 = inlined_call_operand.vmem [shape: f32[1,32], index: 11, kind: input, shape index: {}]   ;;  %s4457_s12 = inlined_call_operand.vmem [shape: f32[32,256], index: 12, kind: input, shape index: {}]   ;;  %s4458_s13 = inlined_call_operand.vmem [shape: f32[1,256], index: 13, kind: input, shape index: {}]   ;;  %s4459_s14 = inlined_call_operand.vmem [shape: f32[768,32], index: 14, kind: input, shape index: {}]   ;;  %s4460_s15 = inlined_call_operand.vmem [shape: f32[1,32], index: 15, kind: input, shape index: {}]   ;;  %s4461_s16 = inlined_call_operand.vmem [shape: f32[1,32], index: 16, kind: input, shape index: {}]   ;;  %s4462_s17 = inlined_call_operand.vmem [shape: f32[1,32], index: 17, kind: input, shape index: {}]   ;;  %s4463_s18 = inlined_call_operand.vmem [shape: f32[32,256], index: 18, kind: input, shape index: {}]   ;;  %s4464_s19 = inlined_call_operand.vmem [shape: f32[1,256], index: 19, kind: input, shape index: {}]   ;;  %s4465_s20 = inlined_call_operand.vmem [shape: f32[1,1024], index: 20, kind: input, shape index: {}]   ;;  %s4466_s21 = inlined_call_operand.vmem [shape: f32[1,1024], index: 21, kind: input, shape index: {}]   ;;  %s4467_s22 = inlined_call_operand.vmem [shape: f32[2,1,1024], index: 22, kind: output, shape index: {}]  }
   0x1   :  { %4470 = sst [smem:[#allocation3_spill]] %s4445_s0 }
   0x2   :  { %4471 = sst [smem:[#allocation4_spill]] %s4446_s1 }
   0x3   :  { %4472 = sst [smem:[#allocation5_spill]] %s4447_s2 }
   0x4   :  { %4473 = sst [smem:[#allocation6_spill]] %s4448_s3  ;;  %s3373_s3 = smov 0  }
   0x5   :  { %4474 = sst [smem:[#allocation7_spill]] %s4449_s4 }
   0x6   :  { %4475 = sst [smem:[#allocation8_spill]] %s4450_s5 }
   0x7   :  { %4476 = sst [smem:[#allocation9_spill]] %s4451_s6 }
   0x8 LB: > { %4477 = sst [smem:[#allocation2_spill]] %s3254_s3  ;;  %s2656_s28 = sadd.s32 4294967295, %s3254_s3   ;;  %s3254_s3 = sphi %s3373_s3, %s32_s3  }
   0x9   : > { %p2660_p0 = scmp.ge.s32.totalorder %s3254_s3, 1  ;;  %p642_p1 = scmp.lt.s32.totalorder %s3254_s3, 3 }
   0xb   : > { %p643_p2 = pnand %p2660_p0, %p642_p1 }
   0xc   : > { %s4478_s4 = sld [smem:[#allocation7_spill]] (!%p643_p2)  ;;  %v3256_v7 = vmov (!%p643_p2), 0.0   ;;  %p718_p3 = scmp.lt.s32.totalorder (!%p643_p2), %s2656_s28, 1  ;;  %vm810_vm0 = vcmask (!%p643_p2), 523264   ;;  %v1312_v47 = vld [vmem:[%s4453_s8 + $0x180] sm:$0xff] (!%p643_p2)  ;;  %v1313_v48 = vld [vmem:[%s4453_s8 + $0x188] sm:$0xff] (!%p643_p2) }
   0xd   : > { %646 = sbr.rel (%p643_p2) target bundleno = 1247 (0x4df), region = 108  ;;  %881 = vmatprep.mubr.f32.mxu0 (!%p643_p2), %v3256_v7  ;;  %s4479_s23 = sld [smem:[#allocation4_spill]] (!%p643_p2)  ;;  %v1296_v49 = vld [vmem:[%s4453_s8 + $0x100] sm:$0xff] (!%p643_p2)  ;;  %v2974_v53 = vpack.c.bf16 (!%p643_p2), %v1313_v48, %v1312_v47  ;;  %v1297_v54 = vld [vmem:[%s4453_s8 + $0x108] sm:$0xff] (!%p643_p2)  ;;  %v1314_v48 = vld [vmem:[%s4453_s8 + $0x190] sm:$0xff] (!%p643_p2)  ;;  %vm1636_vm5 = vcmask (!%p643_p2), 261120  }
   0xe   : > { %v2976_v57 = vpack.c.bf16 (!%p643_p2), %v1297_v54, %v1296_v49  ;;  %s4480_s27 = sld [smem:[#allocation3_spill]] (!%p643_p2)  ;;  %s4481_s0 = sld [smem:[#allocation5_spill]] (!%p643_p2)  ;;  %v1315_v49 = vld [vmem:[%s4453_s8 + $0x198] sm:$0xff] (!%p643_p2)  ;;  %v1316_v54 = vld [vmem:[%s4453_s8 + $0x1a0] sm:$0xff] (!%p643_p2) }
   0xf   : > { %2975 = vmatprep.subr.bf16.mxu1 (!%p643_p2), %v2974_v53  ;;  %s4482_s26 = sld [smem:[#allocation6_spill]] (!%p643_p2)  ;;  %s4484_s5 = sld [smem:[#allocation9_spill]] (!%p643_p2) }
  0x10   : > { %2977 = vmatpush3.bf16.msra.mxu1 (!%p643_p2), %v2976_v57  ;;  %v1300_v57 = vld [vmem:[%s4453_s8 + $0x120] sm:$0xff] (!%p643_p2) }
  0x12   : > { %v759_v0 = vld [vmem:[%s4478_s4 + $0x88] sm:$0xff] (!%p643_p2)  ;;  %v761_v1 = vld [vmem:[%s4478_s4 + $0x98] sm:$0xff] (!%p643_p2)  ;;  %v758_v2 = vld [vmem:[%s4478_s4 + $0x80] sm:$0xff] (!%p643_p2) }
  0x13   : > { %v2910_v3 = vpack.c.bf16 (!%p643_p2), %v761_v1, %v759_v0  ;;  %v760_v4 = vld [vmem:[%s4478_s4 + $0x90] sm:$0xff] (!%p643_p2)  ;;  %v763_v5 = vld [vmem:[%s4478_s4 + $0xa8] sm:$0xff] (!%p643_p2)  ;;  %v765_v6 = vld [vmem:[%s4478_s4 + $0xb8] sm:$0xff] (!%p643_p2) }
  0x14   : > { %v2912_v8 = vpack.c.bf16 %v760_v4, %v758_v2  ;;  %v2914_v9 = vpack.c.bf16 %v765_v6, %v763_v5  ;;  %v762_v10 = vld [vmem:[%s4478_s4 + $0xa0] sm:$0xff]  ;;  %v764_v11 = vld [vmem:[%s4478_s4 + $0xb0] sm:$0xff]  ;;  %v767_v12 = vld [vmem:[%s4478_s4 + $0xc8] sm:$0xff]  ;;  %s4489_s28 = smov (!%p718_p3, %s2656_s28), 1 }
  0x15   : > { %2911 = vmatprep.subr.bf16.mxu0 %v2910_v3  ;;  %v769_v13 = vld [vmem:[%s4478_s4 + $0xd8] sm:$0xff]  ;;  %v2916_v14 = vpack.c.bf16 %v764_v11, %v762_v10  ;;  %v766_v16 = vld [vmem:[%s4478_s4 + $0xc0] sm:$0xff]  ;;  %v768_v17 = vld [vmem:[%s4478_s4 + $0xd0] sm:$0xff]  ;;  %s3443_s29 = sshll.u32 %s4489_s28, 4 }
  0x16   : > { %2913 = vmatpush1.bf16.msra.mxu0 %v2912_v8  ;;  %v2918_v15 = vpack.c.bf16 %v769_v13, %v767_v12  ;;  %v771_v18 = vld [vmem:[%s4478_s4 + $0xe8] sm:$0xff]  ;;  %v773_v19 = vld [vmem:[%s4478_s4 + $0xf8] sm:$0xff]  ;;  %v2920_v20 = vpack.c.bf16 %v768_v17, %v766_v16  ;;  %v770_v22 = vld [vmem:[%s4478_s4 + $0xe0] sm:$0xff]  ;;  %s727_s1 = scalar_lea.vmem %s4479_s23, %s3443_s29  ;;  %s722_s30 = scalar_lea.vmem %s4480_s27, %s3443_s29 }
  0x17   : > { %2915 = vmatprep.subr.bf16.mxu0 %v2914_v9  ;;  %v2922_v21 = vpack.c.bf16 %v773_v19, %v771_v18  ;;  %v772_v23 = vld [vmem:[%s4478_s4 + $0xf0] sm:$0xff]  ;;  %v743_v24 = vld [vmem:[%s4478_s4 + $0x8] sm:$0xff]  ;;  %v745_v25 = vld [vmem:[%s4478_s4 + $0x18] sm:$0xff]  ;;  %s732_s23 = scalar_lea.vmem %s4481_s0, %s3443_s29  ;;  %s737_s2 = scalar_lea.vmem %s4482_s26, %s3443_s29 }
  0x18   : > { %v2924_v26 = vpack.c.bf16 %v772_v23, %v770_v22  ;;  %v2926_v27 = vpack.c.bf16 %v745_v25, %v743_v24  ;;  %v742_v28 = vld [vmem:[%s4478_s4] sm:$0xff]  ;;  %v744_v29 = vld [vmem:[%s4478_s4 + $0x10] sm:$0xff]  ;;  %v747_v30 = vld [vmem:[%s4478_s4 + $0x28] sm:$0xff]  ;;  %s4483_s27 = sld [smem:[#allocation8_spill]]  ;;  %s2669_s29 = sshll.u32 %s4489_s28, 3 }
  0x19   : > { %v749_v31 = vld [vmem:[%s4478_s4 + $0x38] sm:$0xff]  ;;  %v808_v32 = vld [vmem:[%s727_s1] sm:$0xff]  ;;  %v2928_v33 = vpack.c.bf16 %v744_v29, %v742_v28  ;;  %v748_v36 = vld [vmem:[%s4478_s4 + $0x30] sm:$0xff]  ;;  %s4382_s6 = scalar_lea.vmem %s4467_s22, %s2669_s29 }
  0x1a   : > { %2917 = vmatpush1.bf16.msra.mxu0 %v2916_v14  ;;  %v2930_v34 = vpack.c.bf16 %v749_v31, %v747_v30  ;;  %v746_v35 = vld [vmem:[%s4478_s4 + $0x20] sm:$0xff]  ;;  %v751_v37 = vld [vmem:[%s4478_s4 + $0x48] sm:$0xff]  ;;  %v753_v38 = vld [vmem:[%s4478_s4 + $0x58] sm:$0xff] }
  0x1b   : > { %2919 = vmatprep.subr.bf16.mxu0 %v2918_v15  ;;  %v2932_v39 = vpack.c.bf16 %v748_v36, %v746_v35  ;;  %v809_v40 = vld [vmem:[%s727_s1 + $0x8] sm:$0xff]  ;;  %v2934_v41 = vpack.c.bf16 %v753_v38, %v751_v37  ;;  %v750_v42 = vld [vmem:[%s4478_s4 + $0x40] sm:$0xff]  ;;  %v752_v43 = vld [vmem:[%s4478_s4 + $0x50] sm:$0xff] }
  0x1c   : > { %v755_v44 = vld [vmem:[%s4478_s4 + $0x68] sm:$0xff]  ;;  %v757_v45 = vld [vmem:[%s4478_s4 + $0x78] sm:$0xff]  ;;  %v2936_v46 = vpack.c.bf16 %v752_v43, %v750_v42  ;;  %v754_v51 = vld [vmem:[%s4478_s4 + $0x60] sm:$0xff] }
  0x1d   : > { %v2938_v50 = vpack.c.bf16 %v757_v45, %v755_v44  ;;  %v756_v52 = vld [vmem:[%s4478_s4 + $0x70] sm:$0xff]  ;;  %v775_v55 = vld [vmem:[%s4478_s4 + $0x108] sm:$0xff]  ;;  %v777_v56 = vld [vmem:[%s4478_s4 + $0x118] sm:$0xff] }
  0x1e   : > { %2921 = vmatpush1.bf16.msra.mxu0 %v2920_v20  ;;  %v2940_v58 = vpack.c.bf16 %v756_v52, %v754_v51  ;;  %v2942_v59 = vpack.c.bf16 %v777_v56, %v775_v55  ;;  %v774_v60 = vld [vmem:[%s4478_s4 + $0x100] sm:$0xff]  ;;  %v776_v61 = vld [vmem:[%s4478_s4 + $0x110] sm:$0xff]  ;;  %v779_v62 = vld [vmem:[%s4478_s4 + $0x128] sm:$0xff] }
  0x1f   : > { %2923 = vmatprep.subr.bf16.mxu0 %v2922_v21  ;;  %v781_v63 = vld [vmem:[%s4478_s4 + $0x138] sm:$0xff]  ;;  %v806_v0 = vld [vmem:[%s722_s30] sm:$0xff]  ;;  %v2944_v1 = vpack.c.bf16 %v776_v61, %v774_v60  ;;  %v780_v4 = vld [vmem:[%s4478_s4 + $0x130] sm:$0xff] }
  0x20   : > { %v2946_v2 = vpack.c.bf16 %v781_v63, %v779_v62  ;;  %v778_v3 = vld [vmem:[%s4478_s4 + $0x120] sm:$0xff]  ;;  %v783_v5 = vld [vmem:[%s4478_s4 + $0x148] sm:$0xff]  ;;  %v785_v6 = vld [vmem:[%s4478_s4 + $0x158] sm:$0xff] }
  0x21   : > { %v2948_v8 = vpack.c.bf16 %v780_v4, %v778_v3  ;;  %v807_v9 = vld [vmem:[%s722_s30 + $0x8] sm:$0xff]  ;;  %v2950_v10 = vpack.c.bf16 %v785_v6, %v783_v5  ;;  %v782_v11 = vld [vmem:[%s4478_s4 + $0x140] sm:$0xff]  ;;  %v784_v12 = vld [vmem:[%s4478_s4 + $0x150] sm:$0xff] }
  0x22   : > { %2925 = vmatpush1.bf16.msra.mxu0 %v2924_v26  ;;  %v787_v13 = vld [vmem:[%s4478_s4 + $0x168] sm:$0xff]  ;;  %v789_v14 = vld [vmem:[%s4478_s4 + $0x178] sm:$0xff]  ;;  %v2952_v15 = vpack.c.bf16 %v784_v12, %v782_v11  ;;  %v786_v17 = vld [vmem:[%s4478_s4 + $0x160] sm:$0xff] }
  0x23   : > { %2927 = vmatprep.subr.bf16.mxu0 %v2926_v27  ;;  %v2954_v16 = vpack.c.bf16 %v789_v14, %v787_v13  ;;  %v788_v18 = vld [vmem:[%s4478_s4 + $0x170] sm:$0xff]  ;;  %v791_v19 = vld [vmem:[%s4478_s4 + $0x188] sm:$0xff]  ;;  %v793_v20 = vld [vmem:[%s4478_s4 + $0x198] sm:$0xff] }
  0x24   : > { %v2956_v21 = vpack.c.bf16 %v788_v18, %v786_v17  ;;  %v2958_v22 = vpack.c.bf16 %v793_v20, %v791_v19  ;;  %v790_v23 = vld [vmem:[%s4478_s4 + $0x180] sm:$0xff]  ;;  %v792_v24 = vld [vmem:[%s4478_s4 + $0x190] sm:$0xff]  ;;  %v795_v25 = vld [vmem:[%s4478_s4 + $0x1a8] sm:$0xff] }
  0x25   : > { %2670 = vmatmul.mubr.msk.f32.vlgmr.msra.gmra.mrb[0].mxu0 %vm810_vm0, %v808_v32  ;;  %v797_v26 = vld [vmem:[%s4478_s4 + $0x1b8] sm:$0xff]  ;;  %v977_v27 = vld [vmem:[%s732_s23] sm:$0xff]  ;;  %v2960_v28 = vpack.c.bf16 %v792_v24, %v790_v23  ;;  %v796_v31 = vld [vmem:[%s4478_s4 + $0x1b0] sm:$0xff] }
  0x26   : > { %2929 = vmatpush1.bf16.msra.mxu0 %v2928_v33  ;;  %887 = vmatprep.mubr.f32.mxu0 %v3256_v7  ;;  %v2962_v29 = vpack.c.bf16 %v797_v26, %v795_v25  ;;  %v794_v30 = vld [vmem:[%s4478_s4 + $0x1a0] sm:$0xff]  ;;  %v799_v32 = vld [vmem:[%s4478_s4 + $0x1c8] sm:$0xff]  ;;  %v801_v33 = vld [vmem:[%s4478_s4 + $0x1d8] sm:$0xff] }
  0x27   : > { %2931 = vmatprep.subr.bf16.mxu0 %v2930_v34  ;;  %v2964_v34 = vpack.c.bf16 %v796_v31, %v794_v30  ;;  %v978_v35 = vld [vmem:[%s732_s23 + $0x8] sm:$0xff]  ;;  %v2966_v36 = vpack.c.bf16 %v801_v33, %v799_v32  ;;  %v798_v37 = vld [vmem:[%s4478_s4 + $0x1c0] sm:$0xff]  ;;  %v800_v38 = vld [vmem:[%s4478_s4 + $0x1d0] sm:$0xff] }
  0x28   : > { %v802_v43 = vld [vmem:[%s4478_s4 + $0x1e0] sm:$0xff]  ;;  %v804_v44 = vld [vmem:[%s4478_s4 + $0x1f0] sm:$0xff]  ;;  %v1067_v47 = vld [vmem:[%s737_s2 + $0x8] sm:$0xff] }
  0x29   : > { %2671 = vmatmul.mubr.msk.f32.gmra.mrb[2].mxu0 %vm810_vm0, %v809_v40  ;;  %v805_v40 = vld [vmem:[%s4478_s4 + $0x1f8] sm:$0xff]  ;;  %v2972_v45 = vpack.c.bf16 %v804_v44, %v802_v43  ;;  %v1298_v51 = vld [vmem:[%s4453_s8 + $0x110] sm:$0xff]  ;;  %v1317_v55 = vld [vmem:[%s4453_s8 + $0x1a8] sm:$0xff] }
  0x2a   : > { %2933 = vmatpush1.bf16.msra.mxu0 %v2932_v39  ;;  %964 = vmatprep.mubr.f32.mxu0 %v3256_v7  ;;  %v803_v39 = vld [vmem:[%s4478_s4 + $0x1e8] sm:$0xff]  ;;  %v1299_v52 = vld [vmem:[%s4453_s8 + $0x118] sm:$0xff]  ;;  %v2982_v56 = vpack.c.bf16 %v1317_v55, %v1316_v54  ;;  %v1318_v60 = vld [vmem:[%s4453_s8 + $0x1b0] sm:$0xff] }
  0x2b   : > { %2935 = vmatprep.subr.bf16.mxu0 %v2934_v41  ;;  %v2968_v41 = vpack.c.bf16 %v800_v38, %v798_v37  ;;  %v2970_v42 = vpack.c.bf16 %v805_v40, %v803_v39  ;;  %v2980_v53 = vpack.c.bf16 %v1299_v52, %v1298_v51  ;;  %v1319_v61 = vld [vmem:[%s4453_s8 + $0x1b8] sm:$0xff]  ;;  %v1302_v63 = vld [vmem:[%s4453_s8 + $0x130] sm:$0xff]  ;;  %v1321_v3 = vld [vmem:[%s4453_s8 + $0x1c8] sm:$0xff] }
  0x2c   : > { %v2986_v62 = vpack.c.bf16 %v1319_v61, %v1318_v60  ;;  %v1304_v5 = vld [vmem:[%s4453_s8 + $0x140] sm:$0xff]  ;;  %v1305_v6 = vld [vmem:[%s4453_s8 + $0x148] sm:$0xff]  ;;  %v1306_v11 = vld [vmem:[%s4453_s8 + $0x150] sm:$0xff] }
  0x2d   : > { %v1307_v12 = vld [vmem:[%s4453_s8 + $0x158] sm:$0xff]  ;;  %v1324_v14 = vld [vmem:[%s4453_s8 + $0x1e0] sm:$0xff]  ;;  %v1309_v19 = vld [vmem:[%s4453_s8 + $0x168] sm:$0xff] }
  0x2e   : > { %2937 = vmatpush1.bf16.msra.mxu0 %v2936_v46  ;;  %v1066_v46 = vld [vmem:[%s737_s2] sm:$0xff]  ;;  %v1326_v20 = vld [vmem:[%s4453_s8 + $0x1f0] sm:$0xff]  ;;  %v1311_v25 = vld [vmem:[%s4453_s8 + $0x178] sm:$0xff] }
  0x2f   : > { %2939 = vmatprep.subr.bf16.mxu0 %v2938_v50  ;;  %v2978_v50 = vpack.c.bf16 %v1315_v49, %v1314_v48  ;;  %v1308_v18 = vld [vmem:[%s4453_s8 + $0x160] sm:$0xff]  ;;  %v1310_v24 = vld [vmem:[%s4453_s8 + $0x170] sm:$0xff]  ;;  %v1345_v31 = vld [vmem:[%s4453_s8 + $0x288] sm:$0xff] }
  0x30   : > { %v3004_v26 = vpack.c.bf16 %v1311_v25, %v1310_v24  ;;  %v1344_v30 = vld [vmem:[%s4453_s8 + $0x280] sm:$0xff]  ;;  %v1329_v33 = vld [vmem:[%s4453_s8 + $0x208] sm:$0xff]  ;;  %v1347_v37 = vld [vmem:[%s4453_s8 + $0x298] sm:$0xff] }
  0x31   : > { %2979 = vmatprep.subr.bf16.mxu1 %v2978_v50  ;;  %v1328_v32 = vld [vmem:[%s4453_s8 + $0x200] sm:$0xff]  ;;  %v1330_v38 = vld [vmem:[%s4453_s8 + $0x210] sm:$0xff]  ;;  %v1331_v39 = vld [vmem:[%s4453_s8 + $0x218] sm:$0xff] }
  0x32   : > { %2941 = vmatpush1.bf16.msra.mxu0 %v2940_v58  ;;  %2981 = vmatpush3.bf16.msra.mxu1 %v2980_v53  ;;  %v1301_v58 = vld [vmem:[%s4453_s8 + $0x128] sm:$0xff]  ;;  %v1332_v44 = vld [vmem:[%s4453_s8 + $0x220] sm:$0xff]  ;;  %v1350_v48 = vld [vmem:[%s4453_s8 + $0x2b0] sm:$0xff] }
  0x33   : > { %2943 = vmatprep.subr.bf16.mxu0 %v2942_v59  ;;  %v2984_v59 = vpack.c.bf16 %v1301_v58, %v1300_v57  ;;  %2983 = vmatprep.subr.bf16.mxu1 %v2982_v56  ;;  %v1349_v43 = vld [vmem:[%s4453_s8 + $0x2a8] sm:$0xff]  ;;  %v1351_v49 = vld [vmem:[%s4453_s8 + $0x2b8] sm:$0xff]  ;;  %v1334_v50 = vld [vmem:[%s4453_s8 + $0x230] sm:$0xff] }
  0x34   : > { %v1335_v51 = vld [vmem:[%s4453_s8 + $0x238] sm:$0xff]  ;;  %v3050_v52 = vpack.c.bf16 %v1351_v49, %v1350_v48  ;;  %v1352_v54 = vld [vmem:[%s4453_s8 + $0x2c0] sm:$0xff]  ;;  %v1353_v55 = vld [vmem:[%s4453_s8 + $0x2c8] sm:$0xff] }
  0x35   : > { %2672 = vmatmul.mubr.msk.f32.vlgmr.msra.gmra.mrb[0].mxu0 %vm810_vm0, %v806_v0  ;;  %v1303_v0 = vld [vmem:[%s4453_s8 + $0x138] sm:$0xff]  ;;  %v3052_v53 = vpack.c.bf16 %v1335_v51, %v1334_v50  ;;  %v1336_v56 = vld [vmem:[%s4453_s8 + $0x240] sm:$0xff]  ;;  %v1337_v57 = vld [vmem:[%s4453_s8 + $0x248] sm:$0xff]  ;;  %v3054_v58 = vpack.c.bf16 %v1353_v55, %v1352_v54 }
  0x36   : > { %2945 = vmatpush1.bf16.msra.mxu0 %v2944_v1  ;;  %970 = vmatprep.mubr.f32.mxu0 %v3256_v7  ;;  %v2988_v1 = vpack.c.bf16 %v1303_v0, %v1302_v63  ;;  %v1354_v60 = vld [vmem:[%s4453_s8 + $0x2d0] sm:$0xff]  ;;  %v1355_v61 = vld [vmem:[%s4453_s8 + $0x2d8] sm:$0xff] }
  0x37   : > { %2947 = vmatprep.subr.bf16.mxu0 %v2946_v2  ;;  %2985 = vmatpush3.bf16.msra.mxu1 %v2984_v59  ;;  %v1320_v2 = vld [vmem:[%s4453_s8 + $0x1c0] sm:$0xff]  ;;  %v3056_v59 = vpack.c.bf16 %v1337_v57, %v1336_v56  ;;  %v1339_v63 = vld [vmem:[%s4453_s8 + $0x258] sm:$0xff]  ;;  %v3058_v0 = vpack.c.bf16 %v1355_v61, %v1354_v60 }
  0x38   : > { %2987 = vmatprep.subr.bf16.mxu1 %v2986_v62  ;;  %v2990_v4 = vpack.c.bf16 %v1321_v3, %v1320_v2  ;;  %v1338_v62 = vld [vmem:[%s4453_s8 + $0x250] sm:$0xff]  ;;  %v1356_v2 = vld [vmem:[%s4453_s8 + $0x2e0] sm:$0xff]  ;;  %v1357_v3 = vld [vmem:[%s4453_s8 + $0x2e8] sm:$0xff] }
  0x39   : > { %2673 = vmatmul.mubr.msk.f32.gmra.mrb[2].mxu0 %vm810_vm0, %v807_v9  ;;  %v2992_v9 = vpack.c.bf16 %v1305_v6, %v1304_v5  ;;  %v1341_v5 = vld [vmem:[%s4453_s8 + $0x268] sm:$0xff]  ;;  %v3062_v6 = vpack.c.bf16 %v1357_v3, %v1356_v2  ;;  %v1282_v3 = vld [vmem:[%s4453_s8 + $0x90] sm:$0xff] }
  0x3a   : > { %2949 = vmatpush1.bf16.msra.mxu0 %v2948_v8  ;;  %1049 = vmatprep.mubr.f32.mxu0 %v3256_v7  ;;  %v1322_v8 = vld [vmem:[%s4453_s8 + $0x1d0] sm:$0xff] }
  0x3b   : > { %2951 = vmatprep.subr.bf16.mxu0 %v2950_v10  ;;  %2989 = vmatpush3.bf16.msra.mxu1 %v2988_v1  ;;  %v1323_v10 = vld [vmem:[%s4453_s8 + $0x1d8] sm:$0xff]  ;;  %v3060_v1 = vpack.c.bf16 %v1339_v63, %v1338_v62 }
  0x3c   : > { %2991 = vmatprep.subr.bf16.mxu1 %v2990_v4  ;;  %v2994_v13 = vpack.c.bf16 %v1323_v10, %v1322_v8  ;;  %v1340_v4 = vld [vmem:[%s4453_s8 + $0x260] sm:$0xff]  ;;  %v1359_v10 = vld [vmem:[%s4453_s8 + $0x2f8] sm:$0xff] }
  0x3d   : > { %v3064_v8 = vpack.c.bf16 %v1341_v5, %v1340_v4  ;;  %v1283_v4 = vld [vmem:[%s4453_s8 + $0x98] sm:$0xff] }
  0x3e   : > { %2953 = vmatpush1.bf16.msra.mxu0 %v2952_v15  ;;  %v1325_v15 = vld [vmem:[%s4453_s8 + $0x1e8] sm:$0xff] }
  0x3f   : > { %2955 = vmatprep.subr.bf16.mxu0 %v2954_v16  ;;  %2993 = vmatpush3.bf16.msra.mxu1 %v2992_v9  ;;  %v2996_v16 = vpack.c.bf16 %v1307_v12, %v1306_v11  ;;  %v2998_v17 = vpack.c.bf16 %v1325_v15, %v1324_v14  ;;  %v1358_v9 = vld [vmem:[%s4453_s8 + $0x2f0] sm:$0xff]  ;;  %v1842_v15 = vld [vmem:[%s4459_s14 + $0x80] sm:$0xff] }
  0x40   : > { %2995 = vmatprep.subr.bf16.mxu1 %v2994_v13  ;;  %v3066_v11 = vpack.c.bf16 %v1359_v10, %v1358_v9  ;;  %v1342_v12 = vld [vmem:[%s4453_s8 + $0x270] sm:$0xff]  ;;  %v1343_v13 = vld [vmem:[%s4453_s8 + $0x278] sm:$0xff] }
  0x41   : > { %v3068_v14 = vpack.c.bf16 %v1343_v13, %v1342_v12  ;;  %v1266_v12 = vld [vmem:[%s4453_s8 + $0x10] sm:$0xff]  ;;  %v1267_v13 = vld [vmem:[%s4453_s8 + $0x18] sm:$0xff] }
  0x42   : > { %2957 = vmatpush1.bf16.msra.mxu0 %v2956_v21  ;;  %v1327_v21 = vld [vmem:[%s4453_s8 + $0x1f8] sm:$0xff] }
  0x43   : > { %2959 = vmatprep.subr.bf16.mxu0 %v2958_v22  ;;  %2997 = vmatpush3.bf16.msra.mxu1 %v2996_v16  ;;  %v3000_v22 = vpack.c.bf16 %v1309_v19, %v1308_v18  ;;  %v3002_v23 = vpack.c.bf16 %v1327_v21, %v1326_v20  ;;  %v1843_v16 = vld [vmem:[%s4459_s14 + $0x88] sm:$0xff]  ;;  %v1157_v18 = vlaneseq  ;;  %v1155_v21 = vld [vmem:[%s4483_s27] sm:$0x3] }
  0x44   : > { %2999 = vmatprep.subr.bf16.mxu1 %v2998_v17  ;;  %v3110_v17 = vpack.c.bf16 %v1843_v16, %v1842_v15  ;;  %v1284_v16 = vld [vmem:[%s4453_s8 + $0xa0] sm:$0xff] }
  0x45   : > { %2674 = vmatmul.mubr.msk.f32.vlgmr.msra.gmra.mrb[0].mxu0 %vm810_vm0, %v977_v27  ;;  %v1280_v27 = vld [vmem:[%s4453_s8 + $0x80] sm:$0xff]  ;;  %v3819_v19 = vshrl.u32 %v1157_v18, 7  ;;  %vm4385_vm6 = vcmp.lt.s32.totalorder %v1157_v18, 256 }
  0x46   : > { %2961 = vmatpush1.bf16.msra.mxu0 %v2960_v28  ;;  %1055 = vmatprep.mubr.f32.mxu0 %v3256_v7  ;;  %v1281_v28 = vld [vmem:[%s4453_s8 + $0x88] sm:$0xff] }
  0x47   : > { %2963 = vmatprep.subr.bf16.mxu0 %v2962_v29  ;;  %3001 = vmatpush3.bf16.msra.mxu1 %v3000_v22  ;;  %v3006_v29 = vpack.c.bf16 %v1281_v28, %v1280_v27  ;;  %v3822_v20 = vsub.s32 0, %v3819_v19  ;;  %v3828_v22 = vsub.s32 1, %v3819_v19 }
  0x48   : > { %3003 = vmatprep.subr.bf16.mxu1 %v3002_v23 }
  0x49   : > { %2675 = vmatmul.mubr.msk.f32.gmra.mrb[2].mxu0 %vm810_vm0, %v978_v35  ;;  %v3040_v35 = vpack.c.bf16 %v1329_v33, %v1328_v32  ;;  %v1160_v23 = vrot.slane %v1155_v21, %v3822_v20  ;;  %v1164_v24 = vrot.slane %v1155_v21, %v3828_v22  ;;  %v1191_v32 = vld [vmem:[%s4452_s7] sm:$0x3] }
  0x4a   : > { %2965 = vmatpush1.bf16.msra.mxu0 %v2964_v34  ;;  %1138 = vmatprep.mubr.f32.mxu0 %v3256_v7  ;;  %v3038_v34 = vpack.c.bf16 %v1345_v31, %v1344_v30 }
  0x4b   : > { %2967 = vmatprep.subr.bf16.mxu0 %v2966_v36  ;;  %3005 = vmatpush3.bf16.msra.mxu1 %v3004_v26  ;;  %v1346_v36 = vld [vmem:[%s4453_s8 + $0x290] sm:$0xff]  ;;  %v1175_v26 = vld [vmem:[%s4484_s5] sm:$0x3] }
  0x4c   : > { %3007 = vmatprep.subr.bf16.mxu1 %v3006_v29  ;;  %v3042_v40 = vpack.c.bf16 %v1347_v37, %v1346_v36  ;;  %v1180_v31 = vrot.slane %v1175_v26, %v3822_v20 }
  0x4e   : > { %2969 = vmatpush1.bf16.msra.mxu0 %v2968_v41  ;;  %v3044_v41 = vpack.c.bf16 %v1331_v39, %v1330_v38 }
  0x4f   : > { %2971 = vmatprep.subr.bf16.mxu0 %v2970_v42  ;;  %v1348_v42 = vld [vmem:[%s4453_s8 + $0x2a0] sm:$0xff] }
  0x52   : > { %2973 = vmatpush1.bf16.msra.mxu0 %v2972_v45  ;;  %v1333_v45 = vld [vmem:[%s4453_s8 + $0x228] sm:$0xff] }
  0x53   : > { %3039 = vmatprep.subr.bf16.mxu0 %v3038_v34  ;;  %v1184_v34 = vrot.slane %v1175_v26, %v3828_v22  ;;  %v3012_v26 = vpack.c.bf16 %v1267_v13, %v1266_v12  ;;  %v1276_v12 = vld [vmem:[%s4453_s8 + $0x60] sm:$0xff]  ;;  %v1277_v13 = vld [vmem:[%s4453_s8 + $0x68] sm:$0xff] }
  0x55   : > { %2676 = vmatmul.mubr.msk.f32.vlgmr.msra.gmra.mrb[0].mxu0 %vm810_vm0, %v1066_v46  ;;  %v3046_v46 = vpack.c.bf16 %v1349_v43, %v1348_v42  ;;  %v1200_v43 = vrot.slane %v1191_v32, %v3828_v22 }
  0x56   : > { %1144 = vmatprep.mubr.f32.mxu0 %v3256_v7  ;;  %3041 = vmatpush3.bf16.msra.mxu0 %v3040_v35 }
  0x57   : > { %3043 = vmatprep.subr.bf16.mxu0 %v3042_v40  ;;  %v1196_v40 = vrot.slane %v1191_v32, %v3822_v20  ;;  %v1286_v32 = vld [vmem:[%s4453_s8 + $0xb0] sm:$0xff] }
  0x59   : > { %2677 = vmatmul.mubr.msk.f32.gmra.mrb[2].mxu0 %vm810_vm0, %v1067_v47  ;;  %v3048_v47 = vpack.c.bf16 %v1333_v45, %v1332_v44 }
  0x5a   : > { %3045 = vmatpush3.bf16.msra.mxu0 %v3044_v41 }
  0x5b   : > { %3047 = vmatprep.subr.bf16.mxu0 %v3046_v46 }
  0x5e   : > { %3049 = vmatpush3.bf16.msra.mxu0 %v3048_v47 }
  0x5f   : > { %3051 = vmatprep.subr.bf16.mxu0 %v3050_v52 }
  0x62   : > { %3053 = vmatpush3.bf16.msra.mxu0 %v3052_v53 }
  0x63   : > { %3055 = vmatprep.subr.bf16.mxu0 %v3054_v58 }
  0x66   : > { %3057 = vmatpush3.bf16.msra.mxu0 %v3056_v59 }
  0x67   : > { %3059 = vmatprep.subr.bf16.mxu0 %v3058_v0  ;;  %v1264_v0 = vld [vmem:[%s4453_s8] sm:$0xff] }
  0x6a   : > { %3061 = vmatpush3.bf16.msra.mxu0 %v3060_v1  ;;  %v1265_v1 = vld [vmem:[%s4453_s8 + $0x8] sm:$0xff] }
  0x6b   : > { %3063 = vmatprep.subr.bf16.mxu0 %v3062_v6 }
  0x6e   : > { %3065 = vmatpush3.bf16.msra.mxu0 %v3064_v8  ;;  %v3008_v8 = vpack.c.bf16 %v1265_v1, %v1264_v0  ;;  %v1275_v0 = vld [vmem:[%s4453_s8 + $0x58] sm:$0xff]  ;;  %v1292_v1 = vld [vmem:[%s4453_s8 + $0xe0] sm:$0xff] }
  0x6f   : > { %3067 = vmatprep.subr.bf16.mxu0 %v3066_v11  ;;  %v3010_v11 = vpack.c.bf16 %v1283_v4, %v1282_v3 }
  0x72   : > { %3069 = vmatpush3.bf16.msra.mxu0 %v3068_v14 }
  0x73   : > { %3111 = vmatprep.subr.bf16.mxu0 %v3110_v17  ;;  %v1285_v17 = vld [vmem:[%s4453_s8 + $0xa8] sm:$0xff] }
 0x128   : > { %v1140_v25 = vpop.f32.mrb[0].mxu0 }
 0x129   : > { %v1167_v27 = vadd.f32 %v1160_v23, %v1140_v25  ;;  %v1142_v28 = vpop.f32.mrb[1].mxu0 }
 0x12a   : > { %v1168_v29 = vadd.f32 %v1164_v24, %v1142_v28  ;;  %v3014_v28 = vpack.c.bf16 %v1285_v17, %v1284_v16  ;;  %v3032_v17 = vpack.c.bf16 %v1277_v13, %v1276_v12  ;;  %v1855_v12 = vld [vmem:[%s4459_s14 + $0xe8] sm:$0xff] }
 0x12b   : > { %v1171_v30 = vmax.f32 %v1167_v27, 0.0 }
 0x12c   : > { %v1172_v33 = vmax.f32 %v1168_v29, 0.0  ;;  %v1146_v35 = vpop.f32.mrb[2].mxu0  ;;  %v1268_v29 = vld [vmem:[%s4453_s8 + $0x20] sm:$0xff] }
 0x12d   : > { %v1169_v36 = vadd.f32 %v1160_v23, %v1146_v35  ;;  %v1148_v37 = vpop.f32.mrb[3].mxu0  ;;  %v1187_v39 = vmul.f32 %v1180_v31, %v1171_v30  ;;  %v1269_v30 = vld [vmem:[%s4453_s8 + $0x28] sm:$0xff] }
 0x12e   : > { %v1170_v38 = vadd.f32 %v1164_v24, %v1148_v37  ;;  %v1188_v42 = vmul.f32 %v1184_v34, %v1172_v33  ;;  %v1287_v33 = vld [vmem:[%s4453_s8 + $0xb8] sm:$0xff] }
 0x12f   : > { %v1173_v41 = vmax.f32 %v1169_v36, 0.0  ;;  %v3842_v47 = vadd.f32 %v1196_v40, %v1187_v39  ;;  %v3016_v36 = vpack.c.bf16 %v1269_v30, %v1268_v29  ;;  %v1270_v39 = vld [vmem:[%s4453_s8 + $0x30] sm:$0xff]  ;;  %v1826_v29 = vld [vmem:[%s4459_s14] sm:$0xff]  ;;  %v1827_v30 = vld [vmem:[%s4459_s14 + $0x8] sm:$0xff] }
 0x130   : > { %v1174_v44 = vmax.f32 %v1170_v38, 0.0  ;;  %v3846_v49 = vadd.f32 %v1200_v43, %v1188_v42  ;;  %v3018_v38 = vpack.c.bf16 %v1287_v33, %v1286_v32  ;;  %v1288_v42 = vld [vmem:[%s4453_s8 + $0xc0] sm:$0xff]  ;;  %v1844_v32 = vld [vmem:[%s4459_s14 + $0x90] sm:$0xff]  ;;  %v1845_v33 = vld [vmem:[%s4459_s14 + $0x98] sm:$0xff] }
 0x131   : > { %v1189_v45 = vmul.f32 %v1180_v31, %v1173_v41 }
 0x132   : > { %v1190_v46 = vmul.f32 %v1184_v34, %v1174_v44 }
 0x133   : > { %v3844_v48 = vadd.f32 %v1196_v40, %v1189_v45  ;;  %v1271_v40 = vld [vmem:[%s4453_s8 + $0x38] sm:$0xff] }
 0x134   : > { %v3848_v50 = vadd.f32 %v1200_v43, %v1190_v46  ;;  %v1289_v43 = vld [vmem:[%s4453_s8 + $0xc8] sm:$0xff]  ;;  %v3020_v46 = vpack.c.bf16 %v1271_v40, %v1270_v39  ;;  %v3114_v40 = vpack.c.bf16 %v1845_v33, %v1844_v32  ;;  %v1365_v32 = vld [vmem:[%s4457_s12 + $0x10] sm:$0xff] }
 0x135   : > { %v1207_v51 = vadd.f32 %v3844_v48, %v3842_v47  ;;  %v1368_v33 = vld [vmem:[%s4457_s12 + $0x28] sm:$0xff] }
 0x136   : > { %v1214_v52 = vadd.f32 %v3848_v50, %v3846_v49 }
 0x137   : > { %v1208_v53 = vrot.slane %v1207_v51, 4 }
 0x138   : > { %v1215_v54 = vrot.slane %v1214_v52, 4 }
 0x139   : > { %v1209_v55 = vadd.f32 %v1208_v53, %v1207_v51  ;;  %v1272_v53 = vld [vmem:[%s4453_s8 + $0x40] sm:$0xff] }
 0x13a   : > { %v1216_v56 = vadd.f32 %v1215_v54, %v1214_v52  ;;  %v3022_v52 = vpack.c.bf16 %v1289_v43, %v1288_v42  ;;  %v1273_v54 = vld [vmem:[%s4453_s8 + $0x48] sm:$0xff]  ;;  %v1829_v42 = vld [vmem:[%s4459_s14 + $0x18] sm:$0xff] }
 0x13b   : > { %v1210_v57 = vrot.slane %v1209_v55, 2 }
 0x13c   : > { %v1217_v58 = vrot.slane %v1216_v56, 2 }
 0x13d   : > { %v1211_v59 = vadd.f32 %v1210_v57, %v1209_v55  ;;  %v1291_v57 = vld [vmem:[%s4453_s8 + $0xd8] sm:$0xff] }
 0x13e   : > { %v1218_v60 = vadd.f32 %v1217_v58, %v1216_v56  ;;  %v1290_v56 = vld [vmem:[%s4453_s8 + $0xd0] sm:$0xff] }
 0x13f   : > { %v1212_v61 = vrot.slane %v1211_v59, 1 }
 0x140   : > { %v1219_v62 = vrot.slane %v1218_v60, 1 }
 0x141   : > { %v1213_v63 = vadd.f32 %v1212_v61, %v1211_v59 }
 0x142   : > { %v1220_v2 = vadd.f32 %v1219_v62, %v1218_v60  ;;  %v3024_v60 = vpack.c.bf16 %v1273_v54, %v1272_v53  ;;  %v3026_v62 = vpack.c.bf16 %v1291_v57, %v1290_v56  ;;  %v1831_v53 = vld [vmem:[%s4459_s14 + $0x28] sm:$0xff]  ;;  %v1848_v54 = vld [vmem:[%s4459_s14 + $0xb0] sm:$0xff] }
 0x143   : > { %v3866_v5 = vmul.f32 0.0625, %v1213_v63  ;;  %v1274_v63 = vld [vmem:[%s4453_s8 + $0x50] sm:$0xff] }
 0x144   : > { %v3868_v6 = vmul.f32 0.0625, %v1220_v2  ;;  %v1293_v2 = vld [vmem:[%s4453_s8 + $0xe8] sm:$0xff] }
 0x145   : > { %v1224_v9 = vsub.f32 %v3842_v47, %v3866_v5  ;;  %v1226_v10 = vsub.f32 %v3844_v48, %v3866_v5 }
 0x146   : > { %v1225_v14 = vsub.f32 %v3846_v49, %v3868_v6  ;;  %v1227_v15 = vsub.f32 %v3848_v50, %v3868_v6  ;;  %1436 = vmatprep.mubr.f32.mxu1 %v3868_v6 }
 0x147   : > { %v1228_v21 = vmul.f32 %v1224_v9, %v1224_v9  ;;  %v1230_v23 = vmul.f32 %v1226_v10, %v1226_v10  ;;  %1437 = vmatmul.mubr.f32.vlgmr.msra.gmra.mrb[0].mxu1 %v3866_v5 }
 0x148   : > { %v1229_v24 = vmul.f32 %v1225_v14, %v1225_v14  ;;  %v1231_v25 = vmul.f32 %v1227_v15, %v1227_v15  ;;  %3009 = vmatpush3.bf16.msra.mxu1 %v3008_v8  ;;  %1510 = vmatprep.mubr.f32.mxu1 %v3846_v49  ;;  %v3028_v8 = vpack.c.bf16 %v1275_v0, %v1274_v63  ;;  %v1294_v14 = vld [vmem:[%s4453_s8 + $0xf0] sm:$0xff]  ;;  %v1295_v15 = vld [vmem:[%s4453_s8 + $0xf8] sm:$0xff]  ;;  %v1834_v0 = vld [vmem:[%s4459_s14 + $0x40] sm:$0xff] }
 0x149   : > { %v1232_v27 = vadd.f32 %v1230_v23, %v1228_v21  ;;  %3011 = vmatprep.subr.bf16.mxu1 %v3010_v11  ;;  %v3030_v11 = vpack.c.bf16 %v1293_v2, %v1292_v1  ;;  %v3034_v21 = vpack.c.bf16 %v1295_v15, %v1294_v14  ;;  %v1278_v23 = vld [vmem:[%s4453_s8 + $0x70] sm:$0xff]  ;;  %v1835_v1 = vld [vmem:[%s4459_s14 + $0x48] sm:$0xff]  ;;  %v1838_v15 = vld [vmem:[%s4459_s14 + $0x60] sm:$0xff] }
 0x14a   : > { %v1239_v31 = vadd.f32 %v1231_v25, %v1229_v24  ;;  %v1279_v24 = vld [vmem:[%s4453_s8 + $0x78] sm:$0xff]  ;;  %v1852_v2 = vld [vmem:[%s4459_s14 + $0xd0] sm:$0xff] }
 0x14b   : > { %v1233_v34 = vrot.slane %v1232_v27, 4  ;;  %v3036_v25 = vpack.c.bf16 %v1279_v24, %v1278_v23 }
 0x14c   : > { %v1240_v35 = vrot.slane %v1239_v31, 4  ;;  %3013 = vmatpush3.bf16.msra.mxu1 %v3012_v26 }
 0x14d   : > { %v1234_v37 = vadd.f32 %v1233_v34, %v1232_v27  ;;  %3015 = vmatprep.subr.bf16.mxu1 %v3014_v28 }
 0x14e   : > { %v1241_v41 = vadd.f32 %v1240_v35, %v1239_v31 }
 0x14f   : > { %v1235_v44 = vrot.slane %v1234_v37, 2 }
 0x150   : > { %v1242_v45 = vrot.slane %v1241_v41, 2  ;;  %3017 = vmatpush3.bf16.msra.mxu1 %v3016_v36 }
 0x151   : > { %v1236_v51 = vadd.f32 %v1235_v44, %v1234_v37  ;;  %3019 = vmatprep.subr.bf16.mxu1 %v3018_v38  ;;  %v3112_v38 = vpack.c.bf16 %v1827_v30, %v1826_v29  ;;  %v1846_v44 = vld [vmem:[%s4459_s14 + $0xa0] sm:$0xff]  ;;  %v1366_v29 = vld [vmem:[%s4457_s12 + $0x18] sm:$0xff] }
 0x152   : > { %v1243_v55 = vadd.f32 %v1242_v45, %v1241_v41  ;;  %v1828_v41 = vld [vmem:[%s4459_s14 + $0x10] sm:$0xff]  ;;  %v1847_v45 = vld [vmem:[%s4459_s14 + $0xa8] sm:$0xff] }
 0x153   : > { %v1237_v58 = vrot.slane %v1236_v51, 1 }
 0x154   : > { %v1244_v59 = vrot.slane %v1243_v55, 1  ;;  %3021 = vmatpush3.bf16.msra.mxu1 %v3020_v46  ;;  %v3116_v46 = vpack.c.bf16 %v1829_v42, %v1828_v41  ;;  %v1875_v41 = vld [vmem:[%s4459_s14 + $0x188] sm:$0xff] }
 0x155   : > { %v1238_v61 = vadd.f32 %v1237_v58, %v1236_v51  ;;  %3023 = vmatprep.subr.bf16.mxu1 %v3022_v52  ;;  %v3118_v51 = vpack.c.bf16 %v1847_v45, %v1846_v44  ;;  %v1830_v52 = vld [vmem:[%s4459_s14 + $0x20] sm:$0xff]  ;;  %v1832_v58 = vld [vmem:[%s4459_s14 + $0x30] sm:$0xff] }
 0x156   : > { %v1245_v3 = vadd.f32 %v1244_v59, %v1243_v55  ;;  %v1849_v55 = vld [vmem:[%s4459_s14 + $0xb8] sm:$0xff]  ;;  %v3120_v56 = vpack.c.bf16 %v1831_v53, %v1830_v52 }
 0x157   : > { %v1246_v4 = vmul.f32 0.0625, %v1238_v61  ;;  %v3122_v57 = vpack.c.bf16 %v1849_v55, %v1848_v54  ;;  %v1833_v59 = vld [vmem:[%s4459_s14 + $0x38] sm:$0xff]  ;;  %v1851_v61 = vld [vmem:[%s4459_s14 + $0xc8] sm:$0xff] }
 0x158   : > { %3025 = vmatpush3.bf16.msra.mxu1 %v3024_v60  ;;  %v1247_v9 = vmul.f32 0.0625, %v1245_v3  ;;  %v1850_v60 = vld [vmem:[%s4459_s14 + $0xc0] sm:$0xff]  ;;  %v1853_v3 = vld [vmem:[%s4459_s14 + $0xd8] sm:$0xff] }
 0x159   : > { %v1248_v10 = vmax.f32 %v1246_v4, 1e-12  ;;  %3027 = vmatprep.subr.bf16.mxu1 %v3026_v62  ;;  %v3124_v62 = vpack.c.bf16 %v1833_v59, %v1832_v58  ;;  %v3126_v63 = vpack.c.bf16 %v1851_v61, %v1850_v60  ;;  %v3128_v4 = vpack.c.bf16 %v1835_v1, %v1834_v0  ;;  %v2678_v1 = vld [vmem:[%s4454_s9] ss:$0 sm:$0xff] }
 0x15a   : > { %v1249_v16 = vmax.f32 %v1247_v9, 1e-12  ;;  %v1836_v9 = vld [vmem:[%s4459_s14 + $0x50] sm:$0xff] }
 0x15b   : > { %3204 = vrsqrt.f32 %v1248_v10  ;;  %vm1252_vm1 = vcmp.eq.f32.partialorder %v1248_v10, inf  ;;  %v1255_v37 = vand.u32 2147483648, %v1248_v10  ;;  %vm1254_vm4 = vcmp.eq.f32.partialorder %v1248_v10, 0.0 }
 0x15c   : > { %3029 = vmatpush3.bf16.msra.mxu1 %v3028_v8  ;;  %3206 = vrsqrt.f32 %v1249_v16  ;;  %vm1259_vm2 = vcmp.eq.f32.partialorder %v1249_v16, inf  ;;  %v1262_v34 = vand.u32 2147483648, %v1249_v16  ;;  %vm1261_vm3 = vcmp.eq.f32.partialorder %v1249_v16, 0.0 }
 0x15d   : > { %3031 = vmatprep.subr.bf16.mxu1 %v3030_v11  ;;  %v3130_v8 = vpack.c.bf16 %v1853_v3, %v1852_v2  ;;  %v1854_v11 = vld [vmem:[%s4459_s14 + $0xe0] sm:$0xff] }
 0x15e   : > { %v3134_v14 = vpack.c.bf16 %v1855_v12, %v1854_v11  ;;  %v2680_v12 = vld [vmem:[%s4456_s11] ss:$0 sm:$0xff] }
 0x160   : > { %3033 = vmatpush3.bf16.msra.mxu1 %v3032_v17  ;;  %v1856_v17 = vld [vmem:[%s4459_s14 + $0xf0] sm:$0xff] }
 0x161   : > { %3035 = vmatprep.subr.bf16.mxu1 %v3034_v21  ;;  %v1857_v21 = vld [vmem:[%s4459_s14 + $0xf8] sm:$0xff] }
 0x162   : > { %v3138_v24 = vpack.c.bf16 %v1857_v21, %v1856_v17  ;;  %v1858_v17 = vld [vmem:[%s4459_s14 + $0x100] sm:$0xff]  ;;  %v1859_v21 = vld [vmem:[%s4459_s14 + $0x108] sm:$0xff] }
 0x164   : > { %3037 = vmatpush3.bf16.msra.mxu1 %v3036_v25  ;;  %v1840_v25 = vld [vmem:[%s4459_s14 + $0x70] sm:$0xff] }
 0x165   : > { %v3205_v26 = vpop.eup %3204 }
 0x166   : > { %v3207_v27 = vpop.eup %3206  ;;  %v1251_v28 = vmul.f32 %v3205_v26, %v1248_v10  ;;  %v1841_v26 = vld [vmem:[%s4459_s14 + $0x78] sm:$0xff] }
 0x167   : > { %1511 = vmatmul.mubr.f32.vlgmr.msra.gmra.mrb[2].mxu1 %v3842_v47  ;;  %v1258_v31 = vmul.f32 %v3207_v27, %v1249_v16  ;;  %v3140_v27 = vpack.c.bf16 %v1841_v26, %v1840_v25  ;;  %v3080_v25 = vpack.c.bf16 %v1859_v21, %v1858_v17  ;;  %v1906_v17 = vld [vmem:[%s4459_s14 + $0x280] sm:$0xff]  ;;  %v1907_v21 = vld [vmem:[%s4459_s14 + $0x288] sm:$0xff] }
 0x168   : > { %1515 = vmatprep.mubr.f32.mxu1 %v3848_v50  ;;  %v1253_v35 = vsel %vm1252_vm1, %v1248_v10, %v1251_v28  ;;  %v1837_v10 = vld [vmem:[%s4459_s14 + $0x58] sm:$0xff]  ;;  %v1364_v28 = vld [vmem:[%s4457_s12 + $0x8] sm:$0xff] }
 0x169   : > { %v1260_v36 = vsel %vm1259_vm2, %v1249_v16, %v1258_v31  ;;  %v3983_v43 = vsel %vm1254_vm4, %v1255_v37, %v1253_v35  ;;  %v3132_v13 = vpack.c.bf16 %v1837_v10, %v1836_v9  ;;  %v1839_v16 = vld [vmem:[%s4459_s14 + $0x68] sm:$0xff]  ;;  %v3070_v30 = vpack.c.bf16 %v1366_v29, %v1364_v28  ;;  %v1363_v31 = vld [vmem:[%s4457_s12] sm:$0xff]  ;;  %v1370_v35 = vld [vmem:[%s4457_s12 + $0x38] sm:$0xff] }
 0x16a   : > { %v3973_v39 = vsel %vm1261_vm3, %v1262_v34, %v1260_v36  ;;  %v3136_v23 = vpack.c.bf16 %v1839_v16, %v1838_v15  ;;  %v3072_v34 = vpack.c.bf16 %v1365_v32, %v1363_v31  ;;  %v1367_v36 = vld [vmem:[%s4457_s12 + $0x20] sm:$0xff]  ;;  %v1369_v37 = vld [vmem:[%s4457_s12 + $0x30] sm:$0xff]  ;;  %v1861_v28 = vld [vmem:[%s4459_s14 + $0x118] sm:$0xff] }
 0x16b   : > { %1516 = vmatmul.mubr.f32.gmra.mrb[4].mxu1 %v3844_v48  ;;  %1585 = vmatprep.mubr.f32.mxu0 %v3973_v39  ;;  %v3076_v42 = vpack.c.bf16 %v1369_v37, %v1367_v36  ;;  %v2679_v9 = vld [vmem:[%s4455_s10] ss:$0 sm:$0xff]  ;;  %v1879_v31 = vld [vmem:[%s4459_s14 + $0x1a8] sm:$0xff]  ;;  %v1880_v37 = vld [vmem:[%s4459_s14 + $0x1b0] sm:$0xff] }
 0x16c   : > { %1586 = vmatmul.mubr.f32.vlgmr.msra.gmra.mrb[4].mxu0 %v3983_v43  ;;  %1707 = vmatprep.mubr.f32.mxu1 %v3256_v7 }
 0x16d   : > { %3113 = vmatpush3.bf16.msra.mxu0 %v3112_v38  ;;  %2072 = vmatprep.mubr.f32.mxu0 %v3846_v49  ;;  %v3074_v38 = vpack.c.bf16 %v1370_v35, %v1368_v33  ;;  %v1863_v35 = vld [vmem:[%s4459_s14 + $0x128] sm:$0xff] }
 0x16e   : > { %3115 = vmatprep.subr.bf16.mxu0 %v3114_v40  ;;  %3071 = vmatprep.subr.bf16.mxu1 %v3070_v30  ;;  %v1874_v40 = vld [vmem:[%s4459_s14 + $0x180] sm:$0xff] }
 0x16f   : > { %3073 = vmatpush1.bf16.msra.mxu1 %v3072_v34  ;;  %v3078_v44 = vpack.c.bf16 %v1875_v41, %v1874_v40  ;;  %v1878_v30 = vld [vmem:[%s4459_s14 + $0x1a0] sm:$0xff] }
 0x170   : > { %3075 = vmatprep.subr.bf16.mxu1 %v3074_v38  ;;  %v3086_v33 = vpack.c.bf16 %v1879_v31, %v1878_v30  ;;  %v1862_v34 = vld [vmem:[%s4459_s14 + $0x120] sm:$0xff]  ;;  %v1881_v38 = vld [vmem:[%s4459_s14 + $0x1b8] sm:$0xff]  ;;  %v1892_v31 = vld [vmem:[%s4459_s14 + $0x210] sm:$0xff] }
 0x171   : > { %3117 = vmatpush3.bf16.msra.mxu0 %v3116_v46  ;;  %v3088_v41 = vpack.c.bf16 %v1863_v35, %v1862_v34  ;;  %v1911_v34 = vld [vmem:[%s4459_s14 + $0x2a8] sm:$0xff] }
 0x172   : > { %3119 = vmatprep.subr.bf16.mxu0 %v3118_v51 }
 0x173   : > { %3077 = vmatpush1.bf16.msra.mxu1 %v3076_v42 }
 0x174   : > { %3079 = vmatprep.subr.bf16.mxu1 %v3078_v44  ;;  %v3090_v44 = vpack.c.bf16 %v1881_v38, %v1880_v37  ;;  %v1894_v37 = vld [vmem:[%s4459_s14 + $0x220] sm:$0xff]  ;;  %v1895_v38 = vld [vmem:[%s4459_s14 + $0x228] sm:$0xff] }
 0x175   : > { %3121 = vmatpush3.bf16.msra.mxu0 %v3120_v56 }
 0x176   : > { %3123 = vmatprep.subr.bf16.mxu0 %v3122_v57 }
 0x179   : > { %3125 = vmatpush3.bf16.msra.mxu0 %v3124_v62 }
 0x17a   : > { %3127 = vmatprep.subr.bf16.mxu0 %v3126_v63 }
 0x17d   : > { %3129 = vmatpush3.bf16.msra.mxu0 %v3128_v4 }
 0x17e   : > { %3131 = vmatprep.subr.bf16.mxu0 %v3130_v8 }
 0x181   : > { %3133 = vmatpush3.bf16.msra.mxu0 %v3132_v13 }
 0x182   : > { %3135 = vmatprep.subr.bf16.mxu0 %v3134_v14 }
 0x185   : > { %3137 = vmatpush3.bf16.msra.mxu0 %v3136_v23  ;;  %v1876_v23 = vld [vmem:[%s4459_s14 + $0x190] sm:$0xff] }
 0x186   : > { %3139 = vmatprep.subr.bf16.mxu0 %v3138_v24  ;;  %v1877_v24 = vld [vmem:[%s4459_s14 + $0x198] sm:$0xff] }
 0x187   : > { %v3082_v26 = vpack.c.bf16 %v1877_v24, %v1876_v23  ;;  %v3142_v24 = vpack.c.bf16 %v1907_v21, %v1906_v17  ;;  %v1925_v17 = vld [vmem:[%s4463_s18] sm:$0xff]  ;;  %v1927_v21 = vld [vmem:[%s4463_s18 + $0x10] sm:$0xff] }
 0x189   : > { %3141 = vmatpush3.bf16.msra.mxu0 %v3140_v27  ;;  %v1860_v27 = vld [vmem:[%s4459_s14 + $0x110] sm:$0xff] }
 0x18a   : > { %v3084_v32 = vpack.c.bf16 %v1861_v28, %v1860_v27  ;;  %v1908_v27 = vld [vmem:[%s4459_s14 + $0x290] sm:$0xff]  ;;  %v1909_v28 = vld [vmem:[%s4459_s14 + $0x298] sm:$0xff] }
 0x18b   : > { %v3146_v30 = vpack.c.bf16 %v1909_v28, %v1908_v27  ;;  %v1931_v27 = vld [vmem:[%s4463_s18 + $0x30] sm:$0xff] }
 0x18c   : > { %2073 = vmatmul.mubr.f32.vlgmr.msra.gmra.mrb[6].mxu0 %v3842_v47 }
 0x18d   : > { %2077 = vmatprep.mubr.f32.mxu0 %v3848_v50 }
 0x190   : > { %2078 = vmatmul.mubr.f32.gmra.mrb[8].mxu0 %v3844_v48 }
 0x191   : > { %2268 = vmatprep.mubr.f32.mxu0 %v3256_v7 }
 0x21a   : > { %v2726_v45 = vpop.f32.mrb[0].mxu1 }
 0x21b   : > { %v2727_v46 = vpop.f32.mrb[1].mxu1 }
 0x21c   : > { %v2728_v51 = vadd.f32 %v2727_v46, %v2726_v45  ;;  %v1864_v45 = vld [vmem:[%s4459_s14 + $0x130] sm:$0xff]  ;;  %v1865_v46 = vld [vmem:[%s4459_s14 + $0x138] sm:$0xff] }
 0x21e   : > { %v1445_v54 = vrot.slane %v2728_v51, %v3822_v20 }
 0x23a   : > { %v2761_v52 = vpop.f32.mrb[2].mxu1 }
 0x23b   : > { %v2762_v53 = vpop.f32.mrb[3].mxu1 }
 0x23c   : > { %v2763_v55 = vadd.f32 %v2762_v53, %v2761_v52  ;;  %v1882_v52 = vld [vmem:[%s4459_s14 + $0x1c0] sm:$0xff] }
 0x23e   : > { %v1513_v56 = vadd.f32 %v2763_v55, %v1445_v54  ;;  %v2764_v57 = vpop.f32.mrb[4].mxu1 }
 0x23f   : > { %v2765_v58 = vpop.f32.mrb[5].mxu1  ;;  %v2799_v59 = vpop.f32.mrb[4].mxu0 }
 0x240   : > { %v2766_v60 = vadd.f32 %v2765_v58, %v2764_v57  ;;  %v2800_v61 = vpop.f32.mrb[5].mxu0  ;;  %v1866_v57 = vld [vmem:[%s4459_s14 + $0x140] sm:$0xff]  ;;  %v1867_v58 = vld [vmem:[%s4459_s14 + $0x148] sm:$0xff] }
 0x241   : > { %v2801_v62 = vadd.f32 %v2800_v61, %v2799_v59  ;;  %v1885_v61 = vld [vmem:[%s4459_s14 + $0x1d8] sm:$0xff] }
 0x242   : > { %v1518_v63 = vadd.f32 %v2766_v60, %v1445_v54  ;;  %v3092_v54 = vpack.c.bf16 %v1865_v46, %v1864_v45  ;;  %v1884_v60 = vld [vmem:[%s4459_s14 + $0x1d0] sm:$0xff]  ;;  %v1914_v45 = vld [vmem:[%s4459_s14 + $0x2c0] sm:$0xff]  ;;  %v1915_v46 = vld [vmem:[%s4459_s14 + $0x2c8] sm:$0xff] }
 0x243   : > { %v1594_v0 = vrot.slane %v2801_v62, %v3822_v20  ;;  %v3096_v62 = vpack.c.bf16 %v1867_v58, %v1866_v57 }
 0x245   : > { %v1595_v2 = vadd.f32 %v1594_v0, %v1513_v56  ;;  %v1596_v3 = vadd.f32 %v1594_v0, %v1518_v63  ;;  %v3098_v63 = vpack.c.bf16 %v1885_v61, %v1884_v60  ;;  %v1868_v0 = vld [vmem:[%s4459_s14 + $0x150] sm:$0xff]  ;;  %v1901_v61 = vld [vmem:[%s4459_s14 + $0x258] sm:$0xff] }
 0x246   : > { %v1900_v60 = vld [vmem:[%s4459_s14 + $0x250] sm:$0xff] }
 0x247   : > { %v1603_v4 = vadd.f32 %v2678_v1, %v1595_v2  ;;  %v1604_v8 = vadd.f32 %v2678_v1, %v1596_v3  ;;  %v1869_v1 = vld [vmem:[%s4459_s14 + $0x158] sm:$0xff]  ;;  %v1886_v2 = vld [vmem:[%s4459_s14 + $0x1e0] sm:$0xff]  ;;  %v1887_v3 = vld [vmem:[%s4459_s14 + $0x1e8] sm:$0xff] }
 0x249   : > { %v1605_v10 = vmax.f32 %v1603_v4, 0.0  ;;  %v1606_v11 = vmax.f32 %v1604_v8, 0.0  ;;  %v3100_v4 = vpack.c.bf16 %v1869_v1, %v1868_v0  ;;  %v3102_v8 = vpack.c.bf16 %v1887_v3, %v1886_v2  ;;  %v1902_v2 = vld [vmem:[%s4459_s14 + $0x260] sm:$0xff]  ;;  %v1903_v3 = vld [vmem:[%s4459_s14 + $0x268] sm:$0xff] }
 0x24a   : > { %v3164_v0 = vpack.c.bf16 %v1901_v61, %v1900_v60 }
 0x24b   : > { %v1613_v13 = vmul.f32 %v2679_v9, %v1605_v10  ;;  %v1614_v14 = vmul.f32 %v2679_v9, %v1606_v11  ;;  %v1870_v9 = vld [vmem:[%s4459_s14 + $0x160] sm:$0xff]  ;;  %v1871_v10 = vld [vmem:[%s4459_s14 + $0x168] sm:$0xff]  ;;  %v1888_v11 = vld [vmem:[%s4459_s14 + $0x1f0] sm:$0xff] }
 0x24d   : > { %v1621_v15 = vadd.f32 %v2680_v12, %v1613_v13  ;;  %v1622_v16 = vadd.f32 %v2680_v12, %v1614_v14  ;;  %v1889_v12 = vld [vmem:[%s4459_s14 + $0x1f8] sm:$0xff]  ;;  %v3104_v13 = vpack.c.bf16 %v1871_v10, %v1870_v9  ;;  %v3168_v9 = vpack.c.bf16 %v1903_v3, %v1902_v2 }
 0x24e   : > { %v3106_v14 = vpack.c.bf16 %v1889_v12, %v1888_v11  ;;  %v1904_v11 = vld [vmem:[%s4459_s14 + $0x270] sm:$0xff]  ;;  %v1905_v12 = vld [vmem:[%s4459_s14 + $0x278] sm:$0xff] }
 0x24f   : > { %3208 = vtanh.f32 %v1621_v15  ;;  %v1872_v15 = vld [vmem:[%s4459_s14 + $0x170] sm:$0xff] }
 0x250   : > { %3210 = vtanh.f32 %v1622_v16  ;;  %v1873_v16 = vld [vmem:[%s4459_s14 + $0x178] sm:$0xff] }
 0x251   : > { %v3108_v23 = vpack.c.bf16 %v1873_v16, %v1872_v15  ;;  %v1928_v15 = vld [vmem:[%s4463_s18 + $0x18] sm:$0xff] }
 0x259   : > { %v3209_v29 = vpop.eup %3208 }
 0x25a   : > { %2681 = vmatmul.mubr.msk.f32.vlgmr.msra.gmra.mrb[6].mxu1 %vm1636_vm5, %v3209_v29  ;;  %v3211_v36 = vpop.eup %3210 }
 0x25b   : > { %3081 = vmatpush3.bf16.msra.mxu1 %v3080_v25  ;;  %1713 = vmatprep.mubr.f32.mxu1 %v3256_v7  ;;  %v1890_v25 = vld [vmem:[%s4459_s14 + $0x200] sm:$0xff] }
 0x25c   : > { %3083 = vmatprep.subr.bf16.mxu1 %v3082_v26  ;;  %v1891_v26 = vld [vmem:[%s4459_s14 + $0x208] sm:$0xff] }
 0x25d   : > { %v3144_v29 = vpack.c.bf16 %v1891_v26, %v1890_v25  ;;  %v1929_v26 = vld [vmem:[%s4463_s18 + $0x20] sm:$0xff] }
 0x25e   : > { %2682 = vmatmul.mubr.msk.f32.gmra.mrb[8].mxu1 %vm1636_vm5, %v3211_v36  ;;  %v3180_v28 = vpack.c.bf16 %v1931_v27, %v1929_v26 }
 0x25f   : > { %3085 = vmatpush3.bf16.msra.mxu1 %v3084_v32  ;;  %v2869_v40 = vpop.f32.mrb[6].mxu0  ;;  %1998 = vmatprep.mubr.f32.mxu1 %v3868_v6  ;;  %v1883_v6 = vld [vmem:[%s4459_s14 + $0x1c8] sm:$0xff]  ;;  %v1893_v32 = vld [vmem:[%s4459_s14 + $0x218] sm:$0xff] }
 0x260   : > { %v2870_v42 = vpop.f32.mrb[7].mxu0  ;;  %3087 = vmatprep.subr.bf16.mxu1 %v3086_v33  ;;  %v3094_v56 = vpack.c.bf16 %v1883_v6, %v1882_v52  ;;  %v1910_v33 = vld [vmem:[%s4459_s14 + $0x2a0] sm:$0xff]  ;;  %v3148_v35 = vpack.c.bf16 %v1893_v32, %v1892_v31  ;;  %v3158_v6 = vpack.c.bf16 %v1915_v46, %v1914_v45 }
 0x261   : > { %v4151_v51 = vadd.f32 %v2870_v42, %v2869_v40  ;;  %v3150_v36 = vpack.c.bf16 %v1911_v34, %v1910_v33  ;;  %v1912_v40 = vld [vmem:[%s4459_s14 + $0x2b0] sm:$0xff] }
 0x262   : > { %v1896_v42 = vld [vmem:[%s4459_s14 + $0x230] sm:$0xff] }
 0x263   : > { %3089 = vmatpush3.bf16.msra.mxu1 %v3088_v41  ;;  %v2872_v53 = vpop.f32.mrb[8].mxu0 }
 0x264   : > { %v2873_v55 = vpop.f32.mrb[9].mxu0  ;;  %3091 = vmatprep.subr.bf16.mxu1 %v3090_v44  ;;  %v1897_v44 = vld [vmem:[%s4459_s14 + $0x238] sm:$0xff] }
 0x265   : > { %v4165_v59 = vadd.f32 %v2873_v55, %v2872_v53  ;;  %v3156_v52 = vpack.c.bf16 %v1897_v44, %v1896_v42  ;;  %v1898_v53 = vld [vmem:[%s4459_s14 + $0x240] sm:$0xff]  ;;  %v1916_v55 = vld [vmem:[%s4459_s14 + $0x2d0] sm:$0xff] }
 0x267   : > { %3093 = vmatpush3.bf16.msra.mxu1 %v3092_v54  ;;  %v1899_v54 = vld [vmem:[%s4459_s14 + $0x248] sm:$0xff] }
 0x268   : > { %3095 = vmatprep.subr.bf16.mxu1 %v3094_v56  ;;  %v1917_v56 = vld [vmem:[%s4459_s14 + $0x2d8] sm:$0xff]  ;;  %v3160_v57 = vpack.c.bf16 %v1899_v54, %v1898_v53 }
 0x269   : > { %v3162_v58 = vpack.c.bf16 %v1917_v56, %v1916_v55 }
 0x26b   : > { %3097 = vmatpush3.bf16.msra.mxu1 %v3096_v62  ;;  %v1918_v62 = vld [vmem:[%s4459_s14 + $0x2e0] sm:$0xff] }
 0x26c   : > { %3099 = vmatprep.subr.bf16.mxu1 %v3098_v63  ;;  %v1919_v63 = vld [vmem:[%s4459_s14 + $0x2e8] sm:$0xff] }
 0x26d   : > { %v3166_v1 = vpack.c.bf16 %v1919_v63, %v1918_v62 }
 0x26f   : > { %3101 = vmatpush3.bf16.msra.mxu1 %v3100_v4  ;;  %v1920_v4 = vld [vmem:[%s4459_s14 + $0x2f0] sm:$0xff] }
 0x270   : > { %3103 = vmatprep.subr.bf16.mxu1 %v3102_v8  ;;  %v1921_v8 = vld [vmem:[%s4459_s14 + $0x2f8] sm:$0xff] }
 0x271   : > { %v3170_v10 = vpack.c.bf16 %v1921_v8, %v1920_v4 }
 0x273   : > { %3105 = vmatpush3.bf16.msra.mxu1 %v3104_v13  ;;  %v3172_v13 = vpack.c.bf16 %v1905_v12, %v1904_v11 }
 0x274   : > { %3107 = vmatprep.subr.bf16.mxu1 %v3106_v14  ;;  %v1926_v14 = vld [vmem:[%s4463_s18 + $0x8] sm:$0xff] }
 0x275   : > { %v3174_v16 = vpack.c.bf16 %v1928_v15, %v1926_v14 }
 0x277   : > { %3109 = vmatpush3.bf16.msra.mxu1 %v3108_v23  ;;  %v3176_v23 = vpack.c.bf16 %v1927_v21, %v1925_v17  ;;  %3175 = vmatprep.subr.bf16.mxu0 %v3174_v16 }
 0x278   : > { %3143 = vmatprep.subr.bf16.mxu1 %v3142_v24  ;;  %v1932_v24 = vld [vmem:[%s4463_s18 + $0x38] sm:$0xff] }
 0x279   : > { %3177 = vmatpush1.bf16.msra.mxu0 %v3176_v23 }
 0x27a   : > { %1999 = vmatmul.mubr.f32.vlgmr.msra.gmra.mrb[10].mxu1 %v3866_v5  ;;  %v1913_v5 = vld [vmem:[%s4459_s14 + $0x2b8] sm:$0xff] }
 0x27b   : > { %3145 = vmatpush3.bf16.msra.mxu1 %v3144_v29  ;;  %2147 = vmatprep.mubr.f32.mxu1 %v3973_v39  ;;  %v3152_v39 = vpack.c.bf16 %v1895_v38, %v1894_v37  ;;  %v3154_v41 = vpack.c.bf16 %v1913_v5, %v1912_v40  ;;  %v1371_v29 = vld [vmem:[%s4458_s13] sm:$0x3] }
 0x27c   : > { %3147 = vmatprep.subr.bf16.mxu1 %v3146_v30  ;;  %v1629_v31 = vrot.slane %v1371_v29, %v3822_v20  ;;  %v1633_v33 = vrot.slane %v1371_v29, %v3828_v22 }
 0x27f   : > { %3149 = vmatpush3.bf16.msra.mxu1 %v3148_v35 }
 0x280   : > { %3151 = vmatprep.subr.bf16.mxu1 %v3150_v36 }
 0x283   : > { %3153 = vmatpush3.bf16.msra.mxu1 %v3152_v39 }
 0x284   : > { %3155 = vmatprep.subr.bf16.mxu1 %v3154_v41 }
 0x287   : > { %3157 = vmatpush3.bf16.msra.mxu1 %v3156_v52 }
 0x288   : > { %3159 = vmatprep.subr.bf16.mxu1 %v3158_v6 }
 0x28b   : > { %3161 = vmatpush3.bf16.msra.mxu1 %v3160_v57 }
 0x28c   : > { %3163 = vmatprep.subr.bf16.mxu1 %v3162_v58 }
 0x28f   : > { %3165 = vmatpush3.bf16.msra.mxu1 %v3164_v0 }
 0x290   : > { %3167 = vmatprep.subr.bf16.mxu1 %v3166_v1 }
 0x293   : > { %3169 = vmatpush3.bf16.msra.mxu1 %v3168_v9 }
 0x294   : > { %3171 = vmatprep.subr.bf16.mxu1 %v3170_v10 }
 0x297   : > { %3173 = vmatpush3.bf16.msra.mxu1 %v3172_v13 }
 0x29a   : > { %2148 = vmatmul.mubr.f32.vlgmr.msra.gmra.mrb[12].mxu1 %v3983_v43  ;;  %v1930_v43 = vld [vmem:[%s4463_s18 + $0x28] sm:$0xff] }
 0x29b   : > { %v3178_v25 = vpack.c.bf16 %v1932_v24, %v1930_v43 }
 0x29d   : > { %3179 = vmatprep.subr.bf16.mxu0 %v3178_v25 }
 0x29e   : > { %3181 = vmatpush1.bf16.msra.mxu0 %v3180_v28 }
 0x32d   : > { %v1709_v30 = vpop.f32.mrb[6].mxu1 }
 0x32e   : > { %v1711_v32 = vpop.f32.mrb[7].mxu1  ;;  %v1710_v35 = vadd.f32 %v1709_v30, %v1629_v31 }
 0x32f   : > { %v1712_v38 = vadd.f32 %v1711_v32, %v1633_v33 }
 0x331   : > { %v1715_v34 = vpop.f32.mrb[8].mxu1 }
 0x332   : > { %v1716_v36 = vadd.f32 %v1715_v34, %v1629_v31  ;;  %v1717_v37 = vpop.f32.mrb[9].mxu1 }
 0x333   : > { %v1718_v40 = vadd.f32 %v1717_v37, %v1633_v33 }
 0x334   : > { %v1720_v5 = vmax.f32 %v1710_v35, %v1716_v36 }
 0x335   : > { %v1727_v39 = vmax.f32 %v1712_v38, %v1718_v40 }
 0x336   : > { %v1721_v41 = vrot.slane %v1720_v5, 4 }
 0x337   : > { %v1728_v42 = vrot.slane %v1727_v39, 4 }
 0x338   : > { %v1722_v44 = vmax.f32 %v1720_v5, %v1721_v41 }
 0x339   : > { %v1729_v45 = vmax.f32 %v1727_v39, %v1728_v42 }
 0x33a   : > { %v1723_v46 = vrot.slane %v1722_v44, 2 }
 0x33b   : > { %v1730_v52 = vrot.slane %v1729_v45, 2 }
 0x33c   : > { %v1724_v6 = vmax.f32 %v1722_v44, %v1723_v46 }
 0x33d   : > { %v1731_v53 = vmax.f32 %v1729_v45, %v1730_v52 }
 0x33e   : > { %v1725_v54 = vrot.slane %v1724_v6, 1 }
 0x33f   : > { %v1732_v55 = vrot.slane %v1731_v53, 1 }
 0x340   : > { %v1726_v56 = vmax.f32 %v1724_v6, %v1725_v54  ;;  %v2683_v6 = vld [vmem:[%s4460_s15] ss:$0 sm:$0xff] }
 0x341   : > { %v1733_v57 = vmax.f32 %v1731_v53, %v1732_v55 }
 0x342   : > { %v1734_v58 = vsub.f32 %v1710_v35, %v1726_v56  ;;  %v1736_v60 = vsub.f32 %v1716_v36, %v1726_v56 }
 0x343   : > { %v1735_v61 = vsub.f32 %v1712_v38, %v1733_v57  ;;  %v1737_v62 = vsub.f32 %v1718_v40, %v1733_v57 }
 0x344   : > { %v1738_v63 = vmul.f32 1.442695, %v1734_v58  ;;  %v1742_v0 = vmul.f32 1.442695, %v1736_v60 }
 0x345   : > { %v1740_v1 = vmul.f32 1.442695, %v1735_v61  ;;  %v1744_v2 = vmul.f32 1.442695, %v1737_v62  ;;  %v4348_v62 = vld [vmem:[%s4465_s20] sm:$0xff] }
 0x346   : > { %3212 = vpow2.f32 %v1738_v63  ;;  %v2684_v63 = vld [vmem:[%s4461_s16] ss:$0 sm:$0xff] }
 0x347   : > { %3214 = vpow2.f32 %v1742_v0 }
 0x348   : > { %3216 = vpow2.f32 %v1740_v1 }
 0x349   : > { %3218 = vpow2.f32 %v1744_v2 }
 0x34d   : > { %v2834_v3 = vpop.f32.mrb[10].mxu1 }
 0x34e   : > { %v2835_v4 = vpop.f32.mrb[11].mxu1 }
 0x34f   : > { %v2836_v8 = vadd.f32 %v2835_v4, %v2834_v3  ;;  %v2685_v4 = vld [vmem:[%s4462_s17] ss:$0 sm:$0xff] }
 0x350   : > { %v3213_v9 = vpop.eup %3212 }
 0x351   : > { %v3215_v10 = vpop.eup %3214  ;;  %v2007_v11 = vrot.slane %v2836_v8, %v3822_v20 }
 0x352   : > { %v3217_v12 = vpop.eup %3216  ;;  %v1746_v13 = vadd.f32 %v3215_v10, %v3213_v9 }
 0x353   : > { %v3219_v14 = vpop.eup %3218  ;;  %v2075_v15 = vadd.f32 %v4151_v51, %v2007_v11  ;;  %v2080_v16 = vadd.f32 %v4165_v59, %v2007_v11 }
 0x354   : > { %v1747_v17 = vrot.slane %v1746_v13, 4  ;;  %v1753_v21 = vadd.f32 %v3219_v14, %v3217_v12 }
 0x356   : > { %v1748_v23 = vadd.f32 %v1747_v17, %v1746_v13  ;;  %v1754_v43 = vrot.slane %v1753_v21, 4  ;;  %v3257_v13 = vmov 1966171168  }
 0x358   : > { %v1749_v24 = vrot.slane %v1748_v23, 2  ;;  %v1755_v25 = vadd.f32 %v1754_v43, %v1753_v21  ;;  %v2397_v43 = vrot.slane %v4348_v62, %v3828_v22 }
 0x35a   : > { %v1750_v26 = vadd.f32 %v1749_v24, %v1748_v23  ;;  %v1756_v27 = vrot.slane %v1755_v25, 2 }
 0x35c   : > { %v1751_v28 = vrot.slane %v1750_v26, 1  ;;  %v1757_v29 = vadd.f32 %v1756_v27, %v1755_v25 }
 0x35e   : > { %v1752_v30 = vadd.f32 %v1751_v28, %v1750_v26  ;;  %v1758_v31 = vrot.slane %v1757_v29, 1 }
 0x360   : > { %3220 = vrcp.f32 %v1752_v30  ;;  %v1759_v32 = vadd.f32 %v1758_v31, %v1757_v29 }
 0x362   : > { %3222 = vrcp.f32 %v1759_v32 }
 0x36a   : > { %v3221_v33 = vpop.eup %3220 }
 0x36b   : > { %v1761_v34 = vmul.f32 %v3221_v33, %v3213_v9  ;;  %v1764_v51 = vmul.f32 %v3221_v33, %v3215_v10  ;;  %v4359_v9 = vld [vmem:[%s4466_s21] sm:$0xff]  ;;  %v2393_v10 = vrot.slane %v4348_v62, %v3822_v20 }
 0x36c   : > { %v3223_v35 = vpop.eup %3222  ;;  %v2406_v23 = vrot.slane %v4359_v9, %v3822_v20  ;;  %v2410_v28 = vrot.slane %v4359_v9, %v3828_v22 }
 0x36d   : > { %v1766_v59 = vmul.f32 %v1761_v34, %v3842_v47  ;;  %v1768_v36 = vmul.f32 %v1764_v51, %v3844_v48  ;;  %v1763_v37 = vmul.f32 %v3223_v35, %v3217_v12  ;;  %v4336_v38 = vmul.f32 %v3223_v35, %v3219_v14  ;;  %v2907_v40 = vpop.f32.mrb[12].mxu1 }
 0x36e   : > { %v2908_v5 = vpop.f32.mrb[13].mxu1  ;;  %v2419_v14 = vunpack.c.l.s4 %v3257_v13 }
 0x36f   : > { %v1770_v39 = vadd.f32 %v1768_v36, %v1766_v59  ;;  %v1767_v41 = vmul.f32 %v1763_v37, %v3846_v49  ;;  %v1769_v42 = vmul.f32 %v4336_v38, %v3848_v50  ;;  %v2909_v44 = vadd.f32 %v2908_v5, %v2907_v40 }
 0x370   : > { %v2420_v29 = vunpack.c.0.s8 %v2419_v14 }
 0x371   : > { %v1771_v45 = vrot.slane %v1770_v39, 4  ;;  %v1777_v46 = vadd.f32 %v1769_v42, %v1767_v41  ;;  %v2156_v52 = vrot.slane %v2909_v44, %v3822_v20 }
 0x372   : > { %v4374_v44 = vsub.s32 %v2420_v29, %v3819_v19 }
 0x373   : > { %v1772_v53 = vadd.f32 %v1771_v45, %v1770_v39  ;;  %v1778_v54 = vrot.slane %v1777_v46, 4  ;;  %v2157_v55 = vadd.f32 %v2156_v52, %v2075_v15  ;;  %v2158_v56 = vadd.f32 %v2156_v52, %v2080_v16 }
 0x375   : > { %v1773_v57 = vrot.slane %v1772_v53, 2  ;;  %v1779_v58 = vadd.f32 %v1778_v54, %v1777_v46  ;;  %v2165_v60 = vadd.f32 %v2683_v6, %v2157_v55  ;;  %v2166_v61 = vadd.f32 %v2683_v6, %v2158_v56 }
 0x377   : > { %v1774_v0 = vadd.f32 %v1773_v57, %v1772_v53  ;;  %v1780_v1 = vrot.slane %v1779_v58, 2  ;;  %v2167_v2 = vmax.f32 %v2165_v60, 0.0  ;;  %v2168_v3 = vmax.f32 %v2166_v61, 0.0 }
 0x379   : > { %v1775_v8 = vrot.slane %v1774_v0, 1  ;;  %v1781_v11 = vadd.f32 %v1780_v1, %v1779_v58  ;;  %v2175_v12 = vmul.f32 %v2684_v63, %v2167_v2  ;;  %v2176_v15 = vmul.f32 %v2684_v63, %v2168_v3 }
 0x37b   : > { %v1776_v16 = vadd.f32 %v1775_v8, %v1774_v0  ;;  %v1782_v17 = vrot.slane %v1781_v11, 1  ;;  %v2183_v21 = vadd.f32 %v2685_v4, %v2175_v12  ;;  %v2184_v30 = vadd.f32 %v2685_v4, %v2176_v15 }
 0x37c   : > { %v2487_v12 = vsub.s32 5, %v3819_v19 }
 0x37d   : > { %v1784_v24 = vsub.f32 %v3842_v47, %v1776_v16  ;;  %v1786_v25 = vsub.f32 %v3844_v48, %v1776_v16  ;;  %v2400_v26 = vmul.f32 %v2393_v10, %v1776_v16  ;;  %v1783_v27 = vadd.f32 %v1782_v17, %v1781_v11 }
 0x37e   : > { %3224 = vtanh.f32 %v2183_v21  ;;  %v2483_v10 = vsub.s32 4, %v3819_v19 }
 0x37f   : > { %v1788_v31 = vmul.f32 %v1784_v24, %v1784_v24  ;;  %v1790_v32 = vmul.f32 %v1786_v25, %v1786_v25  ;;  %v1785_v33 = vsub.f32 %v3846_v49, %v1783_v27  ;;  %v2413_v35 = vadd.f32 %v2406_v23, %v2400_v26 }
 0x380   : > { %v1787_v59 = vsub.f32 %v3848_v50, %v1783_v27  ;;  %v2401_v36 = vmul.f32 %v2397_v43, %v1783_v27  ;;  %3226 = vtanh.f32 %v2184_v30  ;;  %v2484_v13 = vrot.slane %v4348_v62, %v2483_v10 }
 0x381   : > { %v1792_v40 = vmul.f32 %v1788_v31, %v1761_v34  ;;  %v1794_v5 = vmul.f32 %v1790_v32, %v1764_v51  ;;  %v1789_v39 = vmul.f32 %v1785_v33, %v1785_v33  ;;  %v2496_v21 = vrot.slane %v4359_v9, %v2483_v10 }
 0x382   : > { %v1791_v41 = vmul.f32 %v1787_v59, %v1787_v59  ;;  %v2414_v42 = vadd.f32 %v2410_v28, %v2401_v36  ;;  %v2488_v43 = vrot.slane %v4348_v62, %v2487_v12  ;;  %v2500_v27 = vrot.slane %v4359_v9, %v2487_v12  ;;  %v1933_v59 = vld [vmem:[%s4464_s19] sm:$0x3] }
 0x383   : > { %v1796_v45 = vadd.f32 %v1794_v5, %v1792_v40  ;;  %v1793_v46 = vmul.f32 %v1789_v39, %v1763_v37  ;;  %v2191_v40 = vrot.slane %v1933_v59, %v3822_v20  ;;  %v2195_v39 = vrot.slane %v1933_v59, %v3828_v22 }
 0x384   : > { %v1795_v52 = vmul.f32 %v1791_v41, %v4336_v38  ;;  %v2417_v6 = vcombine.low %v2413_v35, %v2414_v42 }
 0x385   : > { %v1797_v53 = vrot.slane %v1796_v45, 4 }
 0x386   : > { %v1803_v54 = vadd.f32 %v1795_v52, %v1793_v46  ;;  %v2424_v55 = vrot.slane %v2417_v6, %v4374_v44 }
 0x387   : > { %v1798_v34 = vadd.f32 %v1797_v53, %v1796_v45 }
 0x388   : > { %v3225_v37 = vpop.eup %3224  ;;  %v1804_v56 = vrot.slane %v1803_v54, 4  ;;  %v2431_v38 = vrot.slane %v2424_v55, %v4374_v44 }
 0x389   : > { %v1799_v57 = vrot.slane %v1798_v34, 2  ;;  %2686 = vmatmul.mubr.msk.f32.vlgmr.msra.gmra.mrb[10].mxu0 %vm1636_vm5, %v3225_v37 }
 0x38a   : > { %v1805_v58 = vadd.f32 %v1804_v56, %v1803_v54  ;;  %2437 = vst.msk [vmem:[%s4382_s6] sm:$0x3] %vm4385_vm6, %v2431_v38  ;;  %2274 = vmatprep.mubr.f32.mxu0 %v3256_v7  ;;  %v3227_v61 = vpop.eup %3226 }
 0x38b   : > { %v1800_v60 = vadd.f32 %v1799_v57, %v1798_v34 }
 0x38c   : > { %v1806_v63 = vrot.slane %v1805_v58, 2 }
 0x38d   : > { %v1801_v18 = vrot.slane %v1800_v60, 1  ;;  %2687 = vmatmul.mubr.msk.f32.gmra.mrb[12].mxu0 %vm1636_vm5, %v3227_v61 }
 0x38e   : > { %v1807_v0 = vadd.f32 %v1806_v63, %v1805_v58 }
 0x38f   : > { %v1802_v1 = vadd.f32 %v1801_v18, %v1800_v60 }
 0x390   : > { %v1808_v2 = vrot.slane %v1807_v0, 1 }
 0x391   : > { %v1810_v3 = vmax.f32 %v1802_v1, 1e-12 }
 0x392   : > { %v1809_v4 = vadd.f32 %v1808_v2, %v1807_v0 }
 0x393   : > { %3228 = vrsqrt.f32 %v1810_v3  ;;  %vm1814_vm7 = vcmp.eq.f32.partialorder %v1810_v3, inf  ;;  %v1817_v14 = vand.u32 2147483648, %v1810_v3  ;;  %vm1816_vm8 = vcmp.eq.f32.partialorder %v1810_v3, 0.0 }
 0x394   : > { %v1811_v8 = vmax.f32 %v1809_v4, 1e-12 }
 0x396   : > { %3230 = vrsqrt.f32 %v1811_v8  ;;  %vm1821_vm9 = vcmp.eq.f32.partialorder %v1811_v8, inf  ;;  %v1824_v25 = vand.u32 2147483648, %v1811_v8  ;;  %vm1823_vm10 = vcmp.eq.f32.partialorder %v1811_v8, 0.0 }
 0x39d   : > { %v3229_v11 = vpop.eup %3228 }
 0x39e   : > { %v1813_v7 = vmul.f32 %v3229_v11, %v1810_v3 }
 0x3a0   : > { %v3231_v15 = vpop.eup %3230  ;;  %v1815_v16 = vsel %vm1814_vm7, %v1810_v3, %v1813_v7 }
 0x3a1   : > { %v1818_v17 = vsel %vm1816_vm8, %v1817_v14, %v1815_v16  ;;  %v1820_v23 = vmul.f32 %v3231_v15, %v1811_v8 }
 0x3a2   : > { %v2491_v24 = vmul.f32 %v2484_v13, %v1818_v17 }
 0x3a3   : > { %v1822_v26 = vsel %vm1821_vm9, %v1811_v8, %v1820_v23 }
 0x3a4   : > { %v1825_v28 = vsel %vm1823_vm10, %v1824_v25, %v1822_v26  ;;  %v2503_v29 = vadd.f32 %v2496_v21, %v2491_v24 }
 0x3a5   : > { %v2492_v30 = vmul.f32 %v2488_v43, %v1825_v28 }
 0x3a7   : > { %v2504_v31 = vadd.f32 %v2500_v27, %v2492_v30 }
 0x3a9   : > { %v2507_v32 = vcombine.low %v2503_v29, %v2504_v31 }
 0x3ab   : > { %v2514_v33 = vrot.slane %v2507_v32, %v4374_v44 }
 0x3ad   : > { %v2521_v35 = vrot.slane %v2514_v33, %v4374_v44 }
 0x3af   : > { %2523 = vst.msk [vmem:[%s4382_s6 + $0x4] sm:$0x3] %vm4385_vm6, %v2521_v35 }
 0x45c   : > { %v2270_v36 = vpop.f32.mrb[10].mxu0 }
 0x45d   : > { %v2272_v5 = vpop.f32.mrb[11].mxu0  ;;  %v2271_v42 = vadd.f32 %v2270_v36, %v2191_v40 }
 0x45e   : > { %v2273_v52 = vadd.f32 %v2272_v5, %v2195_v39 }
 0x460   : > { %v2276_v41 = vpop.f32.mrb[12].mxu0 }
 0x461   : > { %v2277_v45 = vadd.f32 %v2276_v41, %v2191_v40  ;;  %v2278_v46 = vpop.f32.mrb[13].mxu0 }
 0x462   : > { %v2279_v6 = vadd.f32 %v2278_v46, %v2195_v39 }
 0x463   : > { %v2281_v53 = vmax.f32 %v2271_v42, %v2277_v45 }
 0x464   : > { %v2288_v54 = vmax.f32 %v2273_v52, %v2279_v6 }
 0x465   : > { %v2282_v55 = vrot.slane %v2281_v53, 4 }
 0x466   : > { %v2289_v34 = vrot.slane %v2288_v54, 4 }
 0x467   : > { %v2283_v37 = vmax.f32 %v2281_v53, %v2282_v55 }
 0x468   : > { %v2290_v56 = vmax.f32 %v2288_v54, %v2289_v34  ;;  %v2440_v54 = vsub.s32 2, %v3819_v19 }
 0x469   : > { %v2284_v38 = vrot.slane %v2283_v37, 2 }
 0x46a   : > { %v2291_v57 = vrot.slane %v2290_v56, 2 }
 0x46b   : > { %v2285_v58 = vmax.f32 %v2283_v37, %v2284_v38 }
 0x46c   : > { %v2292_v60 = vmax.f32 %v2290_v56, %v2291_v57  ;;  %v2444_v56 = vsub.s32 3, %v3819_v19  ;;  %v2441_v57 = vrot.slane %v4348_v62, %v2440_v54 }
 0x46d   : > { %v2286_v20 = vrot.slane %v2285_v58, 1 }
 0x46e   : > { %v2293_v61 = vrot.slane %v2292_v60, 1 }
 0x46f   : > { %v2287_v63 = vmax.f32 %v2285_v58, %v2286_v20 }
 0x470   : > { %v2294_v22 = vmax.f32 %v2292_v60, %v2293_v61  ;;  %v2453_v61 = vrot.slane %v4359_v9, %v2440_v54 }
 0x471   : > { %v2295_v18 = vsub.f32 %v2271_v42, %v2287_v63  ;;  %v2297_v0 = vsub.f32 %v2277_v45, %v2287_v63  ;;  %v2445_v63 = vrot.slane %v4348_v62, %v2444_v56 }
 0x472   : > { %v2296_v1 = vsub.f32 %v2273_v52, %v2294_v22  ;;  %v2298_v2 = vsub.f32 %v2279_v6, %v2294_v22 }
 0x473   : > { %v2299_v3 = vmul.f32 1.442695, %v2295_v18  ;;  %v2303_v4 = vmul.f32 1.442695, %v2297_v0 }
 0x474   : > { %v2301_v8 = vmul.f32 1.442695, %v2296_v1  ;;  %v2305_v10 = vmul.f32 1.442695, %v2298_v2  ;;  %v2457_v2 = vrot.slane %v4359_v9, %v2444_v56 }
 0x475   : > { %3232 = vpow2.f32 %v2299_v3 }
 0x476   : > { %3234 = vpow2.f32 %v2303_v4 }
 0x477   : > { %3236 = vpow2.f32 %v2301_v8 }
 0x478   : > { %3238 = vpow2.f32 %v2305_v10 }
 0x47f   : > { %v3233_v11 = vpop.eup %3232 }
 0x480   : > { %v3235_v12 = vpop.eup %3234 }
 0x481   : > { %v3237_v7 = vpop.eup %3236  ;;  %v2307_v13 = vadd.f32 %v3235_v12, %v3233_v11 }
 0x482   : > { %v3239_v14 = vpop.eup %3238 }
 0x483   : > { %v2308_v15 = vrot.slane %v2307_v13, 4  ;;  %v2314_v16 = vadd.f32 %v3239_v14, %v3237_v7 }
 0x485   : > { %v2309_v17 = vadd.f32 %v2308_v15, %v2307_v13  ;;  %v2315_v21 = vrot.slane %v2314_v16, 4 }
 0x487   : > { %v2310_v23 = vrot.slane %v2309_v17, 2  ;;  %v2316_v43 = vadd.f32 %v2315_v21, %v2314_v16 }
 0x489   : > { %v2311_v24 = vadd.f32 %v2310_v23, %v2309_v17  ;;  %v2317_v25 = vrot.slane %v2316_v43, 2 }
 0x48b   : > { %v2312_v26 = vrot.slane %v2311_v24, 1  ;;  %v2318_v27 = vadd.f32 %v2317_v25, %v2316_v43 }
 0x48d   : > { %v2313_v28 = vadd.f32 %v2312_v26, %v2311_v24  ;;  %v2319_v29 = vrot.slane %v2318_v27, 1 }
 0x48f   : > { %3240 = vrcp.f32 %v2313_v28  ;;  %v2320_v30 = vadd.f32 %v2319_v29, %v2318_v27 }
 0x491   : > { %3242 = vrcp.f32 %v2320_v30 }
 0x499   : > { %v3241_v31 = vpop.eup %3240 }
 0x49a   : > { %v2322_v32 = vmul.f32 %v3241_v31, %v3233_v11  ;;  %v2325_v33 = vmul.f32 %v3241_v31, %v3235_v12 }
 0x49b   : > { %v3243_v35 = vpop.eup %3242 }
 0x49c   : > { %v2327_v59 = vmul.f32 %v2322_v32, %v3842_v47  ;;  %v2329_v36 = vmul.f32 %v2325_v33, %v3844_v48  ;;  %v2324_v40 = vmul.f32 %v3243_v35, %v3237_v7  ;;  %v2326_v5 = vmul.f32 %v3243_v35, %v3239_v14 }
 0x49e   : > { %v2331_v39 = vadd.f32 %v2329_v36, %v2327_v59  ;;  %v2328_v41 = vmul.f32 %v2324_v40, %v3846_v49  ;;  %v2330_v42 = vmul.f32 %v2326_v5, %v3848_v50 }
 0x4a0   : > { %v2332_v45 = vrot.slane %v2331_v39, 4  ;;  %v2338_v46 = vadd.f32 %v2330_v42, %v2328_v41 }
 0x4a2   : > { %v2333_v52 = vadd.f32 %v2332_v45, %v2331_v39  ;;  %v2339_v6 = vrot.slane %v2338_v46, 4  ;;  %v2530_v39 = vsub.s32 7, %v3819_v19 }
 0x4a4   : > { %v2334_v53 = vrot.slane %v2333_v52, 2  ;;  %v2340_v55 = vadd.f32 %v2339_v6, %v2338_v46 }
 0x4a6   : > { %v2335_v34 = vadd.f32 %v2334_v53, %v2333_v52  ;;  %v2341_v37 = vrot.slane %v2340_v55, 2 }
 0x4a8   : > { %v2336_v38 = vrot.slane %v2335_v34, 1  ;;  %v2342_v58 = vadd.f32 %v2341_v37, %v2340_v55  ;;  %v2531_v55 = vrot.slane %v4348_v62, %v2530_v39 }
 0x4aa   : > { %v2337_v60 = vadd.f32 %v2336_v38, %v2335_v34  ;;  %v2343_v20 = vrot.slane %v2342_v58, 1 }
 0x4ac   : > { %v2345_v22 = vsub.f32 %v3842_v47, %v2337_v60  ;;  %v2347_v18 = vsub.f32 %v3844_v48, %v2337_v60  ;;  %v2448_v0 = vmul.f32 %v2441_v57, %v2337_v60  ;;  %v2344_v1 = vadd.f32 %v2343_v20, %v2342_v58 }
 0x4ae   : > { %v2349_v3 = vmul.f32 %v2345_v22, %v2345_v22  ;;  %v2351_v4 = vmul.f32 %v2347_v18, %v2347_v18  ;;  %v2346_v8 = vsub.f32 %v3846_v49, %v2344_v1  ;;  %v2460_v10 = vadd.f32 %v2453_v61, %v2448_v0 }
 0x4af   : > { %v2348_v11 = vsub.f32 %v3848_v50, %v2344_v1  ;;  %v2449_v12 = vmul.f32 %v2445_v63, %v2344_v1 }
 0x4b0   : > { %v2353_v7 = vmul.f32 %v2349_v3, %v2322_v32  ;;  %v2355_v13 = vmul.f32 %v2351_v4, %v2325_v33  ;;  %v2350_v14 = vmul.f32 %v2346_v8, %v2346_v8 }
 0x4b1   : > { %v2352_v15 = vmul.f32 %v2348_v11, %v2348_v11  ;;  %v2461_v47 = vadd.f32 %v2457_v2, %v2449_v12 }
 0x4b2   : > { %v2357_v16 = vadd.f32 %v2355_v13, %v2353_v7  ;;  %v2354_v48 = vmul.f32 %v2350_v14, %v2324_v40  ;;  %v2526_v40 = vsub.s32 6, %v3819_v19  ;;  %v2543_v19 = vrot.slane %v4359_v9, %v2530_v39 }
 0x4b3   : > { %v2356_v17 = vmul.f32 %v2352_v15, %v2326_v5  ;;  %v2464_v21 = vcombine.low %v2460_v10, %v2461_v47 }
 0x4b4   : > { %v2358_v23 = vrot.slane %v2357_v16, 4  ;;  %v2527_v42 = vrot.slane %v4348_v62, %v2526_v40  ;;  %v2539_v53 = vrot.slane %v4359_v9, %v2526_v40 }
 0x4b5   : > { %v2364_v43 = vadd.f32 %v2356_v17, %v2354_v48  ;;  %v2471_v24 = vrot.slane %v2464_v21, %v4374_v44 }
 0x4b6   : > { %v2359_v25 = vadd.f32 %v2358_v23, %v2357_v16 }
 0x4b7   : > { %v2365_v49 = vrot.slane %v2364_v43, 4  ;;  %v2478_v26 = vrot.slane %v2471_v24, %v4374_v44 }
 0x4b8   : > { %v2360_v50 = vrot.slane %v2359_v25, 2 }
 0x4b9   : > { %v2366_v27 = vadd.f32 %v2365_v49, %v2364_v43  ;;  %2480 = vst.msk [vmem:[%s4382_s6 + $0x2] sm:$0x3] %vm4385_vm6, %v2478_v26 }
 0x4ba   : > { %v2361_v28 = vadd.f32 %v2360_v50, %v2359_v25 }
 0x4bb   : > { %v2367_v29 = vrot.slane %v2366_v27, 2 }
 0x4bc   : > { %v2362_v30 = vrot.slane %v2361_v28, 1 }
 0x4bd   : > { %v2368_v31 = vadd.f32 %v2367_v29, %v2366_v27 }
 0x4be   : > { %v2363_v32 = vadd.f32 %v2362_v30, %v2361_v28 }
 0x4bf   : > { %v2369_v33 = vrot.slane %v2368_v31, 1 }
 0x4c0   : > { %v2371_v35 = vmax.f32 %v2363_v32, 1e-12 }
 0x4c1   : > { %v2370_v59 = vadd.f32 %v2369_v33, %v2368_v31 }
 0x4c2   : > { %3244 = vrsqrt.f32 %v2371_v35  ;;  %vm2375_vm11 = vcmp.eq.f32.partialorder %v2371_v35, inf  ;;  %v2378_v45 = vand.u32 2147483648, %v2371_v35  ;;  %vm2377_vm12 = vcmp.eq.f32.partialorder %v2371_v35, 0.0 }
 0x4c3   : > { %v2372_v36 = vmax.f32 %v2370_v59, 1e-12 }
 0x4c5   : > { %3246 = vrsqrt.f32 %v2372_v36  ;;  %vm2382_vm13 = vcmp.eq.f32.partialorder %v2372_v36, inf  ;;  %v2385_v37 = vand.u32 2147483648, %v2372_v36  ;;  %vm2384_vm14 = vcmp.eq.f32.partialorder %v2372_v36, 0.0 }
 0x4cc   : > { %v3245_v5 = vpop.eup %3244 }
 0x4cd   : > { %v2374_v41 = vmul.f32 %v3245_v5, %v2371_v35 }
 0x4cf   : > { %v3247_v46 = vpop.eup %3246  ;;  %v2376_v52 = vsel %vm2375_vm11, %v2371_v35, %v2374_v41 }
 0x4d0   : > { %v2379_v6 = vsel %vm2377_vm12, %v2378_v45, %v2376_v52  ;;  %v2381_v54 = vmul.f32 %v3247_v46, %v2372_v36 }
 0x4d1   : > { %v2534_v34 = vmul.f32 %v2527_v42, %v2379_v6 }
 0x4d2   : > { %v2383_v56 = vsel %vm2382_vm13, %v2372_v36, %v2381_v54 }
 0x4d3   : > { %v2386_v38 = vsel %vm2384_vm14, %v2385_v37, %v2383_v56  ;;  %v2546_v57 = vadd.f32 %v2539_v53, %v2534_v34 }
 0x4d4   : > { %v2535_v58 = vmul.f32 %v2531_v55, %v2386_v38 }
 0x4d6   : > { %v2547_v60 = vadd.f32 %v2543_v19, %v2535_v58 }
 0x4d8   : > { %v2550_v20 = vcombine.low %v2546_v57, %v2547_v60 }
 0x4da   : > { %v2557_v61 = vrot.slane %v2550_v20, %v4374_v44 }
 0x4dc   : > { %v2564_v63 = vrot.slane %v2557_v61, %v4374_v44 }
 0x4de   : > { %2566 = vst.msk [vmem:[%s4382_s6 + $0x6] sm:$0x3] %vm4385_vm6, %v2564_v63 }
 0x4df PF: > { %s4487_s25 = sld [smem:[#allocation2_spill]] }
 0x4e5   : > { %s32_s3 = sadd.s32 1, %s4487_s25  }
 0x4e6   : > { %p29_p4 = scmp.ge.s32.totalorder %s32_s3, 4  }
 0x4e8   :  { %31 = sbr.rel (!%p29_p4) target bundleno = 8 (0x8), region = 147 }

</bundles_post_ra>
